<compile_context>
chip_gen: v7x
topology: tpu7x:2x2x1
jax: 0.10.0
libtpu: 0.0.40
codegen_flags: <defaults>
</compile_context>

<pallas_src>
import functools

import jax
import jax.numpy as jnp
from jax import lax
from jax.experimental import pallas as pl
from jax.experimental.pallas import tpu as pltpu


def _round_up(x, m):
    return (x + m - 1) // m * m


def _pick_batch_block(n, h, w, target_m=256):
    """Smallest divisor of n such that the matmul M-dim (b*h*w) >= target_m."""
    for b in range(1, n + 1):
        if n % b == 0 and b * h * w >= target_m:
            return b
    return n


def _basic_block_kernel(x_ref, w1_ref, s1_ref, b1_ref, w2_ref, s2_ref, b2_ref,
                        out_ref, mid_ref, acc_ref, *, B, H, W, C):
    """One batch block per grid step.

    x_ref   : (B, H+2, W+2, C) bf16   spatially padded, channel-padded input
    w1_ref  : (3, 3, C, C)     bf16   conv1 weights (HWIO, channel-padded)
    s1/b1   : (1, C)           f32    folded BN1 scale / bias
    w2_ref  : (3, 3, C, C)     bf16   conv2 weights
    s2/b2   : (1, C)           f32    folded BN2 scale / bias
    out_ref : (B, H, W, C)     f32
    mid_ref : VMEM scratch (B, H+2, W+2, C) bf16  padded conv1 output
    acc_ref : VMEM scratch (B*H*W, C) f32         matmul accumulator
    """
    M = B * H * W

    def conv3x3(src_ref, w_ref):
        # 3x3 / stride-1 conv as 9 lane-dense bf16 matmuls (M,C)x(C,C) with fp32
        # accumulation in the VMEM scratch accumulator.
        first = True
        for ky in range(3):
            for kx in range(3):
                patch = src_ref[:, ky:ky + H, kx:kx + W, :].reshape(M, C)
                contrib = jnp.dot(patch, w_ref[ky, kx],
                                  preferred_element_type=jnp.float32)
                if first:
                    acc_ref[...] = contrib
                    first = False
                else:
                    acc_ref[...] += contrib
        return acc_ref[...]

    # ---------------- conv1 + BN1 + ReLU ----------------
    mid = jnp.maximum(conv3x3(x_ref, w1_ref) * s1_ref[...] + b1_ref[...], 0.0)

    # Stage bf16 intermediate with a zero halo for conv2.  Only the 1-wide
    # border is cleared (the interior is fully overwritten every step), which
    # is cheap and safe under megacore grid sharding.
    mid_ref[:, 0:1, :, :] = jnp.zeros((B, 1, W + 2, C), jnp.bfloat16)
    mid_ref[:, H + 1:H + 2, :, :] = jnp.zeros((B, 1, W + 2, C), jnp.bfloat16)
    mid_ref[:, :, 0:1, :] = jnp.zeros((B, H + 2, 1, C), jnp.bfloat16)
    mid_ref[:, :, W + 1:W + 2, :] = jnp.zeros((B, H + 2, 1, C), jnp.bfloat16)
    mid_ref[:, 1:H + 1, 1:W + 1, :] = mid.astype(jnp.bfloat16).reshape(B, H, W, C)

    # ---------------- conv2 + BN2 + residual + ReLU ----------------
    out = conv3x3(mid_ref, w2_ref) * s2_ref[...] + b2_ref[...]
    identity = x_ref[:, 1:H + 1, 1:W + 1, :].reshape(M, C).astype(jnp.float32)
    out = jnp.maximum(out + identity, 0.0)
    out_ref[...] = out.reshape(B, H, W, C)


def basic_block_forward(x_nchw, w1, bn1, w2, bn2, eps=1e-5, batch_block=None):
    """x_nchw: (N, Cin, H, W) fp32.  w*: (Cout, Cin, 3, 3) fp32 (PyTorch OIHW).
    bn*: dict with gamma, beta, mean, var each of shape (Cout,).
    Returns (N, Cout, H, W) fp32. Only the stride=1 / no-downsample
    configuration is implemented (identity must match the output shape)."""
    N, Cin, H, W = x_nchw.shape
    Cout = w1.shape[0]
    assert Cin == Cout, "no-downsample BasicBlock requires inplanes == planes"
    # TODO(synk): stride>1 / downsample branch not implemented (module default is None).

    C = Cin
    Cp = _round_up(C, 128)                       # lane-dense channel dimension
    B_blk = batch_block or _pick_batch_block(N, H, W)

    # NCHW -> NHWC; fuse channel pad (-> Cp), 1-pixel spatial halo and bf16 cast
    # into one pass.
    x_nhwc = jnp.transpose(x_nchw, (0, 2, 3, 1))
    x_pad = jnp.pad(x_nhwc, ((0, 0), (1, 1), (1, 1), (0, Cp - C))
                    ).astype(jnp.bfloat16)

    # OIHW -> HWIO, channel pad, bf16.
    def prep_w(w):
        w_hwio = jnp.transpose(w, (2, 3, 1, 0))
        return jnp.pad(w_hwio, ((0, 0), (0, 0), (0, Cp - C), (0, Cp - C))
                       ).astype(jnp.bfloat16)

    w1p, w2p = prep_w(w1), prep_w(w2)

    # Fold inference-mode BatchNorm into per-channel scale / bias (fp32).
    def fold_bn(bn):
        scale = bn["gamma"] / jnp.sqrt(bn["var"] + eps)
        bias = bn["beta"] - bn["mean"] * scale
        scale = jnp.pad(scale, (0, Cp - C)).reshape(1, Cp).astype(jnp.float32)
        bias = jnp.pad(bias, (0, Cp - C)).reshape(1, Cp).astype(jnp.float32)
        return scale, bias

    s1, b1 = fold_bn(bn1)
    s2, b2 = fold_bn(bn2)

    kernel = functools.partial(_basic_block_kernel, B=B_blk, H=H, W=W, C=Cp)

    out_pad = pl.pallas_call(
        kernel,
        out_shape=jax.ShapeDtypeStruct((N, H, W, Cp), jnp.float32),
        grid_spec=pltpu.PrefetchScalarGridSpec(
            num_scalar_prefetch=0,
            grid=(N // B_blk,),
            in_specs=[
                pl.BlockSpec((B_blk, H + 2, W + 2, Cp), lambda n: (n, 0, 0, 0)),
                pl.BlockSpec((3, 3, Cp, Cp), lambda n: (0, 0, 0, 0)),
                pl.BlockSpec((1, Cp), lambda n: (0, 0)),
                pl.BlockSpec((1, Cp), lambda n: (0, 0)),
                pl.BlockSpec((3, 3, Cp, Cp), lambda n: (0, 0, 0, 0)),
                pl.BlockSpec((1, Cp), lambda n: (0, 0)),
                pl.BlockSpec((1, Cp), lambda n: (0, 0)),
            ],
            out_specs=pl.BlockSpec((B_blk, H, W, Cp), lambda n: (n, 0, 0, 0)),
            scratch_shapes=[
                pltpu.VMEM((B_blk, H + 2, W + 2, Cp), jnp.bfloat16),
                pltpu.VMEM((B_blk * H * W, Cp), jnp.float32),
            ],
        ),
        compiler_params=pltpu.CompilerParams(dimension_semantics=("parallel",)),
    )(x_pad, w1p, s1, b1, w2p, s2, b2)

    # drop channel padding, NHWC -> NCHW
    return jnp.transpose(out_pad[..., :C], (0, 3, 1, 2))


def _reference_forward(x_nchw, w1, bn1, w2, bn2, eps=1e-5):
    """Pure-JAX reference mirroring the kernel's mixed precision:
    bf16 conv inputs / weights, fp32 accumulation and elementwise math,
    bf16 residual (same values the kernel uses)."""
    def bf(t):
        return t.astype(jnp.bfloat16).astype(jnp.float32)

    def conv(a, w):
        return lax.conv_general_dilated(
            a, w, window_strides=(1, 1), padding=((1, 1), (1, 1)),
            dimension_numbers=("NCHW", "OIHW", "NCHW"),
            precision=lax.Precision.HIGHEST)

    def bn(a, p):
        scale = p["gamma"] / jnp.sqrt(p["var"] + eps)
        bias = p["beta"] - p["mean"] * scale
        return a * scale.reshape(1, -1, 1, 1) + bias.reshape(1, -1, 1, 1)

    x_b = bf(x_nchw)
    out = jax.nn.relu(bn(conv(x_b, bf(w1)), bn1))
    out = bn(conv(bf(out), bf(w2)), bn2)
    return jax.nn.relu(out + x_b)


if __name__ == "__main__":
    key = jax.random.PRNGKey(0)
    N, C, Hs, Ws = 2, 4, 16, 16  # inplanes = planes = 4, stride = 1

    k_x, k_w1, k_w2 = jax.random.split(key, 3)
    x = jax.random.normal(k_x, (N, C, Hs, Ws), dtype=jnp.float32)
    w1 = jax.random.normal(k_w1, (C, C, 3, 3), dtype=jnp.float32) * 0.1
    w2 = jax.random.normal(k_w2, (C, C, 3, 3), dtype=jnp.float32) * 0.1

    # deterministic (non-trivial) BatchNorm parameters, inference mode
    c_idx = jnp.arange(C, dtype=jnp.float32)
    bn1 = {"gamma": 1.0 + 0.1 * c_idx, "beta": 0.05 * c_idx,
           "mean": 0.01 * c_idx, "var": 1.0 + 0.2 * c_idx}
    bn2 = {"gamma": 1.0 - 0.05 * c_idx, "beta": -0.02 * c_idx,
           "mean": -0.01 * c_idx, "var": 1.0 + 0.1 * c_idx}

    out = basic_block_forward(x, w1, bn1, w2, bn2)
    out = jax.block_until_ready(out)

    ref = jax.block_until_ready(_reference_forward(x, w1, bn1, w2, bn2))
    assert out.shape == (N, C, Hs, Ws)
    assert jnp.allclose(out, ref, atol=1e-3, rtol=1e-3), \
        f"max abs err {jnp.max(jnp.abs(out - ref))}"

    print("KERNEL_OK")
</pallas_src>

<mosaic_0001>
module attributes {stable_mosaic.version = 11 : i64} {
  func.func @_basic_block_kernel(%arg0: i32, %arg1: memref<1x18x18x128xbf16, #tpu.memory_space<vmem>>, %arg2: memref<3x3x128x128xbf16, #tpu.memory_space<vmem>>, %arg3: memref<1x128xf32, #tpu.memory_space<vmem>>, %arg4: memref<1x128xf32, #tpu.memory_space<vmem>>, %arg5: memref<3x3x128x128xbf16, #tpu.memory_space<vmem>>, %arg6: memref<1x128xf32, #tpu.memory_space<vmem>>, %arg7: memref<1x128xf32, #tpu.memory_space<vmem>>, %arg8: memref<1x16x16x128xf32, #tpu.memory_space<vmem>>, %arg9: memref<1x18x18x128xbf16, #tpu.memory_space<vmem>>, %arg10: memref<256x128xf32, #tpu.memory_space<vmem>>) attributes {dimension_semantics = [#tpu.dimension_semantics<parallel>], iteration_bounds = array<i64: 2>, scalar_prefetch = 0 : i64, scratch_operands = 2 : i64, tpu.core_type = #tpu.core_type<tc>, window_params = [{transform_indices = @transform_0, window_bounds = array<i64: 1, 18, 18, 128>}, {pipeline_mode = #tpu.pipeline_mode<synchronous>, transform_indices = @transform_1, window_bounds = array<i64: 3, 3, 128, 128>}, {pipeline_mode = #tpu.pipeline_mode<synchronous>, transform_indices = @transform_2, window_bounds = array<i64: 1, 128>}, {pipeline_mode = #tpu.pipeline_mode<synchronous>, transform_indices = @transform_3, window_bounds = array<i64: 1, 128>}, {pipeline_mode = #tpu.pipeline_mode<synchronous>, transform_indices = @transform_4, window_bounds = array<i64: 3, 3, 128, 128>}, {pipeline_mode = #tpu.pipeline_mode<synchronous>, transform_indices = @transform_5, window_bounds = array<i64: 1, 128>}, {pipeline_mode = #tpu.pipeline_mode<synchronous>, transform_indices = @transform_6, window_bounds = array<i64: 1, 128>}, {transform_indices = @transform_7, window_bounds = array<i64: 1, 16, 16, 128>}]} {
    %c0 = arith.constant 0 : index
    %c0_0 = arith.constant 0 : index
    %c0_1 = arith.constant 0 : index
    %c0_2 = arith.constant 0 : index
    %0 = vector.load %arg1[%c0, %c0_0, %c0_1, %c0_2] : memref<1x18x18x128xbf16, #tpu.memory_space<vmem>>, vector<1x16x16x128xbf16>
    %1 = vector.shape_cast %0 : vector<1x16x16x128xbf16> to vector<256x128xbf16>
    %c0_3 = arith.constant 0 : index
    %c0_4 = arith.constant 0 : index
    %c0_5 = arith.constant 0 : index
    %c0_6 = arith.constant 0 : index
    %2 = vector.load %arg2[%c0_3, %c0_4, %c0_5, %c0_6] : memref<3x3x128x128xbf16, #tpu.memory_space<vmem>>, vector<1x1x128x128xbf16>
    %3 = vector.shape_cast %2 : vector<1x1x128x128xbf16> to vector<128x128xbf16>
    %cst = arith.constant dense<0.000000e+00> : vector<256x128xf32>
    %4 = tpu.matmul %1, %3, %cst {dimension_numbers = #tpu.dot_dimension_numbers<[1], [0], [0], [1], [0, 0, 1, 1], [], []>} : vector<256x128xbf16>, vector<128x128xbf16>, vector<256x128xf32> -> vector<256x128xf32>
    %c0_7 = arith.constant 0 : index
    %c0_8 = arith.constant 0 : index
    %5 = vector.load %arg10[%c0_7, %c0_8] : memref<256x128xf32, #tpu.memory_space<vmem>>, vector<256x128xf32>
    tpu.vector_store %arg10[%c0_7, %c0_8], %4 {strides = array<i32>} : memref<256x128xf32, #tpu.memory_space<vmem>>, vector<256x128xf32>,
    %c0_9 = arith.constant 0 : index
    %c0_10 = arith.constant 0 : index
    %c1 = arith.constant 1 : index
    %c0_11 = arith.constant 0 : index
    %6 = vector.load %arg1[%c0_9, %c0_10, %c1, %c0_11] : memref<1x18x18x128xbf16, #tpu.memory_space<vmem>>, vector<1x16x16x128xbf16>
    %7 = vector.shape_cast %6 : vector<1x16x16x128xbf16> to vector<256x128xbf16>
    %c0_12 = arith.constant 0 : index
    %c1_13 = arith.constant 1 : index
    %c0_14 = arith.constant 0 : index
    %c0_15 = arith.constant 0 : index
    %8 = vector.load %arg2[%c0_12, %c1_13, %c0_14, %c0_15] : memref<3x3x128x128xbf16, #tpu.memory_space<vmem>>, vector<1x1x128x128xbf16>
    %9 = vector.shape_cast %8 : vector<1x1x128x128xbf16> to vector<128x128xbf16>
    %cst_16 = arith.constant dense<0.000000e+00> : vector<256x128xf32>
    %10 = tpu.matmul %7, %9, %cst_16 {dimension_numbers = #tpu.dot_dimension_numbers<[1], [0], [0], [1], [0, 0, 1, 1], [], []>} : vector<256x128xbf16>, vector<128x128xbf16>, vector<256x128xf32> -> vector<256x128xf32>
    %c0_17 = arith.constant 0 : index
    %c0_18 = arith.constant 0 : index
    %11 = vector.load %arg10[%c0_17, %c0_18] : memref<256x128xf32, #tpu.memory_space<vmem>>, vector<256x128xf32>
    %12 = arith.addf %11, %10 : vector<256x128xf32>
    %c0_19 = arith.constant 0 : index
    %c0_20 = arith.constant 0 : index
    %13 = vector.load %arg10[%c0_19, %c0_20] : memref<256x128xf32, #tpu.memory_space<vmem>>, vector<256x128xf32>
    tpu.vector_store %arg10[%c0_19, %c0_20], %12 {strides = array<i32>} : memref<256x128xf32, #tpu.memory_space<vmem>>, vector<256x128xf32>,
    %c0_21 = arith.constant 0 : index
    %c0_22 = arith.constant 0 : index
    %c2 = arith.constant 2 : index
    %c0_23 = arith.constant 0 : index
    %14 = vector.load %arg1[%c0_21, %c0_22, %c2, %c0_23] : memref<1x18x18x128xbf16, #tpu.memory_space<vmem>>, vector<1x16x16x128xbf16>
    %15 = vector.shape_cast %14 : vector<1x16x16x128xbf16> to vector<256x128xbf16>
    %c0_24 = arith.constant 0 : index
    %c2_25 = arith.constant 2 : index
    %c0_26 = arith.constant 0 : index
    %c0_27 = arith.constant 0 : index
    %16 = vector.load %arg2[%c0_24, %c2_25, %c0_26, %c0_27] : memref<3x3x128x128xbf16, #tpu.memory_space<vmem>>, vector<1x1x128x128xbf16>
    %17 = vector.shape_cast %16 : vector<1x1x128x128xbf16> to vector<128x128xbf16>
    %cst_28 = arith.constant dense<0.000000e+00> : vector<256x128xf32>
    %18 = tpu.matmul %15, %17, %cst_28 {dimension_numbers = #tpu.dot_dimension_numbers<[1], [0], [0], [1], [0, 0, 1, 1], [], []>} : vector<256x128xbf16>, vector<128x128xbf16>, vector<256x128xf32> -> vector<256x128xf32>
    %c0_29 = arith.constant 0 : index
    %c0_30 = arith.constant 0 : index
    %19 = vector.load %arg10[%c0_29, %c0_30] : memref<256x128xf32, #tpu.memory_space<vmem>>, vector<256x128xf32>
    %20 = arith.addf %19, %18 : vector<256x128xf32>
    %c0_31 = arith.constant 0 : index
    %c0_32 = arith.constant 0 : index
    %21 = vector.load %arg10[%c0_31, %c0_32] : memref<256x128xf32, #tpu.memory_space<vmem>>, vector<256x128xf32>
    tpu.vector_store %arg10[%c0_31, %c0_32], %20 {strides = array<i32>} : memref<256x128xf32, #tpu.memory_space<vmem>>, vector<256x128xf32>,
    %c0_33 = arith.constant 0 : index
    %c1_34 = arith.constant 1 : index
    %c0_35 = arith.constant 0 : index
    %c0_36 = arith.constant 0 : index
    %22 = vector.load %arg1[%c0_33, %c1_34, %c0_35, %c0_36] : memref<1x18x18x128xbf16, #tpu.memory_space<vmem>>, vector<1x16x16x128xbf16>
    %23 = vector.shape_cast %22 : vector<1x16x16x128xbf16> to vector<256x128xbf16>
    %c1_37 = arith.constant 1 : index
    %c0_38 = arith.constant 0 : index
    %c0_39 = arith.constant 0 : index
    %c0_40 = arith.constant 0 : index
    %24 = vector.load %arg2[%c1_37, %c0_38, %c0_39, %c0_40] : memref<3x3x128x128xbf16, #tpu.memory_space<vmem>>, vector<1x1x128x128xbf16>
    %25 = vector.shape_cast %24 : vector<1x1x128x128xbf16> to vector<128x128xbf16>
    %cst_41 = arith.constant dense<0.000000e+00> : vector<256x128xf32>
    %26 = tpu.matmul %23, %25, %cst_41 {dimension_numbers = #tpu.dot_dimension_numbers<[1], [0], [0], [1], [0, 0, 1, 1], [], []>} : vector<256x128xbf16>, vector<128x128xbf16>, vector<256x128xf32> -> vector<256x128xf32>
    %c0_42 = arith.constant 0 : index
    %c0_43 = arith.constant 0 : index
    %27 = vector.load %arg10[%c0_42, %c0_43] : memref<256x128xf32, #tpu.memory_space<vmem>>, vector<256x128xf32>
    %28 = arith.addf %27, %26 : vector<256x128xf32>
    %c0_44 = arith.constant 0 : index
    %c0_45 = arith.constant 0 : index
    %29 = vector.load %arg10[%c0_44, %c0_45] : memref<256x128xf32, #tpu.memory_space<vmem>>, vector<256x128xf32>
    tpu.vector_store %arg10[%c0_44, %c0_45], %28 {strides = array<i32>} : memref<256x128xf32, #tpu.memory_space<vmem>>, vector<256x128xf32>,
    %c0_46 = arith.constant 0 : index
    %c1_47 = arith.constant 1 : index
    %c1_48 = arith.constant 1 : index
    %c0_49 = arith.constant 0 : index
    %30 = vector.load %arg1[%c0_46, %c1_47, %c1_48, %c0_49] : memref<1x18x18x128xbf16, #tpu.memory_space<vmem>>, vector<1x16x16x128xbf16>
    %31 = vector.shape_cast %30 : vector<1x16x16x128xbf16> to vector<256x128xbf16>
    %c1_50 = arith.constant 1 : index
    %c1_51 = arith.constant 1 : index
    %c0_52 = arith.constant 0 : index
    %c0_53 = arith.constant 0 : index
    %32 = vector.load %arg2[%c1_50, %c1_51, %c0_52, %c0_53] : memref<3x3x128x128xbf16, #tpu.memory_space<vmem>>, vector<1x1x128x128xbf16>
    %33 = vector.shape_cast %32 : vector<1x1x128x128xbf16> to vector<128x128xbf16>
    %cst_54 = arith.constant dense<0.000000e+00> : vector<256x128xf32>
    %34 = tpu.matmul %31, %33, %cst_54 {dimension_numbers = #tpu.dot_dimension_numbers<[1], [0], [0], [1], [0, 0, 1, 1], [], []>} : vector<256x128xbf16>, vector<128x128xbf16>, vector<256x128xf32> -> vector<256x128xf32>
    %c0_55 = arith.constant 0 : index
    %c0_56 = arith.constant 0 : index
    %35 = vector.load %arg10[%c0_55, %c0_56] : memref<256x128xf32, #tpu.memory_space<vmem>>, vector<256x128xf32>
    %36 = arith.addf %35, %34 : vector<256x128xf32>
    %c0_57 = arith.constant 0 : index
    %c0_58 = arith.constant 0 : index
    %37 = vector.load %arg10[%c0_57, %c0_58] : memref<256x128xf32, #tpu.memory_space<vmem>>, vector<256x128xf32>
    tpu.vector_store %arg10[%c0_57, %c0_58], %36 {strides = array<i32>} : memref<256x128xf32, #tpu.memory_space<vmem>>, vector<256x128xf32>,
    %c0_59 = arith.constant 0 : index
    %c1_60 = arith.constant 1 : index
    %c2_61 = arith.constant 2 : index
    %c0_62 = arith.constant 0 : index
    %38 = vector.load %arg1[%c0_59, %c1_60, %c2_61, %c0_62] : memref<1x18x18x128xbf16, #tpu.memory_space<vmem>>, vector<1x16x16x128xbf16>
    %39 = vector.shape_cast %38 : vector<1x16x16x128xbf16> to vector<256x128xbf16>
    %c1_63 = arith.constant 1 : index
    %c2_64 = arith.constant 2 : index
    %c0_65 = arith.constant 0 : index
    %c0_66 = arith.constant 0 : index
    %40 = vector.load %arg2[%c1_63, %c2_64, %c0_65, %c0_66] : memref<3x3x128x128xbf16, #tpu.memory_space<vmem>>, vector<1x1x128x128xbf16>
    %41 = vector.shape_cast %40 : vector<1x1x128x128xbf16> to vector<128x128xbf16>
    %cst_67 = arith.constant dense<0.000000e+00> : vector<256x128xf32>
    %42 = tpu.matmul %39, %41, %cst_67 {dimension_numbers = #tpu.dot_dimension_numbers<[1], [0], [0], [1], [0, 0, 1, 1], [], []>} : vector<256x128xbf16>, vector<128x128xbf16>, vector<256x128xf32> -> vector<256x128xf32>
    %c0_68 = arith.constant 0 : index
    %c0_69 = arith.constant 0 : index
    %43 = vector.load %arg10[%c0_68, %c0_69] : memref<256x128xf32, #tpu.memory_space<vmem>>, vector<256x128xf32>
    %44 = arith.addf %43, %42 : vector<256x128xf32>
    %c0_70 = arith.constant 0 : index
    %c0_71 = arith.constant 0 : index
    %45 = vector.load %arg10[%c0_70, %c0_71] : memref<256x128xf32, #tpu.memory_space<vmem>>, vector<256x128xf32>
    tpu.vector_store %arg10[%c0_70, %c0_71], %44 {strides = array<i32>} : memref<256x128xf32, #tpu.memory_space<vmem>>, vector<256x128xf32>,
    %c0_72 = arith.constant 0 : index
    %c2_73 = arith.constant 2 : index
    %c0_74 = arith.constant 0 : index
    %c0_75 = arith.constant 0 : index
    %46 = vector.load %arg1[%c0_72, %c2_73, %c0_74, %c0_75] : memref<1x18x18x128xbf16, #tpu.memory_space<vmem>>, vector<1x16x16x128xbf16>
    %47 = vector.shape_cast %46 : vector<1x16x16x128xbf16> to vector<256x128xbf16>
    %c2_76 = arith.constant 2 : index
    %c0_77 = arith.constant 0 : index
    %c0_78 = arith.constant 0 : index
    %c0_79 = arith.constant 0 : index
    %48 = vector.load %arg2[%c2_76, %c0_77, %c0_78, %c0_79] : memref<3x3x128x128xbf16, #tpu.memory_space<vmem>>, vector<1x1x128x128xbf16>
    %49 = vector.shape_cast %48 : vector<1x1x128x128xbf16> to vector<128x128xbf16>
    %cst_80 = arith.constant dense<0.000000e+00> : vector<256x128xf32>
    %50 = tpu.matmul %47, %49, %cst_80 {dimension_numbers = #tpu.dot_dimension_numbers<[1], [0], [0], [1], [0, 0, 1, 1], [], []>} : vector<256x128xbf16>, vector<128x128xbf16>, vector<256x128xf32> -> vector<256x128xf32>
    %c0_81 = arith.constant 0 : index
    %c0_82 = arith.constant 0 : index
    %51 = vector.load %arg10[%c0_81, %c0_82] : memref<256x128xf32, #tpu.memory_space<vmem>>, vector<256x128xf32>
    %52 = arith.addf %51, %50 : vector<256x128xf32>
    %c0_83 = arith.constant 0 : index
    %c0_84 = arith.constant 0 : index
    %53 = vector.load %arg10[%c0_83, %c0_84] : memref<256x128xf32, #tpu.memory_space<vmem>>, vector<256x128xf32>
    tpu.vector_store %arg10[%c0_83, %c0_84], %52 {strides = array<i32>} : memref<256x128xf32, #tpu.memory_space<vmem>>, vector<256x128xf32>,
    %c0_85 = arith.constant 0 : index
    %c2_86 = arith.constant 2 : index
    %c1_87 = arith.constant 1 : index
    %c0_88 = arith.constant 0 : index
    %54 = vector.load %arg1[%c0_85, %c2_86, %c1_87, %c0_88] : memref<1x18x18x128xbf16, #tpu.memory_space<vmem>>, vector<1x16x16x128xbf16>
    %55 = vector.shape_cast %54 : vector<1x16x16x128xbf16> to vector<256x128xbf16>
    %c2_89 = arith.constant 2 : index
    %c1_90 = arith.constant 1 : index
    %c0_91 = arith.constant 0 : index
    %c0_92 = arith.constant 0 : index
    %56 = vector.load %arg2[%c2_89, %c1_90, %c0_91, %c0_92] : memref<3x3x128x128xbf16, #tpu.memory_space<vmem>>, vector<1x1x128x128xbf16>
    %57 = vector.shape_cast %56 : vector<1x1x128x128xbf16> to vector<128x128xbf16>
    %cst_93 = arith.constant dense<0.000000e+00> : vector<256x128xf32>
    %58 = tpu.matmul %55, %57, %cst_93 {dimension_numbers = #tpu.dot_dimension_numbers<[1], [0], [0], [1], [0, 0, 1, 1], [], []>} : vector<256x128xbf16>, vector<128x128xbf16>, vector<256x128xf32> -> vector<256x128xf32>
    %c0_94 = arith.constant 0 : index
    %c0_95 = arith.constant 0 : index
    %59 = vector.load %arg10[%c0_94, %c0_95] : memref<256x128xf32, #tpu.memory_space<vmem>>, vector<256x128xf32>
    %60 = arith.addf %59, %58 : vector<256x128xf32>
    %c0_96 = arith.constant 0 : index
    %c0_97 = arith.constant 0 : index
    %61 = vector.load %arg10[%c0_96, %c0_97] : memref<256x128xf32, #tpu.memory_space<vmem>>, vector<256x128xf32>
    tpu.vector_store %arg10[%c0_96, %c0_97], %60 {strides = array<i32>} : memref<256x128xf32, #tpu.memory_space<vmem>>, vector<256x128xf32>,
    %c0_98 = arith.constant 0 : index
    %c2_99 = arith.constant 2 : index
    %c2_100 = arith.constant 2 : index
    %c0_101 = arith.constant 0 : index
    %62 = vector.load %arg1[%c0_98, %c2_99, %c2_100, %c0_101] : memref<1x18x18x128xbf16, #tpu.memory_space<vmem>>, vector<1x16x16x128xbf16>
    %63 = vector.shape_cast %62 : vector<1x16x16x128xbf16> to vector<256x128xbf16>
    %c2_102 = arith.constant 2 : index
    %c2_103 = arith.constant 2 : index
    %c0_104 = arith.constant 0 : index
    %c0_105 = arith.constant 0 : index
    %64 = vector.load %arg2[%c2_102, %c2_103, %c0_104, %c0_105] : memref<3x3x128x128xbf16, #tpu.memory_space<vmem>>, vector<1x1x128x128xbf16>
    %65 = vector.shape_cast %64 : vector<1x1x128x128xbf16> to vector<128x128xbf16>
    %cst_106 = arith.constant dense<0.000000e+00> : vector<256x128xf32>
    %66 = tpu.matmul %63, %65, %cst_106 {dimension_numbers = #tpu.dot_dimension_numbers<[1], [0], [0], [1], [0, 0, 1, 1], [], []>} : vector<256x128xbf16>, vector<128x128xbf16>, vector<256x128xf32> -> vector<256x128xf32>
    %c0_107 = arith.constant 0 : index
    %c0_108 = arith.constant 0 : index
    %67 = vector.load %arg10[%c0_107, %c0_108] : memref<256x128xf32, #tpu.memory_space<vmem>>, vector<256x128xf32>
    %68 = arith.addf %67, %66 : vector<256x128xf32>
    %c0_109 = arith.constant 0 : index
    %c0_110 = arith.constant 0 : index
    %69 = vector.load %arg10[%c0_109, %c0_110] : memref<256x128xf32, #tpu.memory_space<vmem>>, vector<256x128xf32>
    tpu.vector_store %arg10[%c0_109, %c0_110], %68 {strides = array<i32>} : memref<256x128xf32, #tpu.memory_space<vmem>>, vector<256x128xf32>,
    %c0_111 = arith.constant 0 : index
    %c0_112 = arith.constant 0 : index
    %70 = vector.load %arg10[%c0_111, %c0_112] : memref<256x128xf32, #tpu.memory_space<vmem>>, vector<256x128xf32>
    %c0_113 = arith.constant 0 : index
    %c0_114 = arith.constant 0 : index
    %71 = vector.load %arg3[%c0_113, %c0_114] : memref<1x128xf32, #tpu.memory_space<vmem>>, vector<1x128xf32>
    %72 = vector.broadcast %71 : vector<1x128xf32> to vector<256x128xf32>
    %73 = arith.mulf %70, %72 : vector<256x128xf32>
    %c0_115 = arith.constant 0 : index
    %c0_116 = arith.constant 0 : index
    %74 = vector.load %arg4[%c0_115, %c0_116] : memref<1x128xf32, #tpu.memory_space<vmem>>, vector<1x128xf32>
    %75 = vector.broadcast %74 : vector<1x128xf32> to vector<256x128xf32>
    %76 = arith.addf %73, %75 : vector<256x128xf32>
    %cst_117 = arith.constant 0.000000e+00 : f32
    %77 = vector.broadcast %cst_117 : f32 to vector<256x128xf32>
    %78 = arith.maximumf %76, %77 : vector<256x128xf32>
    %cst_118 = arith.constant 0.000000e+00 : bf16
    %79 = vector.broadcast %cst_118 : bf16 to vector<1x1x18x128xbf16>
    %c0_119 = arith.constant 0 : index
    %c0_120 = arith.constant 0 : index
    %c0_121 = arith.constant 0 : index
    %c0_122 = arith.constant 0 : index
    %80 = vector.load %arg9[%c0_119, %c0_120, %c0_121, %c0_122] : memref<1x18x18x128xbf16, #tpu.memory_space<vmem>>, vector<1x1x18x128xbf16>
    tpu.vector_store %arg9[%c0_119, %c0_120, %c0_121, %c0_122], %79 {strides = array<i32>} : memref<1x18x18x128xbf16, #tpu.memory_space<vmem>>, vector<1x1x18x128xbf16>,
    %cst_123 = arith.constant 0.000000e+00 : bf16
    %81 = vector.broadcast %cst_123 : bf16 to vector<1x1x18x128xbf16>
    %c0_124 = arith.constant 0 : index
    %c17 = arith.constant 17 : index
    %c0_125 = arith.constant 0 : index
    %c0_126 = arith.constant 0 : index
    %82 = vector.load %arg9[%c0_124, %c17, %c0_125, %c0_126] : memref<1x18x18x128xbf16, #tpu.memory_space<vmem>>, vector<1x1x18x128xbf16>
    tpu.vector_store %arg9[%c0_124, %c17, %c0_125, %c0_126], %81 {strides = array<i32>} : memref<1x18x18x128xbf16, #tpu.memory_space<vmem>>, vector<1x1x18x128xbf16>,
    %cst_127 = arith.constant 0.000000e+00 : bf16
    %83 = vector.broadcast %cst_127 : bf16 to vector<1x18x1x128xbf16>
    %c0_128 = arith.constant 0 : index
    %c0_129 = arith.constant 0 : index
    %c0_130 = arith.constant 0 : index
    %c0_131 = arith.constant 0 : index
    %84 = vector.load %arg9[%c0_128, %c0_129, %c0_130, %c0_131] : memref<1x18x18x128xbf16, #tpu.memory_space<vmem>>, vector<1x18x1x128xbf16>
    tpu.vector_store %arg9[%c0_128, %c0_129, %c0_130, %c0_131], %83 {strides = array<i32>} : memref<1x18x18x128xbf16, #tpu.memory_space<vmem>>, vector<1x18x1x128xbf16>,
    %cst_132 = arith.constant 0.000000e+00 : bf16
    %85 = vector.broadcast %cst_132 : bf16 to vector<1x18x1x128xbf16>
    %c0_133 = arith.constant 0 : index
    %c0_134 = arith.constant 0 : index
    %c17_135 = arith.constant 17 : index
    %c0_136 = arith.constant 0 : index
    %86 = vector.load %arg9[%c0_133, %c0_134, %c17_135, %c0_136] : memref<1x18x18x128xbf16, #tpu.memory_space<vmem>>, vector<1x18x1x128xbf16>
    tpu.vector_store %arg9[%c0_133, %c0_134, %c17_135, %c0_136], %85 {strides = array<i32>} : memref<1x18x18x128xbf16, #tpu.memory_space<vmem>>, vector<1x18x1x128xbf16>,
    %87 = arith.truncf %78 : vector<256x128xf32> to vector<256x128xbf16>
    %88 = vector.shape_cast %87 : vector<256x128xbf16> to vector<1x16x16x128xbf16>
    %c0_137 = arith.constant 0 : index
    %c1_138 = arith.constant 1 : index
    %c1_139 = arith.constant 1 : index
    %c0_140 = arith.constant 0 : index
    %89 = vector.load %arg9[%c0_137, %c1_138, %c1_139, %c0_140] : memref<1x18x18x128xbf16, #tpu.memory_space<vmem>>, vector<1x16x16x128xbf16>
    tpu.vector_store %arg9[%c0_137, %c1_138, %c1_139, %c0_140], %88 {strides = array<i32>} : memref<1x18x18x128xbf16, #tpu.memory_space<vmem>>, vector<1x16x16x128xbf16>,
    %c0_141 = arith.constant 0 : index
    %c0_142 = arith.constant 0 : index
    %c0_143 = arith.constant 0 : index
    %c0_144 = arith.constant 0 : index
    %90 = vector.load %arg9[%c0_141, %c0_142, %c0_143, %c0_144] : memref<1x18x18x128xbf16, #tpu.memory_space<vmem>>, vector<1x16x16x128xbf16>
    %91 = vector.shape_cast %90 : vector<1x16x16x128xbf16> to vector<256x128xbf16>
    %c0_145 = arith.constant 0 : index
    %c0_146 = arith.constant 0 : index
    %c0_147 = arith.constant 0 : index
    %c0_148 = arith.constant 0 : index
    %92 = vector.load %arg5[%c0_145, %c0_146, %c0_147, %c0_148] : memref<3x3x128x128xbf16, #tpu.memory_space<vmem>>, vector<1x1x128x128xbf16>
    %93 = vector.shape_cast %92 : vector<1x1x128x128xbf16> to vector<128x128xbf16>
    %cst_149 = arith.constant dense<0.000000e+00> : vector<256x128xf32>
    %94 = tpu.matmul %91, %93, %cst_149 {dimension_numbers = #tpu.dot_dimension_numbers<[1], [0], [0], [1], [0, 0, 1, 1], [], []>} : vector<256x128xbf16>, vector<128x128xbf16>, vector<256x128xf32> -> vector<256x128xf32>
    %c0_150 = arith.constant 0 : index
    %c0_151 = arith.constant 0 : index
    %95 = vector.load %arg10[%c0_150, %c0_151] : memref<256x128xf32, #tpu.memory_space<vmem>>, vector<256x128xf32>
    tpu.vector_store %arg10[%c0_150, %c0_151], %94 {strides = array<i32>} : memref<256x128xf32, #tpu.memory_space<vmem>>, vector<256x128xf32>,
    %c0_152 = arith.constant 0 : index
    %c0_153 = arith.constant 0 : index
    %c1_154 = arith.constant 1 : index
    %c0_155 = arith.constant 0 : index
    %96 = vector.load %arg9[%c0_152, %c0_153, %c1_154, %c0_155] : memref<1x18x18x128xbf16, #tpu.memory_space<vmem>>, vector<1x16x16x128xbf16>
    %97 = vector.shape_cast %96 : vector<1x16x16x128xbf16> to vector<256x128xbf16>
    %c0_156 = arith.constant 0 : index
    %c1_157 = arith.constant 1 : index
    %c0_158 = arith.constant 0 : index
    %c0_159 = arith.constant 0 : index
    %98 = vector.load %arg5[%c0_156, %c1_157, %c0_158, %c0_159] : memref<3x3x128x128xbf16, #tpu.memory_space<vmem>>, vector<1x1x128x128xbf16>
    %99 = vector.shape_cast %98 : vector<1x1x128x128xbf16> to vector<128x128xbf16>
    %cst_160 = arith.constant dense<0.000000e+00> : vector<256x128xf32>
    %100 = tpu.matmul %97, %99, %cst_160 {dimension_numbers = #tpu.dot_dimension_numbers<[1], [0], [0], [1], [0, 0, 1, 1], [], []>} : vector<256x128xbf16>, vector<128x128xbf16>, vector<256x128xf32> -> vector<256x128xf32>
    %c0_161 = arith.constant 0 : index
    %c0_162 = arith.constant 0 : index
    %101 = vector.load %arg10[%c0_161, %c0_162] : memref<256x128xf32, #tpu.memory_space<vmem>>, vector<256x128xf32>
    %102 = arith.addf %101, %100 : vector<256x128xf32>
    %c0_163 = arith.constant 0 : index
    %c0_164 = arith.constant 0 : index
    %103 = vector.load %arg10[%c0_163, %c0_164] : memref<256x128xf32, #tpu.memory_space<vmem>>, vector<256x128xf32>
    tpu.vector_store %arg10[%c0_163, %c0_164], %102 {strides = array<i32>} : memref<256x128xf32, #tpu.memory_space<vmem>>, vector<256x128xf32>,
    %c0_165 = arith.constant 0 : index
    %c0_166 = arith.constant 0 : index
    %c2_167 = arith.constant 2 : index
    %c0_168 = arith.constant 0 : index
    %104 = vector.load %arg9[%c0_165, %c0_166, %c2_167, %c0_168] : memref<1x18x18x128xbf16, #tpu.memory_space<vmem>>, vector<1x16x16x128xbf16>
    %105 = vector.shape_cast %104 : vector<1x16x16x128xbf16> to vector<256x128xbf16>
    %c0_169 = arith.constant 0 : index
    %c2_170 = arith.constant 2 : index
    %c0_171 = arith.constant 0 : index
    %c0_172 = arith.constant 0 : index
    %106 = vector.load %arg5[%c0_169, %c2_170, %c0_171, %c0_172] : memref<3x3x128x128xbf16, #tpu.memory_space<vmem>>, vector<1x1x128x128xbf16>
    %107 = vector.shape_cast %106 : vector<1x1x128x128xbf16> to vector<128x128xbf16>
    %cst_173 = arith.constant dense<0.000000e+00> : vector<256x128xf32>
    %108 = tpu.matmul %105, %107, %cst_173 {dimension_numbers = #tpu.dot_dimension_numbers<[1], [0], [0], [1], [0, 0, 1, 1], [], []>} : vector<256x128xbf16>, vector<128x128xbf16>, vector<256x128xf32> -> vector<256x128xf32>
    %c0_174 = arith.constant 0 : index
    %c0_175 = arith.constant 0 : index
    %109 = vector.load %arg10[%c0_174, %c0_175] : memref<256x128xf32, #tpu.memory_space<vmem>>, vector<256x128xf32>
    %110 = arith.addf %109, %108 : vector<256x128xf32>
    %c0_176 = arith.constant 0 : index
    %c0_177 = arith.constant 0 : index
    %111 = vector.load %arg10[%c0_176, %c0_177] : memref<256x128xf32, #tpu.memory_space<vmem>>, vector<256x128xf32>
    tpu.vector_store %arg10[%c0_176, %c0_177], %110 {strides = array<i32>} : memref<256x128xf32, #tpu.memory_space<vmem>>, vector<256x128xf32>,
    %c0_178 = arith.constant 0 : index
    %c1_179 = arith.constant 1 : index
    %c0_180 = arith.constant 0 : index
    %c0_181 = arith.constant 0 : index
    %112 = vector.load %arg9[%c0_178, %c1_179, %c0_180, %c0_181] : memref<1x18x18x128xbf16, #tpu.memory_space<vmem>>, vector<1x16x16x128xbf16>
    %113 = vector.shape_cast %112 : vector<1x16x16x128xbf16> to vector<256x128xbf16>
    %c1_182 = arith.constant 1 : index
    %c0_183 = arith.constant 0 : index
    %c0_184 = arith.constant 0 : index
    %c0_185 = arith.constant 0 : index
    %114 = vector.load %arg5[%c1_182, %c0_183, %c0_184, %c0_185] : memref<3x3x128x128xbf16, #tpu.memory_space<vmem>>, vector<1x1x128x128xbf16>
    %115 = vector.shape_cast %114 : vector<1x1x128x128xbf16> to vector<128x128xbf16>
    %cst_186 = arith.constant dense<0.000000e+00> : vector<256x128xf32>
    %116 = tpu.matmul %113, %115, %cst_186 {dimension_numbers = #tpu.dot_dimension_numbers<[1], [0], [0], [1], [0, 0, 1, 1], [], []>} : vector<256x128xbf16>, vector<128x128xbf16>, vector<256x128xf32> -> vector<256x128xf32>
    %c0_187 = arith.constant 0 : index
    %c0_188 = arith.constant 0 : index
    %117 = vector.load %arg10[%c0_187, %c0_188] : memref<256x128xf32, #tpu.memory_space<vmem>>, vector<256x128xf32>
    %118 = arith.addf %117, %116 : vector<256x128xf32>
    %c0_189 = arith.constant 0 : index
    %c0_190 = arith.constant 0 : index
    %119 = vector.load %arg10[%c0_189, %c0_190] : memref<256x128xf32, #tpu.memory_space<vmem>>, vector<256x128xf32>
    tpu.vector_store %arg10[%c0_189, %c0_190], %118 {strides = array<i32>} : memref<256x128xf32, #tpu.memory_space<vmem>>, vector<256x128xf32>,
    %c0_191 = arith.constant 0 : index
    %c1_192 = arith.constant 1 : index
    %c1_193 = arith.constant 1 : index
    %c0_194 = arith.constant 0 : index
    %120 = vector.load %arg9[%c0_191, %c1_192, %c1_193, %c0_194] : memref<1x18x18x128xbf16, #tpu.memory_space<vmem>>, vector<1x16x16x128xbf16>
    %121 = vector.shape_cast %120 : vector<1x16x16x128xbf16> to vector<256x128xbf16>
    %c1_195 = arith.constant 1 : index
    %c1_196 = arith.constant 1 : index
    %c0_197 = arith.constant 0 : index
    %c0_198 = arith.constant 0 : index
    %122 = vector.load %arg5[%c1_195, %c1_196, %c0_197, %c0_198] : memref<3x3x128x128xbf16, #tpu.memory_space<vmem>>, vector<1x1x128x128xbf16>
    %123 = vector.shape_cast %122 : vector<1x1x128x128xbf16> to vector<128x128xbf16>
    %cst_199 = arith.constant dense<0.000000e+00> : vector<256x128xf32>
    %124 = tpu.matmul %121, %123, %cst_199 {dimension_numbers = #tpu.dot_dimension_numbers<[1], [0], [0], [1], [0, 0, 1, 1], [], []>} : vector<256x128xbf16>, vector<128x128xbf16>, vector<256x128xf32> -> vector<256x128xf32>
    %c0_200 = arith.constant 0 : index
    %c0_201 = arith.constant 0 : index
    %125 = vector.load %arg10[%c0_200, %c0_201] : memref<256x128xf32, #tpu.memory_space<vmem>>, vector<256x128xf32>
    %126 = arith.addf %125, %124 : vector<256x128xf32>
    %c0_202 = arith.constant 0 : index
    %c0_203 = arith.constant 0 : index
    %127 = vector.load %arg10[%c0_202, %c0_203] : memref<256x128xf32, #tpu.memory_space<vmem>>, vector<256x128xf32>
    tpu.vector_store %arg10[%c0_202, %c0_203], %126 {strides = array<i32>} : memref<256x128xf32, #tpu.memory_space<vmem>>, vector<256x128xf32>,
    %c0_204 = arith.constant 0 : index
    %c1_205 = arith.constant 1 : index
    %c2_206 = arith.constant 2 : index
    %c0_207 = arith.constant 0 : index
    %128 = vector.load %arg9[%c0_204, %c1_205, %c2_206, %c0_207] : memref<1x18x18x128xbf16, #tpu.memory_space<vmem>>, vector<1x16x16x128xbf16>
    %129 = vector.shape_cast %128 : vector<1x16x16x128xbf16> to vector<256x128xbf16>
    %c1_208 = arith.constant 1 : index
    %c2_209 = arith.constant 2 : index
    %c0_210 = arith.constant 0 : index
    %c0_211 = arith.constant 0 : index
    %130 = vector.load %arg5[%c1_208, %c2_209, %c0_210, %c0_211] : memref<3x3x128x128xbf16, #tpu.memory_space<vmem>>, vector<1x1x128x128xbf16>
    %131 = vector.shape_cast %130 : vector<1x1x128x128xbf16> to vector<128x128xbf16>
    %cst_212 = arith.constant dense<0.000000e+00> : vector<256x128xf32>
    %132 = tpu.matmul %129, %131, %cst_212 {dimension_numbers = #tpu.dot_dimension_numbers<[1], [0], [0], [1], [0, 0, 1, 1], [], []>} : vector<256x128xbf16>, vector<128x128xbf16>, vector<256x128xf32> -> vector<256x128xf32>
    %c0_213 = arith.constant 0 : index
    %c0_214 = arith.constant 0 : index
    %133 = vector.load %arg10[%c0_213, %c0_214] : memref<256x128xf32, #tpu.memory_space<vmem>>, vector<256x128xf32>
    %134 = arith.addf %133, %132 : vector<256x128xf32>
    %c0_215 = arith.constant 0 : index
    %c0_216 = arith.constant 0 : index
    %135 = vector.load %arg10[%c0_215, %c0_216] : memref<256x128xf32, #tpu.memory_space<vmem>>, vector<256x128xf32>
    tpu.vector_store %arg10[%c0_215, %c0_216], %134 {strides = array<i32>} : memref<256x128xf32, #tpu.memory_space<vmem>>, vector<256x128xf32>,
    %c0_217 = arith.constant 0 : index
    %c2_218 = arith.constant 2 : index
    %c0_219 = arith.constant 0 : index
    %c0_220 = arith.constant 0 : index
    %136 = vector.load %arg9[%c0_217, %c2_218, %c0_219, %c0_220] : memref<1x18x18x128xbf16, #tpu.memory_space<vmem>>, vector<1x16x16x128xbf16>
    %137 = vector.shape_cast %136 : vector<1x16x16x128xbf16> to vector<256x128xbf16>
    %c2_221 = arith.constant 2 : index
    %c0_222 = arith.constant 0 : index
    %c0_223 = arith.constant 0 : index
    %c0_224 = arith.constant 0 : index
    %138 = vector.load %arg5[%c2_221, %c0_222, %c0_223, %c0_224] : memref<3x3x128x128xbf16, #tpu.memory_space<vmem>>, vector<1x1x128x128xbf16>
    %139 = vector.shape_cast %138 : vector<1x1x128x128xbf16> to vector<128x128xbf16>
    %cst_225 = arith.constant dense<0.000000e+00> : vector<256x128xf32>
    %140 = tpu.matmul %137, %139, %cst_225 {dimension_numbers = #tpu.dot_dimension_numbers<[1], [0], [0], [1], [0, 0, 1, 1], [], []>} : vector<256x128xbf16>, vector<128x128xbf16>, vector<256x128xf32> -> vector<256x128xf32>
    %c0_226 = arith.constant 0 : index
    %c0_227 = arith.constant 0 : index
    %141 = vector.load %arg10[%c0_226, %c0_227] : memref<256x128xf32, #tpu.memory_space<vmem>>, vector<256x128xf32>
    %142 = arith.addf %141, %140 : vector<256x128xf32>
    %c0_228 = arith.constant 0 : index
    %c0_229 = arith.constant 0 : index
    %143 = vector.load %arg10[%c0_228, %c0_229] : memref<256x128xf32, #tpu.memory_space<vmem>>, vector<256x128xf32>
    tpu.vector_store %arg10[%c0_228, %c0_229], %142 {strides = array<i32>} : memref<256x128xf32, #tpu.memory_space<vmem>>, vector<256x128xf32>,
    %c0_230 = arith.constant 0 : index
    %c2_231 = arith.constant 2 : index
    %c1_232 = arith.constant 1 : index
    %c0_233 = arith.constant 0 : index
    %144 = vector.load %arg9[%c0_230, %c2_231, %c1_232, %c0_233] : memref<1x18x18x128xbf16, #tpu.memory_space<vmem>>, vector<1x16x16x128xbf16>
    %145 = vector.shape_cast %144 : vector<1x16x16x128xbf16> to vector<256x128xbf16>
    %c2_234 = arith.constant 2 : index
    %c1_235 = arith.constant 1 : index
    %c0_236 = arith.constant 0 : index
    %c0_237 = arith.constant 0 : index
    %146 = vector.load %arg5[%c2_234, %c1_235, %c0_236, %c0_237] : memref<3x3x128x128xbf16, #tpu.memory_space<vmem>>, vector<1x1x128x128xbf16>
    %147 = vector.shape_cast %146 : vector<1x1x128x128xbf16> to vector<128x128xbf16>
    %cst_238 = arith.constant dense<0.000000e+00> : vector<256x128xf32>
    %148 = tpu.matmul %145, %147, %cst_238 {dimension_numbers = #tpu.dot_dimension_numbers<[1], [0], [0], [1], [0, 0, 1, 1], [], []>} : vector<256x128xbf16>, vector<128x128xbf16>, vector<256x128xf32> -> vector<256x128xf32>
    %c0_239 = arith.constant 0 : index
    %c0_240 = arith.constant 0 : index
    %149 = vector.load %arg10[%c0_239, %c0_240] : memref<256x128xf32, #tpu.memory_space<vmem>>, vector<256x128xf32>
    %150 = arith.addf %149, %148 : vector<256x128xf32>
    %c0_241 = arith.constant 0 : index
    %c0_242 = arith.constant 0 : index
    %151 = vector.load %arg10[%c0_241, %c0_242] : memref<256x128xf32, #tpu.memory_space<vmem>>, vector<256x128xf32>
    tpu.vector_store %arg10[%c0_241, %c0_242], %150 {strides = array<i32>} : memref<256x128xf32, #tpu.memory_space<vmem>>, vector<256x128xf32>,
    %c0_243 = arith.constant 0 : index
    %c2_244 = arith.constant 2 : index
    %c2_245 = arith.constant 2 : index
    %c0_246 = arith.constant 0 : index
    %152 = vector.load %arg9[%c0_243, %c2_244, %c2_245, %c0_246] : memref<1x18x18x128xbf16, #tpu.memory_space<vmem>>, vector<1x16x16x128xbf16>
    %153 = vector.shape_cast %152 : vector<1x16x16x128xbf16> to vector<256x128xbf16>
    %c2_247 = arith.constant 2 : index
    %c2_248 = arith.constant 2 : index
    %c0_249 = arith.constant 0 : index
    %c0_250 = arith.constant 0 : index
    %154 = vector.load %arg5[%c2_247, %c2_248, %c0_249, %c0_250] : memref<3x3x128x128xbf16, #tpu.memory_space<vmem>>, vector<1x1x128x128xbf16>
    %155 = vector.shape_cast %154 : vector<1x1x128x128xbf16> to vector<128x128xbf16>
    %cst_251 = arith.constant dense<0.000000e+00> : vector<256x128xf32>
    %156 = tpu.matmul %153, %155, %cst_251 {dimension_numbers = #tpu.dot_dimension_numbers<[1], [0], [0], [1], [0, 0, 1, 1], [], []>} : vector<256x128xbf16>, vector<128x128xbf16>, vector<256x128xf32> -> vector<256x128xf32>
    %c0_252 = arith.constant 0 : index
    %c0_253 = arith.constant 0 : index
    %157 = vector.load %arg10[%c0_252, %c0_253] : memref<256x128xf32, #tpu.memory_space<vmem>>, vector<256x128xf32>
    %158 = arith.addf %157, %156 : vector<256x128xf32>
    %c0_254 = arith.constant 0 : index
    %c0_255 = arith.constant 0 : index
    %159 = vector.load %arg10[%c0_254, %c0_255] : memref<256x128xf32, #tpu.memory_space<vmem>>, vector<256x128xf32>
    tpu.vector_store %arg10[%c0_254, %c0_255], %158 {strides = array<i32>} : memref<256x128xf32, #tpu.memory_space<vmem>>, vector<256x128xf32>,
    %c0_256 = arith.constant 0 : index
    %c0_257 = arith.constant 0 : index
    %160 = vector.load %arg10[%c0_256, %c0_257] : memref<256x128xf32, #tpu.memory_space<vmem>>, vector<256x128xf32>
    %c0_258 = arith.constant 0 : index
    %c0_259 = arith.constant 0 : index
    %161 = vector.load %arg6[%c0_258, %c0_259] : memref<1x128xf32, #tpu.memory_space<vmem>>, vector<1x128xf32>
    %162 = vector.broadcast %161 : vector<1x128xf32> to vector<256x128xf32>
    %163 = arith.mulf %160, %162 : vector<256x128xf32>
    %c0_260 = arith.constant 0 : index
    %c0_261 = arith.constant 0 : index
    %164 = vector.load %arg7[%c0_260, %c0_261] : memref<1x128xf32, #tpu.memory_space<vmem>>, vector<1x128xf32>
    %165 = vector.broadcast %164 : vector<1x128xf32> to vector<256x128xf32>
    %166 = arith.addf %163, %165 : vector<256x128xf32>
    %c0_262 = arith.constant 0 : index
    %c1_263 = arith.constant 1 : index
    %c1_264 = arith.constant 1 : index
    %c0_265 = arith.constant 0 : index
    %167 = vector.load %arg1[%c0_262, %c1_263, %c1_264, %c0_265] : memref<1x18x18x128xbf16, #tpu.memory_space<vmem>>, vector<1x16x16x128xbf16>
    %168 = vector.shape_cast %167 : vector<1x16x16x128xbf16> to vector<256x128xbf16>
    %169 = arith.extf %168 : vector<256x128xbf16> to vector<256x128xf32>
    %170 = arith.addf %166, %169 : vector<256x128xf32>
    %cst_266 = arith.constant 0.000000e+00 : f32
    %171 = vector.broadcast %cst_266 : f32 to vector<256x128xf32>
    %172 = arith.maximumf %170, %171 : vector<256x128xf32>
    %173 = vector.shape_cast %172 : vector<256x128xf32> to vector<1x16x16x128xf32>
    %c0_267 = arith.constant 0 : index
    %c0_268 = arith.constant 0 : index
    %c0_269 = arith.constant 0 : index
    %c0_270 = arith.constant 0 : index
    %174 = vector.load %arg8[%c0_267, %c0_268, %c0_269, %c0_270] : memref<1x16x16x128xf32, #tpu.memory_space<vmem>>, vector<1x16x16x128xf32>
    tpu.vector_store %arg8[%c0_267, %c0_268, %c0_269, %c0_270], %173 {strides = array<i32>} : memref<1x16x16x128xf32, #tpu.memory_space<vmem>>, vector<1x16x16x128xf32>,
    return
  }
  func.func @transform_0(%arg0: i32) -> (i32, i32, i32, i32) {
    %c0_i32 = arith.constant 0 : i32
    %c0_i32_0 = arith.constant 0 : i32
    %c0_i32_1 = arith.constant 0 : i32
    %c0_i32_2 = arith.constant 0 : i32
    return %arg0, %c0_i32, %c0_i32_0, %c0_i32_1 : i32, i32, i32, i32
  }
  func.func @transform_1(%arg0: i32) -> (i32, i32, i32, i32) {
    %c0_i32 = arith.constant 0 : i32
    %c0_i32_0 = arith.constant 0 : i32
    %c0_i32_1 = arith.constant 0 : i32
    %c0_i32_2 = arith.constant 0 : i32
    %c0_i32_3 = arith.constant 0 : i32
    return %c0_i32, %c0_i32_0, %c0_i32_1, %c0_i32_2 : i32, i32, i32, i32
  }
  func.func @transform_2(%arg0: i32) -> (i32, i32) {
    %c0_i32 = arith.constant 0 : i32
    %c0_i32_0 = arith.constant 0 : i32
    %c0_i32_1 = arith.constant 0 : i32
    return %c0_i32, %c0_i32_0 : i32, i32
  }
  func.func @transform_3(%arg0: i32) -> (i32, i32) {
    %c0_i32 = arith.constant 0 : i32
    %c0_i32_0 = arith.constant 0 : i32
    %c0_i32_1 = arith.constant 0 : i32
    return %c0_i32, %c0_i32_0 : i32, i32
  }
  func.func @transform_4(%arg0: i32) -> (i32, i32, i32, i32) {
    %c0_i32 = arith.constant 0 : i32
    %c0_i32_0 = arith.constant 0 : i32
    %c0_i32_1 = arith.constant 0 : i32
    %c0_i32_2 = arith.constant 0 : i32
    %c0_i32_3 = arith.constant 0 : i32
    return %c0_i32, %c0_i32_0, %c0_i32_1, %c0_i32_2 : i32, i32, i32, i32
  }
  func.func @transform_5(%arg0: i32) -> (i32, i32) {
    %c0_i32 = arith.constant 0 : i32
    %c0_i32_0 = arith.constant 0 : i32
    %c0_i32_1 = arith.constant 0 : i32
    return %c0_i32, %c0_i32_0 : i32, i32
  }
  func.func @transform_6(%arg0: i32) -> (i32, i32) {
    %c0_i32 = arith.constant 0 : i32
    %c0_i32_0 = arith.constant 0 : i32
    %c0_i32_1 = arith.constant 0 : i32
    return %c0_i32, %c0_i32_0 : i32, i32
  }
  func.func @transform_7(%arg0: i32) -> (i32, i32, i32, i32) {
    %c0_i32 = arith.constant 0 : i32
    %c0_i32_0 = arith.constant 0 : i32
    %c0_i32_1 = arith.constant 0 : i32
    %c0_i32_2 = arith.constant 0 : i32
    return %arg0, %c0_i32, %c0_i32_0, %c0_i32_1 : i32, i32, i32, i32
  }
}

</mosaic_0001>

<bundles_post_ra>
// kernel: tpu_custom_call.1
= control target key start
LH: loop header
LB: loop body
LE: loop exit
PB: predicated region body
PF: predicated region fallthrough
CT: control target
= control target key end

     0   :  { %12 = vsyncpa [#allocation5], 0  ;;  %s18987_s0 = inlined_call_operand.vmem [shape: bf16[2,18,18,128], index: 0, kind: input, shape index: {}]   ;;  %s18988_s1 = inlined_call_operand.vmem [shape: bf16[3,3,128,128], index: 1, kind: input, shape index: {}]   ;;  %s18989_s2 = inlined_call_operand.vmem [shape: f32[1,128], index: 2, kind: input, shape index: {}]   ;;  %s18990_s3 = inlined_call_operand.vmem [shape: f32[1,128], index: 3, kind: input, shape index: {}]   ;;  %s18991_s4 = inlined_call_operand.hbm [shape: bf16[3,3,128,128], index: 4, kind: input, shape index: {}]   ;;  %s18992_s5 = inlined_call_operand.vmem [shape: f32[1,128], index: 5, kind: input, shape index: {}]   ;;  %s18993_s6 = inlined_call_operand.vmem [shape: f32[1,128], index: 6, kind: input, shape index: {}]   ;;  %s18994_s7 = inlined_call_operand.hbm [shape: f32[2,16,16,128], index: 7, kind: output, shape index: {}]  }
   0x1   :  { %13 = vsyncpa [#allocation6], 0 }
   0x2   :  { %15 = vsyncpa [#allocation6 + $0x1], 0  ;;  %s16218_s24 = smov 0   ;;  %s16220_s25 = smov 0  }
   0x3   :  { %s16222_s26 = smov 0   ;;  %s16224_s27 = smov 0  }
   0x4 LB: > { %s16239_s28 = sadd.s32 4294967295, %s16169_s27   ;;  %s12929_s29 = sadd.s32 4294967294, %s16169_s27   ;;  %s16169_s27 = sphi %s16224_s27, %s19022_s27   ;;  %s16165_s26 = sphi %s16222_s26, %s19021_s26   ;;  %s16161_s25 = sphi %s16220_s25, %s19020_s25   ;;  %s16157_s24 = sphi %s16218_s24, %s19019_s24  }
   0x5   : > { %s16243_s30 = sadd.s32 1, %s16169_s27   ;;  %s180_s8 = sadd.s32 1, %s16165_s26 }
   0x6   : > { %s177_s9 = ssub.s32 %s16169_s27, %s16243_s30  ;;  %p190_p0 = scmp.ne.s32.totalorder %s16165_s26, %s16161_s25 }
   0x7   : > { %p178_p1 = scmp.eq.s32.totalorder %s177_s9, 0  ;;  %p191_p2 = scmp.eq.s32.totalorder %s16239_s28, 1 }
   0x8   : > { %p196_p3 = scmp.ne.s32.totalorder %s16161_s25, %s16157_s24  ;;  %p197_p4 = scmp.eq.s32.totalorder %s12929_s29, 1 }
   0x9   : > { %s16254_s10 = scalar_select %p178_p1, %s16165_s26, %s180_s8  }
   0xa   : > { %p16256_p5 = por %p191_p2, %p190_p0  ;;  %p16260_p6 = por %p197_p4, %p196_p3 }
   0xb   : > { %p12930_p7 = scmp.ge.s32.totalorder %s16169_s27, 1  ;;  %p204_p8 = scmp.lt.s32.totalorder %s16169_s27, 3 }
   0xc   : > { %s18998_s11 = scalar_select %p16256_p5, 1, 0 }
   0xd   : > { %s18999_s12 = scalar_select %p16260_p6, 1, 0 }
   0xe   : > { %p18995_p9 = scmp.eq.s32.totalorder %s16239_s28, 0  ;;  %p16267_p10 = pnand %p12930_p7, %p204_p8 }
   0xf   : > { %s16171_s14 = smov [#allocation4]   ;;  %s16075_s19 = scalar_lea.hbm %s18991_s4, 9216 }
  0x10   : > { %s19000_s13 = scalar_select %p16267_p10, 1, 0 }
  0x11   : > { %s225_s15 = sshll.u32 %s16171_s14, 4  ;;  %p15786_p11 = pneg %p16267_p10  ;;  %s226_s15 = int_to_ptr.vmem [resolvable:$true] %s225_s15 }
  0x12   : > { %p16076_p13 = scmp.ne.s32.totalorder %s18991_s4, %s16075_s19  ;;  %p16082_p3 = scmp.lt.u32.totalorder %s16075_s19, %s18991_s4 }
  0x13   : > { %p16275_p12 = pnand %p18995_p9, %p15786_p11 }
  0x15   : > { %p16077_p0 = pneg %p16275_p12 }
  0x17   : > { %p16078_p1 = pnand %p16077_p0, %p16076_p13 }
  0x19   : > { %p16079_p2 = pneg %p16078_p1 }
  0x1b   : > { %p16084_p4 = pnand %p16082_p3, %p16079_p2 }
  0x1d   : > { %16087 = shalt.err (!%p16084_p4)
}
  0x1e   : > { %s16088_s29 = scalar_lea.vmem %s226_s15, 9216  ;;  %p16096_p9 = scmp.lt.s32.totalorder %s226_s15, %s226_s15 }
  0x1f   : > { %p16089_p7 = scmp.ne.s32.totalorder %s226_s15, %s16088_s29  ;;  %p16097_p6 = scmp.lt.s32.totalorder %s16088_s29, %s16088_s29 }
  0x21   : > { %p16091_p8 = pnand %p16089_p7, %p16077_p0  ;;  %p16098_p5 = por %p16097_p6, %p16096_p9 }
  0x23   : > { %p16092_p11 = pneg %p16091_p8 }
  0x25   : > { %p16099_p10 = pnand %p16098_p5, %p16092_p11 }
  0x27   : > { %16102 = shalt.err (!%p16099_p10)
}
  0x28   : > { %s16172_s8 = smov 64   ;;  %s16173_s9 = smov 4  }
  0x29   : > { %15789 = dma.hbm_to_vmem [thread:$0]  (!%p16275_p12), %s18991_s4, 9216, %s226_s15, [#allocation5], %s16172_s8, %s16172_s8, %s16173_s9  }
  0x2a   : > { %p19002_p13 = scmp.ne.s32.totalorder %s19000_s13, 0 }
  0x2b   : > { %p19003_p1 = scmp.eq.s32.totalorder (!%p19002_p13), %s16239_s28, 0 }
  0x2c   : > { %255 = sbr.rel (%p19002_p13) target bundleno = 1662 (0x67e), region = 48 }
  0x33   : > { %16148 = dma.done.wait (%p19003_p1), [#allocation5], 9216   ;;  %p19004_p0 = pmov %p19003_p1 }
  0x34   : > { %p287_p5 = scmp.lt.s32.totalorder %s16239_s28, 1  ;;  %v15835_v0 = vld [vmem:[%s18988_s1] sm:$0xff]   ;;  %v15836_v1 = vld [vmem:[%s18988_s1 + $0x8] sm:$0xff]   ;;  %v15837_v2 = vld [vmem:[%s18988_s1 + $0x10] sm:$0xff]   ;;  %vm726_vm0 = vsmask.f32 3328 }
  0x35   : > { %16150 = vsyncadd (%p19004_p0), [#allocation5], 4294958080  ;;  %14403 = vmatprep.subr.bf16.mxu0 %v15835_v0  ;;  %v15838_v3 = vld [vmem:[%s18988_s1 + $0x18] sm:$0xff]   ;;  %v15839_v5 = vld [vmem:[%s18988_s1 + $0x20] sm:$0xff]   ;;  %vm727_vm1 = vsmask.f32 7440 }
  0x36   : > { %s288_s18 = scalar_select %p287_p5, %s16239_s28, 1  ;;  %14404 = vmatpush3.bf16.msra.mxu0 %v15835_v0  ;;  %v15840_v6 = vld [vmem:[%s18988_s1 + $0x28] sm:$0xff]   ;;  %v15841_v7 = vld [vmem:[%s18988_s1 + $0x30] sm:$0xff]   ;;  %v15842_v8 = vld [vmem:[%s18988_s1 + $0x38] sm:$0xff]   ;;  %vm1595_vm3 = vcmask 1042432   ;;  %vm1596_vm4 = vcmask 1046532  }
  0x37   : > { %14405 = vmatprep.subr.bf16.mxu0 %v15836_v1  ;;  %v15845_v9 = vld [vmem:[%s18988_s1 + $0x40] sm:$0xff]   ;;  %v15848_v12 = vld [vmem:[%s18988_s1 + $0x48] sm:$0xff]   ;;  %v15851_v13 = vld [vmem:[%s18988_s1 + $0x50] sm:$0xff]   ;;  %vm5971_vm6 = vcmask 1040384   ;;  %vm5972_vm7 = vsmask.f32 256 }
  0x38   : > { %s15779_s13 = smul.u32 216, %s288_s18  ;;  %v15854_v16 = vld [vmem:[%s18988_s1 + $0x58] sm:$0xff]   ;;  %v15857_v17 = vld [vmem:[%s18988_s1 + $0x60] sm:$0xff]   ;;  %v15860_v20 = vld [vmem:[%s18988_s1 + $0x68] sm:$0xff]   ;;  %vm6028_vm9 = vsmask.f32 7938 }
  0x39   : > { %v15863_v21 = vld [vmem:[%s18988_s1 + $0x70] sm:$0xff]   ;;  %v15866_v24 = vld [vmem:[%s18988_s1 + $0x78] sm:$0xff]   ;;  %v16373_v34 = vld [vmem:[%s18988_s1 + $0x80] sm:$0xff]   ;;  %vm6503_vm11 = vcmask 1043456   ;;  %vm6180_vm12 = vsmask.f32 4368 }
  0x3a   : > { %s16315_s8 = scalar_lea.vmem %s18987_s0, %s15779_s13  ;;  %14406 = vmatpush3.bf16.msra.mxu0 %v15836_v1  ;;  %vm16396_vm2 = vmor %vm726_vm0, %vm727_vm1  ;;  %s284_s14 = sand.u32 1, %s16161_s25  }
  0x3b   : > { %14407 = vmatprep.subr.bf16.mxu0 %v15837_v2  ;;  %v15843_v4 = vld [vmem:[%s16315_s8] sm:$0xff]   ;;  %v15844_v10 = vld [vmem:[%s16315_s8 + $0xc] sm:$0xff]   ;;  %v15846_v11 = vld [vmem:[%s16315_s8 + $0x18] sm:$0xff]   ;;  %s12935_s19 = sshll.u32 %s284_s14, 8  ;;  %p19017_p9 = scmp.ne.s32.totalorder %s18998_s11, 0 }
  0x3c   : > { %14419 = vmatprep.mubr.bf16.mxu0 %v15843_v4  ;;  %v15847_v14 = vld [vmem:[%s16315_s8 + $0x24] sm:$0xff]   ;;  %v15849_v15 = vld [vmem:[%s16315_s8 + $0x30] sm:$0xff]   ;;  %v15850_v18 = vld [vmem:[%s16315_s8 + $0x3c] sm:$0xff]   ;;  %s18737_s20 = scalar_lea.vmem [#allocation7], %s12935_s19  ;;  %s16175_s23 = smov [#allocation7]  }
  0x3d   : > { %v15852_v19 = vld [vmem:[%s16315_s8 + $0x48] sm:$0xff]   ;;  %v15853_v22 = vld [vmem:[%s16315_s8 + $0x54] sm:$0xff]   ;;  %v15855_v23 = vld [vmem:[%s16315_s8 + $0x60] sm:$0xff]   ;;  %s12855_s16 = sshll.u32 %s18737_s20, 4  ;;  %s16107_s29 = sshll.u32 %s16175_s23, 4  ;;  %s18939_s16 = int_to_ptr.vmem [resolvable:$true] %s12855_s16  ;;  %s16108_s29 = int_to_ptr.vmem [resolvable:$false] %s16107_s29 }
  0x3e   : > { %14408 = vmatpush3.bf16.msra.mxu0 %v15837_v2  ;;  %v678_v25 = vld [vmem:[%s16315_s8] sm:$0xf]  ;;  %v679_v26 = vld [vmem:[%s16315_s8 + $0x4] sm:$0xf]  ;;  %v680_v27 = vld [vmem:[%s16315_s8 + $0x8] sm:$0x1]  ;;  %p16110_p2 = scmp.lt.s32.totalorder %s18939_s16, %s16108_s29 }
  0x3f   : > { %14409 = vmatprep.subr.bf16.mxu0 %v15838_v3  ;;  %v681_v28 = vld [vmem:[%s16315_s8 + $0xc] sm:$0xf]  ;;  %v730_v29 = vshrl.u32 %v678_v25, 16  ;;  %v682_v30 = vld [vmem:[%s16315_s8 + $0x10] sm:$0xf]  ;;  %v733_v31 = vshll.u32 %v678_v25, 16  ;;  %vm16623_vm5 = vmor %vm1595_vm3, %vm1596_vm4 }
  0x40   : > { %v739_v32 = vshll.u32 %v679_v26, 16  ;;  %v743_v33 = vshrl.u32 %v679_v26, 16  ;;  %v754_v35 = vshrl.u32 %v681_v28, 16  ;;  %v757_v36 = vshll.u32 %v681_v28, 16  ;;  %v15856_v37 = vld [vmem:[%s16315_s8 + $0x6c] sm:$0xff]   ;;  %v15858_v41 = vld [vmem:[%s16315_s8 + $0x78] sm:$0xff]   ;;  %vm17641_vm8 = vmand %vm5971_vm6, %vm5972_vm7 }
  0x41   : > { %v763_v38 = vshll.u32 %v682_v30, 16  ;;  %v767_v39 = vshrl.u32 %v682_v30, 16  ;;  %v684_v40 = vld [vmem:[%s16315_s8 + $0x18] sm:$0xf]  ;;  %v749_v42 = vshll.u32 %v680_v27, 16  ;;  %v732_v43 = vrot.slane %v730_v29, 4  ;;  %vm17648_vm10 = vmand %vm5971_vm6, %vm6028_vm9 }
  0x42   : > { %14410 = vmatpush3.bf16.msra.mxu0 %v15838_v3  ;;  %v735_v44 = vrot.slane %v733_v31, 5  ;;  %v16378_v45 = vrot.slane %v739_v32, 5  ;;  %v745_v46 = vrot.slane %v743_v33, 4  ;;  %v685_v47 = vld [vmem:[%s16315_s8 + $0x1c] sm:$0xf]  ;;  %v756_v48 = vrot.slane %v754_v35, 4  ;;  %vm17755_vm13 = vmand %vm6503_vm11, %vm6028_vm9 }
  0x43   : > { %14411 = vmatprep.subr.bf16.mxu0 %v15839_v5  ;;  %v759_v49 = vrot.slane %v757_v36, 5  ;;  %v778_v50 = vshrl.u32 %v684_v40, 16  ;;  %v781_v51 = vshll.u32 %v684_v40, 16  ;;  %v16382_v52 = vrot.slane %v763_v38, 5  ;;  %v683_v54 = vld [vmem:[%s16315_s8 + $0x14] sm:$0x1]  ;;  %vm17762_vm14 = vmor %vm5972_vm7, %vm6180_vm12 }
  0x44   : > { %v769_v53 = vrot.slane %v767_v39, 4  ;;  %v787_v55 = vshll.u32 %v685_v47, 16  ;;  %v791_v56 = vshrl.u32 %v685_v47, 16  ;;  %v687_v57 = vld [vmem:[%s16315_s8 + $0x24] sm:$0xf]  ;;  %v736_v58 = vor.u32 %v735_v44, %v732_v43  ;;  %v15861_v1 = vld [vmem:[%s16315_s8 + $0x90] sm:$0xff]  }
  0x45   : > { %v746_v59 = vor.u32 %v745_v46, %v16378_v45  ;;  %v751_v60 = vrot.slane %v749_v42, 5  ;;  %v760_v61 = vor.u32 %v759_v49, %v756_v48  ;;  %v780_v62 = vrot.slane %v778_v50, 4  ;;  %v15859_v0 = vld [vmem:[%s16315_s8 + $0x84] sm:$0xff]   ;;  %v691_v25 = vld [vmem:[%s16315_s8 + $0x34] sm:$0xf]  ;;  %v15862_v32 = vld [vmem:[%s16315_s8 + $0x9c] sm:$0xff]  }
  0x46   : > { %14412 = vmatpush3.bf16.msra.mxu0 %v15839_v5  ;;  %v783_v63 = vrot.slane %v781_v51, 5  ;;  %v770_v2 = vor.u32 %v769_v53, %v16382_v52  ;;  %v773_v3 = vshll.u32 %v683_v54, 16  ;;  %v802_v4 = vshrl.u32 %v687_v57, 16  ;;  %v15864_v38 = vld [vmem:[%s16315_s8 + $0xa8] sm:$0xff]   ;;  %v692_v44 = vld [vmem:[%s16315_s8 + $0x38] sm:$0x1] }
  0x47   : > { %14413 = vmatprep.subr.bf16.mxu0 %v15840_v6  ;;  %v805_v5 = vshll.u32 %v687_v57, 16  ;;  %v694_v46 = vld [vmem:[%s16315_s8 + $0x40] sm:$0xf]  ;;  %v696_v51 = vld [vmem:[%s16315_s8 + $0x48] sm:$0xf]  ;;  %s16103_s22 = scalar_lea.vmem %s18939_s16, 4096 }
  0x48   : > { %v699_v57 = vld [vmem:[%s16315_s8 + $0x54] sm:$0xf]  ;;  %p16104_p6 = scmp.ne.s32.totalorder %s18939_s16, %s16103_s22  ;;  %s16109_s9 = scalar_lea.vmem %s16108_s29, 8192 }
  0x49   : > { %p16111_p3 = scmp.lt.s32.totalorder %s16109_s9, %s16103_s22 }
  0x4a   : > { %14414 = vmatpush3.bf16.msra.mxu0 %v15840_v6  ;;  %v16390_v6 = vrot.slane %v787_v55, 5  ;;  %p16105_p10 = pnand %p16104_p6, %p19017_p9 }
  0x4b   : > { %14415 = vmatprep.subr.bf16.mxu0 %v15841_v7  ;;  %p16112_p4 = por %p16111_p3, %p16110_p2 }
  0x4c   : > { %p16106_p12 = pneg %p16105_p10 }
  0x4e   : > { %14416 = vmatpush3.bf16.msra.mxu0 %v15841_v7  ;;  %v793_v7 = vrot.slane %v791_v56, 4  ;;  %v839_v56 = vshrl.u32 %v691_v25, 16  ;;  %p16113_p7 = pnand %p16112_p4, %p16106_p12 }
  0x4f   : > { %14417 = vmatprep.subr.bf16.mxu0 %v15842_v8 }
  0x52   : > { %14418 = vmatpush3.bf16.msra.mxu0 %v15842_v8  ;;  %v737_v8 = vrot.slane %v736_v58, 4 }
  0x53   : > { %14451 = vmatprep.subr.bf16.mxu0 %v15845_v9 }
  0x54   : > { %v742_v26 = vsel %vm16396_vm2, %v737_v8, %v16378_v45  ;;  %v693_v45 = vld [vmem:[%s16315_s8 + $0x3c] sm:$0xf] }
  0x55   : > { %14420 = vmatmul.mubr.bf16.vlgmr.msra.gmra.mrb[0].mxu0 %v15844_v10  ;;  %v686_v10 = vld [vmem:[%s16315_s8 + $0x20] sm:$0x1] }
  0x56   : > { %14452 = vmatpush3.bf16.msra.mxu0 %v15845_v9  ;;  %14423 = vmatprep.mubr.bf16.mxu0 %v15846_v11  ;;  %v747_v9 = vrot.slane %v746_v59, 4  ;;  %v688_v11 = vld [vmem:[%s16315_s8 + $0x28] sm:$0xf] }
  0x57   : > { %14453 = vmatprep.subr.bf16.mxu0 %v15848_v12 }
  0x58   : > { %v752_v27 = vsel %vm16396_vm2, %v747_v9, %v751_v60  ;;  %v850_v60 = vshrl.u32 %v693_v45, 16  ;;  %v898_v9 = vshrl.u32 %v699_v57, 16 }
  0x59   : > { %v12977_v43 = vcombine.low %v742_v26, %v752_v27 }
  0x5a   : > { %14454 = vmatpush3.bf16.msra.mxu0 %v15848_v12 }
  0x5b   : > { %14455 = vmatprep.subr.bf16.mxu0 %v15851_v13 }
  0x5d   : > { %14424 = vmatmul.mubr.bf16.gmra.mrb[4].mxu0 %v15847_v14  ;;  %v784_v14 = vor.u32 %v783_v63, %v780_v62  ;;  %v700_v62 = vld [vmem:[%s16315_s8 + $0x58] sm:$0xf]  ;;  %v859_v63 = vshll.u32 %v694_v46, 16 }
  0x5e   : > { %14427 = vmatprep.mubr.bf16.mxu0 %v15849_v15  ;;  %14456 = vmatpush3.bf16.msra.mxu0 %v15851_v13  ;;  %v761_v13 = vrot.slane %v760_v61, 4  ;;  %v689_v15 = vld [vmem:[%s16315_s8 + $0x2c] sm:$0x1]  ;;  %v853_v61 = vshll.u32 %v693_v45, 16 }
  0x5f   : > { %14457 = vmatprep.subr.bf16.mxu0 %v15854_v16  ;;  %v16412_v29 = vrot.slane %v784_v14, 4  ;;  %v821_v36 = vshll.u32 %v689_v15, 16  ;;  %v702_v14 = vld [vmem:[%s16315_s8 + $0x60] sm:$0xf] }
  0x60   : > { %v766_v28 = vsel %vm16396_vm2, %v761_v13, %v16382_v52  ;;  %v697_v52 = vld [vmem:[%s16315_s8 + $0x4c] sm:$0xf]  ;;  %v911_v13 = vshrl.u32 %v700_v62, 16 }
  0x61   : > { %v790_v48 = vsel %vm16396_vm2, %v16412_v29, %v16390_v6  ;;  %v16437_v54 = vrot.slane %v821_v36, 5  ;;  %v887_v8 = vshrl.u32 %v697_v52, 16 }
  0x62   : > { %14458 = vmatpush3.bf16.msra.mxu0 %v15854_v16  ;;  %v771_v16 = vrot.slane %v770_v2, 4  ;;  %v877_v2 = vshll.u32 %v696_v51, 16 }
  0x63   : > { %14459 = vmatprep.subr.bf16.mxu0 %v15857_v17  ;;  %v889_v27 = vrot.slane %v887_v8, 4 }
  0x65   : > { %14428 = vmatmul.mubr.bf16.gmra.mrb[8].mxu0 %v15850_v18  ;;  %v804_v18 = vrot.slane %v802_v4, 4 }
  0x66   : > { %14431 = vmatprep.mubr.bf16.mxu0 %v15852_v19  ;;  %14460 = vmatpush3.bf16.msra.mxu0 %v15857_v17  ;;  %v775_v17 = vrot.slane %v773_v3, 5  ;;  %v807_v19 = vrot.slane %v805_v5, 5  ;;  %v15865_v3 = vld [vmem:[%s16315_s8 + $0xb4] sm:$0xff]   ;;  %v845_v5 = vshll.u32 %v692_v44, 16 }
  0x67   : > { %14461 = vmatprep.subr.bf16.mxu0 %v15860_v20 }
  0x68   : > { %v776_v33 = vsel %vm16396_vm2, %v771_v16, %v775_v17  ;;  %v808_v35 = vor.u32 %v807_v19, %v804_v18  ;;  %v841_v16 = vrot.slane %v839_v56, 4  ;;  %v695_v17 = vld [vmem:[%s16315_s8 + $0x44] sm:$0x1]  ;;  %v852_v18 = vrot.slane %v850_v60, 4 }
  0x69   : > { %v16427_v47 = vcombine.low %v766_v28, %v776_v33  ;;  %v855_v19 = vrot.slane %v853_v61, 5  ;;  %v922_v28 = vshrl.u32 %v702_v14, 16 }
  0x6a   : > { %14462 = vmatpush3.bf16.msra.mxu0 %v15860_v20  ;;  %v690_v20 = vld [vmem:[%s16315_s8 + $0x30] sm:$0xf]  ;;  %v16435_v53 = vrot.slane %v808_v35, 4  ;;  %v913_v35 = vrot.slane %v911_v13, 4 }
  0x6b   : > { %14463 = vmatprep.subr.bf16.mxu0 %v15863_v21  ;;  %v826_v30 = vshrl.u32 %v690_v20, 16  ;;  %v829_v31 = vshll.u32 %v690_v20, 16  ;;  %v16453_v20 = vrot.slane %v859_v63, 5 }
  0x6d   : > { %14432 = vmatmul.mubr.bf16.gmra.mrb[12].mxu0 %v15853_v22  ;;  %v797_v22 = vshll.u32 %v686_v10, 16  ;;  %v828_v49 = vrot.slane %v826_v30, 4  ;;  %v831_v50 = vrot.slane %v829_v31, 5  ;;  %v901_v10 = vshll.u32 %v699_v57, 16 }
  0x6e   : > { %14435 = vmatprep.mubr.bf16.mxu0 %v15855_v23  ;;  %14464 = vmatpush3.bf16.msra.mxu0 %v15863_v21  ;;  %v794_v21 = vor.u32 %v793_v7, %v16390_v6  ;;  %v811_v23 = vshll.u32 %v688_v11, 16  ;;  %v883_v7 = vshll.u32 %v697_v52, 16  ;;  %v925_v30 = vshll.u32 %v702_v14, 16 }
  0x6f   : > { %14465 = vmatprep.subr.bf16.mxu0 %v15866_v24  ;;  %v16420_v40 = vrot.slane %v797_v22, 5  ;;  %v832_v4 = vor.u32 %v831_v50, %v828_v49  ;;  %v698_v22 = vld [vmem:[%s16315_s8 + $0x50] sm:$0x1]  ;;  %v900_v31 = vrot.slane %v898_v9, 4 }
  0x70   : > { %v16418_v39 = vrot.slane %v794_v21, 4  ;;  %v16457_v26 = vrot.slane %v883_v7, 5  ;;  %v893_v50 = vshll.u32 %v698_v22, 16  ;;  %v927_v52 = vrot.slane %v925_v30, 5 }
  0x71   : > { %v833_v36 = vrot.slane %v832_v4, 4 }
  0x72   : > { %14466 = vmatpush3.bf16.msra.mxu0 %v15866_v24  ;;  %v815_v24 = vshrl.u32 %v688_v11, 16  ;;  %v800_v58 = vsel %vm16396_vm2, %v16418_v39, %v16420_v40  ;;  %v907_v11 = vshll.u32 %v700_v62, 16  ;;  %v869_v39 = vshll.u32 %v695_v17, 16  ;;  %v701_v40 = vld [vmem:[%s16315_s8 + $0x5c] sm:$0x1] }
  0x73   : > { %14499 = vmatprep.subr.bf16.mxu0 %v16373_v34  ;;  %v890_v56 = vor.u32 %v889_v27, %v16457_v26  ;;  %v917_v60 = vshll.u32 %v701_v40, 16  ;;  %v12979_v61 = vcombine.low %v790_v48, %v800_v58  ;;  %v895_v48 = vrot.slane %v893_v50, 5  ;;  %v708_v27 = vld [vmem:[%s16315_s8 + $0x78] sm:$0xf] }
  0x74   : > { %v817_v42 = vrot.slane %v815_v24, 4  ;;  %v879_v24 = vrot.slane %v877_v2, 5  ;;  %v16459_v33 = vrot.slane %v907_v11, 5  ;;  %v705_v2 = vld [vmem:[%s16315_s8 + $0x6c] sm:$0xf]  ;;  %v970_v50 = vshrl.u32 %v708_v27, 16 }
  0x75   : > { %14436 = vmatmul.mubr.bf16.gmra.mrb[16].mxu0 %v15856_v37  ;;  %v835_v37 = vshll.u32 %v691_v25, 16  ;;  %v703_v25 = vld [vmem:[%s16315_s8 + $0x64] sm:$0xf]  ;;  %v919_v9 = vrot.slane %v917_v60, 5  ;;  %v946_v14 = vshrl.u32 %v705_v2, 16 }
  0x76   : > { %14439 = vmatprep.mubr.bf16.mxu0 %v15858_v41  ;;  %v16422_v41 = vrot.slane %v811_v23, 5  ;;  %v931_v45 = vshll.u32 %v703_v25, 16 }
  0x77   : > { %v16439_v55 = vrot.slane %v835_v37, 5 }
  0x78   : > { %v818_v59 = vor.u32 %v817_v42, %v16422_v41  ;;  %v856_v42 = vor.u32 %v855_v19, %v852_v18  ;;  %v814_v62 = vsel %vm16396_vm2, %v16435_v53, %v16422_v41  ;;  %v891_v41 = vrot.slane %v890_v56, 4  ;;  %v707_v19 = vld [vmem:[%s16315_s8 + $0x74] sm:$0x1] }
  0x79   : > { %v842_v37 = vor.u32 %v841_v16, %v16439_v55  ;;  %v838_v11 = vsel %vm16396_vm2, %v833_v36, %v16439_v55  ;;  %v949_v16 = vshll.u32 %v705_v2, 16  ;;  %v710_v2 = vld [vmem:[%s16315_s8 + $0x80] sm:$0x1] }
  0x7a   : > { %v16450_v15 = vrot.slane %v818_v59, 4  ;;  %v914_v59 = vor.u32 %v913_v35, %v16459_v33  ;;  %v896_v22 = vsel %vm16396_vm2, %v891_v41, %v895_v48  ;;  %v711_v35 = vld [vmem:[%s16315_s8 + $0x84] sm:$0xf] }
  0x7b   : > { %v843_v63 = vrot.slane %v842_v37, 4  ;;  %v951_v36 = vrot.slane %v949_v16, 5  ;;  %v994_v56 = vshrl.u32 %v711_v35, 16 }
  0x7c   : > { %v824_v6 = vsel %vm16396_vm2, %v16450_v15, %v16437_v54  ;;  %v915_v8 = vrot.slane %v914_v59, 4 }
  0x7d   : > { %14440 = vmatmul.mubr.bf16.gmra.mrb[20].mxu0 %v15859_v0  ;;  %v863_v0 = vshrl.u32 %v694_v46, 16  ;;  %v935_v46 = vshrl.u32 %v703_v25, 16  ;;  %v12980_v17 = vcombine.low %v814_v62, %v824_v6  ;;  %v15870_v25 = vld [vmem:[%s18988_s1 + $0x98] sm:$0xff]  }
  0x7e   : > { %14443 = vmatprep.mubr.bf16.mxu0 %v15861_v1  ;;  %v874_v1 = vshrl.u32 %v696_v51, 16  ;;  %v924_v51 = vrot.slane %v922_v28, 4  ;;  %v717_v6 = vld [vmem:[%s16315_s8 + $0x9c] sm:$0xf] }
  0x7f   : > { %v865_v21 = vrot.slane %v863_v0, 4  ;;  %v871_v0 = vrot.slane %v869_v39, 5  ;;  %v937_v7 = vrot.slane %v935_v46, 4  ;;  %v712_v39 = vld [vmem:[%s16315_s8 + $0x88] sm:$0xf] }
  0x80   : > { %v876_v23 = vrot.slane %v874_v1, 4  ;;  %v704_v1 = vld [vmem:[%s16315_s8 + $0x68] sm:$0x1]  ;;  %v928_v58 = vor.u32 %v927_v52, %v924_v51  ;;  %v714_v46 = vld [vmem:[%s16315_s8 + $0x90] sm:$0xf]  ;;  %v973_v51 = vshll.u32 %v708_v27, 16 }
  0x81   : > { %v866_v44 = vor.u32 %v865_v21, %v16453_v20  ;;  %v941_v13 = vshll.u32 %v704_v1, 16  ;;  %v1003_v59 = vshll.u32 %v712_v39, 16  ;;  %v1007_v60 = vshrl.u32 %v712_v39, 16  ;;  %v15871_v1 = vld [vmem:[%s18988_s1 + $0xa0] sm:$0xff]  }
  0x82   : > { %v880_v49 = vor.u32 %v879_v24, %v876_v23  ;;  %v16503_v18 = vrot.slane %v928_v58, 4  ;;  %v920_v24 = vsel %vm16396_vm2, %v915_v8, %v919_v9  ;;  %v975_v48 = vrot.slane %v973_v51, 5  ;;  %v718_v8 = vld [vmem:[%s16315_s8 + $0xa0] sm:$0xf]  ;;  %v721_v51 = vld [vmem:[%s16315_s8 + $0xac] sm:$0xf] }
  0x83   : > { %v867_v4 = vrot.slane %v866_v44, 4  ;;  %v16520_v30 = vrot.slane %v941_v13, 5  ;;  %v996_v9 = vrot.slane %v994_v56, 4 }
  0x84   : > { %v881_v29 = vrot.slane %v880_v49, 4  ;;  %v715_v49 = vld [vmem:[%s16315_s8 + $0x94] sm:$0xf] }
  0x85   : > { %14444 = vmatmul.mubr.bf16.gmra.mrb[24].mxu0 %v15862_v32  ;;  %v903_v32 = vrot.slane %v901_v10, 5  ;;  %v706_v10 = vld [vmem:[%s16315_s8 + $0x70] sm:$0xf]  ;;  %v872_v15 = vsel %vm16396_vm2, %v867_v4, %v871_v0  ;;  %v1021_v4 = vshll.u32 %v714_v46, 16 }
  0x86   : > { %14447 = vmatprep.mubr.bf16.mxu0 %v15864_v38  ;;  %v847_v38 = vrot.slane %v845_v5, 5  ;;  %v16480_v5 = vrot.slane %v931_v45, 5  ;;  %v955_v21 = vshll.u32 %v706_v10, 16  ;;  %v959_v37 = vshrl.u32 %v706_v10, 16 }
  0x87   : > { %v904_v57 = vor.u32 %v903_v32, %v900_v31  ;;  %v948_v31 = vrot.slane %v946_v14, 4  ;;  %v709_v32 = vld [vmem:[%s16315_s8 + $0x7c] sm:$0xf]  ;;  %v1023_v16 = vrot.slane %v1021_v4, 5 }
  0x88   : > { %v848_v54 = vsel %vm16396_vm2, %v843_v63, %v847_v38  ;;  %v938_v55 = vor.u32 %v937_v7, %v16480_v5  ;;  %v965_v38 = vshll.u32 %v707_v19, 16  ;;  %v934_v44 = vsel %vm16396_vm2, %v16503_v18, %v16480_v5 }
  0x89   : > { %v905_v53 = vrot.slane %v904_v57, 4  ;;  %v12981_v28 = vcombine.low %v838_v11, %v848_v54  ;;  %v16533_v45 = vrot.slane %v955_v21, 5  ;;  %v979_v52 = vshll.u32 %v709_v32, 16 }
  0x8a   : > { %v997_v57 = vshll.u32 %v711_v35, 16  ;;  %v952_v62 = vor.u32 %v951_v36, %v948_v31  ;;  %v961_v63 = vrot.slane %v959_v37, 4  ;;  %v16541_v0 = vrot.slane %v965_v38, 5 }
  0x8b   : > { %v910_v23 = vsel %vm16396_vm2, %v905_v53, %v16459_v33  ;;  %v16524_v33 = vrot.slane %v938_v55, 4  ;;  %v1027_v5 = vshll.u32 %v715_v49, 16  ;;  %v1031_v7 = vshrl.u32 %v715_v49, 16  ;;  %v713_v53 = vld [vmem:[%s16315_s8 + $0x8c] sm:$0x1] }
  0x8c   : > { %v16548_v58 = vrot.slane %v979_v52, 5  ;;  %v999_v10 = vrot.slane %v997_v57, 5  ;;  %v16552_v11 = vrot.slane %v1003_v59, 5  ;;  %v1009_v54 = vrot.slane %v1007_v60, 4  ;;  %v723_v57 = vld [vmem:[%s16315_s8 + $0xb4] sm:$0xf] }
  0x8d   : > { %14448 = vmatmul.mubr.bf16.gmra.mrb[28].mxu0 %v15865_v3  ;;  %v857_v3 = vrot.slane %v856_v42, 4  ;;  %v16527_v42 = vcombine.low %v910_v23, %v920_v24  ;;  %v16554_v13 = vrot.slane %v952_v62, 4  ;;  %v962_v14 = vor.u32 %v961_v63, %v16533_v45  ;;  %v724_v63 = vld [vmem:[%s16315_s8 + $0xb8] sm:$0xf] }
  0x8e   : > { %14467 = vmatprep.mubr.bf16.mxu0 %v12977_v43  ;;  %v15868_v43 = vld [vmem:[%s18988_s1 + $0x88] sm:$0xff]   ;;  %v1033_v18 = vrot.slane %v1031_v7, 4  ;;  %v989_v21 = vshll.u32 %v710_v2, 16  ;;  %v1055_v23 = vshrl.u32 %v718_v8, 16  ;;  %v1010_v27 = vor.u32 %v1009_v54, %v16552_v11 }
  0x8f   : > { %v958_v31 = vsel %vm16396_vm2, %v16554_v13, %v16533_v45  ;;  %v963_v36 = vrot.slane %v962_v14, 4  ;;  %v1075_v7 = vshll.u32 %v721_v51, 16 }
  0x90   : > { %v991_v49 = vrot.slane %v989_v21, 5 }
  0x95   : > { %14468 = vmatmul.mubr.bf16.vlgmr.msra.gmra.mrb[0].mxu0 %v16427_v47  ;;  %v862_v47 = vsel %vm16396_vm2, %v857_v3, %v16453_v20  ;;  %v886_v20 = vsel %vm16396_vm2, %v881_v29, %v16457_v26  ;;  %v1018_v3 = vshrl.u32 %v714_v46, 16  ;;  %v972_v29 = vrot.slane %v970_v50, 4 }
  0x96   : > { %14500 = vmatpush3.bf16.msra.mxu0 %v16373_v34  ;;  %14471 = vmatprep.mubr.bf16.mxu0 %v12979_v61  ;;  %v15869_v34 = vld [vmem:[%s18988_s1 + $0x90] sm:$0xff]   ;;  %v12982_v26 = vcombine.low %v862_v47, %v872_v15  ;;  %v12983_v40 = vcombine.low %v886_v20, %v896_v22  ;;  %v944_v61 = vsel %vm16396_vm2, %v16524_v33, %v16520_v30  ;;  %v15872_v47 = vld [vmem:[%s18988_s1 + $0xa8] sm:$0xff]   ;;  %v1042_v15 = vshrl.u32 %v717_v6, 16  ;;  %v716_v20 = vld [vmem:[%s16315_s8 + $0x98] sm:$0x1] }
  0x97   : > { %14501 = vmatprep.subr.bf16.mxu0 %v15868_v43  ;;  %v1020_v55 = vrot.slane %v1018_v3, 4  ;;  %v976_v19 = vor.u32 %v975_v48, %v972_v29  ;;  %v1051_v22 = vshll.u32 %v718_v8, 16  ;;  %v15873_v30 = vld [vmem:[%s18988_s1 + $0xb0] sm:$0xff]   ;;  %v1037_v39 = vshll.u32 %v716_v20, 16 }
  0x98   : > { %v1044_v35 = vrot.slane %v1042_v15, 4  ;;  %v1057_v50 = vrot.slane %v1055_v23, 4  ;;  %v1079_v48 = vshrl.u32 %v721_v51, 16  ;;  %v1077_v15 = vrot.slane %v1075_v7, 5 }
  0x99   : > { %v1024_v37 = vor.u32 %v1023_v16, %v1020_v55  ;;  %v977_v46 = vrot.slane %v976_v19, 4  ;;  %v1039_v4 = vrot.slane %v1037_v39, 5 }
  0x9a   : > { %14502 = vmatpush3.bf16.msra.mxu0 %v15868_v43  ;;  %v983_v43 = vshrl.u32 %v709_v32, 16  ;;  %v719_v32 = vld [vmem:[%s16315_s8 + $0xa4] sm:$0x1] }
  0x9b   : > { %14503 = vmatprep.subr.bf16.mxu0 %v15869_v34  ;;  %v1061_v60 = vshll.u32 %v719_v32, 16  ;;  %v1025_v2 = vrot.slane %v1024_v37, 4  ;;  %v982_v8 = vsel %vm16396_vm2, %v977_v46, %v16548_v58 }
  0x9c   : > { %v985_v41 = vrot.slane %v983_v43, 4  ;;  %v1011_v43 = vrot.slane %v1010_v27, 4 }
  0x9d   : > { %14472 = vmatmul.mubr.bf16.gmra.mrb[4].mxu0 %v12980_v17  ;;  %v16560_v17 = vrot.slane %v1027_v5, 5  ;;  %v722_v5 = vld [vmem:[%s16315_s8 + $0xb0] sm:$0x1]  ;;  %v1063_v54 = vrot.slane %v1061_v60, 5 }
  0x9e   : > { %14475 = vmatprep.mubr.bf16.mxu0 %v12981_v28  ;;  %14504 = vmatpush3.bf16.msra.mxu0 %v15869_v34  ;;  %v1045_v34 = vshll.u32 %v717_v6, 16  ;;  %v986_v24 = vor.u32 %v985_v41, %v16548_v58  ;;  %v1013_v28 = vshll.u32 %v713_v53, 16  ;;  %v968_v6 = vsel %vm16396_vm2, %v963_v36, %v16541_v0  ;;  %v16592_v53 = vld [vmem:[%s18988_s1 + $0xc0] sm:$0xff]   ;;  %v1501_v36 = vld [vmem:[%s16315_s8 + $0x8] sm:$0x1] }
  0x9f   : > { %14505 = vmatprep.subr.bf16.mxu0 %v15870_v25  ;;  %v1034_v38 = vor.u32 %v1033_v18, %v16560_v17  ;;  %v1090_v41 = vshrl.u32 %v723_v57, 16  ;;  %v1099_v0 = vshll.u32 %v724_v63, 16  ;;  %v12986_v55 = vcombine.low %v958_v31, %v968_v6 }
  0xa0   : > { %v1047_v33 = vrot.slane %v1045_v34, 5  ;;  %v987_v52 = vrot.slane %v986_v24, 4  ;;  %v1015_v56 = vrot.slane %v1013_v28, 5  ;;  %v1103_v34 = vshrl.u32 %v724_v63, 16  ;;  %v1506_v63 = vld [vmem:[%s16315_s8 + $0x1c] sm:$0xf] }
  0xa1   : > { %v1035_v3 = vrot.slane %v1034_v38, 4  ;;  %v1085_v19 = vshll.u32 %v722_v5, 16  ;;  %v1081_v58 = vrot.slane %v1079_v48, 4  ;;  %v1092_v21 = vrot.slane %v1090_v41, 4  ;;  %v1505_v41 = vld [vmem:[%s16315_s8 + $0x18] sm:$0xe] }
  0xa2   : > { %14506 = vmatpush3.bf16.msra.mxu0 %v15870_v25  ;;  %v1000_v25 = vor.u32 %v999_v10, %v996_v9  ;;  %v1048_v59 = vor.u32 %v1047_v33, %v1044_v35  ;;  %v1093_v9 = vshll.u32 %v723_v57, 16  ;;  %v1105_v23 = vrot.slane %v1103_v34, 4  ;;  %v1499_v35 = vld [vmem:[%s16315_s8] sm:$0xe]  ;;  %v1512_v34 = vld [vmem:[%s16315_s8 + $0x34] sm:$0xf] }
  0xa3   : > { %14507 = vmatprep.subr.bf16.mxu0 %v15871_v1  ;;  %v1016_v28 = vsel %vm16396_vm2, %v1011_v43, %v1015_v56  ;;  %v1082_v32 = vor.u32 %v1081_v58, %v1077_v15  ;;  %v1087_v38 = vrot.slane %v1085_v19, 5  ;;  %v1603_v43 = vrot.slane %v1501_v36, 5 }
  0xa4   : > { %v1001_v45 = vrot.slane %v1000_v25, 4  ;;  %v1049_v10 = vrot.slane %v1048_v59, 4  ;;  %v1095_v20 = vrot.slane %v1093_v9, 5  ;;  %v1500_v25 = vld [vmem:[%s16315_s8 + $0x4] sm:$0xf]  ;;  %v1614_v6 = vrot.slane %v1506_v63, 5 }
  0xa5   : > { %14476 = vmatmul.mubr.bf16.gmra.mrb[8].mxu0 %v12982_v26  ;;  %v12985_v26 = vcombine.low %v934_v44, %v944_v61  ;;  %v16575_v44 = vrot.slane %v1051_v22, 5  ;;  %v1101_v22 = vrot.slane %v1099_v0, 5  ;;  %v1600_v39 = vrot.slane %v1500_v25, 5  ;;  %v1509_v9 = vld [vmem:[%s16315_s8 + $0x28] sm:$0xf] }
  0xa6   : > { %14479 = vmatprep.mubr.bf16.mxu0 %v12983_v40  ;;  %14508 = vmatpush3.bf16.msra.mxu0 %v15871_v1  ;;  %v720_v40 = vld [vmem:[%s16315_s8 + $0xa8] sm:$0xf]  ;;  %v15874_v1 = vld [vmem:[%s18988_s1 + $0xb8] sm:$0xff]   ;;  %v1006_v27 = vsel %vm16396_vm2, %v1001_v45, %v16552_v11  ;;  %v1083_v11 = vrot.slane %v1082_v32, 4  ;;  %v1096_v46 = vor.u32 %v1095_v20, %v1092_v21  ;;  %v1621_v19 = vrot.slane %v1509_v9, 5 }
  0xa7   : > { %14509 = vmatprep.subr.bf16.mxu0 %v15872_v47  ;;  %v1066_v61 = vshrl.u32 %v720_v40, 16  ;;  %v1069_v62 = vshll.u32 %v720_v40, 16  ;;  %v1058_v29 = vor.u32 %v1057_v50, %v16575_v44  ;;  %v12988_v33 = vcombine.low %v1006_v27, %v1016_v28  ;;  %v1510_v20 = vld [vmem:[%s16315_s8 + $0x2c] sm:$0x1]  ;;  %v1515_v28 = vld [vmem:[%s16315_s8 + $0x40] sm:$0xf] }
  0xa8   : > { %v13001_v50 = vrot.slane %v1499_v35, 9  ;;  %v1054_v51 = vsel %vm16396_vm2, %v1049_v10, %v16575_v44  ;;  %v1602_v45 = vrot.slane %v1600_v39, 4  ;;  %v1088_v57 = vsel %vm16396_vm2, %v1083_v11, %v1087_v38  ;;  %v15876_v32 = vld [vmem:[%s18988_s1 + $0xc8] sm:$0xff]  }
  0xa9   : > { %v1068_v13 = vrot.slane %v1066_v61, 4  ;;  %v1071_v14 = vrot.slane %v1069_v62, 5  ;;  %v1059_v18 = vrot.slane %v1058_v29, 4  ;;  %v1097_v59 = vrot.slane %v1096_v46, 4  ;;  %v1503_v62 = vld [vmem:[%s16315_s8 + $0x10] sm:$0xf] }
  0xaa   : > { %14510 = vmatpush3.bf16.msra.mxu0 %v15872_v47  ;;  %v725_v47 = vld [vmem:[%s16315_s8 + $0xbc] sm:$0x1]  ;;  %v1607_v7 = vrot.slane %v1503_v62, 5  ;;  %v1601_v29 = vsel %vm16623_vm5, %v13001_v50, %v1600_v39  ;;  %v1604_v48 = vsel %vm16623_vm5, %v1602_v45, %v1603_v43  ;;  %v1635_v11 = vrot.slane %v1515_v28, 5  ;;  %v1525_v9 = vld [vmem:[%s16315_s8 + $0x68] sm:$0x1] }
  0xab   : > { %14511 = vmatprep.subr.bf16.mxu0 %v15873_v30  ;;  %v1109_v24 = vshll.u32 %v725_v47, 16  ;;  %v1072_v31 = vor.u32 %v1071_v14, %v1068_v13  ;;  %v13033_v0 = vcombine.low %v1601_v29, %v1604_v48  ;;  %v13003_v14 = vrot.slane %v1505_v41, 9  ;;  %v1529_v28 = vld [vmem:[%s16315_s8 + $0x78] sm:$0xe] }
  0xac   : > { %v1616_v47 = vrot.slane %v1614_v6, 4 }
  0xad   : > { %14480 = vmatmul.mubr.bf16.gmra.mrb[12].mxu0 %v16527_v42  ;;  %v992_v42 = vsel %vm16396_vm2, %v987_v52, %v991_v49  ;;  %v1073_v40 = vrot.slane %v1072_v31, 4  ;;  %v1106_v49 = vor.u32 %v1105_v23, %v1101_v22  ;;  %v1064_v52 = vsel %vm16396_vm2, %v1059_v18, %v1063_v54  ;;  %v1508_v18 = vld [vmem:[%s16315_s8 + $0x24] sm:$0xe]  ;;  %v1511_v23 = vld [vmem:[%s16315_s8 + $0x30] sm:$0xe] }
  0xae   : > { %14483 = vmatprep.mubr.bf16.mxu0 %v12985_v26  ;;  %14512 = vmatpush3.bf16.msra.mxu0 %v15873_v30  ;;  %v12987_v16 = vcombine.low %v982_v8, %v992_v42  ;;  %v1030_v30 = vsel %vm16396_vm2, %v1025_v2, %v16560_v17  ;;  %v1040_v26 = vsel %vm16396_vm2, %v1035_v3, %v1039_v4  ;;  %v1111_v17 = vrot.slane %v1109_v24, 5  ;;  %v1502_v2 = vld [vmem:[%s16315_s8 + $0xc] sm:$0xe]  ;;  %v1504_v3 = vld [vmem:[%s16315_s8 + $0x14] sm:$0x1] }
  0xaf   : > { %14513 = vmatprep.subr.bf16.mxu0 %v15874_v1  ;;  %v12989_v37 = vcombine.low %v1030_v30, %v1040_v26  ;;  %v1078_v56 = vsel %vm16396_vm2, %v1073_v40, %v1077_v15  ;;  %v1107_v60 = vrot.slane %v1106_v49, 4  ;;  %v12990_v44 = vcombine.low %v1054_v51, %v1064_v52  ;;  %v1507_v8 = vld [vmem:[%s16315_s8 + $0x20] sm:$0x1]  ;;  %v1513_v24 = vld [vmem:[%s16315_s8 + $0x38] sm:$0x1] }
  0xb0   : > { %v1102_v4 = vsel %vm16396_vm2, %v1097_v59, %v1101_v22  ;;  %v13002_v10 = vrot.slane %v1502_v2, 9  ;;  %v1609_v54 = vrot.slane %v1607_v7, 4  ;;  %v1610_v13 = vrot.slane %v1504_v3, 5  ;;  %v1514_v40 = vld [vmem:[%s16315_s8 + $0x3c] sm:$0xe] }
  0xb1   : > { %v1112_v5 = vsel %vm16396_vm2, %v1107_v60, %v1111_v17  ;;  %v1617_v15 = vrot.slane %v1507_v8, 5  ;;  %v1615_v58 = vsel %vm16623_vm5, %v13003_v14, %v1614_v6  ;;  %v1628_v22 = vrot.slane %v1512_v34, 5  ;;  %v1516_v17 = vld [vmem:[%s16315_s8 + $0x44] sm:$0x1]  ;;  %v1517_v51 = vld [vmem:[%s16315_s8 + $0x48] sm:$0xe] }
  0xb2   : > { %14514 = vmatpush3.bf16.msra.mxu0 %v15874_v1  ;;  %v12991_v1 = vcombine.low %v1078_v56, %v1088_v57  ;;  %v12992_v42 = vcombine.low %v1102_v4, %v1112_v5  ;;  %v13004_v27 = vrot.slane %v1508_v18, 9  ;;  %v1623_v26 = vrot.slane %v1621_v19, 4  ;;  %v1519_v52 = vld [vmem:[%s16315_s8 + $0x50] sm:$0x1]  ;;  %v1521_v60 = vld [vmem:[%s16315_s8 + $0x58] sm:$0xf] }
  0xb3   : > { %14547 = vmatprep.subr.bf16.mxu0 %v16592_v53  ;;  %v1618_v21 = vsel %vm16623_vm5, %v1616_v47, %v1617_v15  ;;  %v1624_v31 = vrot.slane %v1510_v20, 5  ;;  %v13005_v35 = vrot.slane %v1511_v23, 9  ;;  %v1631_v36 = vrot.slane %v1513_v24, 5  ;;  %v1524_v2 = vld [vmem:[%s16315_s8 + $0x64] sm:$0xf] }
  0xb4   : > { %v13035_v30 = vcombine.low %v1615_v58, %v1618_v21  ;;  %v1622_v38 = vsel %vm16623_vm5, %v13004_v27, %v1621_v19  ;;  %v13006_v56 = vrot.slane %v1514_v40, 9  ;;  %v1637_v57 = vrot.slane %v1635_v11, 4  ;;  %v1520_v3 = vld [vmem:[%s16315_s8 + $0x54] sm:$0xe]  ;;  %v1522_v4 = vld [vmem:[%s16315_s8 + $0x5c] sm:$0x1] }
  0xb5   : > { %14484 = vmatmul.mubr.bf16.gmra.mrb[16].mxu0 %v12986_v55  ;;  %v1608_v55 = vsel %vm16623_vm5, %v13002_v10, %v1607_v7  ;;  %v1625_v39 = vsel %vm16623_vm5, %v1623_v26, %v1624_v31  ;;  %v1629_v46 = vsel %vm16623_vm5, %v13005_v35, %v1628_v22  ;;  %v1638_v59 = vrot.slane %v1516_v17, 5  ;;  %v15879_v8 = vld [vmem:[%s18988_s1 + $0xe0] sm:$0xff]   ;;  %v1527_v47 = vld [vmem:[%s16315_s8 + $0x70] sm:$0xf]  ;;  %v1530_v18 = vld [vmem:[%s16315_s8 + $0x7c] sm:$0xf] }
  0xb6   : > { %14487 = vmatprep.mubr.bf16.mxu0 %v12987_v16  ;;  %v1611_v16 = vsel %vm16623_vm5, %v1609_v54, %v1610_v13  ;;  %v13036_v45 = vcombine.low %v1622_v38, %v1625_v39  ;;  %v1645_v63 = vrot.slane %v1519_v52, 5  ;;  %v1636_v5 = vsel %vm16623_vm5, %v13006_v56, %v1635_v11  ;;  %v1526_v21 = vld [vmem:[%s16315_s8 + $0x6c] sm:$0xe]  ;;  %v1528_v24 = vld [vmem:[%s16315_s8 + $0x74] sm:$0x1]  ;;  %v15882_v40 = vld [vmem:[%s18988_s1 + $0xf8] sm:$0xff]  }
  0xb7   : > { %v13034_v25 = vcombine.low %v1608_v55, %v1611_v16  ;;  %v1639_v7 = vsel %vm16623_vm5, %v1637_v57, %v1638_v59  ;;  %v1649_v6 = vrot.slane %v1521_v60, 5  ;;  %v1656_v41 = vrot.slane %v1524_v2, 5  ;;  %v15880_v16 = vld [vmem:[%s18988_s1 + $0xe8] sm:$0xff]   ;;  %v15881_v27 = vld [vmem:[%s18988_s1 + $0xf0] sm:$0xff]   ;;  %v1537_v57 = vld [vmem:[%s16315_s8 + $0x98] sm:$0x1] }
  0xb8   : > { %v13008_v54 = vrot.slane %v1520_v3, 9  ;;  %v1652_v14 = vrot.slane %v1522_v4, 5  ;;  %v1659_v55 = vrot.slane %v1525_v9, 5  ;;  %v1663_v20 = vrot.slane %v1527_v47, 5  ;;  %v1533_v31 = vld [vmem:[%s16315_s8 + $0x88] sm:$0xf] }
  0xb9   : > { %v1651_v13 = vrot.slane %v1649_v6, 4  ;;  %v1658_v34 = vrot.slane %v1656_v41, 4  ;;  %v13010_v35 = vrot.slane %v1526_v21, 9  ;;  %v1536_v11 = vld [vmem:[%s16315_s8 + $0x94] sm:$0xf]  ;;  %v1687_v4 = vrot.slane %v1537_v57, 5 }
  0xba   : > { %v1650_v19 = vsel %vm16623_vm5, %v13008_v54, %v1649_v6  ;;  %v1535_v56 = vld [vmem:[%s16315_s8 + $0x90] sm:$0xe] }
  0xbb   : > { %v1653_v58 = vsel %vm16623_vm5, %v1651_v13, %v1652_v14  ;;  %v1660_v23 = vsel %vm16623_vm5, %v1658_v34, %v1659_v55  ;;  %v13013_v2 = vrot.slane %v1535_v56, 9  ;;  %v1545_v34 = vld [vmem:[%s16315_s8 + $0xb8] sm:$0xf] }
  0xbc   : > { %v13040_v26 = vcombine.low %v1650_v19, %v1653_v58  ;;  %v1705_v21 = vrot.slane %v1545_v34, 5 }
  0xbd   : > { %14488 = vmatmul.mubr.bf16.gmra.mrb[20].mxu0 %v12988_v33  ;;  %v1630_v33 = vrot.slane %v1628_v22, 4 }
  0xbe   : > { %14491 = vmatprep.mubr.bf16.mxu0 %v12989_v37  ;;  %v1518_v37 = vld [vmem:[%s16315_s8 + $0x4c] sm:$0xf] }
  0xbf   : > { %v1632_v49 = vsel %vm16623_vm5, %v1630_v33, %v1631_v36  ;;  %v1642_v50 = vrot.slane %v1518_v37, 5  ;;  %v1665_v33 = vrot.slane %v1663_v20, 4  ;;  %v1666_v36 = vrot.slane %v1528_v24, 5  ;;  %v1546_v24 = vld [vmem:[%s16315_s8 + $0xbc] sm:$0x1] }
  0xc0   : > { %v13037_v43 = vcombine.low %v1629_v46, %v1632_v49  ;;  %v13011_v37 = vrot.slane %v1529_v28, 9  ;;  %v1532_v46 = vld [vmem:[%s16315_s8 + $0x84] sm:$0xe]  ;;  %v1664_v49 = vsel %vm16623_vm5, %v13010_v35, %v1663_v20 }
  0xc1   : > { %v1644_v62 = vrot.slane %v1642_v50, 4  ;;  %v1667_v17 = vsel %vm16623_vm5, %v1665_v33, %v1666_v36  ;;  %v13130_v33 = vld [vmem:[%s16315_s8 + $0x10] sm:$0xf] }
  0xc2   : > { %v13042_v59 = vcombine.low %v1664_v49, %v1667_v17  ;;  %v15883_v49 = vld [vmem:[%s16315_s8 + $0xc] sm:$0xff]  }
  0xc3   : > { %v1646_v48 = vsel %vm16623_vm5, %v1644_v62, %v1645_v63 }
  0xc5   : > { %14492 = vmatmul.mubr.bf16.gmra.mrb[24].mxu0 %v12990_v44  ;;  %v13007_v44 = vrot.slane %v1517_v51, 9 }
  0xc6   : > { %14495 = vmatprep.mubr.bf16.mxu0 %v12991_v1  ;;  %v15878_v1 = vld [vmem:[%s18988_s1 + $0xd8] sm:$0xff]  }
  0xc7   : > { %v1643_v29 = vsel %vm16623_vm5, %v13007_v44, %v1642_v50  ;;  %v1677_v50 = vrot.slane %v1533_v31, 5  ;;  %v13012_v44 = vrot.slane %v1532_v46, 9  ;;  %v13129_v31 = vld [vmem:[%s16315_s8 + $0xc] sm:$0xf]  ;;  %v2609_v46 = vshrl.u32 %v13130_v33, 16 }
  0xc8   : > { %v13039_v10 = vcombine.low %v1643_v29, %v1646_v48  ;;  %v1538_v29 = vld [vmem:[%s16315_s8 + $0x9c] sm:$0xe]  ;;  %v1540_v48 = vld [vmem:[%s16315_s8 + $0xa4] sm:$0x1]  ;;  %v2596_v36 = vshrl.u32 %v13129_v31, 16 }
  0xc9   : > { %v1679_v62 = vrot.slane %v1677_v50, 4  ;;  %v13014_v14 = vrot.slane %v1538_v29, 9 }
  0xcd   : > { %14496 = vmatmul.mubr.bf16.gmra.mrb[28].mxu0 %v12992_v42  ;;  %v1523_v42 = vld [vmem:[%s16315_s8 + $0x60] sm:$0xe] }
  0xce   : > { %14515 = vmatprep.mubr.bf16.mxu0 %v13033_v0  ;;  %v13038_v0 = vcombine.low %v1636_v5, %v1639_v7  ;;  %v13009_v15 = vrot.slane %v1523_v42, 9  ;;  %v1542_v5 = vld [vmem:[%s16315_s8 + $0xac] sm:$0xf]  ;;  %v1678_v7 = vsel %vm16623_vm5, %v13012_v44, %v1677_v50  ;;  %v13131_v50 = vld [vmem:[%s16315_s8 + $0x14] sm:$0x1] }
  0xcf   : > { %v1698_v9 = vrot.slane %v1542_v5, 5 }
  0xd0   : > { %v1657_v22 = vsel %vm16623_vm5, %v13009_v15, %v1656_v41  ;;  %v1694_v15 = vrot.slane %v1540_v48, 5 }
  0xd5   : > { %14516 = vmatmul.mubr.bf16.vlgmr.msra.gmra.mrb[0].mxu0 %v13034_v25  ;;  %v1670_v25 = vrot.slane %v1530_v18, 5 }
  0xd6   : > { %14548 = vmatpush3.bf16.msra.mxu0 %v16592_v53  ;;  %14519 = vmatprep.mubr.bf16.mxu0 %v13035_v30  ;;  %v15877_v53 = vld [vmem:[%s18988_s1 + $0xd0] sm:$0xff]   ;;  %v1531_v30 = vld [vmem:[%s16315_s8 + $0x80] sm:$0x1] }
  0xd7   : > { %14549 = vmatprep.subr.bf16.mxu0 %v15876_v32  ;;  %v1672_v38 = vrot.slane %v1670_v25, 4  ;;  %v1673_v39 = vrot.slane %v1531_v30, 5  ;;  %v1671_v51 = vsel %vm16623_vm5, %v13011_v37, %v1670_v25  ;;  %v1707_v30 = vrot.slane %v1705_v21, 4 }
  0xd8   : > { %v2599_v37 = vshll.u32 %v13129_v31, 16 }
  0xd9   : > { %v1674_v52 = vsel %vm16623_vm5, %v1672_v38, %v1673_v39  ;;  %v13132_v38 = vld [vmem:[%s16315_s8 + $0x18] sm:$0xf]  ;;  %v13133_v39 = vld [vmem:[%s16315_s8 + $0x1c] sm:$0xf] }
  0xda   : > { %14550 = vmatpush3.bf16.msra.mxu0 %v15876_v32  ;;  %v13041_v32 = vcombine.low %v1657_v22, %v1660_v23  ;;  %v13043_v60 = vcombine.low %v1671_v51, %v1674_v52  ;;  %v1544_v23 = vld [vmem:[%s16315_s8 + $0xb4] sm:$0xe]  ;;  %v2620_v17 = vshrl.u32 %v13132_v38, 16  ;;  %v2629_v51 = vshll.u32 %v13133_v39, 16 }
  0xdb   : > { %14551 = vmatprep.subr.bf16.mxu0 %v15877_v53  ;;  %v13016_v28 = vrot.slane %v1544_v23, 9  ;;  %v2633_v52 = vshrl.u32 %v13133_v39, 16  ;;  %v2601_v56 = vrot.slane %v2599_v37, 5 }
  0xdc   : > { %v2622_v44 = vrot.slane %v2620_v17, 4 }
  0xdd   : > { %14520 = vmatmul.mubr.bf16.gmra.mrb[4].mxu0 %v13036_v45  ;;  %v1684_v45 = vrot.slane %v1536_v11, 5  ;;  %v2605_v11 = vshll.u32 %v13130_v33, 16  ;;  %v2635_v5 = vrot.slane %v2633_v52, 4  ;;  %v13142_v33 = vld [vmem:[%s16315_s8 + $0x40] sm:$0xf] }
  0xde   : > { %14523 = vmatprep.mubr.bf16.mxu0 %v13037_v43  ;;  %14552 = vmatpush3.bf16.msra.mxu0 %v15877_v53  ;;  %v1534_v53 = vld [vmem:[%s16315_s8 + $0x8c] sm:$0x1]  ;;  %v16734_v43 = vld [vmem:[%s18988_s1 + $0x100] sm:$0xff]   ;;  %v2701_v52 = vshll.u32 %v13142_v33, 16 }
  0xdf   : > { %14553 = vmatprep.subr.bf16.mxu0 %v15878_v1  ;;  %v1680_v63 = vrot.slane %v1534_v53, 5  ;;  %v1686_v3 = vrot.slane %v1684_v45, 4  ;;  %v2623_v53 = vshll.u32 %v13132_v38, 16  ;;  %v16774_v57 = vrot.slane %v2605_v11, 5  ;;  %v15890_v11 = vld [vmem:[%s16315_s8 + $0x48] sm:$0xff]  }
  0xe1   : > { %v1681_v6 = vsel %vm16623_vm5, %v1679_v62, %v1680_v63  ;;  %v1688_v42 = vsel %vm16623_vm5, %v1686_v3, %v1687_v4  ;;  %v2625_v62 = vrot.slane %v2623_v53, 5  ;;  %v15884_v63 = vld [vmem:[%s16315_s8 + $0x18] sm:$0xff]   ;;  %v13135_v3 = vld [vmem:[%s16315_s8 + $0x24] sm:$0xf] }
  0xe2   : > { %14554 = vmatpush3.bf16.msra.mxu0 %v15878_v1  ;;  %v1539_v1 = vld [vmem:[%s16315_s8 + $0xa0] sm:$0xf]  ;;  %v13044_v54 = vcombine.low %v1678_v7, %v1681_v6  ;;  %v15886_v4 = vld [vmem:[%s16315_s8 + $0x24] sm:$0xff]  }
  0xe3   : > { %14555 = vmatprep.subr.bf16.mxu0 %v15879_v8  ;;  %v1691_v41 = vrot.slane %v1539_v1, 5  ;;  %v2615_v1 = vshll.u32 %v13131_v50, 16  ;;  %v15888_v6 = vld [vmem:[%s18988_s1 + $0x108] sm:$0xff]  }
  0xe5   : > { %14524 = vmatmul.mubr.bf16.gmra.mrb[8].mxu0 %v13038_v0  ;;  %v1541_v0 = vld [vmem:[%s16315_s8 + $0xa8] sm:$0xe]  ;;  %v1693_v47 = vrot.slane %v1691_v41, 4  ;;  %v1692_v19 = vsel %vm16623_vm5, %v13014_v14, %v1691_v41  ;;  %v16794_v14 = vrot.slane %v2615_v1, 5 }
  0xe6   : > { %14527 = vmatprep.mubr.bf16.mxu0 %v13039_v10  ;;  %14556 = vmatpush3.bf16.msra.mxu0 %v15879_v8  ;;  %v1685_v8 = vsel %vm16623_vm5, %v13013_v2, %v1684_v45  ;;  %v1543_v10 = vld [vmem:[%s16315_s8 + $0xb0] sm:$0x1]  ;;  %v13015_v55 = vrot.slane %v1541_v0, 9  ;;  %v2598_v45 = vrot.slane %v2596_v36, 4  ;;  %v16778_v2 = vrot.slane %v2629_v51, 5  ;;  %v15892_v51 = vld [vmem:[%s16315_s8 + $0x54] sm:$0xff]  }
  0xe7   : > { %14557 = vmatprep.subr.bf16.mxu0 %v15880_v16  ;;  %v13045_v13 = vcombine.low %v1685_v8, %v1688_v42  ;;  %v1701_v18 = vrot.slane %v1543_v10, 5  ;;  %v1695_v58 = vsel %vm16623_vm5, %v1693_v47, %v1694_v15  ;;  %v13136_v41 = vld [vmem:[%s16315_s8 + $0x28] sm:$0xf]  ;;  %v2626_v8 = vor.u32 %v2625_v62, %v2622_v44  ;;  %v13138_v0 = vld [vmem:[%s16315_s8 + $0x30] sm:$0xf] }
  0xe8   : > { %v1699_v20 = vsel %vm16623_vm5, %v13015_v55, %v1698_v9  ;;  %v13046_v25 = vcombine.low %v1692_v19, %v1695_v58  ;;  %v2602_v29 = vor.u32 %v2601_v56, %v2598_v45  ;;  %v2644_v42 = vshrl.u32 %v13135_v3, 16  ;;  %v15887_v55 = vld [vmem:[%s16315_s8 + $0x30] sm:$0xff]   ;;  %v15900_v56 = vld [vmem:[%s18988_s1 + $0x128] sm:$0xff]  }
  0xe9   : > { %v16796_v47 = vrot.slane %v2626_v8, 4  ;;  %v2653_v34 = vshll.u32 %v13136_v41, 16  ;;  %v2657_v58 = vshrl.u32 %v13136_v41, 16  ;;  %v2705_v45 = vshrl.u32 %v13142_v33, 16  ;;  %v13145_v62 = vld [vmem:[%s16315_s8 + $0x4c] sm:$0xf] }
  0xea   : > { %14558 = vmatpush3.bf16.msra.mxu0 %v15880_v16  ;;  %v1700_v16 = vrot.slane %v1698_v9, 4  ;;  %v2647_v9 = vshll.u32 %v13135_v3, 16  ;;  %v16788_v10 = vrot.slane %v2602_v29, 4  ;;  %v13147_v8 = vld [vmem:[%s16315_s8 + $0x54] sm:$0xf] }
  0xeb   : > { %14559 = vmatprep.subr.bf16.mxu0 %v15881_v27  ;;  %v16814_v31 = vrot.slane %v2653_v34, 5  ;;  %v2707_v41 = vrot.slane %v2705_v45, 4  ;;  %v15898_v45 = vld [vmem:[%s16315_s8 + $0x84] sm:$0xff]  }
  0xec   : > { %v1702_v22 = vsel %vm16623_vm5, %v1700_v16, %v1701_v18  ;;  %v15891_v16 = vld [vmem:[%s18988_s1 + $0x110] sm:$0xff]   ;;  %v2646_v18 = vrot.slane %v2644_v42, 4  ;;  %v2649_v19 = vrot.slane %v2647_v9, 5  ;;  %v15893_v42 = vld [vmem:[%s16315_s8 + $0x60] sm:$0xff]  }
  0xed   : > { %14528 = vmatmul.mubr.bf16.gmra.mrb[12].mxu0 %v13040_v26  ;;  %v1708_v26 = vrot.slane %v1546_v24, 5  ;;  %v15894_v24 = vld [vmem:[%s18988_s1 + $0x118] sm:$0xff]   ;;  %v15903_v9 = vld [vmem:[%s18988_s1 + $0x130] sm:$0xff]  }
  0xee   : > { %14531 = vmatprep.mubr.bf16.mxu0 %v13041_v32  ;;  %14560 = vmatpush3.bf16.msra.mxu0 %v15881_v27  ;;  %v13047_v27 = vcombine.low %v1699_v20, %v1702_v22  ;;  %v1706_v32 = vsel %vm16623_vm5, %v13016_v28, %v1705_v21  ;;  %v15889_v21 = vld [vmem:[%s16315_s8 + $0x3c] sm:$0xff]   ;;  %v13137_v20 = vld [vmem:[%s16315_s8 + $0x2c] sm:$0x1]  ;;  %v2671_v22 = vshll.u32 %v13138_v0, 16  ;;  %v2650_v28 = vor.u32 %v2649_v19, %v2646_v18 }
  0xef   : > { %14561 = vmatprep.subr.bf16.mxu0 %v15882_v40  ;;  %v1709_v35 = vsel %vm16623_vm5, %v1707_v30, %v1708_v26  ;;  %v13141_v30 = vld [vmem:[%s16315_s8 + $0x3c] sm:$0xf]  ;;  %v2729_v18 = vshrl.u32 %v13145_v62, 16 }
  0xf0   : > { %v16819_v37 = vrot.slane %v2671_v22, 5  ;;  %v2692_v53 = vshrl.u32 %v13141_v30, 16  ;;  %v2695_v50 = vshll.u32 %v13141_v30, 16 }
  0xf1   : > { %v2731_v30 = vrot.slane %v2729_v18, 4  ;;  %v15899_v18 = vld [vmem:[%s16315_s8 + $0x90] sm:$0xff]  }
  0xf2   : > { %14562 = vmatpush3.bf16.msra.mxu0 %v15882_v40  ;;  %v13048_v40 = vcombine.low %v1706_v32, %v1709_v35  ;;  %v2659_v32 = vrot.slane %v2657_v58, 4  ;;  %v2663_v35 = vshll.u32 %v13137_v20, 16  ;;  %v2697_v29 = vrot.slane %v2695_v50, 5  ;;  %v15906_v58 = vld [vmem:[%s18988_s1 + $0x138] sm:$0xff]  }
  0xf3   : > { %14595 = vmatprep.subr.bf16.mxu0 %v16734_v43 }
  0xf4   : > { %v16839_v3 = vrot.slane %v2663_v35, 5 }
  0xf5   : > { %14532 = vmatmul.mubr.bf16.gmra.mrb[16].mxu0 %v13042_v59  ;;  %v2611_v59 = vrot.slane %v2609_v46, 4  ;;  %v15897_v46 = vld [vmem:[%s18988_s1 + $0x120] sm:$0xff]  }
  0xf6   : > { %14535 = vmatprep.mubr.bf16.mxu0 %v13043_v60  ;;  %v13134_v60 = vld [vmem:[%s16315_s8 + $0x20] sm:$0x1] }
  0xf7   : > { %v2639_v7 = vshll.u32 %v13134_v60, 16  ;;  %v2612_v48 = vor.u32 %v2611_v59, %v16774_v57  ;;  %v2660_v59 = vor.u32 %v2659_v32, %v16814_v31  ;;  %v13149_v32 = vld [vmem:[%s16315_s8 + $0x5c] sm:$0x1] }
  0xf9   : > { %v16798_v15 = vrot.slane %v2639_v7, 5  ;;  %v16837_v1 = vrot.slane %v2660_v59, 4  ;;  %v13146_v7 = vld [vmem:[%s16315_s8 + $0x50] sm:$0x1]  ;;  %v2759_v59 = vshll.u32 %v13149_v32, 16 }
  0xfa   : > { %v2735_v19 = vshll.u32 %v13146_v7, 16  ;;  %v13152_v7 = vld [vmem:[%s16315_s8 + $0x68] sm:$0x1]  ;;  %v13155_v32 = vld [vmem:[%s16315_s8 + $0x74] sm:$0x1] }
  0xfd   : > { %14536 = vmatmul.mubr.bf16.gmra.mrb[20].mxu0 %v13044_v54  ;;  %v16790_v54 = vrot.slane %v2612_v48, 4  ;;  %v16844_v48 = vrot.slane %v2701_v52, 5 }
  0xfe   : > { %14539 = vmatprep.mubr.bf16.mxu0 %v13045_v13  ;;  %v13139_v13 = vld [vmem:[%s16315_s8 + $0x34] sm:$0xf] }
  0xff   : > { %v2677_v23 = vshll.u32 %v13139_v13, 16  ;;  %v2681_v39 = vshrl.u32 %v13139_v13, 16 }
 0x101   : > { %v16821_v38 = vrot.slane %v2677_v23, 5 }
 0x105   : > { %14540 = vmatmul.mubr.bf16.gmra.mrb[24].mxu0 %v13046_v25  ;;  %v2636_v25 = vor.u32 %v2635_v5, %v16778_v2 }
 0x106   : > { %14543 = vmatprep.mubr.bf16.mxu0 %v13047_v27  ;;  %v13140_v27 = vld [vmem:[%s16315_s8 + $0x38] sm:$0x1] }
 0x107   : > { %v16812_v26 = vrot.slane %v2636_v25, 4  ;;  %v2687_v17 = vshll.u32 %v13140_v27, 16  ;;  %v13148_v27 = vld [vmem:[%s16315_s8 + $0x58] sm:$0xf] }
 0x108   : > { %v2749_v52 = vshll.u32 %v13148_v27, 16 }
 0x109   : > { %v16841_v5 = vrot.slane %v2687_v17, 5  ;;  %v16876_v17 = vld [vmem:[%s18988_s1 + $0x140] sm:$0xff]  }
 0x10d   : > { %14544 = vmatmul.mubr.bf16.gmra.mrb[28].mxu0 %v13048_v40  ;;  %v13144_v40 = vld [vmem:[%s16315_s8 + $0x48] sm:$0xf] }
 0x10e   : > { %14563 = vmatprep.mubr.bf16.mxu0 %v15883_v49  ;;  %v16828_v49 = vrot.slane %v2650_v28, 4  ;;  %v2716_v60 = vshrl.u32 %v13144_v40, 16  ;;  %v2719_v44 = vshll.u32 %v13144_v40, 16 }
 0x110   : > { %v2718_v13 = vrot.slane %v2716_v60, 4  ;;  %v2721_v34 = vrot.slane %v2719_v44, 5 }
 0x112   : > { %v2722_v25 = vor.u32 %v2721_v34, %v2718_v13 }
 0x114   : > { %v16880_v50 = vrot.slane %v2722_v25, 4 }
 0x115   : > { %14564 = vmatmul.mubr.bf16.vlgmr.msra.gmra.mrb[0].mxu0 %v15884_v63  ;;  %v13143_v63 = vld [vmem:[%s16315_s8 + $0x44] sm:$0x1] }
 0x116   : > { %14596 = vmatpush3.bf16.msra.mxu0 %v16734_v43  ;;  %14567 = vmatprep.mubr.bf16.mxu0 %v15886_v4  ;;  %v2668_v43 = vshrl.u32 %v13138_v0, 16  ;;  %v2683_v4 = vrot.slane %v2681_v39, 4  ;;  %v2711_v0 = vshll.u32 %v13143_v63, 16 }
 0x117   : > { %14597 = vmatprep.subr.bf16.mxu0 %v15888_v6 }
 0x118   : > { %v16817_v36 = vrot.slane %v2668_v43, 4  ;;  %v2740_v43 = vshrl.u32 %v13147_v8, 16  ;;  %v2684_v22 = vor.u32 %v2683_v4, %v16821_v38  ;;  %v16869_v40 = vrot.slane %v2711_v0, 5 }
 0x119   : > { %v16897_v0 = vrot.slane %v2759_v59, 5 }
 0x11a   : > { %14598 = vmatpush3.bf16.msra.mxu0 %v15888_v6  ;;  %v2694_v6 = vrot.slane %v2692_v53, 4  ;;  %v2674_v20 = vor.u32 %v16819_v37, %v16817_v36  ;;  %v2742_v35 = vrot.slane %v2740_v43, 4  ;;  %v16865_v37 = vrot.slane %v2684_v22, 4 }
 0x11b   : > { %14599 = vmatprep.subr.bf16.mxu0 %v15891_v16 }
 0x11c   : > { %v2698_v23 = vor.u32 %v2697_v29, %v2694_v6  ;;  %v16863_v36 = vrot.slane %v2674_v20, 4  ;;  %v13153_v6 = vld [vmem:[%s16315_s8 + $0x6c] sm:$0xf]  ;;  %v15901_v20 = vld [vmem:[%s16315_s8 + $0x9c] sm:$0xff]  }
 0x11d   : > { %14568 = vmatmul.mubr.bf16.gmra.mrb[4].mxu0 %v15887_v55  ;;  %v2725_v55 = vshll.u32 %v13145_v62, 16  ;;  %v13151_v62 = vld [vmem:[%s16315_s8 + $0x64] sm:$0xf]  ;;  %v2788_v43 = vshrl.u32 %v13153_v6, 16 }
 0x11e   : > { %14571 = vmatprep.mubr.bf16.mxu0 %v15889_v21  ;;  %14600 = vmatpush3.bf16.msra.mxu0 %v15891_v16  ;;  %v15895_v16 = vld [vmem:[%s16315_s8 + $0x6c] sm:$0xff]   ;;  %v2743_v21 = vshll.u32 %v13147_v8, 16  ;;  %v16867_v39 = vrot.slane %v2698_v23, 4  ;;  %v16894_v8 = vrot.slane %v2749_v52, 5  ;;  %v13158_v52 = vld [vmem:[%s16315_s8 + $0x80] sm:$0x1] }
 0x11f   : > { %14601 = vmatprep.subr.bf16.mxu0 %v15894_v24  ;;  %v16860_v28 = vrot.slane %v2725_v55, 5  ;;  %v2773_v55 = vshll.u32 %v13151_v62, 16 }
 0x120   : > { %v2745_v33 = vrot.slane %v2743_v21, 5  ;;  %v2791_v21 = vshll.u32 %v13153_v6, 16 }
 0x121   : > { %v2732_v60 = vor.u32 %v2731_v30, %v16860_v28  ;;  %v13157_v30 = vld [vmem:[%s16315_s8 + $0x7c] sm:$0xf] }
 0x122   : > { %14602 = vmatpush3.bf16.msra.mxu0 %v15894_v24  ;;  %v2708_v24 = vor.u32 %v2707_v41, %v16844_v48  ;;  %v2746_v44 = vor.u32 %v2745_v33, %v2742_v35  ;;  %v16907_v33 = vrot.slane %v2773_v55, 5  ;;  %v2821_v6 = vshll.u32 %v13157_v30, 16 }
 0x123   : > { %14603 = vmatprep.subr.bf16.mxu0 %v15897_v46  ;;  %v16890_v29 = vrot.slane %v2732_v60, 4  ;;  %v2831_v55 = vshll.u32 %v13158_v52, 16 }
 0x124   : > { %v16878_v53 = vrot.slane %v2708_v24, 4  ;;  %v16892_v41 = vrot.slane %v2746_v44, 4  ;;  %v13159_v44 = vld [vmem:[%s16315_s8 + $0x84] sm:$0xf] }
 0x125   : > { %14572 = vmatmul.mubr.bf16.gmra.mrb[8].mxu0 %v15890_v11  ;;  %v13150_v11 = vld [vmem:[%s16315_s8 + $0x60] sm:$0xf] }
 0x126   : > { %14575 = vmatprep.mubr.bf16.mxu0 %v15892_v51  ;;  %14604 = vmatpush3.bf16.msra.mxu0 %v15897_v46  ;;  %v15896_v46 = vld [vmem:[%s16315_s8 + $0x78] sm:$0xff]   ;;  %v16882_v51 = vrot.slane %v2735_v19, 5  ;;  %v2764_v63 = vshrl.u32 %v13150_v11, 16  ;;  %v2767_v4 = vshll.u32 %v13150_v11, 16  ;;  %v2777_v19 = vshrl.u32 %v13151_v62, 16  ;;  %v15902_v62 = vld [vmem:[%s16315_s8 + $0xa8] sm:$0xff]  }
 0x127   : > { %14605 = vmatprep.subr.bf16.mxu0 %v15900_v56 }
 0x128   : > { %v2766_v13 = vrot.slane %v2764_v63, 4  ;;  %v2769_v34 = vrot.slane %v2767_v4, 5  ;;  %v2779_v11 = vrot.slane %v2777_v19, 4  ;;  %v2807_v63 = vshll.u32 %v13155_v32, 16 }
 0x129   : > { %v2836_v19 = vshrl.u32 %v13159_v44, 16 }
 0x12a   : > { %14606 = vmatpush3.bf16.msra.mxu0 %v15900_v56  ;;  %v2753_v56 = vshrl.u32 %v13148_v27, 16 }
 0x12b   : > { %14607 = vmatprep.subr.bf16.mxu0 %v15903_v9 }
 0x12d   : > { %14576 = vmatmul.mubr.bf16.gmra.mrb[12].mxu0 %v15893_v42  ;;  %v2755_v42 = vrot.slane %v2753_v56, 4  ;;  %v2793_v56 = vrot.slane %v2791_v21, 5 }
 0x12e   : > { %14579 = vmatprep.mubr.bf16.mxu0 %v15895_v16  ;;  %14608 = vmatpush3.bf16.msra.mxu0 %v15903_v9  ;;  %v13154_v9 = vld [vmem:[%s16315_s8 + $0x70] sm:$0xf]  ;;  %v13156_v16 = vld [vmem:[%s16315_s8 + $0x78] sm:$0xf] }
 0x12f   : > { %14609 = vmatprep.subr.bf16.mxu0 %v15906_v58  ;;  %v2797_v22 = vshll.u32 %v13154_v9, 16  ;;  %v2801_v23 = vshrl.u32 %v13154_v9, 16  ;;  %v2756_v24 = vor.u32 %v2755_v42, %v16894_v8  ;;  %v2812_v25 = vshrl.u32 %v13156_v16, 16  ;;  %v15904_v42 = vld [vmem:[%s16315_s8 + $0xb4] sm:$0xff]  }
 0x130   : > { %v2815_v27 = vshll.u32 %v13156_v16, 16  ;;  %v2825_v9 = vshrl.u32 %v13157_v30, 16  ;;  %v2770_v16 = vor.u32 %v2769_v34, %v2766_v13  ;;  %v2618_v13 = vsel %vm16396_vm2, %v16790_v54, %v16794_v14  ;;  %v13160_v34 = vld [vmem:[%s16315_s8 + $0x88] sm:$0xf]  ;;  %v13161_v30 = vld [vmem:[%s16315_s8 + $0x8c] sm:$0x1] }
 0x131   : > { %v16905_v35 = vrot.slane %v2756_v24, 4  ;;  %v16912_v59 = vrot.slane %v2797_v22, 5  ;;  %v2803_v60 = vrot.slane %v2801_v23, 4  ;;  %v2814_v4 = vrot.slane %v2812_v25, 4  ;;  %v13162_v54 = vld [vmem:[%s16315_s8 + $0x90] sm:$0xf] }
 0x132   : > { %14610 = vmatpush3.bf16.msra.mxu0 %v15906_v58  ;;  %v2783_v58 = vshll.u32 %v13152_v7, 16  ;;  %v2817_v7 = vrot.slane %v2815_v27, 5  ;;  %v2608_v22 = vsel %vm16396_vm2, %v16788_v10, %v16774_v57  ;;  %v16928_v23 = vrot.slane %v2770_v16, 4  ;;  %v15905_v14 = vld [vmem:[%s16315_s8 + $0xc0] sm:$0xff]  }
 0x133   : > { %14643 = vmatprep.subr.bf16.mxu0 %v16876_v17  ;;  %v2804_v21 = vor.u32 %v2803_v60, %v16912_v59  ;;  %v16932_v25 = vrot.slane %v2821_v6, 5  ;;  %v2827_v27 = vrot.slane %v2825_v9, 4  ;;  %v16939_v57 = vrot.slane %v2807_v63, 5 }
 0x134   : > { %v16941_v10 = vrot.slane %v2831_v55, 5  ;;  %v2845_v60 = vshll.u32 %v13160_v34, 16  ;;  %v2863_v6 = vshll.u32 %v13162_v54, 16 }
 0x135   : > { %14580 = vmatmul.mubr.bf16.gmra.mrb[16].mxu0 %v15896_v46  ;;  %v16909_v46 = vrot.slane %v2783_v58, 5  ;;  %v2839_v58 = vshll.u32 %v13159_v44, 16  ;;  %v2849_v44 = vshrl.u32 %v13160_v34, 16 }
 0x136   : > { %14583 = vmatprep.mubr.bf16.mxu0 %v15898_v45  ;;  %v2790_v45 = vrot.slane %v2788_v43, 4  ;;  %v16950_v9 = vrot.slane %v2845_v60, 5 }
 0x137   : > { %v2851_v55 = vrot.slane %v2849_v44, 4 }
 0x138   : > { %v2794_v43 = vor.u32 %v2793_v56, %v2790_v45  ;;  %v2838_v45 = vrot.slane %v2836_v19, 4  ;;  %v2841_v56 = vrot.slane %v2839_v58, 5  ;;  %v2642_v19 = vsel %vm16396_vm2, %v16812_v26, %v16798_v15  ;;  %v15908_v15 = vld [vmem:[%s18988_s1 + $0x148] sm:$0xff]  }
 0x13a   : > { %v16935_v32 = vrot.slane %v2794_v43, 4  ;;  %v16964_v43 = vrot.slane %v2863_v6, 5  ;;  %v2842_v26 = vor.u32 %v2841_v56, %v2838_v45  ;;  %v13166_v56 = vld [vmem:[%s16315_s8 + $0xa0] sm:$0xf] }
 0x13b   : > { %v2897_v6 = vshrl.u32 %v13166_v56, 16 }
 0x13d   : > { %14584 = vmatmul.mubr.bf16.gmra.mrb[20].mxu0 %v15899_v18  ;;  %v2780_v18 = vor.u32 %v2779_v11, %v16907_v33  ;;  %v16937_v11 = vrot.slane %v2804_v21, 4  ;;  %v2656_v21 = vsel %vm16396_vm2, %v16828_v49, %v16814_v31  ;;  %v2680_v31 = vsel %vm16396_vm2, %v16863_v36, %v16821_v38 }
 0x13e   : > { %14587 = vmatprep.mubr.bf16.mxu0 %v15901_v20  ;;  %v2818_v20 = vor.u32 %v2817_v7, %v2814_v4  ;;  %v2828_v4 = vor.u32 %v2827_v27, %v16932_v25  ;;  %v2860_v7 = vshrl.u32 %v13162_v54, 16  ;;  %v2852_v27 = vor.u32 %v2851_v55, %v16950_v9 }
 0x13f   : > { %v16930_v24 = vrot.slane %v2780_v18, 4  ;;  %v2632_v18 = vsel %vm16396_vm2, %v16796_v47, %v16778_v2  ;;  %v13163_v2 = vld [vmem:[%s16315_s8 + $0x94] sm:$0xf]  ;;  %v2690_v49 = vsel %vm16396_vm2, %v16865_v37, %v16841_v5  ;;  %v2704_v5 = vsel %vm16396_vm2, %v16867_v39, %v16844_v48  ;;  %v15911_v48 = vld [vmem:[%s18988_s1 + $0x160] sm:$0xff]  }
 0x140   : > { %v16945_v52 = vrot.slane %v2818_v20, 4  ;;  %v16948_v63 = vrot.slane %v2828_v4, 4  ;;  %v16962_v58 = vrot.slane %v2860_v7, 4  ;;  %v2666_v20 = vsel %vm16396_vm2, %v16837_v1, %v16839_v3  ;;  %v15909_v1 = vld [vmem:[%s18988_s1 + $0x150] sm:$0xff]  }
 0x141   : > { %v13194_v47 = vcombine.low %v2632_v18, %v2642_v19  ;;  %v13195_v34 = vcombine.low %v2656_v21, %v2666_v20  ;;  %v16994_v3 = vrot.slane %v2842_v26, 4  ;;  %v16997_v54 = vrot.slane %v2852_v27, 4  ;;  %v13172_v26 = vld [vmem:[%s16315_s8 + $0xb8] sm:$0xf] }
 0x142   : > { %v2714_v37 = vsel %vm16396_vm2, %v16878_v53, %v16869_v40  ;;  %v13196_v45 = vcombine.low %v2680_v31, %v2690_v49  ;;  %v2738_v4 = vsel %vm16396_vm2, %v16890_v29, %v16882_v51  ;;  %v2893_v7 = vshll.u32 %v13166_v56, 16  ;;  %v15912_v51 = vld [vmem:[%s18988_s1 + $0x168] sm:$0xff]  }
 0x143   : > { %v13197_v60 = vcombine.low %v2704_v5, %v2714_v37  ;;  %v2762_v55 = vsel %vm16396_vm2, %v16905_v35, %v16897_v0  ;;  %v13168_v29 = vld [vmem:[%s16315_s8 + $0xa8] sm:$0xf]  ;;  %v2776_v0 = vsel %vm16396_vm2, %v16928_v23, %v16907_v33  ;;  %v2786_v35 = vsel %vm16396_vm2, %v16930_v24, %v16909_v46  ;;  %v13169_v23 = vld [vmem:[%s16315_s8 + $0xac] sm:$0xf] }
 0x144   : > { %v2908_v20 = vshrl.u32 %v13168_v29, 16  ;;  %v2810_v33 = vsel %vm16396_vm2, %v16937_v11, %v16939_v57  ;;  %v13200_v46 = vcombine.low %v2776_v0, %v2786_v35  ;;  %v2824_v24 = vsel %vm16396_vm2, %v16945_v52, %v16932_v25  ;;  %v13171_v57 = vld [vmem:[%s16315_s8 + $0xb4] sm:$0xf] }
 0x145   : > { %14588 = vmatmul.mubr.bf16.gmra.mrb[24].mxu0 %v15902_v62  ;;  %v2855_v62 = vshll.u32 %v13161_v30, 16  ;;  %v2869_v30 = vshll.u32 %v13163_v2, 16  ;;  %v2866_v11 = vor.u32 %v16964_v43, %v16962_v58  ;;  %v2921_v27 = vshrl.u32 %v13169_v23, 16 }
 0x146   : > { %14591 = vmatprep.mubr.bf16.mxu0 %v15904_v42  ;;  %v13193_v42 = vcombine.low %v2608_v22, %v2618_v13  ;;  %v16979_v22 = vld [vmem:[%s16315_s8 + $0x98] sm:$0x1]  ;;  %v13165_v13 = vld [vmem:[%s16315_s8 + $0x9c] sm:$0xf]  ;;  %v2848_v58 = vsel %vm16396_vm2, %v16994_v3, %v16950_v9  ;;  %v17096_v9 = vld [vmem:[%s18988_s1 + $0x180] sm:$0xff]  }
 0x147   : > { %v16952_v16 = vrot.slane %v2855_v62, 5  ;;  %v2879_v38 = vshll.u32 %v16979_v22, 16  ;;  %v2884_v36 = vshrl.u32 %v13165_v13, 16  ;;  %v17015_v39 = vrot.slane %v2869_v30, 5  ;;  %v13170_v22 = vld [vmem:[%s16315_s8 + $0xb0] sm:$0x1] }
 0x148   : > { %v2887_v53 = vshll.u32 %v13165_v13, 16  ;;  %v2728_v62 = vsel %vm16396_vm2, %v16880_v50, %v16860_v28  ;;  %v13167_v28 = vld [vmem:[%s16315_s8 + $0xa4] sm:$0x1]  ;;  %v2867_v31 = vrot.slane %v2866_v11, 4  ;;  %v2935_v30 = vshll.u32 %v13171_v57, 16 }
 0x149   : > { %v17019_v40 = vrot.slane %v2884_v36, 4  ;;  %v13198_v50 = vcombine.low %v2728_v62, %v2738_v4  ;;  %v2903_v21 = vshll.u32 %v13167_v28, 16  ;;  %v2858_v43 = vsel %vm16396_vm2, %v16997_v54, %v16952_v16  ;;  %v13175_v62 = vld [vmem:[%s16315_s8 + $0xc4] sm:$0xf]  ;;  %v13176_v11 = vld [vmem:[%s16315_s8 + $0xc8] sm:$0x1] }
 0x14a   : > { %v2889_v19 = vrot.slane %v2887_v53, 5  ;;  %v2881_v49 = vrot.slane %v2879_v38, 5  ;;  %v2945_v36 = vshrl.u32 %v13172_v26, 16  ;;  %v2910_v54 = vrot.slane %v2908_v20, 4 }
 0x14b   : > { %v2905_v16 = vrot.slane %v2903_v21, 5  ;;  %v13203_v56 = vcombine.low %v2848_v58, %v2858_v43  ;;  %v2872_v4 = vsel %vm16396_vm2, %v2867_v31, %v17015_v39  ;;  %v13217_v58 = vld [vmem:[%s16315_s8 + $0xc] sm:$0xe]  ;;  %v13219_v43 = vld [vmem:[%s16315_s8 + $0x14] sm:$0x1] }
 0x14c   : > { %v2890_v52 = vor.u32 %v2889_v19, %v17019_v40  ;;  %v2947_v53 = vrot.slane %v2945_v36, 4  ;;  %v2965_v19 = vshll.u32 %v13175_v62, 16  ;;  %v13265_v36 = vrot.slane %v13217_v58, 9  ;;  %v13235_v58 = vld [vmem:[%s16315_s8 + $0x54] sm:$0xe] }
 0x14d   : > { %14592 = vmatmul.mubr.bf16.gmra.mrb[28].mxu0 %v15905_v14  ;;  %v2873_v14 = vshrl.u32 %v13163_v2, 16  ;;  %v15913_v2 = vld [vmem:[%s18988_s1 + $0x170] sm:$0xff]  }
 0x14e   : > { %14611 = vmatprep.mubr.bf16.mxu0 %v13193_v42  ;;  %v2752_v42 = vsel %vm16396_vm2, %v16892_v41, %v16894_v8  ;;  %v17042_v41 = vrot.slane %v2893_v7, 5  ;;  %v2899_v8 = vrot.slane %v2897_v6, 4  ;;  %v2891_v5 = vrot.slane %v2890_v52, 4 }
 0x14f   : > { %v17017_v44 = vrot.slane %v2873_v14, 4  ;;  %v13199_v18 = vcombine.low %v2752_v42, %v2762_v55  ;;  %v2941_v14 = vshll.u32 %v13172_v26, 16  ;;  %v2927_v6 = vshll.u32 %v13170_v22, 16  ;;  %v13173_v42 = vld [vmem:[%s16315_s8 + $0xbc] sm:$0x1] }
 0x150   : > { %v2896_v55 = vsel %vm16396_vm2, %v2891_v5, %v17042_v41  ;;  %v2951_v0 = vshll.u32 %v13173_v42, 16  ;;  %v3466_v5 = vrot.slane %v13219_v43, 5  ;;  %v13237_v43 = vld [vmem:[%s16315_s8 + $0x5c] sm:$0x1] }
 0x151   : > { %v2876_v25 = vor.u32 %v17017_v44, %v17015_v39  ;;  %v2937_v44 = vrot.slane %v2935_v30, 5  ;;  %v2943_v40 = vrot.slane %v2941_v14, 5  ;;  %v2969_v39 = vshrl.u32 %v13175_v62, 16 }
 0x153   : > { %v2877_v3 = vrot.slane %v2876_v25, 4  ;;  %v2948_v21 = vor.u32 %v2947_v53, %v2943_v40 }
 0x155   : > { %14612 = vmatmul.mubr.bf16.vlgmr.msra.gmra.mrb[0].mxu0 %v13194_v47  ;;  %v2800_v47 = vsel %vm16396_vm2, %v16935_v32, %v16912_v59  ;;  %v15914_v59 = vld [vmem:[%s18988_s1 + $0x178] sm:$0xff]   ;;  %v2882_v7 = vsel %vm16396_vm2, %v2877_v3, %v2881_v49 }
 0x156   : > { %14644 = vmatpush3.bf16.msra.mxu0 %v16876_v17  ;;  %14615 = vmatprep.mubr.bf16.mxu0 %v13195_v34  ;;  %v15910_v17 = vld [vmem:[%s18988_s1 + $0x158] sm:$0xff]   ;;  %v13201_v32 = vcombine.low %v2800_v47, %v2810_v33  ;;  %v2917_v34 = vshll.u32 %v13169_v23, 16  ;;  %v13204_v35 = vcombine.low %v2872_v4, %v2882_v7 }
 0x157   : > { %14645 = vmatprep.subr.bf16.mxu0 %v15908_v15 }
 0x15a   : > { %14646 = vmatpush3.bf16.msra.mxu0 %v15908_v15  ;;  %v2834_v15 = vsel %vm16396_vm2, %v16948_v63, %v16941_v10  ;;  %v2900_v10 = vor.u32 %v2899_v8, %v17042_v41  ;;  %v2911_v63 = vshll.u32 %v13168_v29, 16  ;;  %v2929_v41 = vrot.slane %v2927_v6, 5 }
 0x15b   : > { %14647 = vmatprep.subr.bf16.mxu0 %v15909_v1  ;;  %v13202_v13 = vcombine.low %v2824_v24, %v2834_v15  ;;  %v2971_v24 = vrot.slane %v2969_v39, 4 }
 0x15c   : > { %v2901_v37 = vrot.slane %v2900_v10, 4  ;;  %v2913_v38 = vrot.slane %v2911_v63, 5  ;;  %v2975_v10 = vshll.u32 %v13176_v11, 16  ;;  %v13233_v11 = vld [vmem:[%s16315_s8 + $0x4c] sm:$0xf] }
 0x15d   : > { %14616 = vmatmul.mubr.bf16.gmra.mrb[4].mxu0 %v13196_v45  ;;  %v2919_v45 = vrot.slane %v2917_v34, 5 }
 0x15e   : > { %14619 = vmatprep.mubr.bf16.mxu0 %v13197_v60  ;;  %14648 = vmatpush3.bf16.msra.mxu0 %v15909_v1  ;;  %v2932_v1 = vshrl.u32 %v13171_v57, 16  ;;  %v13174_v60 = vld [vmem:[%s16315_s8 + $0xc0] sm:$0xf]  ;;  %v2906_v28 = vsel %vm16396_vm2, %v2901_v37, %v2905_v16  ;;  %v13218_v57 = vld [vmem:[%s16315_s8 + $0x10] sm:$0xf]  ;;  %v2977_v14 = vrot.slane %v2975_v10, 5 }
 0x15f   : > { %14649 = vmatprep.subr.bf16.mxu0 %v15910_v17  ;;  %v2956_v29 = vshrl.u32 %v13174_v60, 16  ;;  %v13205_v20 = vcombine.low %v2896_v55, %v2906_v28  ;;  %v13221_v16 = vld [vmem:[%s16315_s8 + $0x1c] sm:$0xf] }
 0x161   : > { %v2958_v33 = vrot.slane %v2956_v29, 4 }
 0x162   : > { %14650 = vmatpush3.bf16.msra.mxu0 %v15910_v17  ;;  %v2923_v17 = vrot.slane %v2921_v27, 4  ;;  %v3463_v27 = vrot.slane %v13218_v57, 5  ;;  %v13236_v57 = vld [vmem:[%s16315_s8 + $0x58] sm:$0xf] }
 0x163   : > { %14651 = vmatprep.subr.bf16.mxu0 %v15911_v48 }
 0x164   : > { %v3465_v3 = vrot.slane %v3463_v27, 4 }
 0x165   : > { %14620 = vmatmul.mubr.bf16.gmra.mrb[8].mxu0 %v13198_v50  ;;  %v2914_v50 = vor.u32 %v2913_v38, %v2910_v54  ;;  %v13224_v54 = vld [vmem:[%s16315_s8 + $0x28] sm:$0xf]  ;;  %v3470_v38 = vrot.slane %v13221_v16, 5  ;;  %v13239_v16 = vld [vmem:[%s16315_s8 + $0x64] sm:$0xf] }
 0x166   : > { %14623 = vmatprep.mubr.bf16.mxu0 %v13199_v18  ;;  %14652 = vmatpush3.bf16.msra.mxu0 %v15911_v48  ;;  %v2934_v48 = vrot.slane %v2932_v1, 4  ;;  %v2959_v18 = vshll.u32 %v13174_v60, 16  ;;  %v13222_v60 = vld [vmem:[%s16315_s8 + $0x20] sm:$0x1] }
 0x167   : > { %14653 = vmatprep.subr.bf16.mxu0 %v15912_v51  ;;  %v3472_v7 = vrot.slane %v3470_v38, 4  ;;  %v3473_v6 = vrot.slane %v13222_v60, 5  ;;  %v13238_v60 = vld [vmem:[%s16315_s8 + $0x60] sm:$0xe] }
 0x168   : > { %v2938_v8 = vor.u32 %v2937_v44, %v2934_v48  ;;  %v2961_v23 = vrot.slane %v2959_v18, 5  ;;  %v3477_v48 = vrot.slane %v13224_v54, 5  ;;  %v13223_v44 = vld [vmem:[%s16315_s8 + $0x24] sm:$0xe]  ;;  %v15918_v54 = vld [vmem:[%s18988_s1 + $0x198] sm:$0xff]  }
 0x169   : > { %v13267_v42 = vrot.slane %v13223_v44, 9  ;;  %v3474_v18 = vsel %vm16623_vm5, %v3472_v7, %v3473_v6  ;;  %v13272_v6 = vrot.slane %v13238_v60, 9 }
 0x16a   : > { %14654 = vmatpush3.bf16.msra.mxu0 %v15912_v51  ;;  %v2924_v51 = vor.u32 %v2923_v17, %v2919_v45  ;;  %v2939_v15 = vrot.slane %v2938_v8, 4  ;;  %v2962_v25 = vor.u32 %v2961_v23, %v2958_v33  ;;  %v3467_v17 = vsel %vm16623_vm5, %v3465_v3, %v3466_v5 }
 0x16b   : > { %14655 = vmatprep.subr.bf16.mxu0 %v15913_v2  ;;  %v3479_v55 = vrot.slane %v3477_v48, 4  ;;  %v3478_v39 = vsel %vm16623_vm5, %v13267_v42, %v3477_v48  ;;  %v3508_v5 = vrot.slane %v13237_v43, 5  ;;  %v13240_v48 = vld [vmem:[%s16315_s8 + $0x68] sm:$0x1]  ;;  %v13252_v43 = vld [vmem:[%s16315_s8 + $0x98] sm:$0x1] }
 0x16c   : > { %v2925_v47 = vrot.slane %v2924_v51, 4  ;;  %v2944_v63 = vsel %vm16396_vm2, %v2939_v15, %v2943_v40  ;;  %v2963_v1 = vrot.slane %v2962_v25, 4  ;;  %v13225_v40 = vld [vmem:[%s16315_s8 + $0x2c] sm:$0x1]  ;;  %v13230_v51 = vld [vmem:[%s16315_s8 + $0x40] sm:$0xf] }
 0x16d   : > { %14624 = vmatmul.mubr.bf16.gmra.mrb[12].mxu0 %v13200_v46  ;;  %v2967_v46 = vrot.slane %v2965_v19, 5  ;;  %v3480_v28 = vrot.slane %v13225_v40, 5  ;;  %v3498_v25 = vrot.slane %v13233_v11, 5  ;;  %v15919_v40 = vld [vmem:[%s18988_s1 + $0x1a0] sm:$0xff]  }
 0x16e   : > { %14627 = vmatprep.mubr.bf16.mxu0 %v13201_v32  ;;  %14656 = vmatpush3.bf16.msra.mxu0 %v15913_v2  ;;  %v2915_v2 = vrot.slane %v2914_v50, 4  ;;  %v2953_v32 = vrot.slane %v2951_v0, 5  ;;  %v13227_v50 = vld [vmem:[%s16315_s8 + $0x34] sm:$0xf]  ;;  %v13228_v0 = vld [vmem:[%s16315_s8 + $0x38] sm:$0x1] }
 0x16f   : > { %14657 = vmatprep.subr.bf16.mxu0 %v15914_v59  ;;  %v2972_v52 = vor.u32 %v2971_v24, %v2967_v46  ;;  %v2968_v37 = vsel %vm16396_vm2, %v2963_v1, %v2967_v46  ;;  %v3484_v19 = vrot.slane %v13227_v50, 5  ;;  %v3481_v8 = vsel %vm16623_vm5, %v3479_v55, %v3480_v28  ;;  %v15916_v24 = vld [vmem:[%s18988_s1 + $0x188] sm:$0xff]  }
 0x170   : > { %v2920_v26 = vsel %vm16396_vm2, %v2915_v2, %v2919_v45  ;;  %v3464_v45 = vsel %vm16623_vm5, %v13265_v36, %v3463_v27  ;;  %v13231_v2 = vld [vmem:[%s16315_s8 + $0x44] sm:$0x1]  ;;  %v3487_v46 = vrot.slane %v13228_v0, 5  ;;  %v3505_v27 = vrot.slane %v13236_v57, 5 }
 0x171   : > { %v2973_v30 = vrot.slane %v2972_v52, 4  ;;  %v13297_v62 = vcombine.low %v3464_v45, %v3467_v17  ;;  %v3486_v23 = vrot.slane %v3484_v19, 4  ;;  %v13271_v36 = vrot.slane %v13235_v58, 9  ;;  %v13250_v58 = vld [vmem:[%s16315_s8 + $0x90] sm:$0xe] }
 0x172   : > { %14658 = vmatpush3.bf16.msra.mxu0 %v15914_v59  ;;  %v2949_v59 = vrot.slane %v2948_v21, 4  ;;  %v13226_v21 = vld [vmem:[%s16315_s8 + $0x30] sm:$0xe]  ;;  %v3507_v3 = vrot.slane %v3505_v27, 4  ;;  %v3512_v45 = vrot.slane %v13239_v16, 5  ;;  %v3515_v55 = vrot.slane %v13240_v48, 5 }
 0x173   : > { %14691 = vmatprep.subr.bf16.mxu0 %v17096_v9  ;;  %v2978_v22 = vsel %vm16396_vm2, %v2973_v30, %v2977_v14  ;;  %v13268_v33 = vrot.slane %v13226_v21, 9  ;;  %v3500_v30 = vrot.slane %v3498_v25, 4  ;;  %v3506_v17 = vsel %vm16623_vm5, %v13271_v36, %v3505_v27 }
 0x174   : > { %v2954_v34 = vsel %vm16396_vm2, %v2949_v59, %v2953_v32  ;;  %v13208_v53 = vcombine.low %v2968_v37, %v2978_v22  ;;  %v3494_v32 = vrot.slane %v13231_v2, 5  ;;  %v13242_v37 = vld [vmem:[%s16315_s8 + $0x70] sm:$0xf]  ;;  %v3514_v42 = vrot.slane %v3512_v45, 4  ;;  %v13246_v2 = vld [vmem:[%s16315_s8 + $0x80] sm:$0x1] }
 0x175   : > { %14628 = vmatmul.mubr.bf16.gmra.mrb[16].mxu0 %v13202_v13  ;;  %v2930_v13 = vsel %vm16396_vm2, %v2925_v47, %v2929_v41  ;;  %v13207_v49 = vcombine.low %v2944_v63, %v2954_v34  ;;  %v13299_v41 = vcombine.low %v3478_v39, %v3481_v8  ;;  %v13232_v63 = vld [vmem:[%s16315_s8 + $0x48] sm:$0xe]  ;;  %v13234_v34 = vld [vmem:[%s16315_s8 + $0x50] sm:$0x1]  ;;  %v3519_v44 = vrot.slane %v13242_v37, 5 }
 0x176   : > { %14631 = vmatprep.mubr.bf16.mxu0 %v13203_v56  ;;  %v13206_v31 = vcombine.low %v2920_v26, %v2930_v13  ;;  %v13220_v56 = vld [vmem:[%s16315_s8 + $0x18] sm:$0xe]  ;;  %v3485_v26 = vsel %vm16623_vm5, %v13268_v33, %v3484_v19  ;;  %v3488_v13 = vsel %vm16623_vm5, %v3486_v23, %v3487_v46  ;;  %v13270_v1 = vrot.slane %v13232_v63, 9  ;;  %v13248_v19 = vld [vmem:[%s16315_s8 + $0x88] sm:$0xf] }
 0x177   : > { %v13266_v4 = vrot.slane %v13220_v56, 9  ;;  %v3501_v14 = vrot.slane %v13234_v34, 5  ;;  %v3509_v56 = vsel %vm16623_vm5, %v3507_v3, %v3508_v5  ;;  %v3521_v50 = vrot.slane %v3519_v44, 4  ;;  %v13247_v33 = vld [vmem:[%s16315_s8 + $0x84] sm:$0xe] }
 0x178   : > { %v3499_v22 = vsel %vm16623_vm5, %v13270_v1, %v3498_v25  ;;  %v13303_v7 = vcombine.low %v3506_v17, %v3509_v56  ;;  %v3513_v39 = vsel %vm16623_vm5, %v13272_v6, %v3512_v45  ;;  %v3516_v8 = vsel %vm16623_vm5, %v3514_v42, %v3515_v55  ;;  %v13249_v23 = vld [vmem:[%s16315_s8 + $0x8c] sm:$0x1]  ;;  %v15922_v25 = vld [vmem:[%s18988_s1 + $0x1b8] sm:$0xff]  }
 0x179   : > { %v3471_v29 = vsel %vm16623_vm5, %v13266_v4, %v3470_v38  ;;  %v3502_v38 = vsel %vm16623_vm5, %v3500_v30, %v3501_v14  ;;  %v13304_v46 = vcombine.low %v3513_v39, %v3516_v8  ;;  %v13275_v11 = vrot.slane %v13247_v33, 9  ;;  %v13253_v1 = vld [vmem:[%s16315_s8 + $0x9c] sm:$0xe]  ;;  %v13255_v30 = vld [vmem:[%s16315_s8 + $0xa4] sm:$0x1] }
 0x17a   : > { %v13298_v47 = vcombine.low %v3471_v29, %v3474_v18  ;;  %v13302_v4 = vcombine.low %v3499_v22, %v3502_v38  ;;  %v13245_v29 = vld [vmem:[%s16315_s8 + $0x7c] sm:$0xf]  ;;  %v15920_v18 = vld [vmem:[%s18988_s1 + $0x1a8] sm:$0xff]   ;;  %v13276_v3 = vrot.slane %v13250_v58, 9  ;;  %v3543_v16 = vrot.slane %v13252_v43, 5  ;;  %v15943_v58 = vld [vmem:[%s18988_s1 + $0x1f0] sm:$0xff]  }
 0x17b   : > { %v3526_v21 = vrot.slane %v13245_v29, 5  ;;  %v3550_v22 = vrot.slane %v13255_v30, 5  ;;  %v13257_v38 = vld [vmem:[%s16315_s8 + $0xac] sm:$0xf]  ;;  %v13260_v45 = vld [vmem:[%s16315_s8 + $0xb8] sm:$0xf] }
 0x17c   : > { %v3554_v60 = vrot.slane %v13257_v38, 5  ;;  %v15933_v43 = vld [vmem:[%s16315_s8 + $0x6c] sm:$0xff]   ;;  %v17297_v30 = vld [vmem:[%s18988_s1 + $0x200] sm:$0xff]   ;;  %v13397_v38 = vld [vmem:[%s16315_s8 + $0x28] sm:$0xf] }
 0x17d   : > { %14632 = vmatmul.mubr.bf16.gmra.mrb[20].mxu0 %v13204_v35  ;;  %v3491_v35 = vrot.slane %v13230_v51, 5 }
 0x17e   : > { %14635 = vmatprep.mubr.bf16.mxu0 %v13205_v20  ;;  %v13229_v20 = vld [vmem:[%s16315_s8 + $0x3c] sm:$0xe] }
 0x17f   : > { %v13269_v15 = vrot.slane %v13229_v20, 9  ;;  %v3493_v59 = vrot.slane %v3491_v35, 4  ;;  %v13244_v20 = vld [vmem:[%s16315_s8 + $0x78] sm:$0xe] }
 0x181   : > { %v3492_v52 = vsel %vm16623_vm5, %v13269_v15, %v3491_v35  ;;  %v3495_v10 = vsel %vm16623_vm5, %v3493_v59, %v3494_v32  ;;  %v13274_v15 = vrot.slane %v13244_v20, 9  ;;  %v3528_v59 = vrot.slane %v3526_v21, 4  ;;  %v13262_v20 = vld [vmem:[%s16315_s8 + $0xc0] sm:$0xe] }
 0x182   : > { %v3529_v32 = vrot.slane %v13246_v2, 5  ;;  %v13264_v2 = vld [vmem:[%s16315_s8 + $0xc8] sm:$0x1]  ;;  %v13280_v33 = vrot.slane %v13262_v20, 9  ;;  %v13402_v20 = vld [vmem:[%s16315_s8 + $0x3c] sm:$0xf] }
 0x184   : > { %v3530_v63 = vsel %vm16623_vm5, %v3528_v59, %v3529_v32  ;;  %v15923_v32 = vld [vmem:[%s16315_s8 + $0x18] sm:$0xff]  }
 0x185   : > { %14636 = vmatmul.mubr.bf16.gmra.mrb[24].mxu0 %v13206_v31  ;;  %v13300_v31 = vcombine.low %v3485_v26, %v3488_v13  ;;  %v3536_v26 = vrot.slane %v13249_v23, 5  ;;  %v13251_v13 = vld [vmem:[%s16315_s8 + $0x94] sm:$0xf] }
 0x186   : > { %14639 = vmatprep.mubr.bf16.mxu0 %v13207_v49  ;;  %v13301_v49 = vcombine.low %v3492_v52, %v3495_v10  ;;  %v13254_v52 = vld [vmem:[%s16315_s8 + $0xa0] sm:$0xf]  ;;  %v3527_v10 = vsel %vm16623_vm5, %v13274_v15, %v3526_v21  ;;  %v3540_v34 = vrot.slane %v13251_v13, 5  ;;  %v15931_v13 = vld [vmem:[%s18988_s1 + $0x1d0] sm:$0xff]  }
 0x187   : > { %v13306_v14 = vcombine.low %v3527_v10, %v3530_v63  ;;  %v15934_v10 = vld [vmem:[%s18988_s1 + $0x1d8] sm:$0xff]   ;;  %v15937_v63 = vld [vmem:[%s18988_s1 + $0x1e0] sm:$0xff]  }
 0x188   : > { %v3542_v5 = vrot.slane %v3540_v34, 4  ;;  %v3541_v17 = vsel %vm16623_vm5, %v13276_v3, %v3540_v34  ;;  %v15930_v34 = vld [vmem:[%s16315_s8 + $0x54] sm:$0xff]  }
 0x189   : > { %v15938_v3 = vld [vmem:[%s16315_s8 + $0x90] sm:$0xff]  }
 0x18a   : > { %v3544_v56 = vsel %vm16623_vm5, %v3542_v5, %v3543_v16 }
 0x18b   : > { %v13308_v6 = vcombine.low %v3541_v17, %v3544_v56 }
 0x18d   : > { %14640 = vmatmul.mubr.bf16.gmra.mrb[28].mxu0 %v13208_v53  ;;  %v13241_v53 = vld [vmem:[%s16315_s8 + $0x6c] sm:$0xe] }
 0x18e   : > { %14659 = vmatprep.mubr.bf16.mxu0 %v13297_v62  ;;  %v13243_v62 = vld [vmem:[%s16315_s8 + $0x74] sm:$0x1]  ;;  %v13273_v28 = vrot.slane %v13241_v53, 9  ;;  %v13258_v53 = vld [vmem:[%s16315_s8 + $0xb0] sm:$0x1] }
 0x18f   : > { %v3522_v51 = vrot.slane %v13243_v62, 5  ;;  %v3561_v62 = vrot.slane %v13260_v45, 5 }
 0x190   : > { %v3520_v0 = vsel %vm16623_vm5, %v13273_v28, %v3519_v44  ;;  %v3556_v28 = vrot.slane %v3554_v60, 4 }
 0x191   : > { %v3523_v35 = vsel %vm16623_vm5, %v3521_v50, %v3522_v51  ;;  %v3557_v50 = vrot.slane %v13258_v53, 5  ;;  %v3563_v29 = vrot.slane %v3561_v62, 4  ;;  %v4496_v53 = vshrl.u32 %v13397_v38, 16 }
 0x193   : > { %v3558_v8 = vsel %vm16623_vm5, %v3556_v28, %v3557_v50  ;;  %v15941_v28 = vld [vmem:[%s16315_s8 + $0xa8] sm:$0xff]  }
 0x195   : > { %14660 = vmatmul.mubr.bf16.vlgmr.msra.gmra.mrb[0].mxu0 %v13298_v47  ;;  %v3533_v47 = vrot.slane %v13248_v19, 5  ;;  %v13263_v19 = vld [vmem:[%s16315_s8 + $0xc4] sm:$0xf] }
 0x196   : > { %14692 = vmatpush3.bf16.msra.mxu0 %v17096_v9  ;;  %14663 = vmatprep.mubr.bf16.mxu0 %v13299_v41  ;;  %v15917_v9 = vld [vmem:[%s18988_s1 + $0x190] sm:$0xff]   ;;  %v3568_v21 = vrot.slane %v13263_v19, 5 }
 0x197   : > { %14693 = vmatprep.subr.bf16.mxu0 %v15916_v24  ;;  %v15921_v41 = vld [vmem:[%s18988_s1 + $0x1b0] sm:$0xff]   ;;  %v3535_v57 = vrot.slane %v3533_v47, 4 }
 0x198   : > { %v3570_v23 = vrot.slane %v3568_v21, 4 }
 0x199   : > { %v3537_v27 = vsel %vm16623_vm5, %v3535_v57, %v3536_v26  ;;  %v15926_v57 = vld [vmem:[%s16315_s8 + $0x30] sm:$0xff]   ;;  %v15928_v26 = vld [vmem:[%s18988_s1 + $0x1c8] sm:$0xff]  }
 0x19a   : > { %14694 = vmatpush3.bf16.msra.mxu0 %v15916_v24  ;;  %v13305_v24 = vcombine.low %v3520_v0, %v3523_v35 }
 0x19b   : > { %14695 = vmatprep.subr.bf16.mxu0 %v15917_v9 }
 0x19d   : > { %14664 = vmatmul.mubr.bf16.gmra.mrb[4].mxu0 %v13300_v31  ;;  %v3547_v31 = vrot.slane %v13254_v52, 5  ;;  %v15929_v52 = vld [vmem:[%s16315_s8 + $0x48] sm:$0xff]  }
 0x19e   : > { %14667 = vmatprep.mubr.bf16.mxu0 %v13301_v49  ;;  %14696 = vmatpush3.bf16.msra.mxu0 %v15917_v9  ;;  %v3534_v9 = vsel %vm16623_vm5, %v13275_v11, %v3533_v47  ;;  %v15925_v49 = vld [vmem:[%s18988_s1 + $0x1c0] sm:$0xff]  }
 0x19f   : > { %14697 = vmatprep.subr.bf16.mxu0 %v15918_v54  ;;  %v13307_v36 = vcombine.low %v3534_v9, %v3537_v27  ;;  %v3549_v37 = vrot.slane %v3547_v31, 4  ;;  %v15924_v11 = vld [vmem:[%s16315_s8 + $0x24] sm:$0xff]  }
 0x1a0   : > { %v15932_v9 = vld [vmem:[%s16315_s8 + $0x60] sm:$0xff]   ;;  %v15940_v27 = vld [vmem:[%s18988_s1 + $0x1e8] sm:$0xff]  }
 0x1a1   : > { %v3551_v44 = vsel %vm16623_vm5, %v3549_v37, %v3550_v22 }
 0x1a2   : > { %14698 = vmatpush3.bf16.msra.mxu0 %v15918_v54  ;;  %v13277_v54 = vrot.slane %v13253_v1, 9  ;;  %v13393_v1 = vld [vmem:[%s16315_s8 + $0x18] sm:$0xf] }
 0x1a3   : > { %14699 = vmatprep.subr.bf16.mxu0 %v15919_v40  ;;  %v4459_v5 = vshrl.u32 %v13393_v1, 16  ;;  %v4462_v16 = vshll.u32 %v13393_v1, 16 }
 0x1a4   : > { %v3548_v48 = vsel %vm16623_vm5, %v13277_v54, %v3547_v31  ;;  %v15935_v31 = vld [vmem:[%s16315_s8 + $0x78] sm:$0xff]   ;;  %v13396_v54 = vld [vmem:[%s16315_s8 + $0x24] sm:$0xf] }
 0x1a5   : > { %14668 = vmatmul.mubr.bf16.gmra.mrb[8].mxu0 %v13302_v4  ;;  %v13259_v4 = vld [vmem:[%s16315_s8 + $0xb4] sm:$0xe]  ;;  %v13309_v42 = vcombine.low %v3548_v48, %v3551_v44  ;;  %v4483_v45 = vshrl.u32 %v13396_v54, 16  ;;  %v4486_v17 = vshll.u32 %v13396_v54, 16  ;;  %v4461_v56 = vrot.slane %v4459_v5, 4 }
 0x1a6   : > { %14671 = vmatprep.mubr.bf16.mxu0 %v13303_v7  ;;  %14700 = vmatpush3.bf16.msra.mxu0 %v15919_v40  ;;  %v13256_v40 = vld [vmem:[%s16315_s8 + $0xa8] sm:$0xe]  ;;  %v13261_v7 = vld [vmem:[%s16315_s8 + $0xbc] sm:$0x1]  ;;  %v13279_v51 = vrot.slane %v13259_v4, 9 }
 0x1a7   : > { %14701 = vmatprep.subr.bf16.mxu0 %v15920_v18  ;;  %v13278_v55 = vrot.slane %v13256_v40, 9  ;;  %v4492_v40 = vshll.u32 %v13397_v38, 16  ;;  %v13395_v4 = vld [vmem:[%s16315_s8 + $0x20] sm:$0x1] }
 0x1a8   : > { %v3562_v0 = vsel %vm16623_vm5, %v13279_v51, %v3561_v62  ;;  %v13399_v62 = vld [vmem:[%s16315_s8 + $0x30] sm:$0xf]  ;;  %v4478_v19 = vshll.u32 %v13395_v4, 16 }
 0x1a9   : > { %v3555_v39 = vsel %vm16623_vm5, %v13278_v55, %v3554_v60  ;;  %v4464_v60 = vrot.slane %v4462_v16, 5  ;;  %v13400_v55 = vld [vmem:[%s16315_s8 + $0x34] sm:$0xf]  ;;  %v4507_v51 = vshrl.u32 %v13399_v62, 16 }
 0x1aa   : > { %14702 = vmatpush3.bf16.msra.mxu0 %v15920_v18  ;;  %v3564_v18 = vrot.slane %v13261_v7, 5  ;;  %v13310_v47 = vcombine.low %v3555_v39, %v3558_v8  ;;  %v15939_v7 = vld [vmem:[%s16315_s8 + $0x9c] sm:$0xff]   ;;  %v13398_v39 = vld [vmem:[%s16315_s8 + $0x2c] sm:$0x1]  ;;  %v17314_v8 = vrot.slane %v4492_v40, 5 }
 0x1ab   : > { %14703 = vmatprep.subr.bf16.mxu0 %v15921_v41  ;;  %v4465_v50 = vor.u32 %v4464_v60, %v4461_v56  ;;  %v13404_v56 = vld [vmem:[%s16315_s8 + $0x44] sm:$0x1] }
 0x1ac   : > { %v3565_v35 = vsel %vm16623_vm5, %v3563_v29, %v3564_v18  ;;  %v4510_v29 = vshll.u32 %v13399_v62, 16  ;;  %v13407_v62 = vld [vmem:[%s16315_s8 + $0x50] sm:$0x1] }
 0x1ad   : > { %14672 = vmatmul.mubr.bf16.gmra.mrb[12].mxu0 %v13304_v46  ;;  %v3571_v46 = vrot.slane %v13264_v2, 5 }
 0x1ae   : > { %14675 = vmatprep.mubr.bf16.mxu0 %v13305_v24  ;;  %14704 = vmatpush3.bf16.msra.mxu0 %v15921_v41  ;;  %v13311_v41 = vcombine.low %v3562_v0, %v3565_v35  ;;  %v3569_v24 = vsel %vm16623_vm5, %v13280_v33, %v3568_v21  ;;  %v4498_v21 = vrot.slane %v4496_v53, 4  ;;  %v4516_v0 = vshll.u32 %v13400_v55, 16 }
 0x1af   : > { %14705 = vmatprep.subr.bf16.mxu0 %v15922_v25  ;;  %v3572_v15 = vsel %vm16623_vm5, %v3570_v23, %v3571_v46  ;;  %v4520_v35 = vshrl.u32 %v13400_v55, 16  ;;  %v4502_v33 = vshll.u32 %v13398_v39, 16  ;;  %v4509_v23 = vrot.slane %v4507_v51, 4  ;;  %v13411_v51 = vld [vmem:[%s16315_s8 + $0x60] sm:$0xf] }
 0x1b0   : > { %v13312_v59 = vcombine.low %v3569_v24, %v3572_v15  ;;  %v4512_v46 = vrot.slane %v4510_v29, 5  ;;  %v13405_v24 = vld [vmem:[%s16315_s8 + $0x48] sm:$0xf]  ;;  %v13412_v29 = vld [vmem:[%s16315_s8 + $0x64] sm:$0xf] }
 0x1b2   : > { %14706 = vmatpush3.bf16.msra.mxu0 %v15922_v25  ;;  %v15927_v25 = vld [vmem:[%s16315_s8 + $0x3c] sm:$0xff]  }
 0x1b3   : > { %14739 = vmatprep.subr.bf16.mxu0 %v15925_v49 }
 0x1b5   : > { %14676 = vmatmul.mubr.bf16.gmra.mrb[16].mxu0 %v13306_v14  ;;  %v13394_v14 = vld [vmem:[%s16315_s8 + $0x1c] sm:$0xf] }
 0x1b6   : > { %14679 = vmatprep.mubr.bf16.mxu0 %v13307_v36  ;;  %v15936_v36 = vld [vmem:[%s16315_s8 + $0x84] sm:$0xff]   ;;  %v4468_v37 = vshll.u32 %v13394_v14, 16  ;;  %v4472_v22 = vshrl.u32 %v13394_v14, 16 }
 0x1b8   : > { %v17305_v48 = vrot.slane %v4468_v37, 5  ;;  %v4474_v44 = vrot.slane %v4472_v22, 4 }
 0x1ba   : > { %v4475_v18 = vor.u32 %v4474_v44, %v17305_v48 }
 0x1bc   : > { %v4476_v15 = vrot.slane %v4475_v18, 4 }
 0x1bd   : > { %14680 = vmatmul.mubr.bf16.gmra.mrb[20].mxu0 %v13308_v6  ;;  %v4485_v6 = vrot.slane %v4483_v45, 4 }
 0x1be   : > { %14683 = vmatprep.mubr.bf16.mxu0 %v13309_v42  ;;  %v4488_v42 = vrot.slane %v4486_v17, 5  ;;  %v13409_v17 = vld [vmem:[%s16315_s8 + $0x58] sm:$0xf] }
 0x1c0   : > { %v4489_v2 = vor.u32 %v4488_v42, %v4485_v6 }
 0x1c5   : > { %14684 = vmatmul.mubr.bf16.gmra.mrb[24].mxu0 %v13310_v47  ;;  %v13403_v47 = vld [vmem:[%s16315_s8 + $0x40] sm:$0xf] }
 0x1c6   : > { %14687 = vmatprep.mubr.bf16.mxu0 %v13311_v41  ;;  %v4466_v41 = vrot.slane %v4465_v50, 4  ;;  %v4592_v50 = vshrl.u32 %v13409_v17, 16 }
 0x1cd   : > { %14688 = vmatmul.mubr.bf16.gmra.mrb[28].mxu0 %v13312_v59  ;;  %v4480_v59 = vrot.slane %v4478_v19, 5 }
 0x1ce   : > { %14707 = vmatprep.mubr.bf16.mxu0 %v15923_v32  ;;  %v4499_v32 = vor.u32 %v4498_v21, %v17314_v8  ;;  %v4550_v21 = vshll.u32 %v13404_v56, 16 }
 0x1cf   : > { %v4481_v5 = vsel %vm16396_vm2, %v4476_v15, %v4480_v59 }
 0x1d0   : > { %v17336_v16 = vrot.slane %v4499_v32, 4  ;;  %v4594_v32 = vrot.slane %v4592_v50, 4  ;;  %v13416_v50 = vld [vmem:[%s16315_s8 + $0x74] sm:$0x1] }
 0x1d5   : > { %14708 = vmatmul.mubr.bf16.vlgmr.msra.gmra.mrb[0].mxu0 %v15924_v11  ;;  %v4531_v11 = vshrl.u32 %v13402_v20, 16 }
 0x1d6   : > { %14740 = vmatpush3.bf16.msra.mxu0 %v15925_v49  ;;  %14711 = vmatprep.mubr.bf16.mxu0 %v15926_v57  ;;  %v15946_v49 = vld [vmem:[%s18988_s1 + $0x1f8] sm:$0xff]   ;;  %v13406_v57 = vld [vmem:[%s16315_s8 + $0x4c] sm:$0xf] }
 0x1d7   : > { %14741 = vmatprep.subr.bf16.mxu0 %v15928_v26  ;;  %v4564_v1 = vshll.u32 %v13406_v57, 16  ;;  %v4568_v14 = vshrl.u32 %v13406_v57, 16  ;;  %v4533_v22 = vrot.slane %v4531_v11, 4 }
 0x1d9   : > { %v17344_v4 = vrot.slane %v4564_v1, 5 }
 0x1da   : > { %14742 = vmatpush3.bf16.msra.mxu0 %v15928_v26  ;;  %v13401_v26 = vld [vmem:[%s16315_s8 + $0x38] sm:$0x1] }
 0x1db   : > { %14743 = vmatprep.subr.bf16.mxu0 %v15931_v13  ;;  %v4526_v54 = vshll.u32 %v13401_v26, 16 }
 0x1dd   : > { %14712 = vmatmul.mubr.bf16.gmra.mrb[4].mxu0 %v15927_v25  ;;  %v4522_v25 = vrot.slane %v4520_v35, 4  ;;  %v4528_v19 = vrot.slane %v4526_v54, 5 }
 0x1de   : > { %14715 = vmatprep.mubr.bf16.mxu0 %v15929_v52  ;;  %14744 = vmatpush3.bf16.msra.mxu0 %v15931_v13  ;;  %v17322_v13 = vrot.slane %v4516_v0, 5  ;;  %v4534_v52 = vshll.u32 %v13402_v20, 16  ;;  %v15945_v0 = vld [vmem:[%s16315_s8 + $0xcc] sm:$0xff]  }
 0x1df   : > { %14745 = vmatprep.subr.bf16.mxu0 %v15934_v10 }
 0x1e0   : > { %v4523_v37 = vor.u32 %v4522_v25, %v17322_v13  ;;  %v4536_v38 = vrot.slane %v4534_v52, 5  ;;  %v17367_v25 = vrot.slane %v4550_v21, 5  ;;  %v13421_v21 = vld [vmem:[%s16315_s8 + $0x88] sm:$0xf] }
 0x1e2   : > { %14746 = vmatpush3.bf16.msra.mxu0 %v15934_v10  ;;  %v4540_v10 = vshll.u32 %v13403_v47, 16  ;;  %v4524_v18 = vrot.slane %v4523_v37, 4  ;;  %v4537_v39 = vor.u32 %v4536_v38, %v4533_v22 }
 0x1e3   : > { %14747 = vmatprep.subr.bf16.mxu0 %v15937_v63 }
 0x1e4   : > { %v17339_v45 = vrot.slane %v4540_v10, 5  ;;  %v17365_v26 = vrot.slane %v4537_v39, 4  ;;  %v4529_v52 = vsel %vm16396_vm2, %v4524_v18, %v4528_v19 }
 0x1e5   : > { %14716 = vmatmul.mubr.bf16.gmra.mrb[8].mxu0 %v15930_v34  ;;  %v17325_v34 = vrot.slane %v4489_v2, 4  ;;  %v4574_v2 = vshll.u32 %v13407_v62, 16 }
 0x1e6   : > { %14719 = vmatprep.mubr.bf16.mxu0 %v15932_v9  ;;  %14748 = vmatpush3.bf16.msra.mxu0 %v15937_v63  ;;  %v15942_v63 = vld [vmem:[%s16315_s8 + $0xb4] sm:$0xff]   ;;  %v4544_v9 = vshrl.u32 %v13403_v47, 16  ;;  %v4543_v38 = vsel %vm16396_vm2, %v17365_v26, %v17339_v45 }
 0x1e7   : > { %14749 = vmatprep.subr.bf16.mxu0 %v15940_v27  ;;  %v4495_v55 = vsel %vm16396_vm2, %v17325_v34, %v17314_v8  ;;  %v4616_v8 = vshrl.u32 %v13412_v29, 16 }
 0x1e8   : > { %v4546_v60 = vrot.slane %v4544_v9, 4  ;;  %v13414_v9 = vld [vmem:[%s16315_s8 + $0x6c] sm:$0xf] }
 0x1e9   : > { %v4627_v37 = vshrl.u32 %v13414_v9, 16  ;;  %v4630_v22 = vshll.u32 %v13414_v9, 16 }
 0x1ea   : > { %14750 = vmatpush3.bf16.msra.mxu0 %v15940_v27  ;;  %v4555_v27 = vshrl.u32 %v13405_v24, 16  ;;  %v4547_v35 = vor.u32 %v4546_v60, %v17339_v45 }
 0x1eb   : > { %14751 = vmatprep.subr.bf16.mxu0 %v15943_v58 }
 0x1ec   : > { %v17371_v10 = vrot.slane %v4547_v35, 4  ;;  %v4632_v35 = vrot.slane %v4630_v22, 5 }
 0x1ed   : > { %14720 = vmatmul.mubr.bf16.gmra.mrb[12].mxu0 %v15933_v43  ;;  %v15944_v43 = vld [vmem:[%s16315_s8 + $0xc0] sm:$0xff]  }
 0x1ee   : > { %14723 = vmatprep.mubr.bf16.mxu0 %v15935_v31  ;;  %14752 = vmatpush3.bf16.msra.mxu0 %v15943_v58  ;;  %v4558_v58 = vshll.u32 %v13405_v24, 16  ;;  %v17328_v31 = vrot.slane %v4502_v33, 5  ;;  %v4603_v33 = vshrl.u32 %v13411_v51, 16 }
 0x1ef   : > { %14753 = vmatprep.subr.bf16.mxu0 %v15946_v49 }
 0x1f0   : > { %v4560_v44 = vrot.slane %v4558_v58, 5  ;;  %v4505_v11 = vsel %vm16396_vm2, %v17336_v16, %v17328_v31  ;;  %v4605_v58 = vrot.slane %v4603_v33, 4  ;;  %v4618_v31 = vrot.slane %v4616_v8, 4 }
 0x1f1   : > { %v13458_v16 = vcombine.low %v4495_v55, %v4505_v11  ;;  %v4646_v33 = vshll.u32 %v13416_v50, 16 }
 0x1f2   : > { %14754 = vmatpush3.bf16.msra.mxu0 %v15946_v49  ;;  %v4513_v49 = vor.u32 %v4512_v46, %v4509_v23  ;;  %v4606_v23 = vshll.u32 %v13411_v51, 16  ;;  %v4612_v46 = vshll.u32 %v13412_v29, 16  ;;  %v13420_v51 = vld [vmem:[%s16315_s8 + $0x84] sm:$0xf] }
 0x1f3   : > { %14787 = vmatprep.subr.bf16.mxu0 %v17297_v30  ;;  %v4678_v8 = vshll.u32 %v13420_v51, 16 }
 0x1f4   : > { %v4514_v53 = vrot.slane %v4513_v49, 4  ;;  %v13415_v49 = vld [vmem:[%s16315_s8 + $0x70] sm:$0xf] }
 0x1f5   : > { %14724 = vmatmul.mubr.bf16.gmra.mrb[16].mxu0 %v15936_v36  ;;  %v13408_v36 = vld [vmem:[%s16315_s8 + $0x54] sm:$0xf]  ;;  %v4636_v56 = vshll.u32 %v13415_v49, 16  ;;  %v4640_v60 = vshrl.u32 %v13415_v49, 16 }
 0x1f6   : > { %14727 = vmatprep.mubr.bf16.mxu0 %v15938_v3  ;;  %v4471_v3 = vsel %vm16396_vm2, %v4466_v41, %v17305_v48  ;;  %v4557_v48 = vrot.slane %v4555_v27, 4  ;;  %v4579_v40 = vshrl.u32 %v13408_v36, 16  ;;  %v4582_v6 = vshll.u32 %v13408_v36, 16  ;;  %v13410_v41 = vld [vmem:[%s16315_s8 + $0x5c] sm:$0x1] }
 0x1f7   : > { %v13457_v42 = vcombine.low %v4471_v3, %v4481_v5  ;;  %v4519_v57 = vsel %vm16396_vm2, %v4514_v53, %v17322_v13  ;;  %v4598_v34 = vshll.u32 %v13410_v41, 16  ;;  %v15955_v27 = vld [vmem:[#allocation4] sm:$0xff]   ;;  %v17376_v13 = vrot.slane %v4612_v46, 5  ;;  %v13413_v5 = vld [vmem:[%s16315_s8 + $0x68] sm:$0x1] }
 0x1f8   : > { %v4561_v20 = vor.u32 %v4560_v44, %v4557_v48  ;;  %v4581_v47 = vrot.slane %v4579_v40, 4  ;;  %v4584_v15 = vrot.slane %v4582_v6, 5  ;;  %14835 = vmatprep.subr.bf16.mxu1 %v15955_v27  ;;  %v13459_v54 = vcombine.low %v4519_v57, %v4529_v52  ;;  %v13417_v48 = vld [vmem:[%s16315_s8 + $0x78] sm:$0xf]  ;;  %v13418_v44 = vld [vmem:[%s16315_s8 + $0x7c] sm:$0xf] }
 0x1f9   : > { %14836 = vmatpush3.bf16.msra.mxu1 %v15955_v27  ;;  %v15948_v40 = vld [vmem:[%s18988_s1 + $0x208] sm:$0xff]   ;;  %v17394_v53 = vrot.slane %v4598_v34, 5  ;;  %v4619_v45 = vor.u32 %v4618_v31, %v17376_v13  ;;  %v4651_v29 = vshrl.u32 %v13417_v48, 16  ;;  %v4654_v18 = vshll.u32 %v13417_v48, 16  ;;  %v13423_v31 = vld [vmem:[%s16315_s8 + $0x90] sm:$0xf] }
 0x1fa   : > { %v4562_v1 = vrot.slane %v4561_v20, 4  ;;  %v4585_v36 = vor.u32 %v4584_v15, %v4581_v47  ;;  %v4660_v19 = vshll.u32 %v13418_v44, 16  ;;  %v4664_v39 = vshrl.u32 %v13418_v44, 16 }
 0x1fb   : > { %v17408_v20 = vrot.slane %v4636_v56, 5  ;;  %v4620_v47 = vrot.slane %v4619_v45, 4  ;;  %v4675_v46 = vshrl.u32 %v13420_v51, 16  ;;  %v4688_v15 = vshrl.u32 %v13421_v21, 16  ;;  %v13426_v45 = vld [vmem:[%s16315_s8 + $0x9c] sm:$0xf] }
 0x1fc   : > { %v4567_v6 = vsel %vm16396_vm2, %v4562_v1, %v17344_v4  ;;  %v17403_v55 = vrot.slane %v4585_v36, 4  ;;  %v4656_v11 = vrot.slane %v4654_v18, 5  ;;  %v17414_v57 = vrot.slane %v4660_v19, 5  ;;  %v13424_v36 = vld [vmem:[%s16315_s8 + $0x94] sm:$0xf] }
 0x1fd   : > { %14728 = vmatmul.mubr.bf16.gmra.mrb[20].mxu0 %v15939_v7  ;;  %v4570_v7 = vrot.slane %v4568_v14, 4  ;;  %v4677_v49 = vrot.slane %v4675_v46, 4  ;;  %v4680_v1 = vrot.slane %v4678_v8, 5  ;;  %v4708_v56 = vshll.u32 %v13424_v36, 16  ;;  %v13427_v19 = vld [vmem:[%s16315_s8 + $0xa0] sm:$0xf] }
 0x1fe   : > { %14731 = vmatprep.mubr.bf16.mxu0 %v15941_v28  ;;  %v4588_v28 = vshll.u32 %v13409_v17, 16  ;;  %v4553_v17 = vsel %vm16396_vm2, %v17371_v10, %v17367_v25  ;;  %v4732_v46 = vshll.u32 %v13427_v19, 16  ;;  %v4736_v8 = vshrl.u32 %v13427_v19, 16 }
 0x1ff   : > { %v4571_v24 = vor.u32 %v4570_v7, %v17344_v4  ;;  %v4622_v7 = vshll.u32 %v13413_v5, 16  ;;  %v4642_v4 = vrot.slane %v4640_v60, 4  ;;  %v13460_v26 = vcombine.low %v4543_v38, %v4553_v17 }
 0x200   : > { %v17356_v59 = vrot.slane %v4588_v28, 5  ;;  %v4699_v38 = vshrl.u32 %v13423_v31, 16  ;;  %v4702_v17 = vshll.u32 %v13423_v31, 16  ;;  %v4712_v60 = vshrl.u32 %v13424_v36, 16 }
 0x201   : > { %v4572_v14 = vrot.slane %v4571_v24, 4  ;;  %v4624_v41 = vrot.slane %v4622_v7, 5  ;;  %v4684_v24 = vshll.u32 %v13421_v21, 16  ;;  %v4643_v10 = vor.u32 %v4642_v4, %v17408_v20 }
 0x202   : > { %v4595_v3 = vor.u32 %v4594_v32, %v17356_v59  ;;  %v4653_v32 = vrot.slane %v4651_v29, 4  ;;  %v4591_v34 = vsel %vm16396_vm2, %v17403_v55, %v17356_v59  ;;  %v4681_v44 = vor.u32 %v4680_v1, %v4677_v49 }
 0x203   : > { %v17434_v59 = vrot.slane %v4684_v24, 5  ;;  %v17443_v22 = vrot.slane %v4643_v10, 4  ;;  %v4701_v29 = vrot.slane %v4699_v38, 4  ;;  %v4704_v18 = vrot.slane %v4702_v17, 5  ;;  %v13433_v38 = vld [vmem:[%s16315_s8 + $0xb8] sm:$0xf] }
 0x204   : > { %v4596_v28 = vrot.slane %v4595_v3, 4  ;;  %v4625_v3 = vsel %vm16396_vm2, %v4620_v47, %v4624_v41  ;;  %v4657_v5 = vor.u32 %v4656_v11, %v4653_v32  ;;  %v17461_v21 = vrot.slane %v4708_v56, 5  ;;  %v15954_v56 = vld [vmem:[%s18988_s1 + $0x238] sm:$0xff]  }
 0x205   : > { %14732 = vmatmul.mubr.bf16.gmra.mrb[24].mxu0 %v15942_v63  ;;  %v17373_v63 = vrot.slane %v4574_v2, 5  ;;  %v4726_v4 = vshll.u32 %v13426_v45, 16  ;;  %v4682_v47 = vrot.slane %v4681_v44, 4  ;;  %v4738_v31 = vrot.slane %v4736_v8, 4 }
 0x206   : > { %14735 = vmatprep.mubr.bf16.mxu0 %v15944_v43  ;;  %v4608_v43 = vrot.slane %v4606_v23, 5  ;;  %v15949_v23 = vld [vmem:[%s18988_s1 + $0x210] sm:$0xff]   ;;  %v4601_v9 = vsel %vm16396_vm2, %v4596_v28, %v17394_v53  ;;  %v13425_v28 = vld [vmem:[%s16315_s8 + $0x98] sm:$0x1] }
 0x207   : > { %v13462_v48 = vcombine.low %v4591_v34, %v4601_v9  ;;  %v4687_v34 = vsel %vm16396_vm2, %v4682_v47, %v17434_v59 }
 0x208   : > { %v4609_v62 = vor.u32 %v4608_v43, %v4605_v58  ;;  %v17428_v58 = vrot.slane %v4646_v33, 5  ;;  %v15950_v43 = vld [vmem:[%s18988_s1 + $0x218] sm:$0xff]  }
 0x20a   : > { %v4610_v2 = vrot.slane %v4609_v62, 4  ;;  %v15951_v62 = vld [vmem:[%s18988_s1 + $0x220] sm:$0xff]   ;;  %v4649_v51 = vsel %vm16396_vm2, %v17443_v22, %v17428_v58  ;;  %v15953_v58 = vld [vmem:[%s18988_s1 + $0x230] sm:$0xff]  }
 0x20c   : > { %v4615_v27 = vsel %vm16396_vm2, %v4610_v2, %v17376_v13  ;;  %v13430_v2 = vld [vmem:[%s16315_s8 + $0xac] sm:$0xf] }
 0x20d   : > { %14736 = vmatmul.mubr.bf16.gmra.mrb[28].mxu0 %v15945_v0  ;;  %v4629_v0 = vrot.slane %v4627_v37, 4  ;;  %v13463_v7 = vcombine.low %v4615_v27, %v4625_v3  ;;  %v13428_v27 = vld [vmem:[%s16315_s8 + $0xa4] sm:$0x1]  ;;  %v13431_v3 = vld [vmem:[%s16315_s8 + $0xb0] sm:$0x1] }
 0x20e   : > { %14755 = vmatprep.mubr.bf16.mxu0 %v13457_v42  ;;  %v4577_v42 = vsel %vm16396_vm2, %v4572_v14, %v17373_v63  ;;  %v13419_v63 = vld [vmem:[%s16315_s8 + $0x80] sm:$0x1]  ;;  %v4690_v14 = vrot.slane %v4688_v15, 4  ;;  %v4742_v22 = vshll.u32 %v13428_v27, 16  ;;  %v4766_v44 = vshll.u32 %v13431_v3, 16 }
 0x20f   : > { %v13461_v25 = vcombine.low %v4567_v6, %v4577_v42  ;;  %v4633_v52 = vor.u32 %v4632_v35, %v4629_v0  ;;  %v4658_v6 = vrot.slane %v4657_v5, 4  ;;  %v4714_v0 = vrot.slane %v4712_v60, 4 }
 0x210   : > { %v4723_v35 = vshrl.u32 %v13426_v45, 16 }
 0x211   : > { %v17441_v37 = vrot.slane %v4633_v52, 4  ;;  %v4663_v32 = vsel %vm16396_vm2, %v4658_v6, %v17414_v57  ;;  %v4715_v52 = vor.u32 %v4714_v0, %v17461_v21  ;;  %v4780_v6 = vshll.u32 %v13433_v38, 16 }
 0x212   : > { %v4725_v10 = vrot.slane %v4723_v35, 4 }
 0x213   : > { %v4639_v50 = vsel %vm16396_vm2, %v17441_v37, %v17408_v20  ;;  %v4718_v20 = vshll.u32 %v13425_v28, 16 }
 0x215   : > { %14756 = vmatmul.mubr.bf16.vlgmr.msra.gmra.mrb[0].mxu0 %v13458_v16  ;;  %v4670_v16 = vshll.u32 %v13419_v63, 16  ;;  %v4728_v63 = vrot.slane %v4726_v4, 5  ;;  %v4720_v9 = vrot.slane %v4718_v20, 5  ;;  %v4768_v4 = vrot.slane %v4766_v44, 5 }
 0x216   : > { %14788 = vmatpush3.bf16.msra.mxu0 %v17297_v30  ;;  %14759 = vmatprep.mubr.bf16.mxu0 %v13459_v54  ;;  %v4666_v30 = vrot.slane %v4664_v39, 4  ;;  %v13422_v54 = vld [vmem:[%s16315_s8 + $0x8c] sm:$0x1]  ;;  %v13429_v39 = vld [vmem:[%s16315_s8 + $0xa8] sm:$0xf] }
 0x217   : > { %14789 = vmatprep.subr.bf16.mxu0 %v15948_v40  ;;  %v4694_v53 = vshll.u32 %v13422_v54, 16  ;;  %v4672_v55 = vrot.slane %v4670_v16, 5  ;;  %v4747_v24 = vshrl.u32 %v13429_v39, 16  ;;  %v4750_v15 = vshll.u32 %v13429_v39, 16 }
 0x218   : > { %v4667_v13 = vor.u32 %v4666_v30, %v17414_v57  ;;  %v4756_v30 = vshll.u32 %v13430_v2, 16  ;;  %v4716_v54 = vrot.slane %v4715_v52, 4  ;;  %v4729_v37 = vor.u32 %v4728_v63, %v4725_v10  ;;  %v13437_v52 = vld [vmem:[%s16315_s8 + $0xc8] sm:$0x1] }
 0x219   : > { %v4696_v33 = vrot.slane %v4694_v53, 5  ;;  %v4749_v49 = vrot.slane %v4747_v24, 4  ;;  %v4752_v1 = vrot.slane %v4750_v15, 5  ;;  %v13435_v53 = vld [vmem:[%s16315_s8 + $0xc0] sm:$0xf] }
 0x21a   : > { %14790 = vmatpush3.bf16.msra.mxu0 %v15948_v40  ;;  %v4691_v40 = vor.u32 %v4690_v14, %v17434_v59  ;;  %v4668_v42 = vrot.slane %v4667_v13, 4  ;;  %v13464_v14 = vcombine.low %v4639_v50, %v4649_v51  ;;  %v17485_v59 = vrot.slane %v4756_v30, 5  ;;  %v13432_v13 = vld [vmem:[%s16315_s8 + $0xb4] sm:$0xf] }
 0x21b   : > { %14791 = vmatprep.subr.bf16.mxu0 %v15949_v23  ;;  %v4721_v28 = vsel %vm16396_vm2, %v4716_v54, %v4720_v9  ;;  %v4730_v50 = vrot.slane %v4729_v37, 4  ;;  %v4744_v51 = vrot.slane %v4742_v22, 5 }
 0x21c   : > { %v4692_v41 = vrot.slane %v4691_v40, 4  ;;  %v4673_v11 = vsel %vm16396_vm2, %v4668_v42, %v4672_v55  ;;  %v4771_v40 = vshrl.u32 %v13432_v13, 16  ;;  %v4784_v42 = vshrl.u32 %v13433_v38, 16 }
 0x21d   : > { %14760 = vmatmul.mubr.bf16.gmra.mrb[4].mxu0 %v13460_v26  ;;  %v4760_v26 = vshrl.u32 %v13430_v2, 16  ;;  %v13465_v36 = vcombine.low %v4663_v32, %v4673_v11  ;;  %v13439_v11 = vld [vmem:[%s16315_s8 + $0xd0] sm:$0xf] }
 0x21e   : > { %14763 = vmatprep.mubr.bf16.mxu0 %v13461_v25  ;;  %14792 = vmatpush3.bf16.msra.mxu0 %v15949_v23  ;;  %v15952_v23 = vld [vmem:[%s18988_s1 + $0x228] sm:$0xff]   ;;  %v4705_v25 = vor.u32 %v4704_v18, %v4701_v29  ;;  %v4697_v57 = vsel %vm16396_vm2, %v4692_v41, %v4696_v33  ;;  %v4795_v29 = vshrl.u32 %v13435_v53, 16  ;;  %v4798_v18 = vshll.u32 %v13435_v53, 16 }
 0x21f   : > { %14793 = vmatprep.subr.bf16.mxu0 %v15950_v43  ;;  %v4762_v5 = vrot.slane %v4760_v26, 4  ;;  %v13466_v17 = vcombine.low %v4687_v34, %v4697_v57  ;;  %v4773_v2 = vrot.slane %v4771_v40, 4  ;;  %v4782_v33 = vrot.slane %v4780_v6, 5 }
 0x220   : > { %v4706_v16 = vrot.slane %v4705_v25, 4  ;;  %v4786_v20 = vrot.slane %v4784_v42, 4  ;;  %v4797_v8 = vrot.slane %v4795_v29, 4  ;;  %v4800_v24 = vrot.slane %v4798_v18, 5  ;;  %v13481_v42 = vld [vmem:[%s16315_s8 + $0x18] sm:$0xe] }
 0x221   : > { %v4763_v45 = vor.u32 %v4762_v5, %v17485_v59 }
 0x222   : > { %14794 = vmatpush3.bf16.msra.mxu0 %v15950_v43  ;;  %v17482_v43 = vrot.slane %v4732_v46, 5  ;;  %v4711_v55 = vsel %vm16396_vm2, %v4706_v16, %v17461_v21  ;;  %v13434_v21 = vld [vmem:[%s16315_s8 + $0xbc] sm:$0x1]  ;;  %v13438_v46 = vld [vmem:[%s16315_s8 + $0xcc] sm:$0xf]  ;;  %v4787_v57 = vor.u32 %v4786_v20, %v4782_v33 }
 0x223   : > { %14795 = vmatprep.subr.bf16.mxu0 %v15951_v62  ;;  %v4764_v47 = vrot.slane %v4763_v45, 4  ;;  %v4790_v25 = vshll.u32 %v13434_v21, 16  ;;  %v4819_v9 = vshrl.u32 %v13438_v46, 16  ;;  %v4822_v27 = vshll.u32 %v13438_v46, 16  ;;  %v13484_v20 = vld [vmem:[%s16315_s8 + $0x24] sm:$0xe] }
 0x224   : > { %v4739_v60 = vor.u32 %v4738_v31, %v17482_v43  ;;  %v4735_v30 = vsel %vm16396_vm2, %v4730_v50, %v17482_v43  ;;  %v4832_v43 = vshrl.u32 %v13439_v11, 16  ;;  %v4801_v31 = vor.u32 %v4800_v24, %v4797_v8  ;;  %v13487_v8 = vld [vmem:[%s16315_s8 + $0x30] sm:$0xe]  ;;  %v13489_v24 = vld [vmem:[%s16315_s8 + $0x38] sm:$0x1] }
 0x225   : > { %14764 = vmatmul.mubr.bf16.gmra.mrb[8].mxu0 %v13462_v48  ;;  %v4753_v48 = vor.u32 %v4752_v1, %v4749_v49  ;;  %v4769_v63 = vsel %vm16396_vm2, %v4764_v47, %v4768_v4  ;;  %v4814_v1 = vshll.u32 %v13437_v52, 16  ;;  %v4788_v5 = vrot.slane %v4787_v57, 4  ;;  %v13488_v4 = vld [vmem:[%s16315_s8 + $0x34] sm:$0xf] }
 0x226   : > { %14767 = vmatprep.mubr.bf16.mxu0 %v13463_v7  ;;  %14796 = vmatpush3.bf16.msra.mxu0 %v15951_v62  ;;  %v13436_v62 = vld [vmem:[%s16315_s8 + $0xc4] sm:$0xf]  ;;  %v4774_v7 = vshll.u32 %v13432_v13, 16  ;;  %v4740_v0 = vrot.slane %v4739_v60, 4  ;;  %v4821_v13 = vrot.slane %v4819_v9, 4  ;;  %v4824_v16 = vrot.slane %v4822_v27, 5 }
 0x227   : > { %14797 = vmatprep.subr.bf16.mxu0 %v15952_v23  ;;  %v4804_v19 = vshll.u32 %v13436_v62, 16  ;;  %v4808_v39 = vshrl.u32 %v13436_v62, 16  ;;  %v4754_v35 = vrot.slane %v4753_v48, 4  ;;  %v4834_v37 = vrot.slane %v4832_v43, 4  ;;  %v13482_v60 = vld [vmem:[%s16315_s8 + $0x1c] sm:$0xf] }
 0x228   : > { %v4776_v41 = vrot.slane %v4774_v7, 5  ;;  %v4745_v26 = vsel %vm16396_vm2, %v4740_v0, %v4744_v51  ;;  %v4802_v22 = vrot.slane %v4801_v31, 4  ;;  %v4825_v40 = vor.u32 %v4824_v16, %v4821_v13  ;;  %v13490_v31 = vld [vmem:[%s16315_s8 + $0x3c] sm:$0xe] }
 0x229   : > { %v4806_v15 = vrot.slane %v4804_v19, 5  ;;  %v4810_v32 = vrot.slane %v4808_v39, 4  ;;  %v4759_v10 = vsel %vm16396_vm2, %v4754_v35, %v17485_v59  ;;  %v4792_v59 = vrot.slane %v4790_v25, 5  ;;  %v13485_v35 = vld [vmem:[%s16315_s8 + $0x28] sm:$0xf] }
 0x22a   : > { %14798 = vmatpush3.bf16.msra.mxu0 %v15952_v23  ;;  %v13467_v23 = vcombine.low %v4711_v55, %v4721_v28  ;;  %v4777_v34 = vor.u32 %v4776_v41, %v4773_v2  ;;  %v5326_v6 = vrot.slane %v13482_v60, 5  ;;  %v13483_v55 = vld [vmem:[%s16315_s8 + $0x20] sm:$0x1]  ;;  %v4826_v51 = vrot.slane %v4825_v40, 4 }
 0x22b   : > { %14799 = vmatprep.subr.bf16.mxu0 %v15953_v58  ;;  %v4811_v49 = vor.u32 %v4810_v32, %v4806_v15  ;;  %v4793_v44 = vsel %vm16396_vm2, %v4788_v5, %v4792_v59  ;;  %v4807_v45 = vsel %vm16396_vm2, %v4802_v22, %v4806_v15  ;;  %v13529_v19 = vrot.slane %v13481_v42, 9 }
 0x22c   : > { %v4778_v3 = vrot.slane %v4777_v34, 4  ;;  %v5328_v39 = vrot.slane %v5326_v6, 4  ;;  %v5329_v0 = vrot.slane %v13483_v55, 5  ;;  %v5333_v21 = vrot.slane %v13485_v35, 5  ;;  %v13494_v34 = vld [vmem:[%s16315_s8 + $0x4c] sm:$0xf] }
 0x22d   : > { %14768 = vmatmul.mubr.bf16.gmra.mrb[12].mxu0 %v13464_v14  ;;  %v13468_v14 = vcombine.low %v4735_v30, %v4745_v26  ;;  %v4812_v38 = vrot.slane %v4811_v49, 4  ;;  %v5327_v41 = vsel %vm16623_vm5, %v13529_v19, %v5326_v6  ;;  %v5340_v46 = vrot.slane %v13488_v4, 5  ;;  %v13492_v49 = vld [vmem:[%s16315_s8 + $0x44] sm:$0x1]  ;;  %v13501_v6 = vld [vmem:[%s16315_s8 + $0x68] sm:$0x1] }
 0x22e   : > { %14771 = vmatprep.mubr.bf16.mxu0 %v13465_v36  ;;  %14800 = vmatpush3.bf16.msra.mxu0 %v15953_v58  ;;  %v4828_v58 = vshll.u32 %v13439_v11, 16  ;;  %v13469_v36 = vcombine.low %v4759_v10, %v4769_v63  ;;  %v4783_v48 = vsel %vm16396_vm2, %v4778_v3, %v4782_v33  ;;  %v5330_v33 = vsel %vm16623_vm5, %v5328_v39, %v5329_v0  ;;  %v13491_v63 = vld [vmem:[%s16315_s8 + $0x40] sm:$0xf]  ;;  %v13503_v39 = vld [vmem:[%s16315_s8 + $0x70] sm:$0xf] }
 0x22f   : > { %14801 = vmatprep.subr.bf16.mxu0 %v15954_v56  ;;  %v13470_v28 = vcombine.low %v4783_v48, %v4793_v44  ;;  %v13561_v32 = vcombine.low %v5327_v41, %v5330_v33  ;;  %v13530_v11 = vrot.slane %v13484_v20, 9  ;;  %v5335_v30 = vrot.slane %v5333_v21, 4  ;;  %v13506_v0 = vld [vmem:[%s16315_s8 + $0x7c] sm:$0xf]  ;;  %v13502_v41 = vld [vmem:[%s16315_s8 + $0x6c] sm:$0xe] }
 0x230   : > { %v4830_v54 = vrot.slane %v4828_v58, 5  ;;  %v13531_v25 = vrot.slane %v13487_v8, 9  ;;  %v5342_v52 = vrot.slane %v5340_v46, 4  ;;  %v5343_v10 = vrot.slane %v13489_v24, 5  ;;  %v13504_v33 = vld [vmem:[%s16315_s8 + $0x74] sm:$0x1] }
 0x231   : > { %v5334_v57 = vsel %vm16623_vm5, %v13530_v11, %v5333_v21  ;;  %v5347_v27 = vrot.slane %v13491_v63, 5  ;;  %v13532_v59 = vrot.slane %v13490_v31, 9  ;;  %v5350_v16 = vrot.slane %v13492_v49, 5  ;;  %v13511_v49 = vld [vmem:[%s16315_s8 + $0x90] sm:$0xe] }
 0x232   : > { %14802 = vmatpush3.bf16.msra.mxu0 %v15954_v56  ;;  %v13440_v56 = vld [vmem:[%s16315_s8 + $0xd4] sm:$0x1]  ;;  %v4835_v53 = vor.u32 %v4834_v37, %v4830_v54  ;;  %v4831_v2 = vsel %vm16396_vm2, %v4826_v51, %v4830_v54  ;;  %v5341_v58 = vsel %vm16623_vm5, %v13531_v25, %v5340_v46  ;;  %v5344_v43 = vsel %vm16623_vm5, %v5342_v52, %v5343_v10  ;;  %v13507_v46 = vld [vmem:[%s16315_s8 + $0x80] sm:$0x1]  ;;  %v13509_v52 = vld [vmem:[%s16315_s8 + $0x88] sm:$0xf] }
 0x233   : > { %v4838_v62 = vshll.u32 %v13440_v56, 16  ;;  %v13563_v5 = vcombine.low %v5341_v58, %v5344_v43  ;;  %v5349_v13 = vrot.slane %v5347_v27, 4  ;;  %v5348_v56 = vsel %vm16623_vm5, %v13532_v59, %v5347_v27  ;;  %v13512_v10 = vld [vmem:[%s16315_s8 + $0x94] sm:$0xf]  ;;  %v13508_v58 = vld [vmem:[%s16315_s8 + $0x84] sm:$0xe] }
 0x234   : > { %v4836_v29 = vrot.slane %v4835_v53, 4  ;;  %v13496_v53 = vld [vmem:[%s16315_s8 + $0x54] sm:$0xe]  ;;  %v5371_v19 = vrot.slane %v13501_v6, 5  ;;  %v5382_v20 = vrot.slane %v13506_v0, 5  ;;  %v5378_v11 = vrot.slane %v13504_v33, 5 }
 0x235   : > { %14772 = vmatmul.mubr.bf16.gmra.mrb[16].mxu0 %v13466_v17  ;;  %v4816_v17 = vrot.slane %v4814_v1, 5  ;;  %v4840_v18 = vrot.slane %v4838_v62, 5  ;;  %v5354_v1 = vrot.slane %v13494_v34, 5  ;;  %v5351_v60 = vsel %vm16623_vm5, %v5349_v13, %v5350_v16  ;;  %v13498_v62 = vld [vmem:[%s16315_s8 + $0x5c] sm:$0x1] }
 0x236   : > { %14775 = vmatprep.mubr.bf16.mxu0 %v13467_v23  ;;  %v13486_v23 = vld [vmem:[%s16315_s8 + $0x2c] sm:$0x1]  ;;  %v13564_v42 = vcombine.low %v5348_v56, %v5351_v60  ;;  %v5364_v51 = vrot.slane %v13498_v62, 5  ;;  %v5385_v25 = vrot.slane %v13507_v46, 5  ;;  %v5396_v31 = vrot.slane %v13512_v10, 5 }
 0x237   : > { %v4817_v7 = vsel %vm16396_vm2, %v4812_v38, %v4816_v17  ;;  %v4841_v47 = vsel %vm16396_vm2, %v4836_v29, %v4840_v18  ;;  %v5336_v26 = vrot.slane %v13486_v23, 5  ;;  %v5356_v37 = vrot.slane %v5354_v1, 4  ;;  %v13497_v38 = vld [vmem:[%s16315_s8 + $0x58] sm:$0xf]  ;;  %v13500_v17 = vld [vmem:[%s16315_s8 + $0x64] sm:$0xf] }
 0x238   : > { %v13471_v50 = vcombine.low %v4807_v45, %v4817_v7  ;;  %v13472_v15 = vcombine.low %v4831_v2, %v4841_v47  ;;  %v5361_v48 = vrot.slane %v13497_v38, 5  ;;  %v5368_v45 = vrot.slane %v13500_v17, 5  ;;  %v13499_v7 = vld [vmem:[%s16315_s8 + $0x60] sm:$0xe]  ;;  %v13505_v23 = vld [vmem:[%s16315_s8 + $0x78] sm:$0xe] }
 0x239   : > { %v5337_v9 = vsel %vm16623_vm5, %v5335_v30, %v5336_v26  ;;  %v13535_v29 = vrot.slane %v13499_v7, 9  ;;  %v5375_v2 = vrot.slane %v13503_v39, 5  ;;  %v13537_v30 = vrot.slane %v13505_v23, 9  ;;  %v13510_v43 = vld [vmem:[%s16315_s8 + $0x8c] sm:$0x1] }
 0x23a   : > { %v13562_v3 = vcombine.low %v5334_v57, %v5337_v9  ;;  %v5370_v18 = vrot.slane %v5368_v45, 4  ;;  %v5384_v26 = vrot.slane %v5382_v20, 4  ;;  %v5389_v57 = vrot.slane %v13509_v52, 5  ;;  %v13517_v62 = vld [vmem:[%s16315_s8 + $0xa8] sm:$0xe] }
 0x23b   : > { %v5369_v47 = vsel %vm16623_vm5, %v13535_v29, %v5368_v45  ;;  %v5383_v9 = vsel %vm16623_vm5, %v13537_v30, %v5382_v20  ;;  %v5392_v59 = vrot.slane %v13510_v43, 5  ;;  %v13539_v13 = vrot.slane %v13511_v49, 9  ;;  %v13519_v45 = vld [vmem:[%s16315_s8 + $0xb0] sm:$0x1]  ;;  %v13523_v33 = vld [vmem:[%s16315_s8 + $0xc0] sm:$0xe] }
 0x23c   : > { %v5372_v21 = vsel %vm16623_vm5, %v5370_v18, %v5371_v19  ;;  %v5386_v27 = vsel %vm16623_vm5, %v5384_v26, %v5385_v25  ;;  %v5398_v16 = vrot.slane %v5396_v31, 4  ;;  %v5413_v29 = vrot.slane %v13519_v45, 5  ;;  %v13521_v18 = vld [vmem:[%s16315_s8 + $0xb8] sm:$0xf]  ;;  %v13524_v19 = vld [vmem:[%s16315_s8 + $0xc4] sm:$0xf] }
 0x23d   : > { %14776 = vmatmul.mubr.bf16.gmra.mrb[20].mxu0 %v13468_v14  ;;  %v13493_v14 = vld [vmem:[%s16315_s8 + $0x48] sm:$0xe]  ;;  %v13567_v24 = vcombine.low %v5369_v47, %v5372_v21  ;;  %v5397_v60 = vsel %vm16623_vm5, %v13539_v13, %v5396_v31  ;;  %v13520_v47 = vld [vmem:[%s16315_s8 + $0xb4] sm:$0xe]  ;;  %v13522_v21 = vld [vmem:[%s16315_s8 + $0xbc] sm:$0x1] }
 0x23e   : > { %14779 = vmatprep.mubr.bf16.mxu0 %v13469_v36  ;;  %v13495_v36 = vld [vmem:[%s16315_s8 + $0x50] sm:$0x1]  ;;  %v13533_v54 = vrot.slane %v13493_v14, 9  ;;  %v13525_v20 = vld [vmem:[%s16315_s8 + $0xc8] sm:$0x1]  ;;  %v15959_v45 = vld [vmem:[#allocation4 + $0x20] sm:$0xff]  }
 0x23f   : > { %v5357_v22 = vrot.slane %v13495_v36, 5  ;;  %v13569_v36 = vcombine.low %v5383_v9, %v5386_v27  ;;  %v5427_v30 = vrot.slane %v13525_v20, 5  ;;  %v13527_v26 = vld [vmem:[%s16315_s8 + $0xd0] sm:$0xf]  ;;  %v13528_v9 = vld [vmem:[%s16315_s8 + $0xd4] sm:$0x1] }
 0x240   : > { %v5355_v44 = vsel %vm16623_vm5, %v13533_v54, %v5354_v1  ;;  %v13513_v1 = vld [vmem:[%s16315_s8 + $0x98] sm:$0x1]  ;;  %v5431_v10 = vrot.slane %v13527_v26, 5  ;;  %v5434_v49 = vrot.slane %v13528_v9, 5  ;;  %v5998_v20 = vld [vmem:[#allocation2 + $0x60] sm:$0x1] }
 0x241   : > { %v5358_v40 = vsel %vm16623_vm5, %v5356_v37, %v5357_v22  ;;  %v5399_v54 = vrot.slane %v13513_v1, 5  ;;  %v13515_v37 = vld [vmem:[%s16315_s8 + $0xa0] sm:$0xf]  ;;  %v13518_v22 = vld [vmem:[%s16315_s8 + $0xac] sm:$0xf] }
 0x242   : > { %v13565_v55 = vcombine.low %v5355_v44, %v5358_v40  ;;  %v5403_v56 = vrot.slane %v13515_v37, 5  ;;  %v13514_v44 = vld [vmem:[%s16315_s8 + $0x9c] sm:$0xe]  ;;  %v13516_v40 = vld [vmem:[%s16315_s8 + $0xa4] sm:$0x1]  ;;  %v5433_v31 = vrot.slane %v5431_v10, 4 }
 0x243   : > { %v5980_v13 = vld [vmem:[#allocation2 + $0x18] sm:$0x1]  ;;  %v5977_v37 = vld [vmem:[#allocation2 + $0xc] sm:$0x1] }
 0x245   : > { %14780 = vmatmul.mubr.bf16.gmra.mrb[24].mxu0 %v13470_v28  ;;  %v13534_v28 = vrot.slane %v13496_v53, 9  ;;  %v5410_v53 = vrot.slane %v13518_v22, 5  ;;  %v15958_v22 = vld [vmem:[#allocation4 + $0x18] sm:$0xff]  }
 0x246   : > { %14783 = vmatprep.mubr.bf16.mxu0 %v13471_v50  ;;  %v5363_v50 = vrot.slane %v5361_v48, 4 }
 0x247   : > { %v5362_v35 = vsel %vm16623_vm5, %v13534_v28, %v5361_v48  ;;  %v5400_v48 = vsel %vm16623_vm5, %v5398_v16, %v5399_v54  ;;  %v5406_v28 = vrot.slane %v13516_v40, 5  ;;  %v5981_v16 = vsel %vm17641_vm8, 0, %v5980_v13  ;;  %v6013_v13 = vld [vmem:[#allocation2 + $0x9c] sm:$0x1]  ;;  %v16051_v54 = vld [vmem:[#allocation4 + $0x1d0] sm:$0xff]  }
 0x248   : > { %v5365_v4 = vsel %vm16623_vm5, %v5363_v50, %v5364_v51  ;;  %v13571_v6 = vcombine.low %v5397_v60, %v5400_v48  ;;  %v13541_v50 = vrot.slane %v13517_v62, 9  ;;  %v5412_v51 = vrot.slane %v5410_v53, 4  ;;  %5982 = vst [vmem:[#allocation2 + $0x18] sm:$0x1] %v5981_v16  ;;  %v6033_v60 = vld [vmem:[#allocation2 + $0x14] sm:$0x1] }
 0x249   : > { %v13566_v8 = vcombine.low %v5362_v35, %v5365_v4  ;;  %v5417_v35 = vrot.slane %v13521_v18, 5  ;;  %v6034_v48 = vsel %vm17648_vm10, 0, %v6033_v60  ;;  %v6014_v16 = vsel %vm17641_vm8, 0, %v6013_v13 }
 0x24a   : > { %v5411_v4 = vsel %vm16623_vm5, %v13541_v50, %v5410_v53  ;;  %6035 = vst [vmem:[#allocation2 + $0x14] sm:$0x1] %v6034_v48  ;;  %v5983_v53 = vld [vmem:[#allocation2 + $0x24] sm:$0x1]  ;;  %6015 = vst [vmem:[#allocation2 + $0x9c] sm:$0x1] %v6014_v16 }
 0x24b   : > { %v5984_v62 = vsel %vm17641_vm8, 0, %v5983_v53  ;;  %v6019_v48 = vld [vmem:[#allocation2 + $0xb4] sm:$0x1] }
 0x24c   : > { %5985 = vst [vmem:[#allocation2 + $0x24] sm:$0x1] %v5984_v62  ;;  %v6075_v62 = vld [vmem:[#allocation2 + $0xbc] sm:$0x1] }
 0x24d   : > { %14784 = vmatmul.mubr.bf16.gmra.mrb[28].mxu0 %v13472_v15  ;;  %v13536_v15 = vrot.slane %v13502_v41, 9  ;;  %v5424_v41 = vrot.slane %v13524_v19, 5  ;;  %v5992_v19 = vld [vmem:[#allocation2 + $0x48] sm:$0x1] }
 0x24e   : > { %14803 = vmatprep.mubr.bf16.mxu0 %v13561_v32  ;;  %v5377_v32 = vrot.slane %v5375_v2, 4 }
 0x24f   : > { %v5376_v63 = vsel %vm16623_vm5, %v13536_v15, %v5375_v2  ;;  %v5414_v2 = vsel %vm16623_vm5, %v5412_v51, %v5413_v29  ;;  %v5420_v15 = vrot.slane %v13522_v21, 5  ;;  %v15961_v51 = vld [vmem:[#allocation4 + $0x30] sm:$0xff]   ;;  %v6045_v21 = vld [vmem:[#allocation2 + $0x44] sm:$0x1] }
 0x250   : > { %v5379_v34 = vsel %vm16623_vm5, %v5377_v32, %v5378_v11  ;;  %v13573_v46 = vcombine.low %v5411_v4, %v5414_v2  ;;  %v13543_v32 = vrot.slane %v13523_v33, 9  ;;  %v5426_v11 = vrot.slane %v5424_v41, 4  ;;  %v6048_v2 = vld [vmem:[#allocation2 + $0x50] sm:$0x1] }
 0x251   : > { %v13568_v14 = vcombine.low %v5376_v63, %v5379_v34 }
 0x252   : > { %v5425_v63 = vsel %vm16623_vm5, %v13543_v32, %v5424_v41  ;;  %v5428_v34 = vsel %vm16623_vm5, %v5426_v11, %v5427_v30  ;;  %v6046_v41 = vsel %vm17648_vm10, 0, %v6045_v21  ;;  %v6051_v32 = vld [vmem:[#allocation2 + $0x5c] sm:$0x1]  ;;  %v6004_v30 = vld [vmem:[#allocation2 + $0x78] sm:$0x1] }
 0x253   : > { %6047 = vst [vmem:[#allocation2 + $0x44] sm:$0x1] %v6046_v41  ;;  %v6052_v11 = vsel %vm17648_vm10, 0, %v6051_v32  ;;  %v6005_v26 = vsel %vm17641_vm8, 0, %v6004_v30 }
 0x254   : > { %6053 = vst [vmem:[#allocation2 + $0x5c] sm:$0x1] %v6052_v11  ;;  %6006 = vst [vmem:[#allocation2 + $0x78] sm:$0x1] %v6005_v26 }
 0x255   : > { %14804 = vmatmul.mubr.bf16.vlgmr.msra.gmra.mrb[0].mxu0 %v13562_v3  ;;  %v13538_v3 = vrot.slane %v13508_v58, 9  ;;  %v13575_v58 = vcombine.low %v5425_v63, %v5428_v34  ;;  %v17690_v34 = vld [vmem:[#allocation4 + $0x40] sm:$0xff]  }
 0x256   : > { %14807 = vmatprep.mubr.bf16.mxu0 %v13563_v5  ;;  %v5391_v5 = vrot.slane %v5389_v57, 4 }
 0x257   : > { %v5390_v38 = vsel %vm16623_vm5, %v13538_v3, %v5389_v57  ;;  %v13526_v57 = vld [vmem:[%s16315_s8 + $0xcc] sm:$0xe]  ;;  %v15956_v3 = vld [vmem:[#allocation4 + $0x8] sm:$0xff]  }
 0x258   : > { %v5393_v17 = vsel %vm16623_vm5, %v5391_v5, %v5392_v59  ;;  %v13544_v43 = vrot.slane %v13526_v57, 9  ;;  %14837 = vmatprep.subr.bf16.mxu1 %v15956_v3  ;;  %v15957_v5 = vld [vmem:[#allocation4 + $0x10] sm:$0xff]   ;;  %v6057_v57 = vld [vmem:[#allocation2 + $0x74] sm:$0x1] }
 0x259   : > { %v13570_v7 = vcombine.low %v5390_v38, %v5393_v17  ;;  %14838 = vmatpush3.bf16.msra.mxu1 %v15956_v3  ;;  %v5978_v38 = vsel %vm17641_vm8, 0, %v5977_v37  ;;  %v6036_v17 = vld [vmem:[#allocation2 + $0x20] sm:$0x1]  ;;  %v6058_v9 = vsel %vm17648_vm10, 0, %v6057_v57  ;;  %v6016_v3 = vld [vmem:[#allocation2 + $0xa8] sm:$0x1] }
 0x25a   : > { %v5432_v1 = vsel %vm16623_vm5, %v13544_v43, %v5431_v10  ;;  %14839 = vmatprep.subr.bf16.mxu1 %v15957_v5  ;;  %5979 = vst [vmem:[#allocation2 + $0xc] sm:$0x1] %v5978_v38  ;;  %v6060_v10 = vld [vmem:[#allocation2 + $0x80] sm:$0x1]  ;;  %6059 = vst [vmem:[#allocation2 + $0x74] sm:$0x1] %v6058_v9 }
 0x25b   : > { %v6061_v63 = vsel %vm17648_vm10, 0, %v6060_v10  ;;  %v6007_v43 = vld [vmem:[#allocation2 + $0x84] sm:$0x1]  ;;  %v6072_v37 = vld [vmem:[#allocation2 + $0xb0] sm:$0x1] }
 0x25c   : > { %6062 = vst [vmem:[#allocation2 + $0x80] sm:$0x1] %v6061_v63  ;;  %v6069_v38 = vld [vmem:[#allocation2 + $0xa4] sm:$0x1] }
 0x25d   : > { %14808 = vmatmul.mubr.bf16.gmra.mrb[4].mxu0 %v13564_v42  ;;  %v13540_v42 = vrot.slane %v13514_v44, 9  ;;  %14840 = vmatpush3.bf16.msra.mxu1 %v15957_v5  ;;  %v5986_v44 = vld [vmem:[#allocation2 + $0x30] sm:$0x1]  ;;  %v6017_v5 = vsel %vm17641_vm8, 0, %v6016_v3 }
 0x25e   : > { %14811 = vmatprep.mubr.bf16.mxu0 %v13565_v55  ;;  %v5405_v55 = vrot.slane %v5403_v56, 4  ;;  %14841 = vmatprep.subr.bf16.mxu1 %v15958_v22  ;;  %v5987_v40 = vsel %vm17641_vm8, 0, %v5986_v44  ;;  %6018 = vst [vmem:[#allocation2 + $0xa8] sm:$0x1] %v6017_v5  ;;  %v6020_v44 = vsel %vm17641_vm8, 0, %v6019_v48 }
 0x25f   : > { %v5404_v39 = vsel %vm16623_vm5, %v13540_v42, %v5403_v56  ;;  %v6037_v56 = vsel %vm17648_vm10, 0, %v6036_v17  ;;  %5988 = vst [vmem:[#allocation2 + $0x30] sm:$0x1] %v5987_v40  ;;  %v6042_v42 = vld [vmem:[#allocation2 + $0x38] sm:$0x1]  ;;  %v6070_v17 = vsel %vm17648_vm10, 0, %v6069_v38 }
 0x260   : > { %v5407_v0 = vsel %vm16623_vm5, %v5405_v55, %v5406_v28  ;;  %6038 = vst [vmem:[#allocation2 + $0x20] sm:$0x1] %v6037_v56  ;;  %v6043_v55 = vsel %vm17648_vm10, 0, %v6042_v42  ;;  %v6039_v28 = vld [vmem:[#allocation2 + $0x2c] sm:$0x1] }
 0x261   : > { %v13572_v23 = vcombine.low %v5404_v39, %v5407_v0  ;;  %14842 = vmatpush3.bf16.msra.mxu1 %v15958_v22  ;;  %6044 = vst [vmem:[#allocation2 + $0x38] sm:$0x1] %v6043_v55  ;;  %v6040_v50 = vsel %vm17648_vm10, 0, %v6039_v28  ;;  %v5993_v39 = vsel %vm17641_vm8, 0, %v5992_v19  ;;  %v5989_v0 = vld [vmem:[#allocation2 + $0x3c] sm:$0x1] }
 0x262   : > { %14843 = vmatprep.subr.bf16.mxu1 %v15959_v45  ;;  %6041 = vst [vmem:[#allocation2 + $0x2c] sm:$0x1] %v6040_v50  ;;  %5994 = vst [vmem:[#allocation2 + $0x48] sm:$0x1] %v5993_v39  ;;  %v5990_v4 = vsel %vm17641_vm8, 0, %v5989_v0  ;;  %v6073_v22 = vsel %vm17648_vm10, 0, %v6072_v37 }
 0x263   : > { %5991 = vst [vmem:[#allocation2 + $0x3c] sm:$0x1] %v5990_v4  ;;  %6074 = vst [vmem:[#allocation2 + $0xb0] sm:$0x1] %v6073_v22  ;;  %v6022_v56 = vld [vmem:[#allocation2 + $0xc0] sm:$0x1] }
 0x264   : > { %6071 = vst [vmem:[#allocation2 + $0xa4] sm:$0x1] %v6070_v17  ;;  %v6023_v60 = vsel %vm17641_vm8, 0, %v6022_v56  ;;  %6021 = vst [vmem:[#allocation2 + $0xb4] sm:$0x1] %v6020_v44 }
 0x265   : > { %14812 = vmatmul.mubr.bf16.gmra.mrb[8].mxu0 %v13566_v8  ;;  %v13542_v8 = vrot.slane %v13520_v47, 9  ;;  %14844 = vmatpush3.bf16.msra.mxu1 %v15959_v45  ;;  %v6049_v47 = vsel %vm17648_vm10, 0, %v6048_v2  ;;  %6024 = vst [vmem:[#allocation2 + $0xc0] sm:$0x1] %v6023_v60  ;;  %v6078_v40 = vld [vmem:[#allocation2 + $0xc8] sm:$0x1] }
 0x266   : > { %14815 = vmatprep.mubr.bf16.mxu0 %v13567_v24  ;;  %v5419_v24 = vrot.slane %v5417_v35, 4  ;;  %6050 = vst [vmem:[#allocation2 + $0x50] sm:$0x1] %v6049_v47  ;;  %v6079_v53 = vsel %vm17648_vm10, 0, %v6078_v40  ;;  %v6076_v45 = vsel %vm17648_vm10, 0, %v6075_v62 }
 0x267   : > { %v5418_v25 = vsel %vm16623_vm5, %v13542_v8, %v5417_v35  ;;  %v15962_v35 = vld [vmem:[#allocation4 + $0x38] sm:$0xff]   ;;  %6080 = vst [vmem:[#allocation2 + $0xc8] sm:$0x1] %v6079_v53  ;;  %6077 = vst [vmem:[#allocation2 + $0xbc] sm:$0x1] %v6076_v45 }
 0x268   : > { %v5421_v52 = vsel %vm16623_vm5, %v5419_v24, %v5420_v15  ;;  %v6054_v24 = vld [vmem:[#allocation2 + $0x68] sm:$0x1]  ;;  %v17729_v39 = vld [vmem:[%s18990_s3] ss:$0 sm:$0xff]  ;;  %v6512_v44 = vld [vmem:[#allocation2 + $0x18] sm:$0xf] }
 0x269   : > { %v13574_v27 = vcombine.low %v5418_v25, %v5421_v52  ;;  %v6055_v15 = vsel %vm17648_vm10, 0, %v6054_v24  ;;  %v6001_v25 = vld [vmem:[#allocation2 + $0x6c] sm:$0x1] }
 0x26a   : > { %6056 = vst [vmem:[#allocation2 + $0x68] sm:$0x1] %v6055_v15  ;;  %v6002_v52 = vsel %vm17641_vm8, 0, %v6001_v25 }
 0x26b   : > { %6003 = vst [vmem:[#allocation2 + $0x6c] sm:$0x1] %v6002_v52 }
 0x26d   : > { %14816 = vmatmul.mubr.bf16.gmra.mrb[12].mxu0 %v13568_v14  ;;  %v5435_v14 = vsel %vm16623_vm5, %v5433_v31, %v5434_v49  ;;  %v6008_v31 = vsel %vm17641_vm8, 0, %v6007_v43  ;;  %v6066_v49 = vld [vmem:[#allocation2 + $0x98] sm:$0x1] }
 0x26e   : > { %14819 = vmatprep.mubr.bf16.mxu0 %v13569_v36  ;;  %v13576_v36 = vcombine.low %v5432_v1, %v5435_v14  ;;  %6009 = vst [vmem:[#allocation2 + $0x84] sm:$0x1] %v6008_v31  ;;  %v6067_v1 = vsel %vm17648_vm10, 0, %v6066_v49  ;;  %v6063_v14 = vld [vmem:[#allocation2 + $0x8c] sm:$0x1] }
 0x26f   : > { %6068 = vst [vmem:[#allocation2 + $0x98] sm:$0x1] %v6067_v1 }
 0x275   : > { %14820 = vmatmul.mubr.bf16.gmra.mrb[16].mxu0 %v13570_v7  ;;  %v16174_v7 = vmov 0  }
 0x276   : > { %14823 = vmatprep.mubr.bf16.mxu0 %v13571_v6  ;;  %5964 = vst [vmem:[#allocation2] sm:$0xf] %v16174_v7  ;;  %5965 = vst [vmem:[#allocation2 + $0x4] sm:$0xf] %v16174_v7  ;;  %v15960_v6 = vld [vmem:[#allocation4 + $0x28] sm:$0xff]  }
 0x277   : > { %5966 = vst [vmem:[#allocation2 + $0x8] sm:$0x1] %v16174_v7  ;;  %5968 = vst [vmem:[#allocation2 + $0xcc] sm:$0xf] %v16174_v7  ;;  %14845 = vmatprep.subr.bf16.mxu1 %v15960_v6 }
 0x278   : > { %5969 = vst [vmem:[#allocation2 + $0xd0] sm:$0xf] %v16174_v7  ;;  %5970 = vst [vmem:[#allocation2 + $0xd4] sm:$0x1] %v16174_v7  ;;  %14846 = vmatpush3.bf16.msra.mxu1 %v15960_v6 }
 0x279   : > { %14847 = vmatprep.subr.bf16.mxu1 %v15961_v51 }
 0x27c   : > { %14848 = vmatpush3.bf16.msra.mxu1 %v15961_v51  ;;  %v17724_v51 = vld [vmem:[%s18989_s2] ss:$0 sm:$0xff] }
 0x27d   : > { %14824 = vmatmul.mubr.bf16.gmra.mrb[20].mxu0 %v13572_v23  ;;  %v5974_v29 = vld [vmem:[#allocation2] sm:$0x1]  ;;  %14849 = vmatprep.subr.bf16.mxu1 %v15962_v35  ;;  %v5999_v23 = vsel %vm17641_vm8, 0, %v5998_v20  ;;  %v7003_v55 = vld [vmem:[#allocation2 + $0x4] sm:$0xf] }
 0x27e   : > { %14827 = vmatprep.mubr.bf16.mxu0 %v13573_v46  ;;  %v5975_v18 = vsel %vm17641_vm8, 0, %v5974_v29  ;;  %v5995_v46 = vld [vmem:[#allocation2 + $0x54] sm:$0x1]  ;;  %6000 = vst [vmem:[#allocation2 + $0x60] sm:$0x1] %v5999_v23  ;;  %v7060_v29 = vshll.u32 %v7003_v55, 16 }
 0x27f   : > { %5976 = vst [vmem:[#allocation2] sm:$0x1] %v5975_v18  ;;  %v5996_v8 = vsel %vm17641_vm8, 0, %v5995_v46  ;;  %v6030_v7 = vld [vmem:[#allocation2 + $0x8] sm:$0x1]  ;;  %v7064_v18 = vshrl.u32 %v7003_v55, 16 }
 0x280   : > { %14850 = vmatpush3.bf16.msra.mxu1 %v15962_v35  ;;  %5997 = vst [vmem:[#allocation2 + $0x54] sm:$0x1] %v5996_v8  ;;  %v6031_v6 = vsel %vm17648_vm10, 0, %v6030_v7  ;;  %v17735_v23 = vrot.slane %v7060_v29, 5 }
 0x281   : > { %14883 = vmatprep.subr.bf16.mxu1 %v17690_v34  ;;  %6032 = vst [vmem:[#allocation2 + $0x8] sm:$0x1] %v6031_v6  ;;  %v17737_v46 = vrot.slane %v7064_v18, 4 }
 0x283   : > { %v7067_v63 = vor.u32 %v17737_v46, %v17735_v23 }
 0x285   : > { %14828 = vmatmul.mubr.bf16.gmra.mrb[24].mxu0 %v13574_v27  ;;  %v6010_v27 = vld [vmem:[#allocation2 + $0x90] sm:$0x1] }
 0x286   : > { %14831 = vmatprep.mubr.bf16.mxu0 %v13575_v58  ;;  %v15963_v33 = vld [vmem:[#allocation2] sm:$0xff]   ;;  %v6011_v58 = vsel %vm17641_vm8, 0, %v6010_v27 }
 0x287   : > { %14851 = vmatprep.mubr.bf16.mxu1 %v15963_v33  ;;  %6012 = vst [vmem:[#allocation2 + $0x90] sm:$0x1] %v6011_v58  ;;  %v7002_v42 = vld [vmem:[#allocation2] sm:$0xf] }
 0x288   : > { %v7051_v28 = vshrl.u32 %v7002_v42, 16  ;;  %v7054_v50 = vshll.u32 %v7002_v42, 16  ;;  %v17742_v30 = vld [vmem:[#allocation2 + $0x8] sm:$0x1]  ;;  %v6505_v42 = vld [vmem:[#allocation2 + $0xc] sm:$0xf] }
 0x289   : > { %v7070_v43 = vshll.u32 %v17742_v30, 16  ;;  %v6614_v30 = vld [vmem:[#allocation2 + $0xc8] sm:$0x1] }
 0x28a   : > { %v7053_v0 = vrot.slane %v7051_v28, 4  ;;  %v7056_v35 = vrot.slane %v7054_v50, 5 }
 0x28c   : > { %v7057_v15 = vor.u32 %v7056_v35, %v7053_v0 }
 0x28d   : > { %14832 = vmatmul.mubr.bf16.gmra.mrb[28].mxu0 %v13576_v36  ;;  %v6064_v36 = vsel %vm17648_vm10, 0, %v6063_v14 }
 0x28e   : > { %6065 = vst [vmem:[#allocation2 + $0x8c] sm:$0x1] %v6064_v36  ;;  %v17747_v58 = vrot.slane %v7057_v15, 4 }
 0x328   : > { %v14805_v19 = vpop.f32.mrb[0].mxu0 }
 0x329   : > { %v5863_v4 = vmul.f32 %v14805_v19, %v17724_v51  ;;  %v5599_v2 = vpop.f32.mrb[1].mxu0  ;;  %v6516_v19 = vld [vmem:[#allocation2 + $0x20] sm:$0x1] }
 0x32a   : > { %v5861_v47 = vmul.f32 %v17724_v51, %v5599_v2  ;;  %v14806_v21 = vpop.f32.mrb[2].mxu0 }
 0x32b   : > { %v5902_v41 = vadd.f32 %v17729_v39, %v5863_v4  ;;  %v5864_v33 = vmul.f32 %v14806_v21, %v17724_v51  ;;  %v5602_v20 = vpop.f32.mrb[3].mxu0  ;;  %v6509_v21 = vld [vmem:[#allocation2 + $0x14] sm:$0x1] }
 0x32c   : > { %v5900_v8 = vadd.f32 %v17729_v39, %v5861_v47  ;;  %v5862_v24 = vmul.f32 %v17724_v51, %v5602_v20 }
 0x32d   : > { %v5934_v32 = vmax.f32 %v5902_v41, 0.0  ;;  %v5903_v11 = vadd.f32 %v17729_v39, %v5864_v33 }
 0x32e   : > { %v5932_v26 = vmax.f32 %v5900_v8, 0.0  ;;  %v5901_v25 = vadd.f32 %v17729_v39, %v5862_v24 }
 0x32f   : > { %v13940_v52 = vpack.c.bf16 %v5934_v32, %v5934_v32  ;;  %v5935_v10 = vmax.f32 %v5903_v11, 0.0 }
 0x330   : > { %v13938_v57 = vpack.c.bf16 %v5932_v26, %v5932_v26  ;;  %v5933_v9 = vmax.f32 %v5901_v25, 0.0  ;;  %v14809_v27 = vpop.f32.mrb[4].mxu0 }
 0x331   : > { %v6200_v31 = vshrl.u32 %v13940_v52, 16  ;;  %v6203_v49 = vshll.u32 %v13940_v52, 16  ;;  %v13941_v1 = vpack.c.bf16 %v5935_v10, %v5935_v10  ;;  %v5867_v14 = vmul.f32 %v14809_v27, %v17724_v51  ;;  %v5615_v36 = vpop.f32.mrb[5].mxu0 }
 0x332   : > { %v6183_v3 = vshrl.u32 %v13938_v57, 16  ;;  %v6186_v5 = vshll.u32 %v13938_v57, 16  ;;  %v13939_v13 = vpack.c.bf16 %v5933_v9, %v5933_v9  ;;  %v5865_v16 = vmul.f32 %v17724_v51, %v5615_v36  ;;  %v14810_v37 = vpop.f32.mrb[6].mxu0 }
 0x333   : > { %v6202_v22 = vrot.slane %v6200_v31, 7  ;;  %v6208_v38 = vshrl.u32 %v13941_v1, 16  ;;  %v6211_v17 = vshll.u32 %v13941_v1, 16  ;;  %v5906_v56 = vadd.f32 %v17729_v39, %v5867_v14  ;;  %v5618_v60 = vpop.f32.mrb[7].mxu0 }
 0x334   : > { %v6185_v40 = vrot.slane %v6183_v3, 7  ;;  %v6191_v53 = vshrl.u32 %v13939_v13, 16  ;;  %v6194_v62 = vshll.u32 %v13939_v13, 16  ;;  %v5904_v45 = vadd.f32 %v17729_v39, %v5865_v16 }
 0x335   : > { %v6205_v7 = vor.u32 %v6203_v49, %v6202_v22  ;;  %v6206_v6 = vrot.slane %v6202_v22, 4  ;;  %v6210_v55 = vrot.slane %v6208_v38, 7  ;;  %v5938_v28 = vmax.f32 %v5906_v56, 0.0 }
 0x336   : > { %v6188_v50 = vor.u32 %v6186_v5, %v6185_v40  ;;  %v6189_v29 = vrot.slane %v6185_v40, 4  ;;  %v6193_v0 = vrot.slane %v6191_v53, 7  ;;  %v5936_v35 = vmax.f32 %v5904_v45, 0.0  ;;  %v6526_v5 = vld [vmem:[#allocation2 + $0x30] sm:$0xf] }
 0x337   : > { %v6513_v4 = vsel %vm17755_vm13, %v6205_v7, %v6512_v44  ;;  %v6213_v2 = vor.u32 %v6211_v17, %v6210_v55  ;;  %v6215_v47 = vrot.slane %v6210_v55, 4  ;;  %v13944_v41 = vpack.c.bf16 %v5938_v28, %v5938_v28  ;;  %v6519_v44 = vld [vmem:[#allocation2 + $0x24] sm:$0xf] }
 0x338   : > { %6514 = vst [vmem:[#allocation2 + $0x18] sm:$0xf] %v6513_v4  ;;  %v6506_v33 = vsel %vm17755_vm13, %v6188_v50, %v6505_v42  ;;  %v6196_v20 = vor.u32 %v6194_v62, %v6193_v0  ;;  %v6198_v8 = vrot.slane %v6193_v0, 4  ;;  %v13942_v24 = vpack.c.bf16 %v5936_v35, %v5936_v35  ;;  %v14813_v15 = vpop.f32.mrb[8].mxu0 }
 0x339   : > { %6507 = vst [vmem:[#allocation2 + $0xc] sm:$0xf] %v6506_v33  ;;  %v6214_v32 = vsel %vm17762_vm14, %v6206_v6, %v6213_v2  ;;  %v6517_v11 = vsel %vm17641_vm8, %v6215_v47, %v6516_v19  ;;  %v6234_v26 = vshrl.u32 %v13944_v41, 16  ;;  %v6237_v25 = vshll.u32 %v13944_v41, 16  ;;  %v5631_v52 = vpop.f32.mrb[9].mxu0 }
 0x33a   : > { %6515 = vst [vmem:[#allocation2 + $0x1c] sm:$0xf] %v6214_v32  ;;  %6518 = vst [vmem:[#allocation2 + $0x20] sm:$0x1] %v6517_v11  ;;  %v6197_v10 = vsel %vm17762_vm14, %v6189_v29, %v6196_v20  ;;  %v6510_v57 = vsel %vm17641_vm8, %v6198_v8, %v6509_v21  ;;  %v6217_v9 = vshrl.u32 %v13942_v24, 16  ;;  %v6220_v27 = vshll.u32 %v13942_v24, 16 }
 0x33b   : > { %v14814_v31 = vpop.f32.mrb[10].mxu0  ;;  %6508 = vst [vmem:[#allocation2 + $0x10] sm:$0xf] %v6197_v10  ;;  %6511 = vst [vmem:[#allocation2 + $0x14] sm:$0x1] %v6510_v57  ;;  %v17778_v49 = vrot.slane %v6234_v26, 7  ;;  %v5868_v1 = vmul.f32 %v14810_v37, %v17724_v51  ;;  %v5866_v14 = vmul.f32 %v17724_v51, %v5618_v60  ;;  %v5871_v36 = vmul.f32 %v14813_v15, %v17724_v51 }
 0x33c   : > { %v5634_v3 = vpop.f32.mrb[11].mxu0  ;;  %v17783_v13 = vrot.slane %v6217_v9, 7  ;;  %v5869_v16 = vmul.f32 %v17724_v51, %v5631_v52  ;;  %v5872_v22 = vmul.f32 %v14814_v31, %v17724_v51  ;;  %v15968_v32 = vld [vmem:[#allocation4 + $0x48] sm:$0xff]  }
 0x33d   : > { %v5870_v38 = vmul.f32 %v17724_v51, %v5634_v3  ;;  %v6239_v17 = vor.u32 %v6237_v25, %v17778_v49  ;;  %v6240_v56 = vrot.slane %v17778_v49, 4  ;;  %v5907_v37 = vadd.f32 %v17729_v39, %v5868_v1 }
 0x33e   : > { %v5905_v60 = vadd.f32 %v17729_v39, %v5866_v14  ;;  %v6222_v40 = vor.u32 %v6220_v27, %v17783_v13  ;;  %v6223_v53 = vrot.slane %v17783_v13, 4  ;;  %v5910_v62 = vadd.f32 %v17729_v39, %v5871_v36  ;;  %v6530_v36 = vld [vmem:[#allocation2 + $0x38] sm:$0x1] }
 0x33f   : > { %v5908_v45 = vadd.f32 %v17729_v39, %v5869_v16  ;;  %v6527_v7 = vsel %vm17755_vm13, %v6239_v17, %v6526_v5  ;;  %v5939_v6 = vmax.f32 %v5907_v37, 0.0  ;;  %v5911_v55 = vadd.f32 %v17729_v39, %v5872_v22  ;;  %v6523_v5 = vld [vmem:[#allocation2 + $0x2c] sm:$0x1]  ;;  %v6540_v17 = vld [vmem:[#allocation2 + $0x48] sm:$0xf] }
 0x340   : > { %v5937_v42 = vmax.f32 %v5905_v60, 0.0  ;;  %6528 = vst [vmem:[#allocation2 + $0x30] sm:$0xf] %v6527_v7  ;;  %v6520_v28 = vsel %vm17755_vm13, %v6222_v40, %v6519_v44  ;;  %v5942_v50 = vmax.f32 %v5910_v62, 0.0  ;;  %v5909_v19 = vadd.f32 %v17729_v39, %v5870_v38  ;;  %v14817_v0 = vpop.f32.mrb[12].mxu0  ;;  %v15971_v40 = vld [vmem:[#allocation4 + $0x50] sm:$0xff]  }
 0x341   : > { %v5940_v29 = vmax.f32 %v5908_v45, 0.0  ;;  %6521 = vst [vmem:[#allocation2 + $0x24] sm:$0xf] %v6520_v28  ;;  %v13945_v35 = vpack.c.bf16 %v5939_v6, %v5939_v6  ;;  %v5943_v2 = vmax.f32 %v5911_v55, 0.0  ;;  %v5875_v47 = vmul.f32 %v14817_v0, %v17724_v51  ;;  %v5647_v21 = vpop.f32.mrb[13].mxu0  ;;  %v15966_v57 = vld [vmem:[#allocation2 + $0x18] sm:$0xff]  }
 0x342   : > { %v13943_v4 = vpack.c.bf16 %v5937_v42, %v5937_v42  ;;  %v13948_v41 = vpack.c.bf16 %v5942_v50, %v5942_v50  ;;  %v5941_v20 = vmax.f32 %v5909_v19, 0.0  ;;  %v5873_v8 = vmul.f32 %v17724_v51, %v5647_v21  ;;  %v17804_v24 = vpop.f32.mrb[14].mxu0  ;;  %v15964_v15 = vld [vmem:[#allocation2 + $0xc] sm:$0xff]   ;;  %v6533_v42 = vld [vmem:[#allocation2 + $0x3c] sm:$0xf] }
 0x343   : > { %v13946_v33 = vpack.c.bf16 %v5940_v29, %v5940_v29  ;;  %v6242_v11 = vshrl.u32 %v13945_v35, 16  ;;  %v6245_v26 = vshll.u32 %v13945_v35, 16  ;;  %v5650_v10 = vpop.f32.mrb[15].mxu0  ;;  %14852 = vmatmul.mubr.bf16.vlgmr.msra.gmra.mrb[0].mxu1 %v15964_v15  ;;  %v13949_v16 = vpack.c.bf16 %v5943_v2, %v5943_v2 }
 0x344   : > { %v6225_v25 = vshrl.u32 %v13943_v4, 16  ;;  %v6228_v52 = vshll.u32 %v13943_v4, 16  ;;  %v6268_v9 = vshrl.u32 %v13948_v41, 16  ;;  %v6271_v27 = vshll.u32 %v13948_v41, 16  ;;  %14855 = vmatprep.mubr.bf16.mxu1 %v15966_v57  ;;  %14884 = vmatpush3.bf16.msra.mxu1 %v17690_v34 }
 0x345   : > { %v6251_v31 = vshrl.u32 %v13946_v33, 16  ;;  %v6254_v1 = vshll.u32 %v13946_v33, 16  ;;  %v6244_v14 = vrot.slane %v6242_v11, 7  ;;  %v13947_v22 = vpack.c.bf16 %v5941_v20, %v5941_v20  ;;  %14885 = vmatprep.subr.bf16.mxu1 %v15968_v32 }
 0x346   : > { %v6227_v3 = vrot.slane %v6225_v25, 7  ;;  %v17807_v38 = vrot.slane %v6268_v9, 7  ;;  %v5914_v37 = vadd.f32 %v17729_v39, %v5875_v47  ;;  %v5912_v60 = vadd.f32 %v17729_v39, %v5873_v8 }
 0x347   : > { %v17809_v44 = vrot.slane %v6251_v31, 7  ;;  %v6247_v62 = vor.u32 %v6245_v26, %v6244_v14  ;;  %v6249_v45 = vrot.slane %v6244_v14, 4  ;;  %v6276_v47 = vshrl.u32 %v13949_v16, 16 }
 0x348   : > { %v6230_v7 = vor.u32 %v6228_v52, %v6227_v3  ;;  %v6232_v6 = vrot.slane %v6227_v3, 4  ;;  %v6273_v55 = vor.u32 %v6271_v27, %v17807_v38  ;;  %v6274_v34 = vrot.slane %v17807_v38, 4  ;;  %v14821_v29 = vpop.f32.mrb[16].mxu0  ;;  %14886 = vmatpush3.bf16.msra.mxu1 %v15968_v32  ;;  %v6544_v52 = vld [vmem:[#allocation2 + $0x50] sm:$0x1] }
 0x349   : > { %v6256_v28 = vor.u32 %v6254_v1, %v17809_v44  ;;  %v6257_v50 = vrot.slane %v17809_v44, 4  ;;  %v6248_v19 = vsel %vm17762_vm14, %v6240_v56, %v6247_v62  ;;  %v6531_v0 = vsel %vm17641_vm8, %v6249_v45, %v6530_v36  ;;  %v5663_v2 = vpop.f32.mrb[17].mxu0  ;;  %14887 = vmatprep.subr.bf16.mxu1 %v15971_v40  ;;  %v6537_v36 = vld [vmem:[#allocation2 + $0x44] sm:$0x1] }
 0x34a   : > { %v6231_v35 = vsel %vm17762_vm14, %v6223_v53, %v6230_v7  ;;  %v6524_v4 = vsel %vm17641_vm8, %v6232_v6, %v6523_v5  ;;  %6529 = vst [vmem:[#allocation2 + $0x34] sm:$0xf] %v6248_v19  ;;  %6532 = vst [vmem:[#allocation2 + $0x38] sm:$0x1] %v6531_v0  ;;  %v6541_v49 = vsel %vm17755_vm13, %v6273_v55, %v6540_v17  ;;  %v6279_v13 = vshll.u32 %v13949_v16, 16  ;;  %v14822_v21 = vpop.f32.mrb[18].mxu0 }
 0x34b   : > { %6522 = vst [vmem:[#allocation2 + $0x28] sm:$0xf] %v6231_v35  ;;  %6525 = vst [vmem:[#allocation2 + $0x2c] sm:$0x1] %v6524_v4  ;;  %v6534_v56 = vsel %vm17755_vm13, %v6256_v28, %v6533_v42  ;;  %v15974_v53 = vld [vmem:[#allocation4 + $0x58] sm:$0xff]   ;;  %v6259_v41 = vshrl.u32 %v13947_v22, 16  ;;  %v5876_v11 = vmul.f32 %v17804_v24, %v17724_v51  ;;  %v5874_v26 = vmul.f32 %v17724_v51, %v5650_v10 }
 0x34c   : > { %6542 = vst [vmem:[#allocation2 + $0x48] sm:$0xf] %v6541_v49  ;;  %6535 = vst [vmem:[#allocation2 + $0x3c] sm:$0xf] %v6534_v56  ;;  %v6262_v33 = vshll.u32 %v13947_v22, 16  ;;  %v5946_v20 = vmax.f32 %v5914_v37, 0.0  ;;  %v5879_v25 = vmul.f32 %v14821_v29, %v17724_v51  ;;  %v5877_v31 = vmul.f32 %v17724_v51, %v5663_v2  ;;  %14888 = vmatpush3.bf16.msra.mxu1 %v15971_v40 }
 0x34d   : > { %v5944_v8 = vmax.f32 %v5912_v60, 0.0  ;;  %v17833_v15 = vpop.f32.mrb[19].mxu0  ;;  %v6278_v32 = vrot.slane %v6276_v47, 7  ;;  %v6261_v57 = vrot.slane %v6259_v41, 7  ;;  %v5915_v3 = vadd.f32 %v17729_v39, %v5876_v11  ;;  %14889 = vmatprep.subr.bf16.mxu1 %v15974_v53  ;;  %v15977_v24 = vld [vmem:[#allocation4 + $0x60] sm:$0xff]   ;;  %v15980_v28 = vld [vmem:[#allocation4 + $0x68] sm:$0xff]  }
 0x34e   : > { %v13952_v9 = vpack.c.bf16 %v5946_v20, %v5946_v20  ;;  %v5913_v5 = vadd.f32 %v17729_v39, %v5874_v26  ;;  %v6554_v37 = vld [vmem:[#allocation2 + $0x60] sm:$0xf]  ;;  %v6547_v42 = vld [vmem:[#allocation2 + $0x54] sm:$0xf]  ;;  %v5918_v0 = vadd.f32 %v17729_v39, %v5879_v25  ;;  %v5916_v35 = vadd.f32 %v17729_v39, %v5877_v31 }
 0x34f   : > { %v13950_v27 = vpack.c.bf16 %v5944_v8, %v5944_v8  ;;  %v6281_v1 = vor.u32 %v6279_v13, %v6278_v32  ;;  %v6283_v14 = vrot.slane %v6278_v32, 4  ;;  %v6264_v16 = vor.u32 %v6262_v33, %v6261_v57 }
 0x350   : > { %v6266_v10 = vrot.slane %v6261_v57, 4  ;;  %v6302_v22 = vshrl.u32 %v13952_v9, 16  ;;  %v6305_v38 = vshll.u32 %v13952_v9, 16  ;;  %v14825_v62 = vpop.f32.mrb[20].mxu0  ;;  %v5947_v55 = vmax.f32 %v5915_v3, 0.0  ;;  %14890 = vmatpush3.bf16.msra.mxu1 %v15974_v53 }
 0x351   : > { %v6282_v17 = vsel %vm17762_vm14, %v6274_v34, %v6281_v1  ;;  %v6545_v44 = vsel %vm17641_vm8, %v6283_v14, %v6544_v52  ;;  %v6285_v60 = vshrl.u32 %v13950_v27, 16  ;;  %v6288_v40 = vshll.u32 %v13950_v27, 16  ;;  %v17856_v4 = vpop.f32.mrb[21].mxu0  ;;  %14891 = vmatprep.subr.bf16.mxu1 %v15977_v24  ;;  %v15983_v27 = vld [vmem:[#allocation4 + $0x70] sm:$0xff]   ;;  %v6551_v14 = vld [vmem:[#allocation2 + $0x5c] sm:$0x1] }
 0x352   : > { %6543 = vst [vmem:[#allocation2 + $0x4c] sm:$0xf] %v6282_v17  ;;  %6546 = vst [vmem:[#allocation2 + $0x50] sm:$0x1] %v6545_v44  ;;  %v6265_v45 = vsel %vm17762_vm14, %v6257_v50, %v6264_v16  ;;  %v6538_v7 = vsel %vm17641_vm8, %v6266_v10, %v6537_v36  ;;  %v17850_v6 = vrot.slane %v6302_v22, 7  ;;  %v15967_v34 = vld [vmem:[#allocation2 + $0x24] sm:$0xff]   ;;  %v13953_v56 = vpack.c.bf16 %v5947_v55, %v5947_v55 }
 0x353   : > { %6536 = vst [vmem:[#allocation2 + $0x40] sm:$0xf] %v6265_v45  ;;  %6539 = vst [vmem:[#allocation2 + $0x44] sm:$0x1] %v6538_v7  ;;  %v17852_v29 = vrot.slane %v6285_v60, 7  ;;  %v5945_v19 = vmax.f32 %v5913_v5, 0.0  ;;  %v5880_v47 = vmul.f32 %v14822_v21, %v17724_v51  ;;  %14856 = vmatmul.mubr.bf16.gmra.mrb[4].mxu1 %v15967_v34  ;;  %v5878_v5 = vmul.f32 %v17724_v51, %v17833_v15 }
 0x354   : > { %v15969_v50 = vld [vmem:[#allocation2 + $0x30] sm:$0xff]   ;;  %v6307_v2 = vor.u32 %v6305_v38, %v17850_v6  ;;  %v6308_v49 = vrot.slane %v17850_v6, 4  ;;  %v17861_v13 = vpop.f32.mrb[22].mxu0  ;;  %v5950_v20 = vmax.f32 %v5918_v0, 0.0  ;;  %v6310_v11 = vshrl.u32 %v13953_v56, 16  ;;  %14892 = vmatpush3.bf16.msra.mxu1 %v15977_v24 }
 0x355   : > { %v6290_v53 = vor.u32 %v6288_v40, %v17852_v29  ;;  %v6291_v41 = vrot.slane %v17852_v29, 4  ;;  %v13951_v33 = vpack.c.bf16 %v5945_v19, %v5945_v19  ;;  %14859 = vmatprep.mubr.bf16.mxu1 %v15969_v50  ;;  %v17865_v8 = vpop.f32.mrb[23].mxu0  ;;  %v6313_v26 = vshll.u32 %v13953_v56, 16  ;;  %14893 = vmatprep.subr.bf16.mxu1 %v15980_v28  ;;  %v6558_v1 = vld [vmem:[#allocation2 + $0x68] sm:$0x1]  ;;  %v15986_v15 = vld [vmem:[#allocation4 + $0x78] sm:$0xff]  }
 0x356   : > { %v6555_v32 = vsel %vm17755_vm13, %v6307_v2, %v6554_v37  ;;  %v5948_v25 = vmax.f32 %v5916_v35, 0.0  ;;  %v13956_v9 = vpack.c.bf16 %v5950_v20, %v5950_v20  ;;  %v6312_v31 = vrot.slane %v6310_v11, 7  ;;  %v6568_v29 = vld [vmem:[#allocation2 + $0x78] sm:$0xf]  ;;  %v6561_v56 = vld [vmem:[#allocation2 + $0x6c] sm:$0xf] }
 0x357   : > { %6556 = vst [vmem:[#allocation2 + $0x60] sm:$0xf] %v6555_v32  ;;  %v6548_v21 = vsel %vm17755_vm13, %v6290_v53, %v6547_v42  ;;  %v6293_v52 = vshrl.u32 %v13951_v33, 16  ;;  %v6296_v57 = vshll.u32 %v13951_v33, 16  ;;  %v5919_v3 = vadd.f32 %v17729_v39, %v5880_v47 }
 0x358   : > { %6549 = vst [vmem:[#allocation2 + $0x54] sm:$0xf] %v6548_v21  ;;  %v13954_v36 = vpack.c.bf16 %v5948_v25, %v5948_v25  ;;  %v6336_v16 = vshrl.u32 %v13956_v9, 16  ;;  %v6339_v10 = vshll.u32 %v13956_v9, 16  ;;  %v5883_v22 = vmul.f32 %v14825_v62, %v17724_v51  ;;  %14894 = vmatpush3.bf16.msra.mxu1 %v15980_v28  ;;  %v14829_v55 = vpop.f32.mrb[24].mxu0 }
 0x359   : > { %v6295_v24 = vrot.slane %v6293_v52, 7  ;;  %v6315_v38 = vor.u32 %v6313_v26, %v6312_v31  ;;  %v6317_v17 = vrot.slane %v6312_v31, 4  ;;  %v5951_v6 = vmax.f32 %v5919_v3, 0.0  ;;  %v15972_v42 = vld [vmem:[#allocation2 + $0x48] sm:$0xff]   ;;  %14895 = vmatprep.subr.bf16.mxu1 %v15983_v27  ;;  %v17884_v0 = vpop.f32.mrb[25].mxu0  ;;  %v17905_v52 = vld [vmem:[#allocation4 + $0x80] sm:$0xff]  }
 0x35a   : > { %v6319_v44 = vshrl.u32 %v13954_v36, 16  ;;  %v6322_v37 = vshll.u32 %v13954_v36, 16  ;;  %v15970_v60 = vld [vmem:[#allocation2 + $0x3c] sm:$0xff]   ;;  %v17875_v7 = vrot.slane %v6336_v16, 7  ;;  %v5917_v28 = vadd.f32 %v17729_v39, %v5878_v5  ;;  %v17892_v47 = vpop.f32.mrb[26].mxu0 }
 0x35b   : > { %v6298_v40 = vor.u32 %v6296_v57, %v6295_v24  ;;  %v6300_v45 = vrot.slane %v6295_v24, 4  ;;  %v6316_v34 = vsel %vm17762_vm14, %v6308_v49, %v6315_v38  ;;  %v6559_v62 = vsel %vm17641_vm8, %v6317_v17, %v6558_v1  ;;  %14860 = vmatmul.mubr.bf16.gmra.mrb[8].mxu1 %v15970_v60  ;;  %v6572_v5 = vld [vmem:[#allocation2 + $0x80] sm:$0x1]  ;;  %v6565_v38 = vld [vmem:[#allocation2 + $0x74] sm:$0x1] }
 0x35c   : > { %v17881_v19 = vrot.slane %v6319_v44, 7  ;;  %6557 = vst [vmem:[#allocation2 + $0x64] sm:$0xf] %v6316_v34  ;;  %6560 = vst [vmem:[#allocation2 + $0x68] sm:$0x1] %v6559_v62  ;;  %v6341_v2 = vor.u32 %v6339_v10, %v17875_v7  ;;  %v6342_v49 = vrot.slane %v17875_v7, 4  ;;  %14863 = vmatprep.mubr.bf16.mxu1 %v15972_v42  ;;  %v13957_v20 = vpack.c.bf16 %v5951_v6, %v5951_v6 }
 0x35d   : > { %v6299_v35 = vsel %vm17762_vm14, %v6291_v41, %v6298_v40  ;;  %v6552_v50 = vsel %vm17641_vm8, %v6300_v45, %v6551_v14  ;;  %v5949_v32 = vmax.f32 %v5917_v28, 0.0  ;;  %v17896_v41 = vpop.f32.mrb[27].mxu0  ;;  %14896 = vmatpush3.bf16.msra.mxu1 %v15983_v27  ;;  %v5922_v26 = vadd.f32 %v17729_v39, %v5883_v22 }
 0x35e   : > { %6550 = vst [vmem:[#allocation2 + $0x58] sm:$0xf] %v6299_v35  ;;  %6553 = vst [vmem:[#allocation2 + $0x5c] sm:$0x1] %v6552_v50  ;;  %v6324_v53 = vor.u32 %v6322_v37, %v17881_v19  ;;  %v6325_v33 = vrot.slane %v17881_v19, 4  ;;  %v6569_v11 = vsel %vm17755_vm13, %v6341_v2, %v6568_v29  ;;  %v5881_v25 = vmul.f32 %v17724_v51, %v17856_v4 }
 0x35f   : > { %v5884_v21 = vmul.f32 %v17861_v13, %v17724_v51  ;;  %14897 = vmatprep.subr.bf16.mxu1 %v15986_v15  ;;  %6570 = vst [vmem:[#allocation2 + $0x78] sm:$0xf] %v6569_v11  ;;  %v6344_v9 = vshrl.u32 %v13957_v20, 16  ;;  %v6347_v27 = vshll.u32 %v13957_v20, 16  ;;  %v13955_v31 = vpack.c.bf16 %v5949_v32, %v5949_v32 }
 0x360   : > { %v6562_v57 = vsel %vm17755_vm13, %v6324_v53, %v6561_v56  ;;  %v5954_v1 = vmax.f32 %v5922_v26, 0.0  ;;  %v5920_v14 = vadd.f32 %v17729_v39, %v5881_v25  ;;  %v5882_v4 = vmul.f32 %v17724_v51, %v17865_v8  ;;  %v17913_v13 = vpop.f32.mrb[28].mxu0 }
 0x361   : > { %6563 = vst [vmem:[#allocation2 + $0x6c] sm:$0xf] %v6562_v57  ;;  %v5923_v36 = vadd.f32 %v17729_v39, %v5884_v21  ;;  %v6346_v3 = vrot.slane %v6344_v9, 7  ;;  %v6327_v24 = vshrl.u32 %v13955_v31, 16  ;;  %v6330_v16 = vshll.u32 %v13955_v31, 16  ;;  %v17916_v22 = vpop.f32.mrb[29].mxu0  ;;  %14898 = vmatpush3.bf16.msra.mxu1 %v15986_v15 }
 0x362   : > { %v5887_v10 = vmul.f32 %v14829_v55, %v17724_v51  ;;  %v13960_v17 = vpack.c.bf16 %v5954_v1, %v5954_v1  ;;  %v5952_v44 = vmax.f32 %v5920_v14, 0.0  ;;  %v5921_v60 = vadd.f32 %v17729_v39, %v5882_v4  ;;  %v17919_v40 = vpop.f32.mrb[30].mxu0  ;;  %14931 = vmatprep.subr.bf16.mxu1 %v17905_v52  ;;  %v6575_v1 = vld [vmem:[#allocation2 + $0x84] sm:$0xf] }
 0x363   : > { %v5955_v37 = vmax.f32 %v5923_v36, 0.0  ;;  %v6349_v8 = vor.u32 %v6347_v27, %v6346_v3  ;;  %v6351_v45 = vrot.slane %v6346_v3, 4  ;;  %v6329_v7 = vrot.slane %v6327_v24, 7  ;;  %v17923_v42 = vpop.f32.mrb[31].mxu0  ;;  %v15975_v2 = vld [vmem:[#allocation2 + $0x60] sm:$0xff]  }
 0x364   : > { %v5926_v6 = vadd.f32 %v17729_v39, %v5887_v10  ;;  %v6370_v55 = vshrl.u32 %v13960_v17, 16  ;;  %v6373_v34 = vshll.u32 %v13960_v17, 16  ;;  %v13958_v15 = vpack.c.bf16 %v5952_v44, %v5952_v44  ;;  %v6586_v10 = vld [vmem:[#allocation2 + $0x98] sm:$0x1] }
 0x365   : > { %v13961_v62 = vpack.c.bf16 %v5955_v37, %v5955_v37  ;;  %v15973_v29 = vld [vmem:[#allocation2 + $0x54] sm:$0xff]   ;;  %v6350_v19 = vsel %vm17762_vm14, %v6342_v49, %v6349_v8  ;;  %v6573_v28 = vsel %vm17641_vm8, %v6351_v45, %v6572_v5  ;;  %v6332_v35 = vor.u32 %v6330_v16, %v6329_v7  ;;  %v6582_v49 = vld [vmem:[#allocation2 + $0x90] sm:$0xf] }
 0x366   : > { %v6334_v50 = vrot.slane %v6329_v7, 4  ;;  %6571 = vst [vmem:[#allocation2 + $0x7c] sm:$0xf] %v6350_v19  ;;  %6574 = vst [vmem:[#allocation2 + $0x80] sm:$0x1] %v6573_v28  ;;  %v6372_v56 = vrot.slane %v6370_v55, 7  ;;  %14864 = vmatmul.mubr.bf16.gmra.mrb[12].mxu1 %v15973_v29  ;;  %v5885_v4 = vmul.f32 %v17724_v51, %v17884_v0  ;;  %v5886_v29 = vmul.f32 %v17724_v51, %v17896_v41 }
 0x367   : > { %v6353_v53 = vshrl.u32 %v13958_v15, 16  ;;  %v6356_v20 = vshll.u32 %v13958_v15, 16  ;;  %v6378_v32 = vshrl.u32 %v13961_v62, 16  ;;  %v6333_v11 = vsel %vm17762_vm14, %v6325_v33, %v6332_v35  ;;  %14867 = vmatprep.mubr.bf16.mxu1 %v15975_v2 }
 0x368   : > { %v6566_v26 = vsel %vm17641_vm8, %v6334_v50, %v6565_v38  ;;  %v6381_v25 = vshll.u32 %v13961_v62, 16  ;;  %v5953_v21 = vmax.f32 %v5921_v60, 0.0  ;;  %6564 = vst [vmem:[#allocation2 + $0x70] sm:$0xf] %v6333_v11  ;;  %v6375_v57 = vor.u32 %v6373_v34, %v6372_v56  ;;  %v6579_v34 = vld [vmem:[#allocation2 + $0x8c] sm:$0x1] }
 0x369   : > { %6567 = vst [vmem:[#allocation2 + $0x74] sm:$0x1] %v6566_v26  ;;  %v6376_v9 = vrot.slane %v6372_v56, 4  ;;  %v6355_v27 = vrot.slane %v6353_v53, 7  ;;  %v6380_v31 = vrot.slane %v6378_v32, 7  ;;  %v5958_v36 = vmax.f32 %v5926_v6, 0.0 }
 0x36a   : > { %v13959_v14 = vpack.c.bf16 %v5953_v21, %v5953_v21  ;;  %v5888_v33 = vmul.f32 %v17892_v47, %v17724_v51  ;;  %v6583_v3 = vsel %vm17755_vm13, %v6375_v57, %v6582_v49  ;;  %v5924_v47 = vadd.f32 %v17729_v39, %v5885_v4  ;;  %v6596_v53 = vld [vmem:[#allocation2 + $0xa8] sm:$0xf] }
 0x36b   : > { %v6358_v5 = vor.u32 %v6356_v20, %v6355_v27  ;;  %v6359_v24 = vrot.slane %v6355_v27, 4  ;;  %v6383_v16 = vor.u32 %v6381_v25, %v6380_v31  ;;  %6584 = vst [vmem:[#allocation2 + $0x90] sm:$0xf] %v6583_v3  ;;  %v6385_v38 = vrot.slane %v6380_v31, 4  ;;  %v6600_v3 = vld [vmem:[#allocation2 + $0xb0] sm:$0x1] }
 0x36c   : > { %v6361_v17 = vshrl.u32 %v13959_v14, 16  ;;  %v6364_v44 = vshll.u32 %v13959_v14, 16  ;;  %v13964_v37 = vpack.c.bf16 %v5958_v36, %v5958_v36  ;;  %v5927_v8 = vadd.f32 %v17729_v39, %v5888_v33 }
 0x36d   : > { %v6576_v60 = vsel %vm17755_vm13, %v6358_v5, %v6575_v1  ;;  %v6384_v0 = vsel %vm17762_vm14, %v6376_v9, %v6383_v16  ;;  %v6587_v45 = vsel %vm17641_vm8, %v6385_v38, %v6586_v10  ;;  %v5956_v15 = vmax.f32 %v5924_v47, 0.0  ;;  %v15978_v49 = vld [vmem:[#allocation2 + $0x78] sm:$0xff]  }
 0x36e   : > { %6577 = vst [vmem:[#allocation2 + $0x84] sm:$0xf] %v6576_v60  ;;  %6585 = vst [vmem:[#allocation2 + $0x94] sm:$0xf] %v6384_v0  ;;  %v6363_v7 = vrot.slane %v6361_v17, 7  ;;  %v6404_v6 = vshrl.u32 %v13964_v37, 16  ;;  %v5891_v19 = vmul.f32 %v17913_v13, %v17724_v51  ;;  %v5889_v2 = vmul.f32 %v17724_v51, %v17916_v22 }
 0x36f   : > { %v6407_v55 = vshll.u32 %v13964_v37, 16  ;;  %6588 = vst [vmem:[#allocation2 + $0x98] sm:$0x1] %v6587_v45  ;;  %v5959_v62 = vmax.f32 %v5927_v8, 0.0  ;;  %v15976_v56 = vld [vmem:[#allocation2 + $0x6c] sm:$0xff]   ;;  %v13962_v20 = vpack.c.bf16 %v5956_v15, %v5956_v15  ;;  %v5925_v11 = vadd.f32 %v17729_v39, %v5886_v29 }
 0x370   : > { %v6366_v28 = vor.u32 %v6364_v44, %v6363_v7  ;;  %v6368_v35 = vrot.slane %v6363_v7, 4  ;;  %v6406_v50 = vrot.slane %v6404_v6, 7  ;;  %v5930_v26 = vadd.f32 %v17729_v39, %v5891_v19  ;;  %14868 = vmatmul.mubr.bf16.gmra.mrb[16].mxu1 %v15976_v56  ;;  %v7005_v45 = vld [vmem:[#allocation2 + $0xc] sm:$0xf] }
 0x371   : > { %v13965_v32 = vpack.c.bf16 %v5959_v62, %v5959_v62  ;;  %v17962_v22 = vrot.slane %v7067_v63, 4  ;;  %v6387_v21 = vshrl.u32 %v13962_v20, 16  ;;  %v6390_v57 = vshll.u32 %v13962_v20, 16  ;;  %14871 = vmatprep.mubr.bf16.mxu1 %v15978_v49  ;;  %v6589_v63 = vld [vmem:[#allocation2 + $0x9c] sm:$0xf] }
 0x372   : > { %v6367_v41 = vsel %vm17762_vm14, %v6359_v24, %v6366_v28  ;;  %v6580_v13 = vsel %vm17641_vm8, %v6368_v35, %v6579_v34  ;;  %v6409_v25 = vor.u32 %v6407_v55, %v6406_v50  ;;  %v5957_v1 = vmax.f32 %v5925_v11, 0.0  ;;  %v6593_v55 = vld [vmem:[#allocation2 + $0xa4] sm:$0x1] }
 0x373   : > { %6578 = vst [vmem:[#allocation2 + $0x88] sm:$0xf] %v6367_v41  ;;  %6581 = vst [vmem:[#allocation2 + $0x8c] sm:$0x1] %v6580_v13  ;;  %v6412_v9 = vshrl.u32 %v13965_v32, 16  ;;  %v6415_v27 = vshll.u32 %v13965_v32, 16  ;;  %v5928_v36 = vadd.f32 %v17729_v39, %v5889_v2  ;;  %v5892_v46 = vmul.f32 %v17919_v40, %v17724_v51 }
 0x374   : > { %v6597_v31 = vsel %vm17755_vm13, %v6409_v25, %v6596_v53  ;;  %v5962_v14 = vmax.f32 %v5930_v26, 0.0  ;;  %v6389_v4 = vrot.slane %v6387_v21, 7  ;;  %v13963_v5 = vpack.c.bf16 %v5957_v1, %v5957_v1  ;;  %v7006_v2 = vld [vmem:[#allocation2 + $0x10] sm:$0xf] }
 0x375   : > { %6598 = vst [vmem:[#allocation2 + $0xa8] sm:$0xf] %v6597_v31  ;;  %v6414_v33 = vrot.slane %v6412_v9, 7  ;;  %v5960_v16 = vmax.f32 %v5928_v36, 0.0  ;;  %v5890_v10 = vmul.f32 %v17724_v51, %v17923_v42  ;;  %v6410_v38 = vrot.slane %v6406_v50, 4  ;;  %v15981_v50 = vld [vmem:[#allocation2 + $0x90] sm:$0xff]  }
 0x376   : > { %v13968_v24 = vpack.c.bf16 %v5962_v14, %v5962_v14  ;;  %v6392_v17 = vor.u32 %v6390_v57, %v6389_v4  ;;  %v6395_v60 = vshrl.u32 %v13963_v5, 16  ;;  %v6398_v0 = vshll.u32 %v13963_v5, 16  ;;  %v6610_v51 = vld [vmem:[#allocation2 + $0xc0] sm:$0xf]  ;;  %v6603_v57 = vld [vmem:[#allocation2 + $0xb4] sm:$0xf] }
 0x377   : > { %v6417_v44 = vor.u32 %v6415_v27, %v6414_v33  ;;  %v6419_v37 = vrot.slane %v6414_v33, 4  ;;  %v13966_v42 = vpack.c.bf16 %v5960_v16, %v5960_v16  ;;  %v5931_v62 = vadd.f32 %v17729_v39, %v5892_v46  ;;  %v7008_v33 = vld [vmem:[#allocation2 + $0x18] sm:$0xf]  ;;  %v7009_v46 = vld [vmem:[#allocation2 + $0x1c] sm:$0xf] }
 0x378   : > { %v6438_v47 = vshrl.u32 %v13968_v24, 16  ;;  %v6441_v8 = vshll.u32 %v13968_v24, 16  ;;  %v6590_v40 = vsel %vm17755_vm13, %v6392_v17, %v6589_v63  ;;  %v6397_v34 = vrot.slane %v6395_v60, 7 }
 0x379   : > { %v6418_v7 = vsel %vm17762_vm14, %v6410_v38, %v6417_v44  ;;  %v6601_v6 = vsel %vm17641_vm8, %v6419_v37, %v6600_v3  ;;  %6591 = vst [vmem:[#allocation2 + $0x9c] sm:$0xf] %v6590_v40  ;;  %v5929_v29 = vadd.f32 %v17729_v39, %v5890_v10  ;;  %v6393_v28 = vrot.slane %v6389_v4, 4 }
 0x37a   : > { %6599 = vst [vmem:[#allocation2 + $0xac] sm:$0xf] %v6418_v7  ;;  %6602 = vst [vmem:[#allocation2 + $0xb0] sm:$0x1] %v6601_v6  ;;  %v17977_v15 = vrot.slane %v6438_v47, 7  ;;  %v15979_v19 = vld [vmem:[#allocation2 + $0x84] sm:$0xff]   ;;  %v6400_v53 = vor.u32 %v6398_v0, %v6397_v34 }
 0x37b   : > { %v6421_v35 = vshrl.u32 %v13966_v42, 16  ;;  %v7075_v56 = vshrl.u32 %v7005_v45, 16  ;;  %v6402_v20 = vrot.slane %v6397_v34, 4  ;;  %v6424_v11 = vshll.u32 %v13966_v42, 16  ;;  %14872 = vmatmul.mubr.bf16.gmra.mrb[20].mxu1 %v15979_v19  ;;  %v7011_v42 = vld [vmem:[#allocation2 + $0x24] sm:$0xf] }
 0x37c   : > { %v6443_v32 = vor.u32 %v6441_v8, %v17977_v15  ;;  %v5963_v49 = vmax.f32 %v5931_v62, 0.0  ;;  %v5961_v41 = vmax.f32 %v5929_v29, 0.0  ;;  %14875 = vmatprep.mubr.bf16.mxu1 %v15981_v50  ;;  %v7078_v13 = vshll.u32 %v7005_v45, 16  ;;  %v6607_v8 = vld [vmem:[#allocation2 + $0xbc] sm:$0x1] }
 0x37d   : > { %v6423_v26 = vrot.slane %v6421_v35, 7  ;;  %v6401_v39 = vsel %vm17762_vm14, %v6393_v28, %v6400_v53  ;;  %v6594_v25 = vsel %vm17641_vm8, %v6402_v20, %v6593_v55  ;;  %v7084_v9 = vshll.u32 %v7006_v2, 16  ;;  %v7012_v53 = vld [vmem:[#allocation2 + $0x28] sm:$0xf] }
 0x37e   : > { %v6611_v21 = vsel %vm17755_vm13, %v6443_v32, %v6610_v51  ;;  %6592 = vst [vmem:[#allocation2 + $0xa0] sm:$0xf] %v6401_v39  ;;  %6595 = vst [vmem:[#allocation2 + $0xa4] sm:$0x1] %v6594_v25  ;;  %v13969_v31 = vpack.c.bf16 %v5963_v49, %v5963_v49  ;;  %v13967_v1 = vpack.c.bf16 %v5961_v41, %v5961_v41  ;;  %v17990_v14 = vrot.slane %v7070_v43, 5 }
 0x37f   : > { %6612 = vst [vmem:[#allocation2 + $0xc0] sm:$0xf] %v6611_v21  ;;  %v6426_v27 = vor.u32 %v6424_v11, %v6423_v26  ;;  %v7077_v36 = vrot.slane %v7075_v56, 4  ;;  %v7088_v4 = vshrl.u32 %v7006_v2, 16  ;;  %v7080_v24 = vrot.slane %v7078_v13, 5 }
 0x380   : > { %v6446_v3 = vshrl.u32 %v13969_v31, 16  ;;  %v6429_v5 = vshrl.u32 %v13967_v1, 16  ;;  %v6449_v16 = vshll.u32 %v13969_v31, 16  ;;  %v6432_v10 = vshll.u32 %v13967_v1, 16  ;;  %v7007_v51 = vld [vmem:[#allocation2 + $0x14] sm:$0x1] }
 0x381   : > { %v6604_v63 = vsel %vm17755_vm13, %v6426_v27, %v6603_v57  ;;  %v17994_v38 = vrot.slane %v7084_v9, 5  ;;  %v7090_v17 = vrot.slane %v7088_v4, 4  ;;  %v7099_v37 = vshrl.u32 %v7008_v33, 16  ;;  %v15984_v56 = vld [vmem:[#allocation2 + $0xa8] sm:$0xff]   ;;  %v7010_v32 = vld [vmem:[#allocation2 + $0x20] sm:$0x1] }
 0x382   : > { %6605 = vst [vmem:[#allocation2 + $0xb4] sm:$0xf] %v6604_v63  ;;  %v6448_v44 = vrot.slane %v6446_v3, 7  ;;  %v6431_v43 = vrot.slane %v6429_v5, 7  ;;  %v7102_v60 = vshll.u32 %v7008_v33, 16  ;;  %v6444_v0 = vrot.slane %v17977_v15, 4 }
 0x383   : > { %v6427_v47 = vrot.slane %v6423_v26, 4  ;;  %v7108_v48 = vshll.u32 %v7009_v46, 16  ;;  %v7112_v45 = vshrl.u32 %v7009_v46, 16  ;;  %v7081_v62 = vor.u32 %v7080_v24, %v7077_v36  ;;  %v7014_v9 = vld [vmem:[#allocation2 + $0x30] sm:$0xf] }
 0x384   : > { %v6451_v40 = vor.u32 %v6449_v16, %v6448_v44  ;;  %v6453_v7 = vrot.slane %v6448_v44, 4  ;;  %v6434_v6 = vor.u32 %v6432_v10, %v6431_v43  ;;  %v6436_v55 = vrot.slane %v6431_v43, 4  ;;  %v7015_v1 = vld [vmem:[#allocation2 + $0x34] sm:$0xf]  ;;  %v7013_v4 = vld [vmem:[#allocation2 + $0x2c] sm:$0x1] }
 0x385   : > { %v15982_v34 = vld [vmem:[#allocation2 + $0x9c] sm:$0xff]   ;;  %v7091_v29 = vor.u32 %v7090_v17, %v17994_v38  ;;  %v7101_v19 = vrot.slane %v7099_v37, 4  ;;  %v7104_v28 = vrot.slane %v7102_v60, 5  ;;  %v7063_v20 = vsel %vm16396_vm2, %v17747_v58, %v17735_v23 }
 0x386   : > { %v6452_v35 = vsel %vm17762_vm14, %v6444_v0, %v6451_v40  ;;  %v6615_v15 = vsel %vm17641_vm8, %v6453_v7, %v6614_v30  ;;  %v6435_v50 = vsel %vm17762_vm14, %v6427_v47, %v6434_v6  ;;  %v6608_v2 = vsel %vm17641_vm8, %v6436_v55, %v6607_v8  ;;  %14876 = vmatmul.mubr.bf16.gmra.mrb[24].mxu1 %v15982_v34  ;;  %v7017_v5 = vld [vmem:[#allocation2 + $0x3c] sm:$0xf]  ;;  %v7018_v44 = vld [vmem:[#allocation2 + $0x40] sm:$0xf]  ;;  %v7016_v40 = vld [vmem:[#allocation2 + $0x38] sm:$0x1] }
 0x387   : > { %6613 = vst [vmem:[#allocation2 + $0xc4] sm:$0xf] %v6452_v35  ;;  %6616 = vst [vmem:[#allocation2 + $0xc8] sm:$0x1] %v6615_v15  ;;  %v18010_v11 = vrot.slane %v7108_v48, 5  ;;  %v7114_v18 = vrot.slane %v7112_v45, 4  ;;  %14879 = vmatprep.mubr.bf16.mxu1 %v15984_v56  ;;  %v7073_v26 = vsel %vm16396_vm2, %v17962_v22, %v17990_v14  ;;  %v7105_v58 = vor.u32 %v7104_v28, %v7101_v19 }
 0x388   : > { %6606 = vst [vmem:[#allocation2 + $0xb8] sm:$0xf] %v6435_v50  ;;  %6609 = vst [vmem:[#allocation2 + $0xbc] sm:$0x1] %v6608_v2  ;;  %v7094_v49 = vshll.u32 %v7007_v51, 16  ;;  %v7123_v41 = vshrl.u32 %v7011_v42, 16  ;;  %v13643_v22 = vcombine.low %v7063_v20, %v7073_v26 }
 0x389   : > { %v7126_v13 = vshll.u32 %v7011_v42, 16  ;;  %v7082_v39 = vrot.slane %v7081_v62, 4  ;;  %v7115_v25 = vor.u32 %v7114_v18, %v18010_v11  ;;  %v7132_v21 = vshll.u32 %v7012_v53, 16  ;;  %v7019_v62 = vld [vmem:[#allocation2 + $0x44] sm:$0x1] }
 0x38a   : > { %v7136_v57 = vshrl.u32 %v7012_v53, 16  ;;  %v7092_v23 = vrot.slane %v7091_v29, 4  ;;  %v7125_v27 = vrot.slane %v7123_v41, 4  ;;  %v7118_v36 = vshll.u32 %v7010_v32, 16  ;;  %v7020_v19 = vld [vmem:[#allocation2 + $0x48] sm:$0xf] }
 0x38b   : > { %v7128_v31 = vrot.slane %v7126_v13, 5  ;;  %v18017_v33 = vrot.slane %v7132_v21, 5  ;;  %v7096_v14 = vrot.slane %v7094_v49, 5  ;;  %v7147_v63 = vshrl.u32 %v7014_v9, 16  ;;  %v7021_v2 = vld [vmem:[#allocation2 + $0x4c] sm:$0xf] }
 0x38c   : > { %v7138_v46 = vrot.slane %v7136_v57, 4  ;;  %v7150_v3 = vshll.u32 %v7014_v9, 16  ;;  %v7116_v24 = vrot.slane %v7115_v25, 4  ;;  %v7156_v10 = vshll.u32 %v7015_v1, 16  ;;  %v7023_v18 = vld [vmem:[#allocation2 + $0x54] sm:$0xf] }
 0x38d   : > { %v7129_v16 = vor.u32 %v7128_v31, %v7125_v27  ;;  %v7160_v17 = vshrl.u32 %v7015_v1, 16  ;;  %v7087_v43 = vsel %vm16396_vm2, %v7082_v39, %v17994_v38  ;;  %v7097_v37 = vsel %vm16396_vm2, %v7092_v23, %v7096_v14  ;;  %v7024_v39 = vld [vmem:[#allocation2 + $0x58] sm:$0xf]  ;;  %v7022_v57 = vld [vmem:[#allocation2 + $0x50] sm:$0x1]  ;;  %v15988_v23 = vld [vmem:[#allocation4 + $0x88] sm:$0xff]  }
 0x38e   : > { %v7106_v60 = vrot.slane %v7105_v58, 4  ;;  %v7142_v0 = vshll.u32 %v7013_v4, 16  ;;  %v7120_v47 = vrot.slane %v7118_v36, 5  ;;  %v7139_v8 = vor.u32 %v7138_v46, %v18017_v33 }
 0x38f   : > { %v15985_v30 = vld [vmem:[#allocation2 + $0xb4] sm:$0xff]   ;;  %v18025_v48 = vrot.slane %v7156_v10, 5  ;;  %v7162_v45 = vrot.slane %v7160_v17, 4  ;;  %v7149_v7 = vrot.slane %v7147_v63, 4  ;;  %v7152_v6 = vrot.slane %v7150_v3, 5  ;;  %v15989_v63 = vld [vmem:[#allocation4 + $0x90] sm:$0xff]  }
 0x390   : > { %14880 = vmatmul.mubr.bf16.gmra.mrb[28].mxu1 %v15985_v30  ;;  %v7171_v55 = vshrl.u32 %v7017_v5, 16  ;;  %v7174_v51 = vshll.u32 %v7017_v5, 16  ;;  %v13644_v42 = vcombine.low %v7087_v43, %v7097_v37  ;;  %v7121_v38 = vsel %vm16396_vm2, %v7116_v24, %v7120_v47  ;;  %v7026_v24 = vld [vmem:[#allocation2 + $0x60] sm:$0xf]  ;;  %v7027_v30 = vld [vmem:[#allocation2 + $0x64] sm:$0xf] }
 0x391   : > { %14899 = vmatprep.mubr.bf16.mxu1 %v13643_v22  ;;  %v7130_v34 = vrot.slane %v7129_v16, 4  ;;  %v7180_v29 = vshll.u32 %v7018_v44, 16  ;;  %v7111_v28 = vsel %vm16396_vm2, %v7106_v60, %v18010_v11  ;;  %v7144_v35 = vrot.slane %v7142_v0, 5 }
 0x392   : > { %v7173_v15 = vrot.slane %v7171_v55, 4  ;;  %v7176_v50 = vrot.slane %v7174_v51, 5  ;;  %v7140_v56 = vrot.slane %v7139_v8, 4  ;;  %v7163_v53 = vor.u32 %v7162_v45, %v18025_v48  ;;  %v7025_v45 = vld [vmem:[#allocation2 + $0x5c] sm:$0x1] }
 0x393   : > { %v7166_v20 = vshll.u32 %v7016_v40, 16  ;;  %v7184_v32 = vshrl.u32 %v7018_v44, 16  ;;  %v13645_v26 = vcombine.low %v7111_v28, %v7121_v38  ;;  %v7153_v49 = vor.u32 %v7152_v6, %v7149_v7 }
 0x394   : > { %v7195_v41 = vshrl.u32 %v7020_v19, 16  ;;  %v7198_v13 = vshll.u32 %v7020_v19, 16  ;;  %v7135_v25 = vsel %vm16396_vm2, %v7130_v34, %v18017_v33  ;;  %v18036_v11 = vrot.slane %v7180_v29, 5 }
 0x395   : > { %v7186_v21 = vrot.slane %v7184_v32, 4  ;;  %v7204_v9 = vshll.u32 %v7021_v2, 16  ;;  %v7177_v58 = vor.u32 %v7176_v50, %v7173_v15  ;;  %v7190_v27 = vshll.u32 %v7019_v62, 16  ;;  %v7028_v15 = vld [vmem:[#allocation2 + $0x68] sm:$0x1] }
 0x396   : > { %v7197_v31 = vrot.slane %v7195_v41, 4  ;;  %v7200_v1 = vrot.slane %v7198_v13, 5  ;;  %v7145_v36 = vsel %vm16396_vm2, %v7140_v56, %v7144_v35  ;;  %v7164_v4 = vrot.slane %v7163_v53, 4  ;;  %v15990_v35 = vld [vmem:[#allocation4 + $0x98] sm:$0xff]   ;;  %v7032_v13 = vld [vmem:[#allocation2 + $0x78] sm:$0xf] }
 0x397   : > { %v18040_v46 = vrot.slane %v7204_v9, 5  ;;  %v7208_v22 = vshrl.u32 %v7021_v2, 16  ;;  %v7154_v14 = vrot.slane %v7153_v49, 4  ;;  %v7168_v33 = vrot.slane %v7166_v20, 5  ;;  %v7030_v32 = vld [vmem:[#allocation2 + $0x70] sm:$0xf] }
 0x398   : > { %14900 = vmatmul.mubr.bf16.vlgmr.msra.gmra.mrb[0].mxu1 %v13644_v42  ;;  %v7219_v3 = vshrl.u32 %v7023_v18, 16  ;;  %v7222_v5 = vshll.u32 %v7023_v18, 16  ;;  %v7187_v16 = vor.u32 %v7186_v21, %v18036_v11  ;;  %v7201_v10 = vor.u32 %v7200_v1, %v7197_v31  ;;  %v7029_v42 = vld [vmem:[#allocation2 + $0x6c] sm:$0xf]  ;;  %v15991_v31 = vld [vmem:[#allocation4 + $0xa0] sm:$0xff]  }
 0x399   : > { %14903 = vmatprep.mubr.bf16.mxu1 %v13645_v26  ;;  %14932 = vmatpush3.bf16.msra.mxu1 %v17905_v52  ;;  %v7210_v17 = vrot.slane %v7208_v22, 4  ;;  %v7228_v44 = vshll.u32 %v7024_v39, 16  ;;  %v18044_v43 = vrot.slane %v7177_v58, 4  ;;  %v18046_v37 = vrot.slane %v7190_v27, 5 }
 0x39a   : > { %14933 = vmatprep.subr.bf16.mxu1 %v15988_v23  ;;  %v7214_v60 = vshll.u32 %v7022_v57, 16  ;;  %v7232_v0 = vshrl.u32 %v7024_v39, 16  ;;  %v7169_v47 = vsel %vm16396_vm2, %v7164_v4, %v7168_v33  ;;  %v7221_v52 = vrot.slane %v7219_v3, 4  ;;  %v7033_v57 = vld [vmem:[#allocation2 + $0x7c] sm:$0xf] }
 0x39b   : > { %v7211_v8 = vor.u32 %v7210_v17, %v18040_v46  ;;  %v18051_v40 = vrot.slane %v7228_v44, 5  ;;  %v13646_v7 = vcombine.low %v7135_v25, %v7145_v36  ;;  %v7159_v6 = vsel %vm16396_vm2, %v7154_v14, %v18025_v48  ;;  %v7036_v44 = vld [vmem:[#allocation2 + $0x88] sm:$0xf] }
 0x39c   : > { %v7224_v55 = vrot.slane %v7222_v5, 5  ;;  %v7234_v51 = vrot.slane %v7232_v0, 4  ;;  %v7188_v38 = vrot.slane %v7187_v16, 4  ;;  %v7202_v34 = vrot.slane %v7201_v10, 4  ;;  %v15992_v5 = vld [vmem:[#allocation4 + $0xa8] sm:$0xff]  }
 0x39d   : > { %14934 = vmatpush3.bf16.msra.mxu1 %v15988_v23  ;;  %v7243_v62 = vshrl.u32 %v7026_v24, 16  ;;  %v7246_v29 = vshll.u32 %v7026_v24, 16  ;;  %v13647_v19 = vcombine.low %v7159_v6, %v7169_v47  ;;  %v7212_v28 = vrot.slane %v7211_v8, 4  ;;  %v7035_v0 = vld [vmem:[#allocation2 + $0x84] sm:$0xf] }
 0x39e   : > { %14935 = vmatprep.subr.bf16.mxu1 %v15989_v63  ;;  %v7252_v50 = vshll.u32 %v7027_v30, 16  ;;  %v7256_v2 = vshrl.u32 %v7027_v30, 16  ;;  %v7183_v48 = vsel %vm16396_vm2, %v18044_v43, %v18036_v11  ;;  %v7235_v56 = vor.u32 %v7234_v51, %v18051_v40 }
 0x39f   : > { %v7245_v53 = vrot.slane %v7243_v62, 4  ;;  %v7248_v20 = vrot.slane %v7246_v29, 5  ;;  %v7216_v18 = vrot.slane %v7214_v60, 5  ;;  %v7225_v26 = vor.u32 %v7224_v55, %v7221_v52  ;;  %v7034_v52 = vld [vmem:[#allocation2 + $0x80] sm:$0x1] }
 0x3a0   : > { %14904 = vmatmul.mubr.bf16.gmra.mrb[4].mxu1 %v13646_v7  ;;  %v7238_v49 = vshll.u32 %v7025_v45, 16  ;;  %v18061_v41 = vrot.slane %v7252_v50, 5  ;;  %v7193_v39 = vsel %vm16396_vm2, %v7188_v38, %v18046_v37  ;;  %v7207_v25 = vsel %vm16396_vm2, %v7202_v34, %v18040_v46  ;;  %v7031_v46 = vld [vmem:[#allocation2 + $0x74] sm:$0x1] }
 0x3a1   : > { %14907 = vmatprep.mubr.bf16.mxu1 %v13647_v19  ;;  %14936 = vmatpush3.bf16.msra.mxu1 %v15989_v63  ;;  %v7258_v11 = vrot.slane %v7256_v2, 4  ;;  %v7267_v21 = vshrl.u32 %v7029_v42, 16  ;;  %v7217_v9 = vsel %vm16396_vm2, %v7212_v28, %v7216_v18  ;;  %v7270_v23 = vshll.u32 %v7029_v42, 16  ;;  %v7038_v19 = vld [vmem:[#allocation2 + $0x90] sm:$0xf]  ;;  %v15993_v2 = vld [vmem:[#allocation4 + $0xb0] sm:$0xff]  }
 0x3a2   : > { %14937 = vmatprep.subr.bf16.mxu1 %v15990_v35  ;;  %v7276_v58 = vshll.u32 %v7030_v32, 16  ;;  %v7280_v27 = vshrl.u32 %v7030_v32, 16  ;;  %v7236_v1 = vrot.slane %v7235_v56, 4  ;;  %v7249_v36 = vor.u32 %v7248_v20, %v7245_v53  ;;  %v7039_v28 = vld [vmem:[#allocation2 + $0x94] sm:$0xf] }
 0x3a3   : > { %v7259_v4 = vor.u32 %v7258_v11, %v18061_v41  ;;  %v7262_v22 = vshll.u32 %v7028_v15, 16  ;;  %v7226_v14 = vrot.slane %v7225_v26, 4  ;;  %v7240_v33 = vrot.slane %v7238_v49, 5  ;;  %v15994_v11 = vld [vmem:[#allocation4 + $0xb8] sm:$0xff]  }
 0x3a4   : > { %v18072_v63 = vrot.slane %v7276_v58, 5  ;;  %v7282_v3 = vrot.slane %v7280_v27, 4  ;;  %v7269_v24 = vrot.slane %v7267_v21, 4  ;;  %v7272_v16 = vrot.slane %v7270_v23, 5  ;;  %v7037_v21 = vld [vmem:[#allocation2 + $0x8c] sm:$0x1] }
 0x3a5   : > { %14938 = vmatpush3.bf16.msra.mxu1 %v15990_v35  ;;  %v7291_v10 = vshrl.u32 %v7032_v13, 16  ;;  %v7294_v17 = vshll.u32 %v7032_v13, 16  ;;  %v13648_v30 = vcombine.low %v7183_v48, %v7193_v39  ;;  %v13649_v43 = vcombine.low %v7207_v25, %v7217_v9 }
 0x3a6   : > { %v7260_v37 = vrot.slane %v7259_v4, 4  ;;  %14939 = vmatprep.subr.bf16.mxu1 %v15991_v31  ;;  %v7300_v60 = vshll.u32 %v7033_v57, 16  ;;  %v7241_v47 = vsel %vm16396_vm2, %v7236_v1, %v7240_v33  ;;  %v7250_v8 = vrot.slane %v7249_v36, 4 }
 0x3a7   : > { %v7264_v45 = vrot.slane %v7262_v22, 5  ;;  %v7304_v7 = vshrl.u32 %v7033_v57, 16  ;;  %v7283_v6 = vor.u32 %v7282_v3, %v18072_v63  ;;  %v7293_v55 = vrot.slane %v7291_v10, 4  ;;  %v7040_v10 = vld [vmem:[#allocation2 + $0x98] sm:$0x1] }
 0x3a8   : > { %14908 = vmatmul.mubr.bf16.gmra.mrb[8].mxu1 %v13648_v30  ;;  %v7296_v51 = vrot.slane %v7294_v17, 5  ;;  %v18077_v42 = vrot.slane %v7300_v60, 5  ;;  %v7231_v38 = vsel %vm16396_vm2, %v7226_v14, %v18051_v40  ;;  %v7273_v34 = vor.u32 %v7272_v16, %v7269_v24  ;;  %v7042_v14 = vld [vmem:[#allocation2 + $0xa0] sm:$0xf]  ;;  %v7041_v24 = vld [vmem:[#allocation2 + $0x9c] sm:$0xf] }
 0x3a9   : > { %14911 = vmatprep.mubr.bf16.mxu1 %v13649_v43  ;;  %v7286_v62 = vshll.u32 %v7031_v46, 16  ;;  %v7306_v29 = vrot.slane %v7304_v7, 4  ;;  %14940 = vmatpush3.bf16.msra.mxu1 %v15991_v31  ;;  %v13650_v35 = vcombine.low %v7231_v38, %v7241_v47  ;;  %v7265_v15 = vsel %vm16396_vm2, %v7260_v37, %v7264_v45  ;;  %v18098_v30 = vld [vmem:[#allocation4 + $0xc0] sm:$0xff]   ;;  %v7044_v47 = vld [vmem:[#allocation2 + $0xa8] sm:$0xf] }
 0x3aa   : > { %v7324_v50 = vshll.u32 %v7036_v44, 16  ;;  %14941 = vmatprep.subr.bf16.mxu1 %v15992_v5  ;;  %v7255_v48 = vsel %vm16396_vm2, %v7250_v8, %v18061_v41  ;;  %v7315_v40 = vshrl.u32 %v7035_v0, 16  ;;  %v7318_v53 = vshll.u32 %v7035_v0, 16 }
 0x3ab   : > { %v7307_v56 = vor.u32 %v7306_v29, %v18077_v42  ;;  %v7284_v20 = vrot.slane %v7283_v6, 4  ;;  %v7297_v32 = vor.u32 %v7296_v51, %v7293_v55  ;;  %v7310_v18 = vshll.u32 %v7034_v52, 16  ;;  %v7045_v6 = vld [vmem:[#allocation2 + $0xac] sm:$0xf] }
 0x3ac   : > { %v7328_v26 = vshrl.u32 %v7036_v44, 16  ;;  %v13651_v49 = vcombine.low %v7255_v48, %v7265_v15  ;;  %v7274_v13 = vrot.slane %v7273_v34, 4  ;;  %v7288_v39 = vrot.slane %v7286_v62, 5 }
 0x3ad   : > { %v18088_v25 = vrot.slane %v7324_v50, 5  ;;  %14942 = vmatpush3.bf16.msra.mxu1 %v15992_v5  ;;  %v7339_v9 = vshrl.u32 %v7038_v19, 16  ;;  %v7342_v23 = vshll.u32 %v7038_v19, 16  ;;  %v7348_v41 = vshll.u32 %v7039_v28, 16 }
 0x3ae   : > { %v7330_v57 = vrot.slane %v7328_v26, 4  ;;  %14943 = vmatprep.subr.bf16.mxu1 %v15993_v2  ;;  %v7308_v58 = vrot.slane %v7307_v56, 4  ;;  %v7317_v27 = vrot.slane %v7315_v40, 4  ;;  %v7320_v31 = vrot.slane %v7318_v53, 5  ;;  %v7048_v40 = vld [vmem:[#allocation2 + $0xb8] sm:$0xf] }
 0x3af   : > { %v7352_v1 = vshrl.u32 %v7039_v28, 16  ;;  %v7289_v36 = vsel %vm16396_vm2, %v7284_v20, %v7288_v39  ;;  %v7298_v4 = vrot.slane %v7297_v32, 4  ;;  %v7312_v22 = vrot.slane %v7310_v18, 5  ;;  %v7043_v20 = vld [vmem:[#allocation2 + $0xa4] sm:$0x1] }
 0x3b0   : > { %14912 = vmatmul.mubr.bf16.gmra.mrb[12].mxu1 %v13650_v35  ;;  %v7331_v33 = vor.u32 %v7330_v57, %v18088_v25  ;;  %v7334_v46 = vshll.u32 %v7037_v21, 16  ;;  %v18093_v3 = vrot.slane %v7348_v41, 5  ;;  %v7279_v16 = vsel %vm16396_vm2, %v7274_v13, %v18072_v63  ;;  %v7046_v57 = vld [vmem:[#allocation2 + $0xb0] sm:$0x1] }
 0x3b1   : > { %14915 = vmatprep.mubr.bf16.mxu1 %v13651_v49  ;;  %v7354_v5 = vrot.slane %v7352_v1, 4  ;;  %14944 = vmatpush3.bf16.msra.mxu1 %v15993_v2  ;;  %v7341_v17 = vrot.slane %v7339_v9, 4  ;;  %v7344_v44 = vrot.slane %v7342_v23, 5  ;;  %v13652_v43 = vcombine.low %v7279_v16, %v7289_v36 }
 0x3b2   : > { %14945 = vmatprep.subr.bf16.mxu1 %v15994_v11  ;;  %v7313_v37 = vsel %vm16396_vm2, %v7308_v58, %v7312_v22  ;;  %v7321_v60 = vor.u32 %v7320_v31, %v7317_v27  ;;  %v7372_v0 = vshll.u32 %v7042_v14, 16  ;;  %v7363_v45 = vshrl.u32 %v7041_v24, 16 }
 0x3b3   : > { %v7355_v8 = vor.u32 %v7354_v5, %v18093_v3  ;;  %v7366_v52 = vshll.u32 %v7041_v24, 16  ;;  %v7376_v7 = vshrl.u32 %v7042_v14, 16  ;;  %v7303_v63 = vsel %vm16396_vm2, %v7298_v4, %v18077_v42 }
 0x3b4   : > { %v7332_v55 = vrot.slane %v7331_v33, 4  ;;  %v7336_v51 = vrot.slane %v7334_v46, 5  ;;  %v7358_v38 = vshll.u32 %v7040_v10, 16  ;;  %v7345_v34 = vor.u32 %v7344_v44, %v7341_v17  ;;  %v7821_v10 = vld [vmem:[#allocation2 + $0x4] sm:$0xf] }
 0x3b5   : > { %14946 = vmatpush3.bf16.msra.mxu1 %v15994_v11  ;;  %v7374_v62 = vrot.slane %v7372_v0, 5  ;;  %v7378_v29 = vrot.slane %v7376_v7, 4  ;;  %v7387_v19 = vshrl.u32 %v7044_v47, 16  ;;  %v13653_v28 = vcombine.low %v7303_v63, %v7313_v37  ;;  %v7047_v11 = vld [vmem:[#allocation2 + $0xb4] sm:$0xf] }
 0x3b6   : > { %14979 = vmatprep.subr.bf16.mxu1 %v18098_v30  ;;  %v7322_v35 = vrot.slane %v7321_v60, 4  ;;  %v7390_v15 = vshll.u32 %v7044_v47, 16  ;;  %v7396_v50 = vshll.u32 %v7045_v6, 16  ;;  %v7356_v2 = vrot.slane %v7355_v8, 4  ;;  %v7820_v7 = vld [vmem:[#allocation2] sm:$0xe] }
 0x3b7   : > { %v7365_v48 = vrot.slane %v7363_v45, 4  ;;  %v7368_v56 = vrot.slane %v7366_v52, 5  ;;  %v7337_v42 = vsel %vm16396_vm2, %v7332_v55, %v7336_v51  ;;  %v7360_v53 = vrot.slane %v7358_v38, 5 }
 0x3b8   : > { %14916 = vmatmul.mubr.bf16.gmra.mrb[16].mxu1 %v13652_v43  ;;  %v7398_v32 = vrot.slane %v7396_v50, 5  ;;  %v7400_v18 = vshrl.u32 %v7045_v6, 16  ;;  %v7346_v26 = vrot.slane %v7345_v34, 4  ;;  %v7379_v49 = vor.u32 %v7378_v29, %v7374_v62  ;;  %v7822_v6 = vld [vmem:[#allocation2 + $0x8] sm:$0x1] }
 0x3b9   : > { %14919 = vmatprep.mubr.bf16.mxu1 %v13653_v28  ;;  %v7389_v13 = vrot.slane %v7387_v19, 4  ;;  %v7392_v39 = vrot.slane %v7390_v15, 5  ;;  %v7327_v21 = vsel %vm16396_vm2, %v7322_v35, %v18088_v25  ;;  %v7420_v23 = vshll.u32 %v7048_v40, 16 }
 0x3ba   : > { %v7402_v9 = vrot.slane %v7400_v18, 4  ;;  %v7361_v41 = vsel %vm16396_vm2, %v7356_v2, %v7360_v53  ;;  %v7369_v58 = vor.u32 %v7368_v56, %v7365_v48  ;;  %v7382_v27 = vshll.u32 %v7043_v20, 16  ;;  %v7824_v2 = vld [vmem:[#allocation2 + $0x10] sm:$0xf] }
 0x3bb   : > { %v7424_v31 = vshrl.u32 %v7048_v40, 16  ;;  %v13654_v1 = vcombine.low %v7327_v21, %v7337_v42  ;;  %v7411_v4 = vshrl.u32 %v7047_v11, 16  ;;  %v7414_v22 = vshll.u32 %v7047_v11, 16  ;;  %v7828_v11 = vld [vmem:[#allocation2 + $0x20] sm:$0x1] }
 0x3bc   : > { %v7403_v36 = vor.u32 %v7402_v9, %v7398_v32  ;;  %v7351_v14 = vsel %vm16396_vm2, %v7346_v26, %v18093_v3  ;;  %v7380_v33 = vrot.slane %v7379_v49, 4  ;;  %v7393_v46 = vor.u32 %v7392_v39, %v7389_v13  ;;  %v7049_v3 = vld [vmem:[#allocation2 + $0xbc] sm:$0x1]  ;;  %v7825_v13 = vld [vmem:[#allocation2 + $0x14] sm:$0x1] }
 0x3bd   : > { %v7406_v25 = vshll.u32 %v7046_v57, 16  ;;  %v13655_v5 = vcombine.low %v7351_v14, %v7361_v41  ;;  %v7422_v24 = vrot.slane %v7420_v23, 5  ;;  %v7426_v16 = vrot.slane %v7424_v31, 4  ;;  %v7823_v21 = vld [vmem:[#allocation2 + $0xc] sm:$0xe] }
 0x3be   : > { %v7370_v17 = vrot.slane %v7369_v58, 4  ;;  %v7384_v44 = vrot.slane %v7382_v27, 5  ;;  %v7404_v43 = vrot.slane %v7403_v36, 4  ;;  %v7413_v37 = vrot.slane %v7411_v4, 4  ;;  %v7830_v9 = vld [vmem:[#allocation2 + $0x28] sm:$0xf] }
 0x3bf   : > { %v7416_v60 = vrot.slane %v7414_v22, 5  ;;  %v7394_v47 = vrot.slane %v7393_v46, 4  ;;  %v7408_v8 = vrot.slane %v7406_v25, 5  ;;  %v7918_v45 = vrot.slane %v7821_v10, 5  ;;  %v7826_v41 = vld [vmem:[#allocation2 + $0x18] sm:$0xe] }
 0x3c0   : > { %14920 = vmatmul.mubr.bf16.gmra.mrb[20].mxu1 %v13654_v1  ;;  %v7385_v0 = vsel %vm16396_vm2, %v7380_v33, %v7384_v44  ;;  %v7427_v52 = vor.u32 %v7426_v16, %v7422_v24  ;;  %v7375_v63 = vsel %vm16396_vm2, %v7370_v17, %v7374_v62  ;;  %v7430_v34 = vshll.u32 %v7049_v3, 16  ;;  %v7827_v62 = vld [vmem:[#allocation2 + $0x1c] sm:$0xf]  ;;  %v7833_v58 = vld [vmem:[#allocation2 + $0x34] sm:$0xf]  ;;  %v15997_v3 = vld [vmem:[#allocation4 + $0xd0] sm:$0xff]  }
 0x3c1   : > { %14923 = vmatprep.mubr.bf16.mxu1 %v13655_v5  ;;  %v7409_v55 = vsel %vm16396_vm2, %v7404_v43, %v7408_v8  ;;  %v13656_v51 = vcombine.low %v7375_v63, %v7385_v0  ;;  %v7417_v38 = vor.u32 %v7416_v60, %v7413_v37  ;;  %v7399_v29 = vsel %vm16396_vm2, %v7394_v47, %v7398_v32  ;;  %v7831_v5 = vld [vmem:[#allocation2 + $0x2c] sm:$0x1]  ;;  %v7834_v17 = vld [vmem:[#allocation2 + $0x38] sm:$0x1]  ;;  %v7829_v44 = vld [vmem:[#allocation2 + $0x24] sm:$0xe] }
 0x3c2   : > { %v13667_v19 = vrot.slane %v7820_v7, 9  ;;  %v7920_v28 = vrot.slane %v7918_v45, 4  ;;  %v7921_v35 = vrot.slane %v7822_v6, 5  ;;  %v13657_v15 = vcombine.low %v7399_v29, %v7409_v55  ;;  %v7836_v37 = vld [vmem:[#allocation2 + $0x40] sm:$0xf]  ;;  %v15998_v29 = vld [vmem:[#allocation4 + $0xd8] sm:$0xff]  }
 0x3c3   : > { %v7428_v50 = vrot.slane %v7427_v52, 4  ;;  %v7418_v48 = vrot.slane %v7417_v38, 4  ;;  %v7432_v56 = vrot.slane %v7430_v34, 5  ;;  %v7925_v20 = vrot.slane %v7824_v2, 5  ;;  %v7832_v0 = vld [vmem:[#allocation2 + $0x30] sm:$0xe] }
 0x3c4   : > { %v7919_v40 = vsel %vm16623_vm5, %v13667_v19, %v7918_v45  ;;  %v7922_v42 = vsel %vm16623_vm5, %v7920_v28, %v7921_v35  ;;  %v7932_v32 = vrot.slane %v7827_v62, 5  ;;  %v7928_v23 = vrot.slane %v7825_v13, 5  ;;  %v7839_v47 = vld [vmem:[#allocation2 + $0x4c] sm:$0xf]  ;;  %v7837_v34 = vld [vmem:[#allocation2 + $0x44] sm:$0x1] }
 0x3c5   : > { %v7433_v53 = vsel %vm16396_vm2, %v7428_v50, %v7432_v56  ;;  %v7423_v18 = vsel %vm16396_vm2, %v7418_v48, %v7422_v24  ;;  %v13683_v26 = vcombine.low %v7919_v40, %v7922_v42  ;;  %v7927_v39 = vrot.slane %v7925_v20, 4  ;;  %v15996_v24 = vld [vmem:[#allocation4 + $0xc8] sm:$0xff]   ;;  %v7840_v35 = vld [vmem:[#allocation2 + $0x50] sm:$0x1]  ;;  %v7842_v2 = vld [vmem:[#allocation2 + $0x58] sm:$0xf] }
 0x3c6   : > { %v13658_v49 = vcombine.low %v7423_v18, %v7433_v53  ;;  %v7934_v57 = vrot.slane %v7932_v32, 4  ;;  %v7935_v27 = vrot.slane %v7828_v11, 5  ;;  %v13668_v31 = vrot.slane %v7823_v21, 9  ;;  %v7838_v56 = vld [vmem:[#allocation2 + $0x48] sm:$0xe]  ;;  %v15999_v42 = vld [vmem:[#allocation4 + $0xe0] sm:$0xff]  }
 0x3c7   : > { %v7929_v1 = vsel %vm16623_vm5, %v7927_v39, %v7928_v23  ;;  %v7939_v36 = vrot.slane %v7830_v9, 5  ;;  %v13669_v4 = vrot.slane %v7826_v41, 9  ;;  %v7946_v14 = vrot.slane %v7833_v58, 5  ;;  %v7845_v62 = vld [vmem:[#allocation2 + $0x64] sm:$0xf] }
 0x3c8   : > { %14924 = vmatmul.mubr.bf16.gmra.mrb[24].mxu1 %v13656_v51  ;;  %v7936_v22 = vsel %vm16623_vm5, %v7934_v57, %v7935_v27  ;;  %v7926_v33 = vsel %vm16623_vm5, %v13668_v31, %v7925_v20  ;;  %v7942_v60 = vrot.slane %v7831_v5, 5  ;;  %v7949_v8 = vrot.slane %v7834_v17, 5  ;;  %v7843_v21 = vld [vmem:[#allocation2 + $0x5c] sm:$0x1]  ;;  %v16000_v57 = vld [vmem:[#allocation4 + $0xe8] sm:$0xff]  }
 0x3c9   : > { %14927 = vmatprep.mubr.bf16.mxu1 %v13657_v15  ;;  %v13684_v46 = vcombine.low %v7926_v33, %v7929_v1  ;;  %v7933_v25 = vsel %vm16623_vm5, %v13669_v4, %v7932_v32  ;;  %v7941_v10 = vrot.slane %v7939_v36, 4  ;;  %v7948_v43 = vrot.slane %v7946_v14, 4  ;;  %v7835_v15 = vld [vmem:[#allocation2 + $0x3c] sm:$0xe]  ;;  %v7846_v41 = vld [vmem:[#allocation2 + $0x68] sm:$0x1] }
 0x3ca   : > { %v13685_v16 = vcombine.low %v7933_v25, %v7936_v22  ;;  %v13670_v45 = vrot.slane %v7829_v44, 9  ;;  %v7953_v7 = vrot.slane %v7836_v37, 5  ;;  %v13671_v6 = vrot.slane %v7832_v0, 9  ;;  %v7841_v58 = vld [vmem:[#allocation2 + $0x54] sm:$0xe] }
 0x3cb   : > { %v7943_v52 = vsel %vm16623_vm5, %v7941_v10, %v7942_v60  ;;  %v7950_v63 = vsel %vm16623_vm5, %v7948_v43, %v7949_v8  ;;  %v7960_v55 = vrot.slane %v7839_v47, 5  ;;  %v7956_v48 = vrot.slane %v7837_v34, 5  ;;  %v7848_v31 = vld [vmem:[#allocation2 + $0x70] sm:$0xf]  ;;  %v7851_v4 = vld [vmem:[#allocation2 + $0x7c] sm:$0xf] }
 0x3cc   : > { %v7940_v51 = vsel %vm16623_vm5, %v13670_v45, %v7939_v36  ;;  %v7947_v38 = vsel %vm16623_vm5, %v13671_v6, %v7946_v14  ;;  %v7955_v28 = vrot.slane %v7953_v7, 4  ;;  %v7963_v40 = vrot.slane %v7840_v35, 5  ;;  %v7844_v36 = vld [vmem:[#allocation2 + $0x60] sm:$0xe]  ;;  %v16001_v14 = vld [vmem:[#allocation4 + $0xf0] sm:$0xff]   ;;  %v16002_v37 = vld [vmem:[#allocation4 + $0xf8] sm:$0xff]  }
 0x3cd   : > { %v13687_v19 = vcombine.low %v7947_v38, %v7950_v63  ;;  %v7962_v50 = vrot.slane %v7960_v55, 4  ;;  %v13672_v53 = vrot.slane %v7835_v15, 9  ;;  %v7967_v32 = vrot.slane %v7842_v2, 5  ;;  %v7849_v43 = vld [vmem:[#allocation2 + $0x74] sm:$0x1] }
 0x3ce   : > { %v7957_v20 = vsel %vm16623_vm5, %v7955_v28, %v7956_v48  ;;  %v13673_v18 = vrot.slane %v7838_v56, 9  ;;  %v7970_v1 = vrot.slane %v7843_v21, 5  ;;  %v7977_v22 = vrot.slane %v7846_v41, 5  ;;  %v7852_v47 = vld [vmem:[#allocation2 + $0x80] sm:$0x1] }
 0x3cf   : > { %v7954_v13 = vsel %vm16623_vm5, %v13672_v53, %v7953_v7  ;;  %v7969_v23 = vrot.slane %v7967_v32, 4  ;;  %v13674_v33 = vrot.slane %v7841_v58, 9  ;;  %v7981_v25 = vrot.slane %v7848_v31, 5  ;;  %v7847_v8 = vld [vmem:[#allocation2 + $0x6c] sm:$0xe] }
 0x3d0   : > { %14928 = vmatmul.mubr.bf16.gmra.mrb[28].mxu1 %v13658_v49  ;;  %v7974_v49 = vrot.slane %v7845_v62, 5  ;;  %v13688_v39 = vcombine.low %v7954_v13, %v7957_v20  ;;  %v7961_v11 = vsel %vm16623_vm5, %v13673_v18, %v7960_v55  ;;  %v13675_v5 = vrot.slane %v7844_v36, 9  ;;  %v7854_v45 = vld [vmem:[#allocation2 + $0x88] sm:$0xf]  ;;  %v7850_v7 = vld [vmem:[#allocation2 + $0x78] sm:$0xe] }
 0x3d1   : > { %14947 = vmatprep.mubr.bf16.mxu1 %v13683_v26  ;;  %v7964_v26 = vsel %vm16623_vm5, %v7962_v50, %v7963_v40  ;;  %v7968_v10 = vsel %vm16623_vm5, %v13674_v33, %v7967_v32  ;;  %v7983_v0 = vrot.slane %v7981_v25, 4  ;;  %v7857_v6 = vld [vmem:[#allocation2 + $0x94] sm:$0xf]  ;;  %v7991_v63 = vrot.slane %v7852_v47, 5  ;;  %v18166_v55 = vld [vmem:[#allocation4 + $0x100] sm:$0xff]  }
 0x3d2   : > { %v13689_v9 = vcombine.low %v7961_v11, %v7964_v26  ;;  %v7976_v27 = vrot.slane %v7974_v49, 4  ;;  %v7975_v44 = vsel %vm16623_vm5, %v13675_v5, %v7974_v49  ;;  %v7995_v38 = vrot.slane %v7854_v45, 5  ;;  %v7855_v35 = vld [vmem:[#allocation2 + $0x8c] sm:$0x1]  ;;  %v7853_v2 = vld [vmem:[#allocation2 + $0x84] sm:$0xe] }
 0x3d3   : > { %v13677_v34 = vrot.slane %v7850_v7, 9  ;;  %v7858_v48 = vld [vmem:[#allocation2 + $0x98] sm:$0x1]  ;;  %v7860_v56 = vld [vmem:[#allocation2 + $0xa0] sm:$0xf]  ;;  %v7998_v20 = vrot.slane %v7855_v35, 5 }
 0x3d4   : > { %v7997_v40 = vrot.slane %v7995_v38, 4  ;;  %v7863_v32 = vld [vmem:[#allocation2 + $0xac] sm:$0xf]  ;;  %v8005_v18 = vrot.slane %v7858_v48, 5  ;;  %v13678_v26 = vrot.slane %v7853_v2, 9  ;;  %v8009_v13 = vrot.slane %v7860_v56, 5 }
 0x3d5   : > { %v8016_v21 = vrot.slane %v7863_v32, 5  ;;  %v7861_v41 = vld [vmem:[#allocation2 + $0xa4] sm:$0x1]  ;;  %v7864_v58 = vld [vmem:[#allocation2 + $0xb0] sm:$0x1]  ;;  %v18198_v56 = vld [vmem:[#allocation4 + $0x140] sm:$0xff]  }
 0x3d6   : > { %v7999_v49 = vsel %vm16623_vm5, %v7997_v40, %v7998_v20  ;;  %v8011_v31 = vrot.slane %v8009_v13, 4  ;;  %v8019_v33 = vrot.slane %v7864_v58, 5  ;;  %v16003_v7 = vld [vmem:[#allocation2 + $0xc] sm:$0xff]   ;;  %v16020_v35 = vld [vmem:[#allocation4 + $0x128] sm:$0xff]  }
 0x3d7   : > { %v8018_v36 = vrot.slane %v8016_v21, 4  ;;  %v16026_v2 = vld [vmem:[#allocation4 + $0x138] sm:$0xff]   ;;  %v16018_v40 = vld [vmem:[#allocation2 + $0x84] sm:$0xff]  }
 0x3d8   : > { %14948 = vmatmul.mubr.bf16.vlgmr.msra.gmra.mrb[0].mxu1 %v13684_v46  ;;  %v7971_v46 = vsel %vm16623_vm5, %v7969_v23, %v7970_v1  ;;  %v7859_v1 = vld [vmem:[#allocation2 + $0x9c] sm:$0xe]  ;;  %v16015_v48 = vld [vmem:[#allocation2 + $0x6c] sm:$0xff]  }
 0x3d9   : > { %14951 = vmatprep.mubr.bf16.mxu1 %v13685_v16  ;;  %14980 = vmatpush3.bf16.msra.mxu1 %v18098_v30  ;;  %v13686_v30 = vcombine.low %v7940_v51, %v7943_v52  ;;  %v7988_v16 = vrot.slane %v7851_v4, 5  ;;  %v13690_v17 = vcombine.low %v7968_v10, %v7971_v46  ;;  %v7984_v52 = vrot.slane %v7849_v43, 5  ;;  %v7866_v4 = vld [vmem:[#allocation2 + $0xb8] sm:$0xf]  ;;  %v7867_v43 = vld [vmem:[#allocation2 + $0xbc] sm:$0x1] }
 0x3da   : > { %14981 = vmatprep.subr.bf16.mxu1 %v15996_v24  ;;  %v13676_v51 = vrot.slane %v7847_v8, 9  ;;  %v13680_v46 = vrot.slane %v7859_v1, 9  ;;  %v8023_v5 = vrot.slane %v7866_v4, 5  ;;  %v8026_v47 = vrot.slane %v7867_v43, 5 }
 0x3db   : > { %v7989_v50 = vsel %vm16623_vm5, %v13677_v34, %v7988_v16  ;;  %v16014_v34 = vld [vmem:[#allocation4 + $0x118] sm:$0xff]  }
 0x3dc   : > { %v7982_v28 = vsel %vm16623_vm5, %v13676_v51, %v7981_v25  ;;  %v8010_v10 = vsel %vm16623_vm5, %v13680_v46, %v8009_v13  ;;  %v16006_v51 = vld [vmem:[#allocation2 + $0x24] sm:$0xff]   ;;  %v8868_v13 = vld [vmem:[#allocation2 + $0x1c] sm:$0xf] }
 0x3dd   : > { %14982 = vmatpush3.bf16.msra.mxu1 %v15996_v24  ;;  %v7978_v24 = vsel %vm16623_vm5, %v7976_v27, %v7977_v22  ;;  %v8012_v22 = vrot.slane %v7861_v41, 5  ;;  %v8950_v4 = vshrl.u32 %v8868_v13, 16 }
 0x3de   : > { %14983 = vmatprep.subr.bf16.mxu1 %v15997_v3  ;;  %v13691_v60 = vcombine.low %v7975_v44, %v7978_v24 }
 0x3df   : > { %v8013_v25 = vsel %vm16623_vm5, %v8011_v31, %v8012_v22 }
 0x3e0   : > { %14952 = vmatmul.mubr.bf16.gmra.mrb[4].mxu1 %v13686_v30  ;;  %v7985_v30 = vsel %vm16623_vm5, %v7983_v0, %v7984_v52  ;;  %v7865_v0 = vld [vmem:[#allocation2 + $0xb4] sm:$0xe] }
 0x3e1   : > { %14955 = vmatprep.mubr.bf16.mxu1 %v13687_v19  ;;  %14984 = vmatpush3.bf16.msra.mxu1 %v15997_v3  ;;  %v7990_v3 = vrot.slane %v7988_v16, 4  ;;  %v8002_v19 = vrot.slane %v7857_v6, 5  ;;  %v13692_v15 = vcombine.low %v7982_v28, %v7985_v30  ;;  %v8020_v16 = vsel %vm16623_vm5, %v8018_v36, %v8019_v33  ;;  %v16004_v6 = vld [vmem:[#allocation2 + $0x18] sm:$0xff]   ;;  %v16011_v30 = vld [vmem:[#allocation4 + $0x110] sm:$0xff]  }
 0x3e2   : > { %14985 = vmatprep.subr.bf16.mxu1 %v15998_v29  ;;  %v13682_v8 = vrot.slane %v7865_v0, 9  ;;  %v16010_v28 = vld [vmem:[#allocation2 + $0x48] sm:$0xff]   ;;  %v8946_v36 = vshll.u32 %v8868_v13, 16 }
 0x3e3   : > { %v8004_v53 = vrot.slane %v8002_v19, 4 }
 0x3e4   : > { %v8024_v45 = vsel %vm16623_vm5, %v13682_v8, %v8023_v5  ;;  %v18204_v43 = vrot.slane %v8946_v36, 5  ;;  %v8880_v36 = vld [vmem:[#allocation2 + $0x4c] sm:$0xf] }
 0x3e5   : > { %14986 = vmatpush3.bf16.msra.mxu1 %v15998_v29  ;;  %v7992_v29 = vsel %vm16623_vm5, %v7990_v3, %v7991_v63  ;;  %v8006_v11 = vsel %vm16623_vm5, %v8004_v53, %v8005_v18  ;;  %v16008_v63 = vld [vmem:[#allocation4 + $0x108] sm:$0xff]   ;;  %v8865_v53 = vld [vmem:[#allocation2 + $0x10] sm:$0xf] }
 0x3e6   : > { %14987 = vmatprep.subr.bf16.mxu1 %v15999_v42  ;;  %v13693_v62 = vcombine.low %v7989_v50, %v7992_v29  ;;  %v16009_v29 = vld [vmem:[#allocation2 + $0x3c] sm:$0xff]   ;;  %v8922_v18 = vshll.u32 %v8865_v53, 16 }
 0x3e7   : > { %v16013_v50 = vld [vmem:[#allocation2 + $0x60] sm:$0xff]  }
 0x3e8   : > { %14956 = vmatmul.mubr.bf16.gmra.mrb[8].mxu1 %v13688_v39  ;;  %v18201_v41 = vrot.slane %v8922_v18, 5 }
 0x3e9   : > { %14959 = vmatprep.mubr.bf16.mxu1 %v13689_v9  ;;  %14988 = vmatpush3.bf16.msra.mxu1 %v15999_v42  ;;  %v7856_v42 = vld [vmem:[#allocation2 + $0x90] sm:$0xe] }
 0x3ea   : > { %14989 = vmatprep.subr.bf16.mxu1 %v16000_v57  ;;  %v13679_v39 = vrot.slane %v7856_v42, 9  ;;  %v8864_v42 = vld [vmem:[#allocation2 + $0xc] sm:$0xf] }
 0x3eb   : > { %v8913_v20 = vshrl.u32 %v8864_v42, 16  ;;  %v8916_v32 = vshll.u32 %v8864_v42, 16 }
 0x3ec   : > { %v8003_v23 = vsel %vm16623_vm5, %v13679_v39, %v8002_v19  ;;  %v16017_v19 = vld [vmem:[#allocation4 + $0x120] sm:$0xff]   ;;  %v8870_v39 = vld [vmem:[#allocation2 + $0x24] sm:$0xf] }
 0x3ed   : > { %14990 = vmatpush3.bf16.msra.mxu1 %v16000_v57  ;;  %v7996_v57 = vsel %vm16623_vm5, %v13678_v26, %v7995_v38  ;;  %v13695_v27 = vcombine.low %v8003_v23, %v8006_v11  ;;  %v16007_v38 = vld [vmem:[#allocation2 + $0x30] sm:$0xff]   ;;  %v8926_v26 = vshrl.u32 %v8865_v53, 16  ;;  %v8871_v11 = vld [vmem:[#allocation2 + $0x28] sm:$0xf]  ;;  %v8918_v23 = vrot.slane %v8916_v32, 5 }
 0x3ee   : > { %14991 = vmatprep.subr.bf16.mxu1 %v16001_v14  ;;  %v13694_v9 = vcombine.low %v7996_v57, %v7999_v49  ;;  %v8867_v49 = vld [vmem:[#allocation2 + $0x18] sm:$0xf]  ;;  %v16021_v57 = vld [vmem:[#allocation2 + $0x9c] sm:$0xff]   ;;  %v8961_v22 = vshrl.u32 %v8870_v39, 16  ;;  %v8970_v33 = vshll.u32 %v8871_v11, 16  ;;  %v8974_v46 = vshrl.u32 %v8871_v11, 16 }
 0x3ef   : > { %v8928_v58 = vrot.slane %v8926_v26, 4  ;;  %v8937_v31 = vshrl.u32 %v8867_v49, 16  ;;  %v8940_v1 = vshll.u32 %v8867_v49, 16 }
 0x3f0   : > { %14960 = vmatmul.mubr.bf16.gmra.mrb[12].mxu1 %v13690_v17  ;;  %v13696_v17 = vcombine.low %v8010_v10, %v8013_v25  ;;  %v8869_v10 = vld [vmem:[#allocation2 + $0x20] sm:$0x1]  ;;  %v8976_v8 = vrot.slane %v8974_v46, 4 }
 0x3f1   : > { %14963 = vmatprep.mubr.bf16.mxu1 %v13691_v60  ;;  %14992 = vmatpush3.bf16.msra.mxu1 %v16001_v14  ;;  %v7862_v14 = vld [vmem:[#allocation2 + $0xa8] sm:$0xe]  ;;  %v8025_v60 = vrot.slane %v8023_v5, 4  ;;  %v8929_v5 = vor.u32 %v8928_v58, %v18201_v41 }
 0x3f2   : > { %14993 = vmatprep.subr.bf16.mxu1 %v16002_v37  ;;  %v13681_v24 = vrot.slane %v7862_v14, 9  ;;  %v8964_v14 = vshll.u32 %v8870_v39, 16  ;;  %v8879_v39 = vld [vmem:[#allocation2 + $0x48] sm:$0xf] }
 0x3f3   : > { %v8027_v3 = vsel %vm16623_vm5, %v8025_v60, %v8026_v47  ;;  %v8963_v60 = vrot.slane %v8961_v22, 4  ;;  %v18206_v47 = vrot.slane %v8970_v33, 5  ;;  %v9033_v33 = vshrl.u32 %v8879_v39, 16 }
 0x3f4   : > { %v8017_v44 = vsel %vm16623_vm5, %v13681_v24, %v8016_v21  ;;  %v13698_v52 = vcombine.low %v8024_v45, %v8027_v3  ;;  %v16019_v21 = vld [vmem:[#allocation2 + $0x90] sm:$0xff]   ;;  %v8966_v0 = vrot.slane %v8964_v14, 5  ;;  %v9036_v46 = vshll.u32 %v8879_v39, 16 }
 0x3f5   : > { %14994 = vmatpush3.bf16.msra.mxu1 %v16002_v37  ;;  %v13697_v37 = vcombine.low %v8017_v44, %v8020_v16  ;;  %v8874_v16 = vld [vmem:[#allocation2 + $0x34] sm:$0xf]  ;;  %v8942_v44 = vrot.slane %v8940_v1, 5  ;;  %v8873_v3 = vld [vmem:[#allocation2 + $0x30] sm:$0xf] }
 0x3f6   : > { %15027 = vmatprep.subr.bf16.mxu1 %v18166_v55  ;;  %v8994_v45 = vshll.u32 %v8874_v16, 16  ;;  %v8889_v39 = vld [vmem:[#allocation2 + $0x70] sm:$0xf] }
 0x3f8   : > { %14964 = vmatmul.mubr.bf16.gmra.mrb[16].mxu1 %v13692_v15  ;;  %v16012_v15 = vld [vmem:[#allocation2 + $0x54] sm:$0xff]  }
 0x3f9   : > { %14967 = vmatprep.mubr.bf16.mxu1 %v13693_v62  ;;  %v16016_v62 = vld [vmem:[#allocation2 + $0x78] sm:$0xff]  }
 0x400   : > { %14968 = vmatmul.mubr.bf16.gmra.mrb[20].mxu1 %v13694_v9  ;;  %v8915_v9 = vrot.slane %v8913_v20, 4 }
 0x401   : > { %14971 = vmatprep.mubr.bf16.mxu1 %v13695_v27  ;;  %v8866_v27 = vld [vmem:[#allocation2 + $0x14] sm:$0x1] }
 0x402   : > { %v8919_v25 = vor.u32 %v8918_v23, %v8915_v9  ;;  %v8932_v24 = vshll.u32 %v8866_v27, 16 }
 0x408   : > { %14972 = vmatmul.mubr.bf16.gmra.mrb[24].mxu1 %v13696_v17  ;;  %v8939_v17 = vrot.slane %v8937_v31, 4 }
 0x409   : > { %14975 = vmatprep.mubr.bf16.mxu1 %v13697_v37  ;;  %v8952_v37 = vrot.slane %v8950_v4, 4  ;;  %v16025_v4 = vld [vmem:[#allocation2 + $0xc0] sm:$0xff]  }
 0x410   : > { %14976 = vmatmul.mubr.bf16.gmra.mrb[28].mxu1 %v13698_v52  ;;  %v8998_v52 = vshrl.u32 %v8874_v16, 16  ;;  %v8882_v16 = vld [vmem:[#allocation2 + $0x54] sm:$0xf] }
 0x411   : > { %14995 = vmatprep.mubr.bf16.mxu1 %v16003_v7  ;;  %v16022_v7 = vld [vmem:[#allocation2 + $0xa8] sm:$0xff]  }
 0x418   : > { %14996 = vmatmul.mubr.bf16.vlgmr.msra.gmra.mrb[0].mxu1 %v16004_v6  ;;  %v8930_v6 = vrot.slane %v8929_v5, 4 }
 0x419   : > { %14999 = vmatprep.mubr.bf16.mxu1 %v16006_v51  ;;  %15028 = vmatpush3.bf16.msra.mxu1 %v18166_v55  ;;  %v16023_v55 = vld [vmem:[#allocation4 + $0x130] sm:$0xff]   ;;  %v8876_v51 = vld [vmem:[#allocation2 + $0x3c] sm:$0xf] }
 0x41a   : > { %15029 = vmatprep.subr.bf16.mxu1 %v16008_v63  ;;  %v9012_v42 = vshll.u32 %v8876_v51, 16 }
 0x41c   : > { %v9014_v1 = vrot.slane %v9012_v42, 5 }
 0x41d   : > { %15030 = vmatpush3.bf16.msra.mxu1 %v16008_v63  ;;  %v8956_v63 = vshll.u32 %v8869_v10, 16 }
 0x41e   : > { %15031 = vmatprep.subr.bf16.mxu1 %v16011_v30 }
 0x41f   : > { %v8958_v20 = vrot.slane %v8956_v63, 5  ;;  %v9060_v63 = vshll.u32 %v8882_v16, 16 }
 0x420   : > { %15000 = vmatmul.mubr.bf16.gmra.mrb[4].mxu1 %v16007_v38  ;;  %v8943_v38 = vor.u32 %v8942_v44, %v8939_v17  ;;  %v9042_v44 = vshll.u32 %v8880_v36, 16 }
 0x421   : > { %15003 = vmatprep.mubr.bf16.mxu1 %v16009_v29  ;;  %15032 = vmatpush3.bf16.msra.mxu1 %v16011_v30  ;;  %v16024_v30 = vld [vmem:[#allocation2 + $0xb4] sm:$0xff]   ;;  %v8872_v29 = vld [vmem:[#allocation2 + $0x2c] sm:$0x1] }
 0x422   : > { %15033 = vmatprep.subr.bf16.mxu1 %v16014_v34  ;;  %v8980_v32 = vshll.u32 %v8872_v29, 16  ;;  %v8944_v18 = vrot.slane %v8943_v38, 4 }
 0x424   : > { %v8982_v14 = vrot.slane %v8980_v32, 5  ;;  %v8886_v32 = vld [vmem:[#allocation2 + $0x64] sm:$0xf] }
 0x425   : > { %15034 = vmatpush3.bf16.msra.mxu1 %v16014_v34  ;;  %v8953_v34 = vor.u32 %v8952_v37, %v18204_v43  ;;  %v9046_v37 = vshrl.u32 %v8880_v36, 16 }
 0x426   : > { %15035 = vmatprep.subr.bf16.mxu1 %v16017_v19 }
 0x427   : > { %v8954_v26 = vrot.slane %v8953_v34, 4 }
 0x428   : > { %15004 = vmatmul.mubr.bf16.gmra.mrb[8].mxu1 %v16010_v28  ;;  %v8988_v28 = vshll.u32 %v8873_v3, 16 }
 0x429   : > { %15007 = vmatprep.mubr.bf16.mxu1 %v16012_v15  ;;  %15036 = vmatpush3.bf16.msra.mxu1 %v16017_v19  ;;  %v8985_v19 = vshrl.u32 %v8873_v3, 16  ;;  %v8934_v15 = vrot.slane %v8932_v24, 5  ;;  %v8878_v3 = vld [vmem:[#allocation2 + $0x44] sm:$0x1] }
 0x42a   : > { %15037 = vmatprep.subr.bf16.mxu1 %v16020_v35  ;;  %v8990_v13 = vrot.slane %v8988_v28, 5  ;;  %v18231_v28 = vrot.slane %v9042_v44, 5 }
 0x42b   : > { %v8935_v53 = vsel %vm16396_vm2, %v8930_v6, %v8934_v15  ;;  %v8987_v49 = vrot.slane %v8985_v19, 4  ;;  %v9057_v6 = vshrl.u32 %v8882_v16, 16  ;;  %v9028_v19 = vshll.u32 %v8878_v3, 16  ;;  %v16030_v3 = vld [vmem:[#allocation4 + $0x158] sm:$0xff]  }
 0x42d   : > { %15038 = vmatpush3.bf16.msra.mxu1 %v16020_v35  ;;  %v8920_v35 = vrot.slane %v8919_v25, 4  ;;  %v8949_v25 = vsel %vm16396_vm2, %v8944_v18, %v18204_v43  ;;  %v8991_v5 = vor.u32 %v8990_v13, %v8987_v49 }
 0x42e   : > { %15039 = vmatprep.subr.bf16.mxu1 %v16023_v55 }
 0x42f   : > { %v8925_v11 = vsel %vm16396_vm2, %v8920_v35, %v18201_v41  ;;  %v8959_v41 = vsel %vm16396_vm2, %v8954_v26, %v8958_v20  ;;  %v8885_v35 = vld [vmem:[#allocation2 + $0x60] sm:$0xf]  ;;  %v9062_v20 = vrot.slane %v9060_v63, 5 }
 0x430   : > { %15008 = vmatmul.mubr.bf16.gmra.mrb[12].mxu1 %v16013_v50  ;;  %v8977_v50 = vor.u32 %v8976_v8, %v18206_v47  ;;  %v13731_v22 = vcombine.low %v8925_v11, %v8935_v53  ;;  %v13732_v15 = vcombine.low %v8949_v25, %v8959_v41  ;;  %v9059_v53 = vrot.slane %v9057_v6, 4 }
 0x431   : > { %15011 = vmatprep.mubr.bf16.mxu1 %v16015_v48  ;;  %15040 = vmatpush3.bf16.msra.mxu1 %v16023_v55  ;;  %v8967_v55 = vor.u32 %v8966_v0, %v8963_v60  ;;  %v9000_v48 = vrot.slane %v8998_v52, 4  ;;  %v8883_v60 = vld [vmem:[#allocation2 + $0x58] sm:$0xf]  ;;  %v9035_v52 = vrot.slane %v9033_v33, 4  ;;  %v9081_v49 = vshrl.u32 %v8885_v35, 16 }
 0x432   : > { %15041 = vmatprep.subr.bf16.mxu1 %v16026_v2  ;;  %v8978_v58 = vrot.slane %v8977_v50, 4  ;;  %v9066_v38 = vshll.u32 %v8883_v60, 16  ;;  %v9070_v34 = vshrl.u32 %v8883_v60, 16  ;;  %v9084_v13 = vshll.u32 %v8885_v35, 16 }
 0x433   : > { %v9118_v33 = vshrl.u32 %v8889_v39, 16  ;;  %v9083_v41 = vrot.slane %v9081_v49, 4 }
 0x434   : > { %v8983_v43 = vsel %vm16396_vm2, %v8978_v58, %v8982_v14  ;;  %v18235_v18 = vrot.slane %v9066_v38, 5  ;;  %v9072_v26 = vrot.slane %v9070_v34, 4  ;;  %v9114_v14 = vshll.u32 %v8889_v39, 16 }
 0x435   : > { %15042 = vmatpush3.bf16.msra.mxu1 %v16026_v2  ;;  %v18210_v2 = vrot.slane %v8994_v45, 5 }
 0x436   : > { %15075 = vmatprep.subr.bf16.mxu1 %v18198_v56  ;;  %v9073_v25 = vor.u32 %v9072_v26, %v18235_v18 }
 0x437   : > { %v9001_v27 = vor.u32 %v9000_v48, %v18210_v2  ;;  %v8881_v48 = vld [vmem:[#allocation2 + $0x50] sm:$0x1] }
 0x438   : > { %15012 = vmatmul.mubr.bf16.gmra.mrb[16].mxu1 %v16016_v62  ;;  %v8877_v62 = vld [vmem:[#allocation2 + $0x40] sm:$0xf]  ;;  %v9052_v58 = vshll.u32 %v8881_v48, 16 }
 0x439   : > { %15015 = vmatprep.mubr.bf16.mxu1 %v16018_v40  ;;  %v9009_v40 = vshrl.u32 %v8876_v51, 16  ;;  %v9018_v9 = vshll.u32 %v8877_v62, 16  ;;  %v9022_v23 = vshrl.u32 %v8877_v62, 16  ;;  %v9002_v8 = vrot.slane %v9001_v27, 4  ;;  %v16028_v62 = vld [vmem:[#allocation4 + $0x148] sm:$0xff]  }
 0x43a   : > { %v8992_v51 = vrot.slane %v8991_v5, 4  ;;  %v9090_v27 = vshll.u32 %v8886_v32, 16  ;;  %v8892_v5 = vld [vmem:[#allocation2 + $0x7c] sm:$0xf] }
 0x43b   : > { %v9011_v31 = vrot.slane %v9009_v40, 4  ;;  %v18223_v10 = vrot.slane %v9018_v9, 5  ;;  %v9024_v17 = vrot.slane %v9022_v23, 4  ;;  %v9142_v6 = vshrl.u32 %v8892_v5, 16 }
 0x43c   : > { %v8997_v11 = vsel %vm16396_vm2, %v8992_v51, %v18210_v2  ;;  %v8884_v2 = vld [vmem:[#allocation2 + $0x5c] sm:$0x1] }
 0x43d   : > { %v9015_v45 = vor.u32 %v9014_v1, %v9011_v31  ;;  %v9025_v29 = vor.u32 %v9024_v17, %v18223_v10  ;;  %v9094_v31 = vshrl.u32 %v8886_v32, 16  ;;  %v8888_v1 = vld [vmem:[#allocation2 + $0x6c] sm:$0xf]  ;;  %v8887_v17 = vld [vmem:[#allocation2 + $0x68] sm:$0x1]  ;;  %v9076_v60 = vshll.u32 %v8884_v2, 16 }
 0x43e   : > { %v9105_v44 = vshrl.u32 %v8888_v1, 16  ;;  %v8894_v32 = vld [vmem:[#allocation2 + $0x84] sm:$0xf] }
 0x43f   : > { %v9016_v40 = vrot.slane %v9015_v45, 4  ;;  %v18250_v45 = vrot.slane %v9114_v14, 5 }
 0x440   : > { %15016 = vmatmul.mubr.bf16.gmra.mrb[20].mxu1 %v16019_v21  ;;  %v8968_v21 = vrot.slane %v8967_v55, 4 }
 0x441   : > { %15019 = vmatprep.mubr.bf16.mxu1 %v16021_v57  ;;  %v8875_v57 = vld [vmem:[#allocation2 + $0x38] sm:$0x1]  ;;  %v9021_v36 = vsel %vm16396_vm2, %v9016_v40, %v18223_v10  ;;  %v9054_v10 = vrot.slane %v9052_v58, 5 }
 0x442   : > { %v9004_v24 = vshll.u32 %v8875_v57, 16  ;;  %v8973_v0 = vsel %vm16396_vm2, %v8968_v21, %v18206_v47  ;;  %v9048_v47 = vrot.slane %v9046_v37, 4  ;;  %v9026_v21 = vrot.slane %v9025_v29, 4 }
 0x443   : > { %v13733_v55 = vcombine.low %v8973_v0, %v8983_v43  ;;  %v9030_v57 = vrot.slane %v9028_v19, 5  ;;  %v9108_v37 = vshll.u32 %v8888_v1, 16  ;;  %v18248_v0 = vrot.slane %v9090_v27, 5  ;;  %v8890_v19 = vld [vmem:[#allocation2 + $0x74] sm:$0x1] }
 0x444   : > { %v9049_v9 = vor.u32 %v9048_v47, %v18231_v28  ;;  %v9096_v43 = vrot.slane %v9094_v31, 4  ;;  %v9107_v47 = vrot.slane %v9105_v44, 4  ;;  %v9153_v31 = vshrl.u32 %v8894_v32, 16 }
 0x445   : > { %v9110_v35 = vrot.slane %v9108_v37, 5  ;;  %v9156_v1 = vshll.u32 %v8894_v32, 16 }
 0x446   : > { %v9050_v16 = vrot.slane %v9049_v9, 4  ;;  %v9097_v40 = vor.u32 %v9096_v43, %v18248_v0  ;;  %v9155_v44 = vrot.slane %v9153_v31, 4 }
 0x447   : > { %v9158_v37 = vrot.slane %v9156_v1, 5  ;;  %v8903_v1 = vld [vmem:[#allocation2 + $0xa8] sm:$0xf] }
 0x448   : > { %15020 = vmatmul.mubr.bf16.gmra.mrb[24].mxu1 %v16022_v7  ;;  %v9038_v7 = vrot.slane %v9036_v46, 5  ;;  %v9063_v46 = vor.u32 %v9062_v20, %v9059_v53  ;;  %v9055_v29 = vsel %vm16396_vm2, %v9050_v16, %v9054_v10  ;;  %v16031_v20 = vld [vmem:[#allocation4 + $0x160] sm:$0xff]   ;;  %v8901_v10 = vld [vmem:[#allocation2 + $0xa0] sm:$0xf] }
 0x449   : > { %15023 = vmatprep.mubr.bf16.mxu1 %v16024_v30  ;;  %v9006_v30 = vrot.slane %v9004_v24, 5  ;;  %v9031_v24 = vsel %vm16396_vm2, %v9026_v21, %v9030_v57  ;;  %v9111_v21 = vor.u32 %v9110_v35, %v9107_v47  ;;  %v9124_v57 = vshll.u32 %v8890_v19, 16 }
 0x44a   : > { %v9039_v42 = vor.u32 %v9038_v7, %v9035_v52  ;;  %v9120_v52 = vrot.slane %v9118_v33, 4  ;;  %v9138_v7 = vshll.u32 %v8892_v5, 16  ;;  %v13735_v63 = vcombine.low %v9021_v36, %v9031_v24  ;;  %v8898_v24 = vld [vmem:[#allocation2 + $0x94] sm:$0xf] }
 0x44b   : > { %v9007_v50 = vsel %vm16396_vm2, %v9002_v8, %v9006_v30  ;;  %v8891_v8 = vld [vmem:[#allocation2 + $0x78] sm:$0xf]  ;;  %v9064_v51 = vrot.slane %v9063_v46, 4  ;;  %v9074_v30 = vrot.slane %v9073_v25, 4  ;;  %v9098_v36 = vrot.slane %v9097_v40, 4 }
 0x44c   : > { %v13734_v23 = vcombine.low %v8997_v11, %v9007_v50  ;;  %v9129_v50 = vshrl.u32 %v8891_v8, 16  ;;  %v9132_v48 = vshll.u32 %v8891_v8, 16  ;;  %v18259_v53 = vrot.slane %v9138_v7, 5  ;;  %v8893_v11 = vld [vmem:[#allocation2 + $0x80] sm:$0x1]  ;;  %v16033_v7 = vld [vmem:[#allocation4 + $0x170] sm:$0xff]  }
 0x44d   : > { %v9069_v49 = vsel %vm16396_vm2, %v9064_v51, %v18235_v18  ;;  %v9148_v2 = vshll.u32 %v8893_v11, 16  ;;  %v16032_v18 = vld [vmem:[#allocation4 + $0x168] sm:$0xff]   ;;  %v8897_v46 = vld [vmem:[#allocation2 + $0x90] sm:$0xf]  ;;  %v9112_v25 = vrot.slane %v9111_v21, 4  ;;  %v9186_v51 = vshll.u32 %v8898_v24, 16 }
 0x44e   : > { %v9131_v58 = vrot.slane %v9129_v50, 4  ;;  %v9134_v27 = vrot.slane %v9132_v48, 5  ;;  %v9214_v19 = vshrl.u32 %v8901_v10, 16 }
 0x450   : > { %15024 = vmatmul.mubr.bf16.gmra.mrb[28].mxu1 %v16025_v4  ;;  %v9040_v4 = vrot.slane %v9039_v42, 4  ;;  %v9121_v42 = vor.u32 %v9120_v52, %v18250_v45  ;;  %v8896_v52 = vld [vmem:[#allocation2 + $0x8c] sm:$0x1] }
 0x451   : > { %15043 = vmatprep.mubr.bf16.mxu1 %v13731_v22  ;;  %v16029_v22 = vld [vmem:[#allocation4 + $0x150] sm:$0xff]   ;;  %v9172_v48 = vshll.u32 %v8896_v52, 16 }
 0x452   : > { %v9045_v34 = vsel %vm16396_vm2, %v9040_v4, %v18231_v28  ;;  %v9144_v28 = vrot.slane %v9142_v6, 4  ;;  %v9122_v4 = vrot.slane %v9121_v42, 4  ;;  %v9177_v6 = vshrl.u32 %v8897_v46, 16  ;;  %v16034_v42 = vld [vmem:[#allocation4 + $0x178] sm:$0xff]  }
 0x453   : > { %v13736_v26 = vcombine.low %v9045_v34, %v9055_v29  ;;  %v9210_v29 = vshll.u32 %v8901_v10, 16 }
 0x458   : > { %15044 = vmatmul.mubr.bf16.vlgmr.msra.gmra.mrb[0].mxu1 %v13732_v15  ;;  %v9078_v15 = vrot.slane %v9076_v60, 5 }
 0x459   : > { %15047 = vmatprep.mubr.bf16.mxu1 %v13733_v55  ;;  %15076 = vmatpush3.bf16.msra.mxu1 %v18198_v56  ;;  %v9086_v56 = vrot.slane %v9084_v13, 5  ;;  %v9100_v55 = vshll.u32 %v8887_v17, 16  ;;  %v9135_v17 = vor.u32 %v9134_v27, %v9131_v58  ;;  %v9174_v58 = vrot.slane %v9172_v48, 5  ;;  %v8908_v48 = vld [vmem:[#allocation2 + $0xbc] sm:$0x1] }
 0x45a   : > { %15077 = vmatprep.subr.bf16.mxu1 %v16028_v62  ;;  %v9079_v13 = vsel %vm16396_vm2, %v9074_v30, %v9078_v15  ;;  %v8900_v30 = vld [vmem:[#allocation2 + $0x9c] sm:$0xf] }
 0x45b   : > { %v9087_v38 = vor.u32 %v9086_v56, %v9083_v41  ;;  %v13737_v14 = vcombine.low %v9069_v49, %v9079_v13  ;;  %v9102_v33 = vrot.slane %v9100_v55, 5  ;;  %v9126_v41 = vrot.slane %v9124_v57, 5  ;;  %v8899_v57 = vld [vmem:[#allocation2 + $0x98] sm:$0x1] }
 0x45c   : > { %v9136_v15 = vrot.slane %v9135_v17, 4  ;;  %v9159_v55 = vor.u32 %v9158_v37, %v9155_v44  ;;  %v9204_v40 = vshll.u32 %v8900_v30, 16  ;;  %v18284_v49 = vrot.slane %v9210_v29, 5 }
 0x45d   : > { %15078 = vmatpush3.bf16.msra.mxu1 %v16028_v62  ;;  %v8895_v62 = vld [vmem:[#allocation2 + $0x88] sm:$0xf]  ;;  %v9088_v39 = vrot.slane %v9087_v38, 4  ;;  %v9103_v60 = vsel %vm16396_vm2, %v9098_v36, %v9102_v33  ;;  %v9127_v43 = vsel %vm16396_vm2, %v9122_v4, %v9126_v41  ;;  %v9117_v38 = vsel %vm16396_vm2, %v9112_v25, %v18250_v45  ;;  %v18289_v36 = vld [vmem:[#allocation4 + $0x180] sm:$0xff]   ;;  %v8906_v33 = vld [vmem:[#allocation2 + $0xb4] sm:$0xf] }
 0x45e   : > { %15079 = vmatprep.subr.bf16.mxu1 %v16029_v22  ;;  %v9162_v9 = vshll.u32 %v8895_v62, 16  ;;  %v13739_v35 = vcombine.low %v9117_v38, %v9127_v43  ;;  %v18282_v45 = vrot.slane %v9186_v51, 5  ;;  %v9216_v13 = vrot.slane %v9214_v19, 4 }
 0x45f   : > { %v9093_v16 = vsel %vm16396_vm2, %v9088_v39, %v18248_v0  ;;  %v9190_v0 = vshrl.u32 %v8898_v24, 16  ;;  %v8904_v39 = vld [vmem:[#allocation2 + $0xac] sm:$0xf]  ;;  %v9141_v11 = vsel %vm16396_vm2, %v9136_v15, %v18259_v53  ;;  %v9160_v21 = vrot.slane %v9159_v55, 4  ;;  %v8909_v15 = vld [vmem:[#allocation2 + $0xc0] sm:$0xf] }
 0x460   : > { %15048 = vmatmul.mubr.bf16.gmra.mrb[4].mxu1 %v13734_v23  ;;  %v9166_v23 = vshrl.u32 %v8895_v62, 16  ;;  %v18267_v56 = vrot.slane %v9162_v9, 5  ;;  %v13738_v47 = vcombine.low %v9093_v16, %v9103_v60  ;;  %v9201_v62 = vshrl.u32 %v8900_v30, 16  ;;  %v8907_v9 = vld [vmem:[#allocation2 + $0xb8] sm:$0xf] }
 0x461   : > { %15051 = vmatprep.mubr.bf16.mxu1 %v13735_v63  ;;  %15080 = vmatpush3.bf16.msra.mxu1 %v16029_v22  ;;  %v9145_v22 = vor.u32 %v9144_v28, %v18259_v53  ;;  %v9180_v63 = vshll.u32 %v8897_v46, 16  ;;  %v9179_v28 = vrot.slane %v9177_v6, 4  ;;  %v9192_v32 = vrot.slane %v9190_v0, 4  ;;  %v8905_v30 = vld [vmem:[#allocation2 + $0xb0] sm:$0x1] }
 0x462   : > { %15081 = vmatprep.subr.bf16.mxu1 %v16030_v3  ;;  %v9168_v5 = vrot.slane %v9166_v23, 4  ;;  %v9203_v27 = vrot.slane %v9201_v62, 4  ;;  %v9206_v31 = vrot.slane %v9204_v40, 5  ;;  %v9217_v46 = vor.u32 %v9216_v13, %v18284_v49 }
 0x463   : > { %v9146_v8 = vrot.slane %v9145_v22, 4  ;;  %v9193_v22 = vor.u32 %v9192_v32, %v18282_v45  ;;  %v9258_v25 = vshll.u32 %v8907_v9, 16  ;;  %v9262_v41 = vshrl.u32 %v8907_v9, 16 }
 0x464   : > { %v9169_v34 = vor.u32 %v9168_v5, %v18267_v56  ;;  %v9165_v5 = vsel %vm16396_vm2, %v9160_v21, %v18267_v56  ;;  %v9196_v24 = vshll.u32 %v8899_v57, 16  ;;  %v9225_v16 = vshrl.u32 %v8903_v1, 16  ;;  %v8910_v56 = vld [vmem:[#allocation2 + $0xc4] sm:$0xf] }
 0x465   : > { %15082 = vmatpush3.bf16.msra.mxu1 %v16030_v3  ;;  %v9150_v3 = vrot.slane %v9148_v2, 5  ;;  %v8902_v2 = vld [vmem:[#allocation2 + $0xa4] sm:$0x1]  ;;  %v9228_v17 = vshll.u32 %v8903_v1, 16  ;;  %v9207_v44 = vor.u32 %v9206_v31, %v9203_v27  ;;  %v9249_v10 = vshrl.u32 %v8906_v33, 16 }
 0x466   : > { %15083 = vmatprep.subr.bf16.mxu1 %v16031_v20  ;;  %v9220_v37 = vshll.u32 %v8902_v2, 16  ;;  %v9252_v60 = vshll.u32 %v8906_v33, 16  ;;  %v9218_v6 = vrot.slane %v9217_v46, 4  ;;  %v9264_v51 = vrot.slane %v9262_v41, 4 }
 0x467   : > { %v9151_v50 = vsel %vm16396_vm2, %v9146_v8, %v9150_v3  ;;  %v9194_v8 = vrot.slane %v9193_v22, 4  ;;  %v9198_v0 = vrot.slane %v9196_v24, 5  ;;  %v9227_v38 = vrot.slane %v9225_v16, 4 }
 0x468   : > { %15052 = vmatmul.mubr.bf16.gmra.mrb[8].mxu1 %v13736_v26  ;;  %v9170_v26 = vrot.slane %v9169_v34, 4  ;;  %v13740_v23 = vcombine.low %v9141_v11, %v9151_v50  ;;  %v9230_v34 = vrot.slane %v9228_v17, 5  ;;  %v9208_v29 = vrot.slane %v9207_v44, 4 }
 0x469   : > { %15055 = vmatprep.mubr.bf16.mxu1 %v13737_v14  ;;  %15084 = vmatpush3.bf16.msra.mxu1 %v16031_v20  ;;  %v9182_v20 = vrot.slane %v9180_v63, 5  ;;  %v9238_v14 = vshrl.u32 %v8904_v39, 16  ;;  %v9260_v63 = vrot.slane %v9258_v25, 5  ;;  %v9222_v19 = vrot.slane %v9220_v37, 5 }
 0x46a   : > { %15085 = vmatprep.subr.bf16.mxu1 %v16032_v18  ;;  %v9175_v53 = vsel %vm16396_vm2, %v9170_v26, %v9174_v58  ;;  %v9199_v55 = vsel %vm16396_vm2, %v9194_v8, %v9198_v0  ;;  %v9282_v62 = vshll.u32 %v8910_v56, 16  ;;  %v9286_v40 = vshrl.u32 %v8910_v56, 16  ;;  %v6025_v56 = vld [vmem:[#allocation2 + $0xcc] sm:$0x1] }
 0x46b   : > { %v9183_v4 = vor.u32 %v9182_v20, %v9179_v28  ;;  %v13741_v43 = vcombine.low %v9165_v5, %v9175_v53  ;;  %v9240_v52 = vrot.slane %v9238_v14, 4  ;;  %v9223_v28 = vsel %vm16396_vm2, %v9218_v6, %v9222_v19  ;;  %v8911_v53 = vld [vmem:[#allocation2 + $0xc8] sm:$0x1] }
 0x46c   : > { %v9265_v20 = vor.u32 %v9264_v51, %v9260_v63  ;;  %v9231_v32 = vor.u32 %v9230_v34, %v9227_v38  ;;  %v9244_v26 = vshll.u32 %v8905_v30, 16  ;;  %v9273_v13 = vshrl.u32 %v8909_v15, 16  ;;  %v9689_v51 = vld [vmem:[#allocation2 + $0x28] sm:$0xf] }
 0x46d   : > { %15086 = vmatpush3.bf16.msra.mxu1 %v16032_v18  ;;  %v9234_v18 = vshll.u32 %v8904_v39, 16  ;;  %v9276_v39 = vshll.u32 %v8909_v15, 16  ;;  %v9213_v21 = vsel %vm16396_vm2, %v9208_v29, %v18284_v49  ;;  %v9268_v9 = vshll.u32 %v8908_v48, 16  ;;  %v9687_v15 = vld [vmem:[#allocation2 + $0x20] sm:$0x1] }
 0x46e   : > { %15087 = vmatprep.subr.bf16.mxu1 %v16033_v7  ;;  %v9284_v27 = vrot.slane %v9282_v62, 5  ;;  %v9288_v31 = vrot.slane %v9286_v40, 4  ;;  %v9232_v1 = vrot.slane %v9231_v32, 4  ;;  %v9275_v22 = vrot.slane %v9273_v13, 4  ;;  %v9685_v48 = vld [vmem:[#allocation2 + $0x18] sm:$0xe] }
 0x46f   : > { %v9236_v3 = vrot.slane %v9234_v18, 5  ;;  %v9278_v2 = vrot.slane %v9276_v39, 5  ;;  %v9683_v18 = vld [vmem:[#allocation2 + $0x10] sm:$0xf]  ;;  %v9270_v33 = vrot.slane %v9268_v9, 5  ;;  %v9292_v16 = vshll.u32 %v8911_v53, 16 }
 0x470   : > { %15056 = vmatmul.mubr.bf16.gmra.mrb[12].mxu1 %v13738_v47  ;;  %v9251_v47 = vrot.slane %v9249_v10, 4  ;;  %v9289_v46 = vor.u32 %v9288_v31, %v9284_v27  ;;  %v9780_v41 = vrot.slane %v9683_v18, 5  ;;  %v9794_v29 = vrot.slane %v9689_v51, 5  ;;  %v9692_v40 = vld [vmem:[#allocation2 + $0x34] sm:$0xf]  ;;  %v16036_v31 = vld [vmem:[#allocation4 + $0x188] sm:$0xff]  }
 0x471   : > { %15059 = vmatprep.mubr.bf16.mxu1 %v13739_v35  ;;  %15088 = vmatpush3.bf16.msra.mxu1 %v16033_v7  ;;  %v9184_v7 = vrot.slane %v9183_v4, 4  ;;  %v9254_v35 = vrot.slane %v9252_v60, 5  ;;  %v9241_v50 = vor.u32 %v9240_v52, %v9236_v3  ;;  %v9246_v4 = vrot.slane %v9244_v26, 5  ;;  %v9684_v60 = vld [vmem:[#allocation2 + $0x14] sm:$0x1] }
 0x472   : > { %15089 = vmatprep.subr.bf16.mxu1 %v16034_v42  ;;  %v9237_v5 = vsel %vm16396_vm2, %v9232_v1, %v9236_v3  ;;  %v9279_v24 = vor.u32 %v9278_v2, %v9275_v22  ;;  %v9290_v10 = vrot.slane %v9289_v46, 4  ;;  %v9782_v8 = vrot.slane %v9780_v41, 4  ;;  %v9686_v52 = vld [vmem:[#allocation2 + $0x1c] sm:$0xf]  ;;  %v9691_v22 = vld [vmem:[#allocation2 + $0x30] sm:$0xe] }
 0x473   : > { %v9255_v57 = vor.u32 %v9254_v35, %v9251_v47  ;;  %v9242_v58 = vrot.slane %v9241_v50, 4  ;;  %v9294_v6 = vrot.slane %v9292_v16, 5  ;;  %v9783_v0 = vrot.slane %v9684_v60, 5  ;;  %v9690_v50 = vld [vmem:[#allocation2 + $0x2c] sm:$0x1]  ;;  %v16038_v60 = vld [vmem:[#allocation4 + $0x198] sm:$0xff]  }
 0x474   : > { %v6026_v3 = vsel %vm17641_vm8, 0, %v6025_v56  ;;  %v9796_v62 = vrot.slane %v9794_v29, 4  ;;  %v9797_v32 = vrot.slane %v9690_v50, 5  ;;  %v13756_v26 = vrot.slane %v9685_v48, 9  ;;  %v9698_v18 = vld [vmem:[#allocation2 + $0x4c] sm:$0xf] }
 0x475   : > { %15090 = vmatpush3.bf16.msra.mxu1 %v16034_v42  ;;  %v9189_v42 = vsel %vm16396_vm2, %v9184_v7, %v18282_v45  ;;  %v9266_v45 = vrot.slane %v9265_v20, 4  ;;  %v9256_v14 = vrot.slane %v9255_v57, 4  ;;  %v9247_v49 = vsel %vm16396_vm2, %v9242_v58, %v9246_v4  ;;  %6027 = vst [vmem:[#allocation2 + $0xcc] sm:$0x1] %v6026_v3  ;;  %v9695_v20 = vld [vmem:[#allocation2 + $0x40] sm:$0xf] }
 0x476   : > { %15123 = vmatprep.subr.bf16.mxu1 %v18289_v36  ;;  %v13742_v11 = vcombine.low %v9189_v42, %v9199_v55  ;;  %v13744_v17 = vcombine.low %v9237_v5, %v9247_v49  ;;  %v9280_v7 = vrot.slane %v9279_v24, 4  ;;  %v9295_v30 = vsel %vm16396_vm2, %v9290_v10, %v9294_v6  ;;  %v9696_v4 = vld [vmem:[#allocation2 + $0x44] sm:$0x1]  ;;  %v9701_v53 = vld [vmem:[#allocation2 + $0x58] sm:$0xf]  ;;  %v16037_v46 = vld [vmem:[#allocation4 + $0x190] sm:$0xff]  }
 0x477   : > { %v9271_v25 = vsel %vm16396_vm2, %v9266_v45, %v9270_v33  ;;  %v9261_v44 = vsel %vm16396_vm2, %v9256_v14, %v9260_v63  ;;  %v9787_v63 = vrot.slane %v9686_v52, 5  ;;  %v9784_v34 = vsel %vm16623_vm5, %v9782_v8, %v9783_v0  ;;  %v9694_v33 = vld [vmem:[#allocation2 + $0x3c] sm:$0xe]  ;;  %v9699_v10 = vld [vmem:[#allocation2 + $0x50] sm:$0x1]  ;;  %v16040_v48 = vld [vmem:[#allocation4 + $0x1a8] sm:$0xff]  }
 0x478   : > { %15060 = vmatmul.mubr.bf16.gmra.mrb[16].mxu1 %v13740_v23  ;;  %v13743_v23 = vcombine.low %v9213_v21, %v9223_v28  ;;  %v13745_v37 = vcombine.low %v9261_v44, %v9271_v25  ;;  %v9285_v19 = vsel %vm16396_vm2, %v9280_v7, %v9284_v27  ;;  %v9790_v42 = vrot.slane %v9687_v15, 5  ;;  %v9688_v28 = vld [vmem:[#allocation2 + $0x24] sm:$0xe]  ;;  %v9693_v27 = vld [vmem:[#allocation2 + $0x38] sm:$0x1] }
 0x479   : > { %15063 = vmatprep.mubr.bf16.mxu1 %v13741_v43  ;;  %v9682_v43 = vld [vmem:[#allocation2 + $0xc] sm:$0xe]  ;;  %v13746_v47 = vcombine.low %v9285_v19, %v9295_v30  ;;  %v9789_v55 = vrot.slane %v9787_v63, 4  ;;  %v9801_v39 = vrot.slane %v9692_v40, 5  ;;  %v9798_v21 = vsel %vm16623_vm5, %v9796_v62, %v9797_v32  ;;  %v9702_v52 = vld [vmem:[#allocation2 + $0x5c] sm:$0x1] }
 0x47a   : > { %v13755_v38 = vrot.slane %v9682_v43, 9  ;;  %v9808_v57 = vrot.slane %v9695_v20, 5  ;;  %v9788_v9 = vsel %vm16623_vm5, %v13756_v26, %v9787_v63  ;;  %v9804_v14 = vrot.slane %v9693_v27, 5  ;;  %v9697_v7 = vld [vmem:[#allocation2 + $0x48] sm:$0xe]  ;;  %v16039_v63 = vld [vmem:[#allocation4 + $0x1a0] sm:$0xff]  }
 0x47b   : > { %v9791_v13 = vsel %vm16623_vm5, %v9789_v55, %v9790_v42  ;;  %v9803_v1 = vrot.slane %v9801_v39, 4  ;;  %v9811_v49 = vrot.slane %v9696_v4, 5  ;;  %v13758_v25 = vrot.slane %v9691_v22, 9  ;;  %v9704_v51 = vld [vmem:[#allocation2 + $0x64] sm:$0xf] }
 0x47c   : > { %v9781_v35 = vsel %vm16623_vm5, %v13755_v38, %v9780_v41  ;;  %v9810_v2 = vrot.slane %v9808_v57, 4  ;;  %v9815_v5 = vrot.slane %v9698_v18, 5  ;;  %v13759_v24 = vrot.slane %v9694_v33, 9  ;;  %v9700_v0 = vld [vmem:[#allocation2 + $0x54] sm:$0xe] }
 0x47d   : > { %v13771_v59 = vcombine.low %v9781_v35, %v9784_v34  ;;  %v9805_v41 = vsel %vm16623_vm5, %v9803_v1, %v9804_v14  ;;  %v9802_v44 = vsel %vm16623_vm5, %v13758_v25, %v9801_v39  ;;  %v9818_v56 = vrot.slane %v9699_v10, 5  ;;  %v9707_v3 = vld [vmem:[#allocation2 + $0x70] sm:$0xf]  ;;  %v9705_v50 = vld [vmem:[#allocation2 + $0x68] sm:$0x1] }
 0x47e   : > { %v9812_v16 = vsel %vm16623_vm5, %v9810_v2, %v9811_v49  ;;  %v9817_v8 = vrot.slane %v9815_v5, 4  ;;  %v9825_v30 = vrot.slane %v9702_v52, 5  ;;  %v13760_v38 = vrot.slane %v9697_v7, 9  ;;  %v9708_v42 = vld [vmem:[#allocation2 + $0x74] sm:$0x1] }
 0x47f   : > { %v13761_v19 = vrot.slane %v9700_v0, 9  ;;  %v9836_v35 = vrot.slane %v9707_v3, 5  ;;  %v9710_v32 = vld [vmem:[#allocation2 + $0x7c] sm:$0xf]  ;;  %v9832_v26 = vrot.slane %v9705_v50, 5  ;;  %v16042_v2 = vld [vmem:[#allocation4 + $0x1b8] sm:$0xff]  }
 0x480   : > { %15064 = vmatmul.mubr.bf16.gmra.mrb[20].mxu1 %v13742_v11  ;;  %v13757_v11 = vrot.slane %v9688_v28, 9  ;;  %v9819_v34 = vsel %vm16623_vm5, %v9817_v8, %v9818_v56  ;;  %v9816_v15 = vsel %vm16623_vm5, %v13760_v38, %v9815_v5  ;;  %v9703_v28 = vld [vmem:[#allocation2 + $0x60] sm:$0xe]  ;;  %v9713_v39 = vld [vmem:[#allocation2 + $0x88] sm:$0xf] }
 0x481   : > { %15067 = vmatprep.mubr.bf16.mxu1 %v13743_v23  ;;  %v13772_v23 = vcombine.low %v9788_v9, %v9791_v13  ;;  %v9838_v20 = vrot.slane %v9836_v35, 4  ;;  %v9706_v13 = vld [vmem:[#allocation2 + $0x6c] sm:$0xe]  ;;  %v9711_v22 = vld [vmem:[#allocation2 + $0x80] sm:$0x1] }
 0x482   : > { %v9795_v58 = vsel %vm16623_vm5, %v13757_v11, %v9794_v29  ;;  %v9829_v29 = vrot.slane %v9704_v51, 5  ;;  %v9839_v11 = vrot.slane %v9708_v42, 5  ;;  %v9714_v33 = vld [vmem:[#allocation2 + $0x8c] sm:$0x1]  ;;  %v9846_v25 = vrot.slane %v9711_v22, 5 }
 0x483   : > { %v13773_v45 = vcombine.low %v9795_v58, %v9798_v21  ;;  %v16041_v21 = vld [vmem:[#allocation4 + $0x1b0] sm:$0xff]   ;;  %v13763_v58 = vrot.slane %v9706_v13, 9  ;;  %v9719_v5 = vld [vmem:[#allocation2 + $0xa0] sm:$0xf]  ;;  %v9717_v7 = vld [vmem:[#allocation2 + $0x98] sm:$0x1] }
 0x484   : > { %v9831_v40 = vrot.slane %v9829_v29, 4  ;;  %v9840_v27 = vsel %vm16623_vm5, %v9838_v20, %v9839_v11  ;;  %v9720_v56 = vld [vmem:[#allocation2 + $0xa4] sm:$0x1]  ;;  %v9715_v0 = vld [vmem:[#allocation2 + $0x90] sm:$0xe] }
 0x485   : > { %v9837_v4 = vsel %vm16623_vm5, %v13763_v58, %v9836_v35  ;;  %v9718_v38 = vld [vmem:[#allocation2 + $0x9c] sm:$0xe]  ;;  %v9726_v20 = vld [vmem:[#allocation2 + $0xbc] sm:$0x1]  ;;  %v9728_v13 = vld [vmem:[#allocation2 + $0xc4] sm:$0xf] }
 0x486   : > { %v9833_v9 = vsel %vm16623_vm5, %v9831_v40, %v9832_v26  ;;  %v13779_v18 = vcombine.low %v9837_v4, %v9840_v27  ;;  %v9723_v40 = vld [vmem:[#allocation2 + $0xb0] sm:$0x1]  ;;  %v9724_v11 = vld [vmem:[#allocation2 + $0xb4] sm:$0xe]  ;;  %v9729_v4 = vld [vmem:[#allocation2 + $0xc8] sm:$0x1] }
 0x487   : > { %v13769_v58 = vrot.slane %v9724_v11, 9 }
 0x488   : > { %15068 = vmatmul.mubr.bf16.gmra.mrb[24].mxu1 %v13744_v17  ;;  %v9822_v17 = vrot.slane %v9701_v53, 5  ;;  %v9709_v53 = vld [vmem:[#allocation2 + $0x78] sm:$0xe] }
 0x489   : > { %15071 = vmatprep.mubr.bf16.mxu1 %v13745_v37  ;;  %v9809_v37 = vsel %vm16623_vm5, %v13759_v24, %v9808_v57  ;;  %v13762_v57 = vrot.slane %v9703_v28, 9  ;;  %v9853_v24 = vrot.slane %v9714_v33, 5  ;;  %v6081_v33 = vld [vmem:[#allocation2 + $0xd4] sm:$0x1] }
 0x48a   : > { %v13775_v43 = vcombine.low %v9809_v37, %v9812_v16  ;;  %v9824_v6 = vrot.slane %v9822_v17, 4  ;;  %v9823_v55 = vsel %vm16623_vm5, %v13761_v19, %v9822_v17  ;;  %v18360_v16 = vld [vmem:[#allocation4 + $0x1c0] sm:$0xff]   ;;  %v13764_v17 = vrot.slane %v9709_v53, 9 }
 0x48b   : > { %v13766_v19 = vrot.slane %v9715_v0, 9  ;;  %v6082_v53 = vsel %vm17648_vm10, 0, %v6081_v33  ;;  %v10728_v0 = vld [vmem:[#allocation2 + $0x1c] sm:$0xf] }
 0x48c   : > { %6083 = vst [vmem:[#allocation2 + $0xd4] sm:$0x1] %v6082_v53  ;;  %v16062_v53 = vld [vmem:[#allocation2 + $0xb4] sm:$0xff]  }
 0x490   : > { %15072 = vmatmul.mubr.bf16.gmra.mrb[28].mxu1 %v13746_v47  ;;  %v9826_v47 = vsel %vm16623_vm5, %v9824_v6, %v9825_v30  ;;  %v9722_v30 = vld [vmem:[#allocation2 + $0xac] sm:$0xf] }
 0x491   : > { %15091 = vmatprep.mubr.bf16.mxu1 %v13771_v59  ;;  %v13776_v59 = vcombine.low %v9816_v15, %v9819_v34  ;;  %v13777_v62 = vcombine.low %v9823_v55, %v9826_v47  ;;  %v9725_v34 = vld [vmem:[#allocation2 + $0xb8] sm:$0xf]  ;;  %v9871_v35 = vrot.slane %v9722_v30, 5  ;;  %v13767_v15 = vrot.slane %v9718_v38, 9  ;;  %v16058_v30 = vld [vmem:[#allocation2 + $0x90] sm:$0xff]  }
 0x492   : > { %v9878_v55 = vrot.slane %v9725_v34, 5  ;;  %v10785_v38 = vshll.u32 %v10728_v0, 16  ;;  %v10789_v34 = vshrl.u32 %v10728_v0, 16  ;;  %v10738_v0 = vld [vmem:[#allocation2 + $0x44] sm:$0x1] }
 0x493   : > { %v9873_v28 = vrot.slane %v9871_v35, 4 }
 0x494   : > { %v9880_v26 = vrot.slane %v9878_v55, 4 }
 0x498   : > { %15092 = vmatmul.mubr.bf16.vlgmr.msra.gmra.mrb[0].mxu1 %v13772_v23  ;;  %v9843_v23 = vrot.slane %v9710_v32, 5  ;;  %v9721_v32 = vld [vmem:[#allocation2 + $0xa8] sm:$0xe] }
 0x499   : > { %15095 = vmatprep.mubr.bf16.mxu1 %v13773_v45  ;;  %15124 = vmatpush3.bf16.msra.mxu1 %v18289_v36  ;;  %v13774_v36 = vcombine.low %v9802_v44, %v9805_v41  ;;  %v9830_v45 = vsel %vm16623_vm5, %v13762_v57, %v9829_v29  ;;  %v9712_v41 = vld [vmem:[#allocation2 + $0x84] sm:$0xe]  ;;  %v9867_v29 = vrot.slane %v9720_v56, 5  ;;  %v13768_v57 = vrot.slane %v9721_v32, 9  ;;  %v18394_v56 = vld [vmem:[#allocation4 + $0x200] sm:$0xff]  }
 0x49a   : > { %15125 = vmatprep.subr.bf16.mxu1 %v16036_v31  ;;  %v13778_v1 = vcombine.low %v9830_v45, %v9833_v9  ;;  %v9845_v14 = vrot.slane %v9843_v23, 4  ;;  %v13765_v37 = vrot.slane %v9712_v41, 9  ;;  %v10734_v32 = vld [vmem:[#allocation2 + $0x34] sm:$0xf] }
 0x49c   : > { %v9847_v44 = vsel %vm16623_vm5, %v9845_v14, %v9846_v25  ;;  %v9888_v14 = vrot.slane %v9729_v4, 5 }
 0x49d   : > { %15126 = vmatpush3.bf16.msra.mxu1 %v16036_v31  ;;  %v9850_v31 = vrot.slane %v9713_v39, 5  ;;  %v9874_v39 = vrot.slane %v9723_v40, 5  ;;  %v10733_v40 = vld [vmem:[#allocation2 + $0x30] sm:$0xf] }
 0x49e   : > { %15127 = vmatprep.subr.bf16.mxu1 %v16037_v46 }
 0x49f   : > { %v9852_v49 = vrot.slane %v9850_v31, 4  ;;  %v9851_v52 = vsel %vm16623_vm5, %v13765_v37, %v9850_v31  ;;  %v9875_v9 = vsel %vm16623_vm5, %v9873_v28, %v9874_v39  ;;  %v9872_v31 = vsel %vm16623_vm5, %v13768_v57, %v9871_v35  ;;  %v16054_v37 = vld [vmem:[#allocation4 + $0x1d8] sm:$0xff]  }
 0x4a0   : > { %15096 = vmatmul.mubr.bf16.gmra.mrb[4].mxu1 %v13774_v36  ;;  %v13784_v45 = vcombine.low %v9872_v31, %v9875_v9  ;;  %v10837_v31 = vshrl.u32 %v10734_v32, 16 }
 0x4a1   : > { %15099 = vmatprep.mubr.bf16.mxu1 %v13775_v43  ;;  %15128 = vmatpush3.bf16.msra.mxu1 %v16037_v46  ;;  %v9716_v46 = vld [vmem:[#allocation2 + $0x94] sm:$0xf]  ;;  %v9854_v10 = vsel %vm16623_vm5, %v9852_v49, %v9853_v24  ;;  %v9844_v43 = vsel %vm16623_vm5, %v13764_v17, %v9843_v23  ;;  %v9885_v23 = vrot.slane %v9728_v13, 5  ;;  %v16044_v24 = vld [vmem:[#allocation2 + $0x24] sm:$0xff]  }
 0x4a2   : > { %15129 = vmatprep.subr.bf16.mxu1 %v16038_v60  ;;  %v9857_v36 = vrot.slane %v9716_v46, 5  ;;  %v13780_v8 = vcombine.low %v9844_v43, %v9847_v44  ;;  %v13781_v6 = vcombine.low %v9851_v52, %v9854_v10  ;;  %v16048_v17 = vld [vmem:[#allocation4 + $0x1c8] sm:$0xff]   ;;  %v16046_v44 = vld [vmem:[#allocation2 + $0x30] sm:$0xff]   ;;  %v16049_v10 = vld [vmem:[#allocation2 + $0x48] sm:$0xff]  }
 0x4a3   : > { %v16050_v43 = vld [vmem:[#allocation2 + $0x54] sm:$0xff]   ;;  %v16052_v52 = vld [vmem:[#allocation2 + $0x60] sm:$0xff]  }
 0x4a4   : > { %v9859_v51 = vrot.slane %v9857_v36, 4  ;;  %v9858_v50 = vsel %vm16623_vm5, %v13766_v19, %v9857_v36  ;;  %v16047_v36 = vld [vmem:[#allocation2 + $0x3c] sm:$0xff]  }
 0x4a5   : > { %15130 = vmatpush3.bf16.msra.mxu1 %v16038_v60  ;;  %v9864_v60 = vrot.slane %v9719_v5, 5  ;;  %v16043_v5 = vld [vmem:[#allocation2 + $0x18] sm:$0xff]  }
 0x4a6   : > { %15131 = vmatprep.subr.bf16.mxu1 %v16039_v63 }
 0x4a7   : > { %v9866_v3 = vrot.slane %v9864_v60, 4 }
 0x4a8   : > { %15100 = vmatmul.mubr.bf16.gmra.mrb[8].mxu1 %v13776_v59 }
 0x4a9   : > { %15103 = vmatprep.mubr.bf16.mxu1 %v13777_v62  ;;  %15132 = vmatpush3.bf16.msra.mxu1 %v16039_v63  ;;  %v9860_v63 = vrot.slane %v9717_v7, 5  ;;  %v9868_v59 = vsel %vm16623_vm5, %v9866_v3, %v9867_v29  ;;  %v9865_v62 = vsel %vm16623_vm5, %v13767_v15, %v9864_v60  ;;  %v16057_v60 = vld [vmem:[#allocation4 + $0x1e0] sm:$0xff]   ;;  %v16053_v7 = vld [vmem:[#allocation2 + $0x6c] sm:$0xff]   ;;  %v16056_v3 = vld [vmem:[#allocation2 + $0x84] sm:$0xff]   ;;  %v18397_v15 = vrot.slane %v10785_v38, 5 }
 0x4aa   : > { %15133 = vmatprep.subr.bf16.mxu1 %v16040_v48  ;;  %v13783_v42 = vcombine.low %v9865_v62, %v9868_v59  ;;  %v10731_v29 = vld [vmem:[#allocation2 + $0x28] sm:$0xf]  ;;  %v10791_v59 = vrot.slane %v10789_v34, 4  ;;  %v16059_v62 = vld [vmem:[#allocation2 + $0x9c] sm:$0xff]  }
 0x4ab   : > { %v9861_v47 = vsel %vm16623_vm5, %v9859_v51, %v9860_v63  ;;  %v16055_v51 = vld [vmem:[#allocation2 + $0x78] sm:$0xff]  }
 0x4ac   : > { %v10727_v63 = vld [vmem:[#allocation2 + $0x18] sm:$0xf]  ;;  %v10792_v13 = vor.u32 %v10791_v59, %v18397_v15  ;;  %v16065_v59 = vld [vmem:[#allocation2 + $0xcc] sm:$0xff]  }
 0x4ad   : > { %15134 = vmatpush3.bf16.msra.mxu1 %v16040_v48  ;;  %v13782_v48 = vcombine.low %v9858_v50, %v9861_v47  ;;  %v10776_v19 = vshrl.u32 %v10727_v63, 16  ;;  %v10729_v47 = vld [vmem:[#allocation2 + $0x20] sm:$0x1]  ;;  %v10779_v35 = vshll.u32 %v10727_v63, 16  ;;  %v10809_v50 = vshll.u32 %v10731_v29, 16 }
 0x4ae   : > { %15135 = vmatprep.subr.bf16.mxu1 %v16041_v21 }
 0x4af   : > { %v10778_v28 = vrot.slane %v10776_v19, 4  ;;  %v18400_v57 = vrot.slane %v10809_v50, 5 }
 0x4b0   : > { %15104 = vmatmul.mubr.bf16.gmra.mrb[12].mxu1 %v13778_v1  ;;  %v9879_v1 = vsel %vm16623_vm5, %v13769_v58, %v9878_v55  ;;  %v10730_v55 = vld [vmem:[#allocation2 + $0x24] sm:$0xf]  ;;  %v10827_v58 = vshll.u32 %v10733_v40, 16 }
 0x4b1   : > { %15107 = vmatprep.mubr.bf16.mxu1 %v13779_v18  ;;  %15136 = vmatpush3.bf16.msra.mxu1 %v16041_v21  ;;  %v9881_v21 = vrot.slane %v9726_v20, 5  ;;  %v9727_v18 = vld [vmem:[#allocation2 + $0xc0] sm:$0xe]  ;;  %v10795_v20 = vshll.u32 %v10729_v47, 16  ;;  %v10800_v39 = vshrl.u32 %v10730_v55, 16  ;;  %v10803_v11 = vshll.u32 %v10730_v55, 16 }
 0x4b2   : > { %15137 = vmatprep.subr.bf16.mxu1 %v16042_v2  ;;  %v13770_v49 = vrot.slane %v9727_v18, 9  ;;  %v10732_v18 = vld [vmem:[#allocation2 + $0x2c] sm:$0x1] }
 0x4b3   : > { %v9882_v27 = vsel %vm16623_vm5, %v9880_v26, %v9881_v21  ;;  %v10781_v26 = vrot.slane %v10779_v35, 5  ;;  %v10737_v21 = vld [vmem:[#allocation2 + $0x40] sm:$0xf]  ;;  %v10805_v33 = vrot.slane %v10803_v11, 5 }
 0x4b4   : > { %v13785_v22 = vcombine.low %v9879_v1, %v9882_v27  ;;  %v9886_v25 = vsel %vm16623_vm5, %v13770_v49, %v9885_v23  ;;  %v10833_v27 = vshll.u32 %v10734_v32, 16  ;;  %v10857_v1 = vshll.u32 %v10737_v21, 16 }
 0x4b5   : > { %15138 = vmatpush3.bf16.msra.mxu1 %v16042_v2  ;;  %v9887_v2 = vrot.slane %v9885_v23, 4  ;;  %v10824_v23 = vshrl.u32 %v10733_v40, 16  ;;  %v10861_v4 = vshrl.u32 %v10737_v21, 16  ;;  %v10797_v49 = vrot.slane %v10795_v20, 5  ;;  %v10742_v40 = vld [vmem:[#allocation2 + $0x54] sm:$0xf] }
 0x4b6   : > { %15171 = vmatprep.subr.bf16.mxu1 %v18360_v16 }
 0x4b7   : > { %v9889_v46 = vsel %vm16623_vm5, %v9887_v2, %v9888_v14  ;;  %v10793_v2 = vrot.slane %v10792_v13, 4  ;;  %v10802_v14 = vrot.slane %v10800_v39, 4 }
 0x4b8   : > { %15108 = vmatmul.mubr.bf16.gmra.mrb[16].mxu1 %v13780_v8  ;;  %v13786_v41 = vcombine.low %v9886_v25, %v9889_v46  ;;  %v16060_v8 = vld [vmem:[#allocation4 + $0x1e8] sm:$0xff]   ;;  %v10735_v25 = vld [vmem:[#allocation2 + $0x38] sm:$0x1] }
 0x4b9   : > { %15111 = vmatprep.mubr.bf16.mxu1 %v13781_v6  ;;  %v16066_v6 = vld [vmem:[#allocation4 + $0x1f8] sm:$0xff]  }
 0x4c0   : > { %15112 = vmatmul.mubr.bf16.gmra.mrb[20].mxu1 %v13782_v48  ;;  %v10813_v48 = vshrl.u32 %v10731_v29, 16 }
 0x4c1   : > { %15115 = vmatprep.mubr.bf16.mxu1 %v13783_v42  ;;  %v16061_v42 = vld [vmem:[#allocation2 + $0xa8] sm:$0xff]  }
 0x4c2   : > { %v10815_v9 = vrot.slane %v10813_v48, 4 }
 0x4c4   : > { %v10816_v46 = vor.u32 %v10815_v9, %v18400_v57  ;;  %v10746_v9 = vld [vmem:[#allocation2 + $0x64] sm:$0xf] }
 0x4c8   : > { %15116 = vmatmul.mubr.bf16.gmra.mrb[24].mxu1 %v13784_v45  ;;  %v10736_v45 = vld [vmem:[#allocation2 + $0x3c] sm:$0xf] }
 0x4c9   : > { %15119 = vmatprep.mubr.bf16.mxu1 %v13785_v22  ;;  %v10782_v22 = vor.u32 %v10781_v26, %v10778_v28  ;;  %v10743_v26 = vld [vmem:[#allocation2 + $0x58] sm:$0xf] }
 0x4d0   : > { %15120 = vmatmul.mubr.bf16.gmra.mrb[28].mxu1 %v13786_v41  ;;  %v10826_v41 = vrot.slane %v10824_v23, 4 }
 0x4d1   : > { %15139 = vmatprep.mubr.bf16.mxu1 %v16043_v5  ;;  %v10829_v5 = vrot.slane %v10827_v58, 5 }
 0x4d3   : > { %v10830_v63 = vor.u32 %v10829_v5, %v10826_v41 }
 0x4d5   : > { %v10831_v39 = vrot.slane %v10830_v63, 4 }
 0x4d8   : > { %15140 = vmatmul.mubr.bf16.vlgmr.msra.gmra.mrb[0].mxu1 %v16044_v24  ;;  %v18403_v24 = vrot.slane %v10833_v27, 5  ;;  %v10896_v27 = vshrl.u32 %v10742_v40, 16 }
 0x4d9   : > { %15143 = vmatprep.mubr.bf16.mxu1 %v16046_v44  ;;  %15172 = vmatpush3.bf16.msra.mxu1 %v18360_v16  ;;  %v16063_v16 = vld [vmem:[#allocation4 + $0x1f0] sm:$0xff]   ;;  %v10848_v44 = vshrl.u32 %v10736_v45, 16 }
 0x4da   : > { %15173 = vmatprep.subr.bf16.mxu1 %v16048_v17 }
 0x4db   : > { %v10850_v34 = vrot.slane %v10848_v44, 4  ;;  %v10898_v44 = vrot.slane %v10896_v27, 4 }
 0x4dd   : > { %15174 = vmatpush3.bf16.msra.mxu1 %v16048_v17  ;;  %v10839_v17 = vrot.slane %v10837_v31, 4 }
 0x4de   : > { %15175 = vmatprep.subr.bf16.mxu1 %v16051_v54 }
 0x4df   : > { %v10840_v38 = vor.u32 %v10839_v17, %v18403_v24 }
 0x4e0   : > { %15144 = vmatmul.mubr.bf16.gmra.mrb[4].mxu1 %v16047_v36  ;;  %v10740_v36 = vld [vmem:[#allocation2 + $0x4c] sm:$0xf] }
 0x4e1   : > { %15147 = vmatprep.mubr.bf16.mxu1 %v16049_v10  ;;  %15176 = vmatpush3.bf16.msra.mxu1 %v16051_v54  ;;  %v10851_v54 = vshll.u32 %v10736_v45, 16  ;;  %v18405_v10 = vrot.slane %v10857_v1, 5  ;;  %v10841_v11 = vrot.slane %v10840_v38, 4  ;;  %v10741_v1 = vld [vmem:[#allocation2 + $0x50] sm:$0x1] }
 0x4e2   : > { %15177 = vmatprep.subr.bf16.mxu1 %v16054_v37  ;;  %v10891_v17 = vshll.u32 %v10741_v1, 16  ;;  %v10755_v1 = vld [vmem:[#allocation2 + $0x88] sm:$0xf] }
 0x4e3   : > { %v10853_v29 = vrot.slane %v10851_v54, 5  ;;  %v10749_v54 = vld [vmem:[#allocation2 + $0x70] sm:$0xf] }
 0x4e4   : > { %v10957_v63 = vshrl.u32 %v10749_v54, 16 }
 0x4e5   : > { %15178 = vmatpush3.bf16.msra.mxu1 %v16054_v37  ;;  %v16064_v37 = vld [vmem:[#allocation2 + $0xc0] sm:$0xff]   ;;  %v10854_v21 = vor.u32 %v10853_v29, %v10850_v34  ;;  %v10893_v34 = vrot.slane %v10891_v17, 5 }
 0x4e6   : > { %15179 = vmatprep.subr.bf16.mxu1 %v16057_v60 }
 0x4e8   : > { %15148 = vmatmul.mubr.bf16.gmra.mrb[8].mxu1 %v16050_v43  ;;  %v10783_v43 = vrot.slane %v10782_v22, 4  ;;  %v10905_v22 = vshll.u32 %v10743_v26, 16 }
 0x4e9   : > { %15151 = vmatprep.mubr.bf16.mxu1 %v16052_v52  ;;  %15180 = vmatpush3.bf16.msra.mxu1 %v16057_v60  ;;  %v10863_v60 = vrot.slane %v10861_v4, 4  ;;  %v10806_v52 = vor.u32 %v10805_v33, %v10802_v14  ;;  %v10899_v4 = vshll.u32 %v10742_v40, 16  ;;  %v10745_v14 = vld [vmem:[#allocation2 + $0x60] sm:$0xf]  ;;  %v10929_v33 = vshll.u32 %v10746_v9, 16 }
 0x4ea   : > { %15181 = vmatprep.subr.bf16.mxu1 %v16060_v8  ;;  %v10788_v55 = vsel %vm16396_vm2, %v10783_v43, %v18397_v15  ;;  %v10923_v43 = vshll.u32 %v10745_v14, 16 }
 0x4eb   : > { %v10864_v19 = vor.u32 %v10863_v60, %v18405_v10  ;;  %v10807_v50 = vrot.slane %v10806_v52, 4  ;;  %v10920_v60 = vshrl.u32 %v10745_v14, 16  ;;  %v10754_v14 = vld [vmem:[#allocation2 + $0x84] sm:$0xf] }
 0x4ec   : > { %v10925_v40 = vrot.slane %v10923_v43, 5 }
 0x4ed   : > { %15182 = vmatpush3.bf16.msra.mxu1 %v16060_v8  ;;  %v10798_v8 = vsel %vm16396_vm2, %v10793_v2, %v10797_v49  ;;  %v10865_v23 = vrot.slane %v10864_v19, 4  ;;  %v10812_v31 = vsel %vm16396_vm2, %v10807_v50, %v18400_v57  ;;  %v10855_v57 = vrot.slane %v10854_v21, 4  ;;  %v10747_v50 = vld [vmem:[#allocation2 + $0x68] sm:$0x1] }
 0x4ee   : > { %15183 = vmatprep.subr.bf16.mxu1 %v16063_v16 }
 0x4f0   : > { %15152 = vmatmul.mubr.bf16.gmra.mrb[12].mxu1 %v16053_v7  ;;  %v10739_v7 = vld [vmem:[#allocation2 + $0x48] sm:$0xf] }
 0x4f1   : > { %15155 = vmatprep.mubr.bf16.mxu1 %v16055_v51  ;;  %15184 = vmatpush3.bf16.msra.mxu1 %v16063_v16  ;;  %v10819_v16 = vshll.u32 %v10732_v18, 16  ;;  %v10843_v51 = vshll.u32 %v10735_v25, 16  ;;  %v10872_v47 = vshrl.u32 %v10739_v7, 16  ;;  %v10875_v35 = vshll.u32 %v10739_v7, 16 }
 0x4f2   : > { %15185 = vmatprep.subr.bf16.mxu1 %v16066_v6  ;;  %v10909_v18 = vshrl.u32 %v10743_v26, 16  ;;  %v18431_v7 = vrot.slane %v10929_v33, 5  ;;  %v16069_v26 = vld [vmem:[#allocation4 + $0x210] sm:$0xff]  }
 0x4f3   : > { %v10821_v48 = vrot.slane %v10819_v16, 5  ;;  %v10845_v28 = vrot.slane %v10843_v51, 5  ;;  %v10874_v58 = vrot.slane %v10872_v47, 4  ;;  %v10877_v15 = vrot.slane %v10875_v35, 5  ;;  %v10744_v16 = vld [vmem:[#allocation2 + $0x5c] sm:$0x1] }
 0x4f4   : > { %v10751_v47 = vld [vmem:[#allocation2 + $0x78] sm:$0xf] }
 0x4f5   : > { %15186 = vmatpush3.bf16.msra.mxu1 %v16066_v6  ;;  %v10817_v6 = vrot.slane %v10816_v46, 4  ;;  %v10836_v46 = vsel %vm16396_vm2, %v10831_v39, %v18403_v24  ;;  %v10846_v25 = vsel %vm16396_vm2, %v10841_v11, %v10845_v28  ;;  %v10878_v5 = vor.u32 %v10877_v15, %v10874_v58  ;;  %v10750_v28 = vld [vmem:[#allocation2 + $0x74] sm:$0x1] }
 0x4f6   : > { %15219 = vmatprep.subr.bf16.mxu1 %v18394_v56  ;;  %v10911_v24 = vrot.slane %v10909_v18, 4  ;;  %v13821_v51 = vcombine.low %v10836_v46, %v10846_v25  ;;  %v10959_v39 = vrot.slane %v10957_v63, 4  ;;  %v10968_v11 = vshrl.u32 %v10751_v47, 16  ;;  %v10756_v63 = vld [vmem:[#allocation2 + $0x8c] sm:$0x1] }
 0x4f7   : > { %v10822_v13 = vsel %vm16396_vm2, %v10817_v6, %v10821_v48  ;;  %v10879_v38 = vrot.slane %v10878_v5, 4  ;;  %v10922_v48 = vrot.slane %v10920_v60, 4  ;;  %v10971_v21 = vshll.u32 %v10751_v47, 16  ;;  %v10758_v60 = vld [vmem:[#allocation2 + $0x94] sm:$0xf] }
 0x4f8   : > { %15156 = vmatmul.mubr.bf16.gmra.mrb[16].mxu1 %v16056_v3  ;;  %v10881_v3 = vshll.u32 %v10740_v36, 16  ;;  %v13820_v49 = vcombine.low %v10812_v31, %v10822_v13  ;;  %v10963_v18 = vshll.u32 %v10750_v28, 16  ;;  %v11005_v5 = vshrl.u32 %v10755_v1, 16 }
 0x4f9   : > { %15159 = vmatprep.mubr.bf16.mxu1 %v16058_v30  ;;  %v10885_v30 = vshrl.u32 %v10740_v36, 16  ;;  %v10901_v36 = vrot.slane %v10899_v4, 5  ;;  %v10973_v46 = vrot.slane %v10971_v21, 5  ;;  %v11011_v28 = vshll.u32 %v10756_v63, 16 }
 0x4fa   : > { %v18414_v20 = vrot.slane %v10881_v3, 5  ;;  %v16068_v3 = vld [vmem:[#allocation4 + $0x208] sm:$0xff]  }
 0x4fb   : > { %v10887_v32 = vrot.slane %v10885_v30, 4  ;;  %v10953_v30 = vshll.u32 %v10749_v54, 16  ;;  %v10992_v54 = vshrl.u32 %v10754_v14, 16 }
 0x4fd   : > { %v10888_v2 = vor.u32 %v10887_v32, %v18414_v20  ;;  %v10752_v32 = vld [vmem:[#allocation2 + $0x7c] sm:$0xf]  ;;  %v18441_v13 = vrot.slane %v10953_v30, 5  ;;  %v10757_v30 = vld [vmem:[#allocation2 + $0x90] sm:$0xf] }
 0x4fe   : > { %v10977_v31 = vshll.u32 %v10752_v32, 16 }
 0x4ff   : > { %v10889_v52 = vrot.slane %v10888_v2, 4  ;;  %v10926_v2 = vor.u32 %v10925_v40, %v10922_v48  ;;  %v11016_v48 = vshrl.u32 %v10757_v30, 16 }
 0x500   : > { %15160 = vmatmul.mubr.bf16.gmra.mrb[20].mxu1 %v16059_v62  ;;  %v10867_v62 = vshll.u32 %v10738_v0, 16  ;;  %v10860_v0 = vsel %vm16396_vm2, %v10855_v57, %v18405_v10  ;;  %v18447_v17 = vrot.slane %v10977_v31, 5 }
 0x501   : > { %15163 = vmatprep.mubr.bf16.mxu1 %v16061_v42  ;;  %v13819_v42 = vcombine.low %v10788_v55, %v10798_v8  ;;  %v10748_v8 = vld [vmem:[#allocation2 + $0x6c] sm:$0xf]  ;;  %v10915_v55 = vshll.u32 %v10744_v16, 16  ;;  %v10894_v10 = vsel %vm16396_vm2, %v10889_v52, %v10893_v34  ;;  %v10927_v52 = vrot.slane %v10926_v2, 4  ;;  %v10753_v16 = vld [vmem:[#allocation2 + $0x80] sm:$0x1] }
 0x502   : > { %v10869_v45 = vrot.slane %v10867_v62, 5  ;;  %v10944_v29 = vshrl.u32 %v10748_v8, 16  ;;  %v10947_v19 = vshll.u32 %v10748_v8, 16  ;;  %v11007_v34 = vrot.slane %v11005_v5, 4  ;;  %v10759_v2 = vld [vmem:[#allocation2 + $0x98] sm:$0x1] }
 0x503   : > { %v10917_v27 = vrot.slane %v10915_v55, 5 }
 0x504   : > { %v10870_v41 = vsel %vm16396_vm2, %v10865_v23, %v10869_v45  ;;  %v10946_v23 = vrot.slane %v10944_v29, 4  ;;  %v10949_v58 = vrot.slane %v10947_v19, 5  ;;  %v10981_v45 = vshrl.u32 %v10752_v32, 16  ;;  %v10760_v32 = vld [vmem:[#allocation2 + $0x9c] sm:$0xf] }
 0x505   : > { %v13822_v35 = vcombine.low %v10860_v0, %v10870_v41  ;;  %v11001_v41 = vshll.u32 %v10755_v1, 16  ;;  %v11029_v29 = vshrl.u32 %v10758_v60, 16  ;;  %v11040_v31 = vshrl.u32 %v10760_v32, 16  ;;  %v10764_v1 = vld [vmem:[#allocation2 + $0xac] sm:$0xf] }
 0x506   : > { %v10950_v57 = vor.u32 %v10949_v58, %v10946_v23  ;;  %v11077_v5 = vshrl.u32 %v10764_v1, 16 }
 0x508   : > { %15164 = vmatmul.mubr.bf16.gmra.mrb[24].mxu1 %v16062_v53  ;;  %v10933_v53 = vshrl.u32 %v10746_v9, 16  ;;  %v10939_v9 = vshll.u32 %v10747_v50, 16  ;;  %v10951_v19 = vrot.slane %v10950_v57, 4  ;;  %v10932_v50 = vsel %vm16396_vm2, %v10927_v52, %v18431_v7 }
 0x509   : > { %15167 = vmatprep.mubr.bf16.mxu1 %v16064_v37  ;;  %v18429_v37 = vrot.slane %v10905_v22, 5  ;;  %v11079_v63 = vrot.slane %v11077_v5, 4 }
 0x50a   : > { %v10935_v6 = vrot.slane %v10933_v53, 4  ;;  %v10960_v53 = vor.u32 %v10959_v39, %v18441_v13  ;;  %v10941_v25 = vrot.slane %v10939_v9, 5  ;;  %v10761_v9 = vld [vmem:[#allocation2 + $0xa0] sm:$0xf] }
 0x50b   : > { %v10912_v62 = vor.u32 %v10911_v24, %v18429_v37 }
 0x50d   : > { %v10913_v22 = vrot.slane %v10912_v62, 4 }
 0x50f   : > { %v10918_v8 = vsel %vm16396_vm2, %v10913_v22, %v10917_v27 }
 0x510   : > { %15168 = vmatmul.mubr.bf16.gmra.mrb[28].mxu1 %v16065_v59  ;;  %v10902_v59 = vor.u32 %v10901_v36, %v10898_v44  ;;  %v10983_v44 = vrot.slane %v10981_v45, 4  ;;  %v10995_v36 = vshll.u32 %v10754_v14, 16  ;;  %v11043_v45 = vshll.u32 %v10760_v32, 16  ;;  %v10769_v32 = vld [vmem:[#allocation2 + $0xc0] sm:$0xf] }
 0x511   : > { %15187 = vmatprep.mubr.bf16.mxu1 %v13819_v42  ;;  %v10936_v42 = vor.u32 %v10935_v6, %v18431_v7  ;;  %v10961_v6 = vrot.slane %v10960_v53, 4  ;;  %v10956_v7 = vsel %vm16396_vm2, %v10951_v19, %v18441_v13  ;;  %v11053_v14 = vshrl.u32 %v10761_v9, 16 }
 0x512   : > { %v10903_v15 = vrot.slane %v10902_v59, 4  ;;  %v10984_v47 = vor.u32 %v10983_v44, %v18447_v17  ;;  %v10997_v59 = vrot.slane %v10995_v36, 5  ;;  %v10762_v36 = vld [vmem:[#allocation2 + $0xa4] sm:$0x1] }
 0x513   : > { %v10937_v33 = vrot.slane %v10936_v42, 4  ;;  %v10987_v42 = vshll.u32 %v10753_v16, 16 }
 0x514   : > { %v10908_v43 = vsel %vm16396_vm2, %v10903_v15, %v18429_v37  ;;  %v11025_v37 = vshll.u32 %v10758_v60, 16  ;;  %v10985_v23 = vrot.slane %v10984_v47, 4  ;;  %v11018_v15 = vrot.slane %v11016_v48, 4  ;;  %v10765_v48 = vld [vmem:[#allocation2 + $0xb0] sm:$0x1] }
 0x515   : > { %v10942_v24 = vsel %vm16396_vm2, %v10937_v33, %v10941_v25  ;;  %v13824_v55 = vcombine.low %v10908_v43, %v10918_v8  ;;  %v10989_v22 = vrot.slane %v10987_v42, 5  ;;  %v16073_v33 = vld [vmem:[#allocation4 + $0x230] sm:$0xff]   ;;  %v11042_v60 = vrot.slane %v11040_v31, 4 }
 0x516   : > { %v13825_v62 = vcombine.low %v10932_v50, %v10942_v24  ;;  %v18465_v21 = vrot.slane %v11025_v37, 5  ;;  %v11045_v43 = vrot.slane %v11043_v45, 5  ;;  %v16074_v24 = vld [vmem:[#allocation4 + $0x238] sm:$0xff]   ;;  %v10767_v37 = vld [vmem:[#allocation2 + $0xb8] sm:$0xf]  ;;  %v11112_v31 = vshrl.u32 %v10769_v32, 16 }
 0x517   : > { %v10990_v25 = vsel %vm16396_vm2, %v10985_v23, %v10989_v22  ;;  %v11097_v42 = vshll.u32 %v10767_v37, 16  ;;  %v11115_v45 = vshll.u32 %v10769_v32, 16 }
 0x518   : > { %15188 = vmatmul.mubr.bf16.vlgmr.msra.gmra.mrb[0].mxu1 %v13820_v49  ;;  %v16070_v49 = vld [vmem:[#allocation4 + $0x218] sm:$0xff]   ;;  %v11046_v47 = vor.u32 %v11045_v43, %v11042_v60 }
 0x519   : > { %15191 = vmatprep.mubr.bf16.mxu1 %v13821_v51  ;;  %15220 = vmatpush3.bf16.msra.mxu1 %v18394_v56  ;;  %v10884_v56 = vsel %vm16396_vm2, %v10879_v38, %v18414_v20  ;;  %v10970_v20 = vrot.slane %v10968_v11, 4  ;;  %v10965_v51 = vrot.slane %v10963_v18, 5  ;;  %v18456_v38 = vrot.slane %v11001_v41, 5 }
 0x51a   : > { %15221 = vmatprep.subr.bf16.mxu1 %v16068_v3  ;;  %v13823_v4 = vcombine.low %v10884_v56, %v10894_v10  ;;  %v11019_v10 = vshll.u32 %v10757_v30, 16  ;;  %v11031_v56 = vrot.slane %v11029_v29, 4  ;;  %v11049_v18 = vshll.u32 %v10761_v9, 16 }
 0x51b   : > { %v10974_v0 = vor.u32 %v10973_v46, %v10970_v20  ;;  %v10966_v40 = vsel %vm16396_vm2, %v10961_v6, %v10965_v51  ;;  %v11008_v11 = vor.u32 %v11007_v34, %v18456_v38  ;;  %v10763_v46 = vld [vmem:[#allocation2 + $0xa8] sm:$0xf]  ;;  %v11073_v41 = vshll.u32 %v10764_v1, 16  ;;  %v10766_v34 = vld [vmem:[#allocation2 + $0xb4] sm:$0xf] }
 0x51c   : > { %v11021_v27 = vrot.slane %v11019_v10, 5  ;;  %v11032_v20 = vor.u32 %v11031_v56, %v18465_v21  ;;  %v18476_v8 = vrot.slane %v11049_v18, 5  ;;  %v11064_v52 = vshrl.u32 %v10763_v46, 16  ;;  %v10772_v1 = vld [vmem:[#allocation2 + $0xcc] sm:$0xf] }
 0x51d   : > { %15222 = vmatpush3.bf16.msra.mxu1 %v16068_v3  ;;  %v16071_v3 = vld [vmem:[#allocation4 + $0x220] sm:$0xff]   ;;  %v10975_v39 = vrot.slane %v10974_v0, 4  ;;  %v11009_v53 = vrot.slane %v11008_v11, 4  ;;  %v11067_v16 = vshll.u32 %v10763_v46, 16  ;;  %v18483_v30 = vrot.slane %v11073_v41, 5 }
 0x51e   : > { %15223 = vmatprep.subr.bf16.mxu1 %v16069_v26  ;;  %v11022_v44 = vor.u32 %v11021_v27, %v11018_v15  ;;  %v11033_v0 = vrot.slane %v11032_v20, 4  ;;  %v11066_v10 = vrot.slane %v11064_v52, 4  ;;  %v11099_v18 = vrot.slane %v11097_v42, 5 }
 0x51f   : > { %v10980_v13 = vsel %vm16396_vm2, %v10975_v39, %v18447_v17  ;;  %v11055_v17 = vrot.slane %v11053_v14, 4  ;;  %v11091_v39 = vshll.u32 %v10766_v34, 16  ;;  %v11136_v20 = vshrl.u32 %v10772_v1, 16 }
 0x520   : > { %15192 = vmatmul.mubr.bf16.gmra.mrb[4].mxu1 %v13822_v35  ;;  %v10994_v35 = vrot.slane %v10992_v54, 4  ;;  %v11035_v54 = vshll.u32 %v10759_v2, 16  ;;  %v13827_v6 = vcombine.low %v10980_v13, %v10990_v25  ;;  %v11023_v29 = vrot.slane %v11022_v44, 4 }
 0x521   : > { %15195 = vmatprep.mubr.bf16.mxu1 %v13823_v4  ;;  %15224 = vmatpush3.bf16.msra.mxu1 %v16069_v26  ;;  %v16072_v26 = vld [vmem:[#allocation4 + $0x228] sm:$0xff]   ;;  %v13826_v4 = vcombine.low %v10956_v7, %v10966_v40  ;;  %v11056_v50 = vor.u32 %v11055_v17, %v18476_v8  ;;  %v11088_v40 = vshrl.u32 %v10766_v34, 16  ;;  %v11047_v7 = vrot.slane %v11046_v47, 4  ;;  %v10771_v17 = vld [vmem:[#allocation2 + $0xc8] sm:$0x1] }
 0x522   : > { %15225 = vmatprep.subr.bf16.mxu1 %v16070_v49  ;;  %v10998_v58 = vor.u32 %v10997_v59, %v10994_v35  ;;  %v11037_v19 = vrot.slane %v11035_v54, 5  ;;  %v11059_v35 = vshll.u32 %v10762_v36, 16  ;;  %v10770_v59 = vld [vmem:[#allocation2 + $0xc4] sm:$0xf]  ;;  %v11028_v9 = vsel %vm16396_vm2, %v11023_v29, %v18465_v21  ;;  %v10768_v21 = vld [vmem:[#allocation2 + $0xbc] sm:$0x1] }
 0x523   : > { %v11121_v11 = vshll.u32 %v10770_v59, 16  ;;  %v11125_v56 = vshrl.u32 %v10770_v59, 16  ;;  %v11057_v22 = vrot.slane %v11056_v50, 4  ;;  %v11090_v2 = vrot.slane %v11088_v40, 4 }
 0x524   : > { %v10999_v57 = vrot.slane %v10998_v58, 4  ;;  %v11061_v23 = vrot.slane %v11059_v35, 5  ;;  %v11083_v58 = vshll.u32 %v10765_v48, 16  ;;  %v11093_v13 = vrot.slane %v11091_v39, 5 }
 0x525   : > { %15226 = vmatpush3.bf16.msra.mxu1 %v16070_v49  ;;  %v11013_v49 = vrot.slane %v11011_v28, 5  ;;  %v11101_v28 = vshrl.u32 %v10767_v37, 16  ;;  %v11139_v46 = vshll.u32 %v10772_v1, 16  ;;  %v11114_v44 = vrot.slane %v11112_v31, 4  ;;  %v11545_v1 = vld [vmem:[#allocation2 + $0x18] sm:$0xe] }
 0x526   : > { %15227 = vmatprep.subr.bf16.mxu1 %v16071_v3  ;;  %v11085_v5 = vrot.slane %v11083_v58, 5  ;;  %v11117_v54 = vrot.slane %v11115_v45, 5  ;;  %v11052_v36 = vsel %vm16396_vm2, %v11047_v7, %v18476_v8  ;;  %v11062_v60 = vsel %vm16396_vm2, %v11057_v22, %v11061_v23  ;;  %v11547_v58 = vld [vmem:[#allocation2 + $0x20] sm:$0x1] }
 0x527   : > { %v11014_v51 = vsel %vm16396_vm2, %v11009_v53, %v11013_v49  ;;  %v11103_v14 = vrot.slane %v11101_v28, 4  ;;  %v11123_v53 = vrot.slane %v11121_v11, 5  ;;  %v11127_v49 = vrot.slane %v11125_v56, 4 }
 0x528   : > { %15196 = vmatmul.mubr.bf16.gmra.mrb[8].mxu1 %v13824_v55  ;;  %v13830_v34 = vcombine.low %v11052_v36, %v11062_v60  ;;  %v11118_v37 = vor.u32 %v11117_v54, %v11114_v44  ;;  %v11131_v29 = vshll.u32 %v10771_v17, 16  ;;  %v11646_v22 = vrot.slane %v11547_v58, 5  ;;  %v11551_v44 = vld [vmem:[#allocation2 + $0x30] sm:$0xe]  ;;  %v11558_v54 = vld [vmem:[#allocation2 + $0x4c] sm:$0xf] }
 0x529   : > { %15199 = vmatprep.mubr.bf16.mxu1 %v13825_v62  ;;  %15228 = vmatpush3.bf16.msra.mxu1 %v16071_v3  ;;  %v11004_v3 = vsel %vm16396_vm2, %v10999_v57, %v18456_v38  ;;  %v11069_v62 = vrot.slane %v11067_v16, 5  ;;  %v11038_v38 = vsel %vm16396_vm2, %v11033_v0, %v11037_v19  ;;  %v11104_v43 = vor.u32 %v11103_v14, %v11099_v18  ;;  %v10774_v19 = vld [vmem:[#allocation2 + $0xd4] sm:$0x1]  ;;  %v11563_v58 = vld [vmem:[#allocation2 + $0x60] sm:$0xe] }
 0x52a   : > { %15229 = vmatprep.subr.bf16.mxu1 %v16072_v26  ;;  %v13828_v55 = vcombine.low %v11004_v3, %v11014_v51  ;;  %v13829_v15 = vcombine.low %v11028_v9, %v11038_v38  ;;  %v11094_v16 = vor.u32 %v11093_v13, %v11090_v2  ;;  %v11138_v51 = vrot.slane %v11136_v20, 4  ;;  %v11546_v38 = vld [vmem:[#allocation2 + $0x1c] sm:$0xf] }
 0x52b   : > { %v11070_v27 = vor.u32 %v11069_v62, %v11066_v10  ;;  %v11141_v0 = vrot.slane %v11139_v46, 5  ;;  %v11105_v35 = vrot.slane %v11104_v43, 4  ;;  %v11155_v62 = vshll.u32 %v10774_v19, 16  ;;  %v11553_v46 = vld [vmem:[#allocation2 + $0x38] sm:$0x1] }
 0x52c   : > { %v11095_v50 = vrot.slane %v11094_v16, 4  ;;  %v11119_v40 = vrot.slane %v11118_v37, 4  ;;  %v11133_v42 = vrot.slane %v11131_v29, 5  ;;  %v11643_v32 = vrot.slane %v11546_v38, 5  ;;  %v11554_v37 = vld [vmem:[#allocation2 + $0x3c] sm:$0xe] }
 0x52d   : > { %15230 = vmatpush3.bf16.msra.mxu1 %v16072_v26  ;;  %v11080_v26 = vor.u32 %v11079_v63, %v18483_v30  ;;  %v11071_v41 = vrot.slane %v11070_v27, 4  ;;  %v11142_v48 = vor.u32 %v11141_v0, %v11138_v51  ;;  %v11157_v56 = vrot.slane %v11155_v62, 5  ;;  %v11549_v27 = vld [vmem:[#allocation2 + $0x28] sm:$0xf]  ;;  %v11561_v19 = vld [vmem:[#allocation2 + $0x58] sm:$0xf] }
 0x52e   : > { %15231 = vmatprep.subr.bf16.mxu1 %v16073_v33  ;;  %v11124_v7 = vsel %vm16396_vm2, %v11119_v40, %v11123_v53  ;;  %v11650_v2 = vrot.slane %v11549_v27, 5  ;;  %v13843_v14 = vrot.slane %v11545_v1, 9  ;;  %v11660_v36 = vrot.slane %v11553_v46, 5 }
 0x52f   : > { %v11076_v8 = vsel %vm16396_vm2, %v11071_v41, %v18483_v30  ;;  %v11143_v39 = vrot.slane %v11142_v48, 4  ;;  %v11555_v41 = vld [vmem:[#allocation2 + $0x40] sm:$0xf] }
 0x530   : > { %15200 = vmatmul.mubr.bf16.gmra.mrb[12].mxu1 %v13826_v4  ;;  %v10773_v4 = vld [vmem:[#allocation2 + $0xd0] sm:$0xf]  ;;  %v11652_v20 = vrot.slane %v11650_v2, 4  ;;  %v11664_v17 = vrot.slane %v11555_v41, 5  ;;  %v11569_v41 = vld [vmem:[#allocation2 + $0x78] sm:$0xe] }
 0x531   : > { %15203 = vmatprep.mubr.bf16.mxu1 %v13827_v6  ;;  %15232 = vmatpush3.bf16.msra.mxu1 %v16073_v33  ;;  %v11081_v33 = vrot.slane %v11080_v26, 4  ;;  %v11145_v25 = vshll.u32 %v10773_v4, 16  ;;  %v11149_v57 = vshrl.u32 %v10773_v4, 16  ;;  %v11128_v6 = vor.u32 %v11127_v49, %v11123_v53  ;;  %v11552_v4 = vld [vmem:[#allocation2 + $0x34] sm:$0xf] }
 0x532   : > { %15233 = vmatprep.subr.bf16.mxu1 %v16074_v24  ;;  %v11100_v26 = vsel %vm16396_vm2, %v11095_v50, %v11099_v18  ;;  %v11657_v13 = vrot.slane %v11552_v4, 5  ;;  %v11644_v53 = vsel %vm16623_vm5, %v13843_v14, %v11643_v32  ;;  %v11550_v49 = vld [vmem:[#allocation2 + $0x2c] sm:$0x1]  ;;  %v13846_v50 = vrot.slane %v11554_v37, 9  ;;  %v11579_v37 = vld [vmem:[#allocation2 + $0xa0] sm:$0xf] }
 0x533   : > { %v11086_v52 = vsel %vm16396_vm2, %v11081_v33, %v11085_v5  ;;  %v11147_v3 = vrot.slane %v11145_v25, 5  ;;  %v11151_v63 = vrot.slane %v11149_v57, 4  ;;  %v11548_v25 = vld [vmem:[#allocation2 + $0x24] sm:$0xe]  ;;  %v11653_v5 = vrot.slane %v11550_v49, 5 }
 0x534   : > { %v13831_v47 = vcombine.low %v11076_v8, %v11086_v52  ;;  %v11659_v57 = vrot.slane %v11657_v13, 4  ;;  %v13844_v60 = vrot.slane %v11548_v25, 9  ;;  %v13845_v52 = vrot.slane %v11551_v44, 9  ;;  %v11559_v8 = vld [vmem:[#allocation2 + $0x50] sm:$0x1] }
 0x535   : > { %15234 = vmatpush3.bf16.msra.mxu1 %v16074_v24  ;;  %v11107_v24 = vshll.u32 %v10768_v21, 16  ;;  %v11152_v10 = vor.u32 %v11151_v63, %v11147_v3  ;;  %v11148_v31 = vsel %vm16396_vm2, %v11143_v39, %v11147_v3  ;;  %v11654_v43 = vsel %vm16623_vm5, %v11652_v20, %v11653_v5  ;;  %v11556_v3 = vld [vmem:[#allocation2 + $0x44] sm:$0x1]  ;;  %v11566_v20 = vld [vmem:[#allocation2 + $0x6c] sm:$0xe] }
 0x536   : > { %v11661_v16 = vsel %vm16623_vm5, %v11659_v57, %v11660_v36  ;;  %v11658_v0 = vsel %vm16623_vm5, %v13845_v52, %v11657_v13  ;;  %v13849_v4 = vrot.slane %v11563_v58, 9  ;;  %v11568_v13 = vld [vmem:[#allocation2 + $0x74] sm:$0x1]  ;;  %v11573_v25 = vld [vmem:[#allocation2 + $0x88] sm:$0xf] }
 0x537   : > { %v11109_v59 = vrot.slane %v11107_v24, 5  ;;  %v11153_v11 = vrot.slane %v11152_v10, 4  ;;  %v11671_v24 = vrot.slane %v11558_v54, 5  ;;  %v13861_v63 = vcombine.low %v11658_v0, %v11661_v16  ;;  %v11576_v5 = vld [vmem:[#allocation2 + $0x94] sm:$0xf] }
 0x538   : > { %15204 = vmatmul.mubr.bf16.gmra.mrb[16].mxu1 %v13828_v55  ;;  %v11129_v55 = vrot.slane %v11128_v6, 4  ;;  %v11651_v6 = vsel %vm16623_vm5, %v13844_v60, %v11650_v2  ;;  %v11678_v10 = vrot.slane %v11561_v19, 5  ;;  %v11695_v57 = vrot.slane %v11568_v13, 5  ;;  %v11575_v19 = vld [vmem:[#allocation2 + $0x90] sm:$0xe] }
 0x539   : > { %15207 = vmatprep.mubr.bf16.mxu1 %v13829_v15  ;;  %v11110_v28 = vsel %vm16396_vm2, %v11105_v35, %v11109_v59  ;;  %v11645_v15 = vrot.slane %v11643_v32, 4  ;;  %v11158_v45 = vsel %vm16396_vm2, %v11153_v11, %v11157_v56  ;;  %v13860_v51 = vcombine.low %v11651_v6, %v11654_v43  ;;  %v11557_v35 = vld [vmem:[#allocation2 + $0x48] sm:$0xe]  ;;  %v11564_v59 = vld [vmem:[#allocation2 + $0x64] sm:$0xf] }
 0x53a   : > { %v11134_v30 = vsel %vm16396_vm2, %v11129_v55, %v11133_v42  ;;  %v13832_v9 = vcombine.low %v11100_v26, %v11110_v28  ;;  %v13834_v18 = vcombine.low %v11148_v31, %v11158_v45  ;;  %v11673_v29 = vrot.slane %v11671_v24, 4  ;;  %v11562_v32 = vld [vmem:[#allocation2 + $0x5c] sm:$0x1]  ;;  %v11565_v11 = vld [vmem:[#allocation2 + $0x68] sm:$0x1] }
 0x53b   : > { %v13833_v23 = vcombine.low %v11124_v7, %v11134_v30  ;;  %v11647_v33 = vsel %vm16623_vm5, %v11645_v15, %v11646_v22  ;;  %v11674_v55 = vrot.slane %v11559_v8, 5  ;;  %v13847_v62 = vrot.slane %v11557_v35, 9  ;;  %v11560_v56 = vld [vmem:[#allocation2 + $0x54] sm:$0xe]  ;;  %v11567_v7 = vld [vmem:[#allocation2 + $0x70] sm:$0xf] }
 0x53c   : > { %v13859_v21 = vcombine.low %v11644_v53, %v11647_v33  ;;  %v11685_v40 = vrot.slane %v11564_v59, 5  ;;  %v11665_v42 = vsel %vm16623_vm5, %v13846_v50, %v11664_v17  ;;  %v11680_v39 = vrot.slane %v11678_v10, 4  ;;  %v11570_v15 = vld [vmem:[#allocation2 + $0x7c] sm:$0xf] }
 0x53d   : > { %v11675_v38 = vsel %vm16623_vm5, %v11673_v29, %v11674_v55  ;;  %v11672_v30 = vsel %vm16623_vm5, %v13847_v62, %v11671_v24  ;;  %v11688_v27 = vrot.slane %v11565_v11, 5  ;;  %v13848_v31 = vrot.slane %v11560_v56, 9  ;;  %v11585_v56 = vld [vmem:[#allocation2 + $0xb8] sm:$0xf] }
 0x53e   : > { %v13863_v26 = vcombine.low %v11672_v30, %v11675_v38  ;;  %v11692_v1 = vrot.slane %v11567_v7, 5  ;;  %v11699_v2 = vrot.slane %v11570_v15, 5  ;;  %v11686_v33 = vsel %vm16623_vm5, %v13849_v4, %v11685_v40  ;;  %v11581_v7 = vld [vmem:[#allocation2 + $0xa8] sm:$0xe] }
 0x53f   : > { %v13850_v54 = vrot.slane %v11566_v20, 9  ;;  %v11706_v60 = vrot.slane %v11573_v25, 5  ;;  %v13851_v43 = vrot.slane %v11569_v41, 9  ;;  %v11713_v52 = vrot.slane %v11576_v5, 5  ;;  %v11587_v25 = vld [vmem:[#allocation2 + $0xc0] sm:$0xe] }
 0x540   : > { %15208 = vmatmul.mubr.bf16.gmra.mrb[20].mxu1 %v13830_v34  ;;  %v11666_v34 = vrot.slane %v11664_v17, 4  ;;  %v11694_v49 = vrot.slane %v11692_v1, 4  ;;  %v11701_v46 = vrot.slane %v11699_v2, 4  ;;  %v11720_v50 = vrot.slane %v11579_v37, 5  ;;  %v11590_v5 = vld [vmem:[#allocation2 + $0xcc] sm:$0xe] }
 0x541   : > { %15211 = vmatprep.mubr.bf16.mxu1 %v13831_v47  ;;  %v11667_v47 = vrot.slane %v11556_v3, 5  ;;  %v11693_v16 = vsel %vm16623_vm5, %v13850_v54, %v11692_v1  ;;  %v11700_v6 = vsel %vm16623_vm5, %v13851_v43, %v11699_v2  ;;  %v11708_v3 = vrot.slane %v11706_v60, 4  ;;  %v13889_v37 = vld [vmem:[%s16315_s8 + $0x1c] sm:$0xf] }
 0x542   : > { %v11696_v36 = vsel %vm16623_vm5, %v11694_v49, %v11695_v57  ;;  %v11715_v8 = vrot.slane %v11713_v52, 4  ;;  %v11589_v49 = vld [vmem:[#allocation2 + $0xc8] sm:$0x1] }
 0x543   : > { %v11668_v48 = vsel %vm16623_vm5, %v11666_v34, %v11667_v47  ;;  %v13866_v24 = vcombine.low %v11693_v16, %v11696_v36  ;;  %v11572_v34 = vld [vmem:[#allocation2 + $0x84] sm:$0xe]  ;;  %v11582_v47 = vld [vmem:[#allocation2 + $0xac] sm:$0xf]  ;;  %v11744_v41 = vrot.slane %v11589_v49, 5 }
 0x544   : > { %v13862_v28 = vcombine.low %v11665_v42, %v11668_v48  ;;  %v13852_v59 = vrot.slane %v11572_v34, 9  ;;  %v13853_v48 = vrot.slane %v11575_v19, 9  ;;  %v11727_v62 = vrot.slane %v11582_v47, 5 }
 0x545   : > { %v12331_v47 = vshll.u32 %v13889_v37, 16 }
 0x546   : > { %v11707_v38 = vsel %vm16623_vm5, %v13852_v59, %v11706_v60  ;;  %v11714_v42 = vsel %vm16623_vm5, %v13853_v48, %v11713_v52  ;;  %v11729_v11 = vrot.slane %v11727_v62, 4  ;;  %v13857_v60 = vrot.slane %v11587_v25, 9  ;;  %v13885_v59 = vld [vmem:[%s16315_s8 + $0xc] sm:$0xf] }
 0x547   : > { %v13858_v52 = vrot.slane %v11590_v5, 9  ;;  %v12301_v61 = vshll.u32 %v13885_v59, 16  ;;  %v13893_v5 = vld [vmem:[%s16315_s8 + $0x2c] sm:$0x1] }
 0x548   : > { %15212 = vmatmul.mubr.bf16.gmra.mrb[24].mxu1 %v13832_v9  ;;  %v11687_v9 = vrot.slane %v11685_v40, 4 }
 0x549   : > { %15215 = vmatprep.mubr.bf16.mxu1 %v13833_v23  ;;  %v11681_v23 = vrot.slane %v11562_v32, 5  ;;  %v11722_v32 = vrot.slane %v11720_v50, 4 }
 0x54a   : > { %v11689_v22 = vsel %vm16623_vm5, %v11687_v9, %v11688_v27 }
 0x54b   : > { %v11682_v45 = vsel %vm16623_vm5, %v11680_v39, %v11681_v23  ;;  %v13865_v53 = vcombine.low %v11686_v33, %v11689_v22  ;;  %v11578_v39 = vld [vmem:[#allocation2 + $0x9c] sm:$0xe]  ;;  %v11588_v23 = vld [vmem:[#allocation2 + $0xc4] sm:$0xf]  ;;  %v11591_v33 = vld [vmem:[#allocation2 + $0xd0] sm:$0xf] }
 0x54c   : > { %v13854_v15 = vrot.slane %v11578_v39, 9  ;;  %v11741_v4 = vrot.slane %v11588_v23, 5  ;;  %v11748_v57 = vrot.slane %v11591_v33, 5  ;;  %v13890_v39 = vld [vmem:[%s16315_s8 + $0x20] sm:$0x1] }
 0x54e   : > { %v11721_v22 = vsel %vm16623_vm5, %v13854_v15, %v11720_v50  ;;  %v11743_v20 = vrot.slane %v11741_v4, 4  ;;  %v11750_v16 = vrot.slane %v11748_v57, 4 }
 0x550   : > { %15216 = vmatmul.mubr.bf16.gmra.mrb[28].mxu1 %v13834_v18  ;;  %v11679_v18 = vsel %vm16623_vm5, %v13848_v31, %v11678_v10  ;;  %v11734_v31 = vrot.slane %v11585_v56, 5  ;;  %v11745_v43 = vsel %vm16623_vm5, %v11743_v20, %v11744_v41  ;;  %v13896_v41 = vld [vmem:[%s16315_s8 + $0x38] sm:$0x1] }
 0x551   : > { %15235 = vmatprep.mubr.bf16.mxu1 %v13859_v21  ;;  %v13864_v14 = vcombine.low %v11679_v18, %v11682_v45  ;;  %v11571_v21 = vld [vmem:[#allocation2 + $0x80] sm:$0x1]  ;;  %v13855_v45 = vrot.slane %v11581_v7, 9 }
 0x552   : > { %v11702_v44 = vrot.slane %v11571_v21, 5  ;;  %v11584_v21 = vld [vmem:[#allocation2 + $0xb4] sm:$0xe] }
 0x553   : > { %v11728_v18 = vsel %vm16623_vm5, %v13855_v45, %v11727_v62  ;;  %v13856_v54 = vrot.slane %v11584_v21, 9  ;;  %v13891_v62 = vld [vmem:[%s16315_s8 + $0x24] sm:$0xf] }
 0x554   : > { %v11703_v17 = vsel %vm16623_vm5, %v11701_v46, %v11702_v44  ;;  %v11592_v44 = vld [vmem:[#allocation2 + $0xd4] sm:$0x1]  ;;  %v12349_v7 = vshll.u32 %v13891_v62, 16 }
 0x555   : > { %v13867_v0 = vcombine.low %v11700_v6, %v11703_v17  ;;  %v11735_v17 = vsel %vm16623_vm5, %v13856_v54, %v11734_v31 }
 0x556   : > { %v12351_v49 = vrot.slane %v12349_v7, 5 }
 0x558   : > { %15236 = vmatmul.mubr.bf16.vlgmr.msra.gmra.mrb[0].mxu1 %v13860_v51  ;;  %v11574_v51 = vld [vmem:[#allocation2 + $0x8c] sm:$0x1] }
 0x559   : > { %15239 = vmatprep.mubr.bf16.mxu1 %v13861_v63  ;;  %v11577_v63 = vld [vmem:[#allocation2 + $0x98] sm:$0x1]  ;;  %v11709_v29 = vrot.slane %v11574_v51, 5  ;;  %v11742_v51 = vsel %vm16623_vm5, %v13857_v60, %v11741_v4  ;;  %v13900_v60 = vld [vmem:[%s16315_s8 + $0x48] sm:$0xf] }
 0x55a   : > { %v11716_v35 = vrot.slane %v11577_v63, 5 }
 0x55b   : > { %v11710_v55 = vsel %vm16623_vm5, %v11708_v3, %v11709_v29  ;;  %v11749_v3 = vsel %vm16623_vm5, %v13858_v52, %v11748_v57 }
 0x55c   : > { %v11717_v10 = vsel %vm16623_vm5, %v11715_v8, %v11716_v35  ;;  %v13868_v40 = vcombine.low %v11707_v38, %v11710_v55  ;;  %v13888_v8 = vld [vmem:[%s16315_s8 + $0x18] sm:$0xf]  ;;  %v12335_v35 = vshrl.u32 %v13889_v37, 16  ;;  %v13886_v55 = vld [vmem:[%s16315_s8 + $0x10] sm:$0xf]  ;;  %v12298_v38 = vshrl.u32 %v13885_v59, 16 }
 0x55d   : > { %v13869_v30 = vcombine.low %v11714_v42, %v11717_v10  ;;  %v12322_v29 = vshrl.u32 %v13888_v8, 16  ;;  %v12325_v19 = vshll.u32 %v13888_v8, 16  ;;  %v13894_v10 = vld [vmem:[%s16315_s8 + $0x30] sm:$0xf]  ;;  %v13892_v42 = vld [vmem:[%s16315_s8 + $0x28] sm:$0xf] }
 0x55e   : > { %v12373_v56 = vshll.u32 %v13894_v10, 16  ;;  %v12355_v15 = vshll.u32 %v13892_v42, 16  ;;  %v12300_v45 = vrot.slane %v12298_v38, 4  ;;  %v13898_v38 = vld [vmem:[%s16315_s8 + $0x40] sm:$0xf] }
 0x55f   : > { %v12324_v50 = vrot.slane %v12322_v29, 4  ;;  %v12327_v48 = vrot.slane %v12325_v19, 5  ;;  %v13901_v29 = vld [vmem:[%s16315_s8 + $0x4c] sm:$0xf]  ;;  %v12403_v7 = vshll.u32 %v13898_v38, 16 }
 0x560   : > { %15240 = vmatmul.mubr.bf16.gmra.mrb[4].mxu1 %v13862_v28  ;;  %v11580_v28 = vld [vmem:[#allocation2 + $0xa4] sm:$0x1]  ;;  %v12357_v20 = vrot.slane %v12355_v15, 5 }
 0x561   : > { %15243 = vmatprep.mubr.bf16.mxu1 %v13863_v26  ;;  %v11583_v26 = vld [vmem:[#allocation2 + $0xb0] sm:$0x1]  ;;  %v11723_v9 = vrot.slane %v11580_v28, 5  ;;  %v18586_v28 = vrot.slane %v12331_v47, 5 }
 0x562   : > { %v11730_v58 = vrot.slane %v11583_v26, 5  ;;  %v12337_v26 = vrot.slane %v12335_v35, 4 }
 0x563   : > { %v11724_v27 = vsel %vm16623_vm5, %v11722_v32, %v11723_v9  ;;  %v12311_v32 = vshrl.u32 %v13886_v55, 16  ;;  %v12346_v9 = vshrl.u32 %v13891_v62, 16 }
 0x564   : > { %v11731_v1 = vsel %vm16623_vm5, %v11729_v11, %v11730_v58  ;;  %v13870_v2 = vcombine.low %v11721_v22, %v11724_v27  ;;  %v12370_v11 = vshrl.u32 %v13894_v10, 16  ;;  %v12359_v27 = vshrl.u32 %v13892_v42, 16 }
 0x565   : > { %v13871_v13 = vcombine.low %v11728_v18, %v11731_v1  ;;  %v12303_v1 = vrot.slane %v12301_v61, 5  ;;  %v12338_v22 = vor.u32 %v12337_v26, %v18586_v28  ;;  %v12313_v18 = vrot.slane %v12311_v32, 4 }
 0x566   : > { %v12372_v33 = vrot.slane %v12370_v11, 4  ;;  %v12361_v25 = vrot.slane %v12359_v27, 4 }
 0x567   : > { %v12304_v57 = vor.u32 %v12303_v1, %v12300_v45 }
 0x568   : > { %15244 = vmatmul.mubr.bf16.gmra.mrb[8].mxu1 %v13864_v14  ;;  %v11586_v14 = vld [vmem:[#allocation2 + $0xbc] sm:$0x1] }
 0x569   : > { %15247 = vmatprep.mubr.bf16.mxu1 %v13865_v53  ;;  %v11736_v53 = vrot.slane %v11734_v31, 4  ;;  %v11737_v46 = vrot.slane %v11586_v14, 5  ;;  %v12328_v31 = vor.u32 %v12327_v48, %v12324_v50  ;;  %v13887_v14 = vld [vmem:[%s16315_s8 + $0x14] sm:$0x1] }
 0x56b   : > { %v11738_v36 = vsel %vm16623_vm5, %v11736_v53, %v11737_v46  ;;  %v12348_v53 = vrot.slane %v12346_v9, 4  ;;  %v12431_v9 = vshrl.u32 %v13901_v29, 16 }
 0x56c   : > { %v13872_v6 = vcombine.low %v11735_v17, %v11738_v36  ;;  %v12317_v36 = vshll.u32 %v13887_v14, 16 }
 0x56e   : > { %v12319_v37 = vrot.slane %v12317_v36, 5 }
 0x570   : > { %15248 = vmatmul.mubr.bf16.gmra.mrb[12].mxu1 %v13866_v24  ;;  %v11751_v24 = vrot.slane %v11592_v44, 5  ;;  %v12329_v44 = vrot.slane %v12328_v31, 4 }
 0x571   : > { %15251 = vmatprep.mubr.bf16.mxu1 %v13867_v0  ;;  %v13873_v0 = vcombine.low %v11742_v51, %v11745_v43  ;;  %v12339_v43 = vrot.slane %v12338_v22, 4  ;;  %v12362_v51 = vor.u32 %v12361_v25, %v12357_v20  ;;  %v13906_v22 = vld [vmem:[%s16315_s8 + $0x60] sm:$0xf]  ;;  %v12433_v25 = vrot.slane %v12431_v9, 4 }
 0x572   : > { %v11752_v63 = vsel %vm16623_vm5, %v11750_v16, %v11751_v24  ;;  %v12352_v16 = vor.u32 %v12351_v49, %v12348_v53  ;;  %v12334_v19 = vsel %vm16396_vm2, %v12329_v44, %v18586_v28  ;;  %v13902_v53 = vld [vmem:[%s16315_s8 + $0x50] sm:$0x1]  ;;  %v13907_v49 = vld [vmem:[%s16315_s8 + $0x64] sm:$0xf]  ;;  %v12466_v44 = vshrl.u32 %v13906_v22, 16 }
 0x573   : > { %v13874_v34 = vcombine.low %v11749_v3, %v11752_v63  ;;  %v12305_v3 = vrot.slane %v12304_v57, 4  ;;  %v12418_v63 = vshrl.u32 %v13900_v60, 16  ;;  %v12363_v10 = vrot.slane %v12362_v51, 4  ;;  %v13904_v57 = vld [vmem:[%s16315_s8 + $0x58] sm:$0xf] }
 0x574   : > { %v12353_v59 = vrot.slane %v12352_v16, 4  ;;  %v18604_v32 = vunpack.c.l.bf16 %v12334_v19  ;;  %v12479_v16 = vshrl.u32 %v13907_v49, 16 }
 0x578   : > { %15252 = vmatmul.mubr.bf16.gmra.mrb[16].mxu1 %v13868_v40  ;;  %v13895_v40 = vld [vmem:[%s16315_s8 + $0x34] sm:$0xf] }
 0x579   : > { %15255 = vmatprep.mubr.bf16.mxu1 %v13869_v30  ;;  %v12307_v30 = vshll.u32 %v13886_v55, 16  ;;  %v12379_v23 = vshll.u32 %v13895_v40, 16  ;;  %v12383_v58 = vshrl.u32 %v13895_v40, 16  ;;  %v13897_v55 = vld [vmem:[%s16315_s8 + $0x3c] sm:$0xf]  ;;  %v12420_v40 = vrot.slane %v12418_v63, 4 }
 0x57a   : > { %v12394_v26 = vshrl.u32 %v13897_v55, 16 }
 0x57b   : > { %v12309_v4 = vrot.slane %v12307_v30, 5  ;;  %v12381_v21 = vrot.slane %v12379_v23, 5  ;;  %v12385_v46 = vrot.slane %v12383_v58, 4  ;;  %v12427_v30 = vshll.u32 %v13901_v29, 16 }
 0x57d   : > { %v12314_v54 = vor.u32 %v12313_v18, %v12309_v4  ;;  %v12386_v24 = vor.u32 %v12385_v46, %v12381_v21  ;;  %v12310_v61 = vsel %vm16396_vm2, %v12305_v3, %v12309_v4  ;;  %v18622_v1 = vrot.slane %v12427_v30, 5 }
 0x57e   : > { %v18612_v23 = vunpack.c.l.bf16 %v12310_v61  ;;  %v12407_v4 = vshrl.u32 %v13898_v38, 16  ;;  %v18636_v46 = vrot.slane %v12403_v7, 5  ;;  %v13913_v61 = vld [vmem:[%s16315_s8 + $0x7c] sm:$0xf] }
 0x57f   : > { %v12315_v8 = vrot.slane %v12314_v54, 4  ;;  %v12387_v50 = vrot.slane %v12386_v24, 4  ;;  %v12469_v54 = vshll.u32 %v13906_v22, 16  ;;  %v12451_v24 = vshll.u32 %v13904_v57, 16 }
 0x580   : > { %15256 = vmatmul.mubr.bf16.gmra.mrb[20].mxu1 %v13870_v2  ;;  %v12341_v2 = vshll.u32 %v13890_v39, 16  ;;  %v12397_v39 = vshll.u32 %v13897_v55, 16  ;;  %v12434_v63 = vor.u32 %v12433_v25, %v18622_v1  ;;  %v12527_v22 = vshrl.u32 %v13913_v61, 16 }
 0x581   : > { %15259 = vmatprep.mubr.bf16.mxu1 %v13871_v13  ;;  %v12375_v13 = vrot.slane %v12373_v56, 5  ;;  %v12320_v28 = vsel %vm16396_vm2, %v12315_v8, %v12319_v37  ;;  %v12358_v56 = vsel %vm16396_vm2, %v12353_v59, %v12357_v20  ;;  %v12468_v37 = vrot.slane %v12466_v44, 4 }
 0x582   : > { %v12343_v17 = vrot.slane %v12341_v2, 5  ;;  %v18620_v31 = vunpack.c.l.bf16 %v12320_v28  ;;  %v13903_v2 = vld [vmem:[%s16315_s8 + $0x54] sm:$0xf]  ;;  %v18628_v14 = vunpack.c.l.bf16 %v12358_v56  ;;  %v12471_v29 = vrot.slane %v12469_v54, 5 }
 0x583   : > { %v12376_v52 = vor.u32 %v12375_v13, %v12372_v33  ;;  %v12396_v33 = vrot.slane %v12394_v26, 4  ;;  %v12399_v13 = vrot.slane %v12397_v39, 5  ;;  %v12442_v36 = vshrl.u32 %v13903_v2, 16  ;;  %v13905_v26 = vld [vmem:[%s16315_s8 + $0x5c] sm:$0x1] }
 0x584   : > { %v12344_v47 = vsel %vm16396_vm2, %v12339_v43, %v12343_v17  ;;  %v12409_v17 = vrot.slane %v12407_v4, 4  ;;  %v12435_v56 = vrot.slane %v12434_v63, 4  ;;  %v12472_v7 = vor.u32 %v12471_v29, %v12468_v37 }
 0x585   : > { %v12377_v35 = vrot.slane %v12376_v52, 4  ;;  %v18614_v58 = vunpack.c.l.bf16 %v12344_v47  ;;  %v12475_v52 = vshll.u32 %v13907_v49, 16  ;;  %v12400_v3 = vor.u32 %v12399_v13, %v12396_v33 }
 0x586   : > { %v12444_v19 = vrot.slane %v12442_v36, 4  ;;  %v12410_v55 = vor.u32 %v12409_v17, %v18636_v46  ;;  %v12523_v4 = vshll.u32 %v13913_v61, 16  ;;  %v12461_v13 = vshll.u32 %v13905_v26, 16 }
 0x587   : > { %v12382_v11 = vsel %vm16396_vm2, %v12377_v35, %v12381_v21  ;;  %v13909_v35 = vld [vmem:[%s16315_s8 + $0x6c] sm:$0xf]  ;;  %v12401_v30 = vrot.slane %v12400_v3, 4  ;;  %v12473_v54 = vrot.slane %v12472_v7, 4  ;;  %v13914_v3 = vld [vmem:[%s16315_s8 + $0x80] sm:$0x1] }
 0x588   : > { %15260 = vmatmul.mubr.bf16.gmra.mrb[24].mxu1 %v13872_v6  ;;  %v12389_v6 = vshll.u32 %v13896_v41, 16  ;;  %v18626_v18 = vunpack.c.l.bf16 %v12382_v11  ;;  %v13912_v41 = vld [vmem:[%s16315_s8 + $0x78] sm:$0xf]  ;;  %v12490_v39 = vshrl.u32 %v13909_v35, 16  ;;  %v12493_v11 = vshll.u32 %v13909_v35, 16 }
 0x589   : > { %15263 = vmatprep.mubr.bf16.mxu1 %v13873_v0  ;;  %v12365_v0 = vshll.u32 %v13893_v5, 16  ;;  %v13899_v5 = vld [vmem:[%s16315_s8 + $0x44] sm:$0x1]  ;;  %v12514_v51 = vshrl.u32 %v13912_v41, 16  ;;  %v12406_v44 = vsel %vm16396_vm2, %v12401_v30, %v18636_v46  ;;  %v12525_v17 = vrot.slane %v12523_v4, 5 }
 0x58a   : > { %v12391_v48 = vrot.slane %v12389_v6, 5  ;;  %v12455_v6 = vshrl.u32 %v13904_v57, 16  ;;  %v12413_v8 = vshll.u32 %v13899_v5, 16  ;;  %v12492_v49 = vrot.slane %v12490_v39, 4  ;;  %v18691_v39 = vld [vmem:[%s16315_s8 + $0x94] sm:$0xf] }
 0x58b   : > { %v12367_v62 = vrot.slane %v12365_v0, 5  ;;  %v12517_v0 = vshll.u32 %v13912_v41, 16  ;;  %v12495_v25 = vrot.slane %v12493_v11, 5  ;;  %v18666_v29 = vunpack.c.l.bf16 %v12406_v44 }
 0x58c   : > { %v12392_v15 = vsel %vm16396_vm2, %v12387_v50, %v12391_v48  ;;  %v12477_v50 = vrot.slane %v12475_v52, 5  ;;  %v13908_v48 = vld [vmem:[%s16315_s8 + $0x68] sm:$0x1]  ;;  %v12457_v38 = vrot.slane %v12455_v6, 4  ;;  %v12415_v9 = vrot.slane %v12413_v8, 5 }
 0x58d   : > { %v12368_v27 = vsel %vm16396_vm2, %v12363_v10, %v12367_v62  ;;  %v18632_v21 = vunpack.c.l.bf16 %v12392_v15  ;;  %v12481_v10 = vrot.slane %v12479_v16, 4  ;;  %v18648_v62 = vrot.slane %v12451_v24, 5  ;;  %v13918_v16 = vld [vmem:[%s16315_s8 + $0x90] sm:$0xf]  ;;  %v13911_v8 = vld [vmem:[%s16315_s8 + $0x74] sm:$0x1] }
 0x58e   : > { %v18634_v20 = vunpack.c.l.bf16 %v12368_v27  ;;  %v13910_v27 = vld [vmem:[%s16315_s8 + $0x70] sm:$0xf]  ;;  %v12529_v52 = vrot.slane %v12527_v22, 4  ;;  %v12565_v35 = vshll.u32 %v13918_v16, 16 }
 0x58f   : > { %v12458_v33 = vor.u32 %v12457_v38, %v18648_v62  ;;  %v12499_v57 = vshll.u32 %v13910_v27, 16  ;;  %v12503_v41 = vshrl.u32 %v13910_v27, 16  ;;  %v18678_v38 = vld [vmem:[%s18992_s5] ss:$0 sm:$0xff] }
 0x590   : > { %15264 = vmatmul.mubr.bf16.gmra.mrb[28].mxu1 %v13874_v34  ;;  %v12421_v34 = vshll.u32 %v13900_v60, 16  ;;  %v12445_v60 = vshll.u32 %v13903_v2, 16  ;;  %v12411_v2 = vrot.slane %v12410_v55, 4  ;;  %v12567_v27 = vrot.slane %v12565_v35, 5 }
 0x591   : > { %v12501_v46 = vrot.slane %v12499_v57, 5  ;;  %v12505_v37 = vrot.slane %v12503_v41, 4  ;;  %v13915_v57 = vld [vmem:[%s16315_s8 + $0x84] sm:$0xf] }
 0x592   : > { %v12423_v42 = vrot.slane %v12421_v34, 5  ;;  %v12437_v34 = vshll.u32 %v13902_v53, 16  ;;  %v12447_v47 = vrot.slane %v12445_v60, 5  ;;  %v12416_v6 = vsel %vm16396_vm2, %v12411_v2, %v12415_v9 }
 0x593   : > { %v12506_v26 = vor.u32 %v12505_v37, %v12501_v46 }
 0x594   : > { %v12424_v45 = vor.u32 %v12423_v42, %v12420_v40  ;;  %v12516_v40 = vrot.slane %v12514_v51, 4  ;;  %v12519_v42 = vrot.slane %v12517_v0, 5  ;;  %v12439_v28 = vrot.slane %v12437_v34, 5 }
 0x595   : > { %v12448_v15 = vor.u32 %v12447_v47, %v12444_v19  ;;  %v12459_v51 = vrot.slane %v12458_v33, 4  ;;  %v12463_v0 = vrot.slane %v12461_v13, 5  ;;  %v12496_v34 = vor.u32 %v12495_v25, %v12492_v49 }
 0x596   : > { %v12425_v43 = vrot.slane %v12424_v45, 4  ;;  %v12482_v45 = vor.u32 %v12481_v10, %v12477_v50  ;;  %v12520_v53 = vor.u32 %v12519_v42, %v12516_v40  ;;  %v12440_v24 = vsel %vm16396_vm2, %v12435_v56, %v12439_v28  ;;  %v18697_v56 = vld [vmem:[%s18993_s6] ss:$0 sm:$0xff] }
 0x597   : > { %v12449_v36 = vrot.slane %v12448_v15, 4  ;;  %v12478_v19 = vsel %vm16396_vm2, %v12473_v54, %v12477_v50  ;;  %v12562_v47 = vshrl.u32 %v13918_v16, 16  ;;  %v12533_v10 = vshll.u32 %v13914_v3, 16 }
 0x598   : > { %v12430_v59 = vsel %vm16396_vm2, %v12425_v43, %v18622_v1  ;;  %v12485_v1 = vshll.u32 %v13908_v48, 16  ;;  %v12483_v60 = vrot.slane %v12482_v45, 4  ;;  %v12521_v63 = vrot.slane %v12520_v53, 4 }
 0x599   : > { %v18654_v5 = vunpack.c.l.bf16 %v12430_v59  ;;  %v12454_v59 = vsel %vm16396_vm2, %v12449_v36, %v18648_v62  ;;  %v12530_v48 = vor.u32 %v12529_v52, %v12525_v17  ;;  %v18680_v61 = vunpack.c.l.bf16 %v12440_v24 }
 0x59a   : > { %v12487_v43 = vrot.slane %v12485_v1, 5  ;;  %v18682_v50 = vunpack.c.l.bf16 %v12416_v6  ;;  %v12464_v40 = vsel %vm16396_vm2, %v12459_v51, %v12463_v0  ;;  %v12509_v42 = vshll.u32 %v13911_v8, 16  ;;  %v13916_v8 = vld [vmem:[%s16315_s8 + $0x88] sm:$0xf] }
 0x59b   : > { %v18686_v30 = vunpack.c.l.bf16 %v12478_v19  ;;  %v12526_v62 = vsel %vm16396_vm2, %v12521_v63, %v12525_v17  ;;  %v12497_v28 = vrot.slane %v12496_v34, 4  ;;  %v18699_v9 = vunpack.c.l.bf16 %v12454_v59 }
 0x59c   : > { %v12488_v55 = vsel %vm16396_vm2, %v12483_v60, %v12487_v43  ;;  %v12564_v15 = vrot.slane %v12562_v47, 4  ;;  %v18704_v4 = vunpack.c.l.bf16 %v12464_v40  ;;  %v12531_v22 = vrot.slane %v12530_v48, 4 }
 0x59d   : > { %v18701_v7 = vunpack.c.l.bf16 %v12488_v55  ;;  %v12535_v2 = vrot.slane %v12533_v10, 5  ;;  %v18707_v53 = vunpack.c.l.bf16 %v12526_v62  ;;  %v12511_v49 = vrot.slane %v12509_v42, 5 }
 0x59e   : > { %v12571_v25 = vshll.u32 %v18691_v39, 16  ;;  %v12502_v36 = vsel %vm16396_vm2, %v12497_v28, %v12501_v46  ;;  %v12507_v60 = vrot.slane %v12506_v26, 4  ;;  %v12568_v52 = vor.u32 %v12567_v27, %v12564_v15  ;;  %v13917_v27 = vld [vmem:[%s16315_s8 + $0x8c] sm:$0x1] }
 0x59f   : > { %v12575_v16 = vshrl.u32 %v18691_v39, 16  ;;  %v12536_v51 = vsel %vm16396_vm2, %v12531_v22, %v12535_v2  ;;  %v12538_v0 = vshrl.u32 %v13915_v57, 16  ;;  %v18726_v34 = vunpack.c.l.bf16 %v12502_v36 }
 0x5a0   : > { %v18728_v46 = vrot.slane %v12571_v25, 5  ;;  %v12541_v47 = vshll.u32 %v13915_v57, 16  ;;  %v12569_v48 = vrot.slane %v12568_v52, 4  ;;  %v12547_v42 = vshll.u32 %v13916_v8, 16 }
 0x5a1   : > { %v12551_v62 = vshrl.u32 %v13916_v8, 16  ;;  %v12540_v15 = vrot.slane %v12538_v0, 4  ;;  %v12557_v52 = vshll.u32 %v13917_v27, 16 }
 0x5a2   : > { %v12543_v2 = vrot.slane %v12541_v47, 5  ;;  %v12574_v57 = vsel %vm16396_vm2, %v12569_v48, %v18728_v46  ;;  %v18759_v36 = vrot.slane %v12547_v42, 5 }
 0x5a3   : > { %v18766_v8 = vunpack.c.l.bf16 %v12574_v57 }
 0x62b   : > { %v15237_v11 = vpop.f32.mrb[0].mxu1 }
 0x62c   : > { %v12180_v45 = vmul.f32 %v15237_v11, %v18678_v38  ;;  %v11916_v1 = vpop.f32.mrb[1].mxu1 }
 0x62d   : > { %v12178_v33 = vmul.f32 %v18678_v38, %v11916_v1  ;;  %v15238_v13 = vpop.f32.mrb[2].mxu1 }
 0x62e   : > { %v12219_v41 = vadd.f32 %v18697_v56, %v12180_v45  ;;  %v12181_v44 = vmul.f32 %v15238_v13, %v18678_v38  ;;  %v11919_v54 = vpop.f32.mrb[3].mxu1  ;;  %v13924_v13 = vld [vmem:[%s16315_s8 + $0xa8] sm:$0xf] }
 0x62f   : > { %v12217_v43 = vadd.f32 %v18697_v56, %v12178_v33  ;;  %v12179_v17 = vmul.f32 %v18678_v38, %v11919_v54  ;;  %v12577_v33 = vrot.slane %v12575_v16, 4  ;;  %v12610_v16 = vshrl.u32 %v13924_v13, 16 }
 0x630   : > { %v12747_v24 = vadd.f32 %v18604_v32, %v12219_v41  ;;  %v12220_v6 = vadd.f32 %v18697_v56, %v12181_v44  ;;  %v12512_v32 = vsel %vm16396_vm2, %v12507_v60, %v12511_v49  ;;  %v12553_v60 = vrot.slane %v12551_v62, 4 }
 0x631   : > { %v12745_v3 = vadd.f32 %v18612_v23, %v12217_v43  ;;  %v12218_v63 = vadd.f32 %v18697_v56, %v12179_v17  ;;  %v18735_v23 = vunpack.c.l.bf16 %v12536_v51  ;;  %v18744_v11 = vunpack.c.l.bf16 %v12512_v32 }
 0x632   : > { %v12779_v37 = vmax.f32 %v12747_v24, 0.0  ;;  %v12748_v19 = vadd.f32 %v18614_v58, %v12220_v6  ;;  %v12544_v51 = vor.u32 %v12543_v2, %v12540_v15  ;;  %v12612_v48 = vrot.slane %v12610_v16, 4 }
 0x633   : > { %v12777_v35 = vmax.f32 %v12745_v3, 0.0  ;;  %v12746_v59 = vadd.f32 %v18620_v31, %v12218_v63  ;;  %v15241_v55 = vpop.f32.mrb[4].mxu1  ;;  %v13920_v31 = vld [vmem:[%s16315_s8 + $0x98] sm:$0x1] }
 0x634   : > { %12811 = vst [vmem:[%s18737_s20 + $0x10] sm:$0xff] %v12779_v37  ;;  %v12780_v10 = vmax.f32 %v12748_v19, 0.0  ;;  %v12184_v58 = vmul.f32 %v15241_v55, %v18678_v38  ;;  %v11932_v40 = vpop.f32.mrb[5].mxu1  ;;  %v12581_v41 = vshll.u32 %v13920_v31, 16  ;;  %v12559_v55 = vrot.slane %v12557_v52, 5 }
 0x635   : > { %12809 = vst [vmem:[%s18737_s20] sm:$0xff] %v12777_v35  ;;  %v12778_v28 = vmax.f32 %v12746_v59, 0.0  ;;  %v12182_v26 = vmul.f32 %v18678_v38, %v11932_v40  ;;  %v15242_v39 = vpop.f32.mrb[6].mxu1  ;;  %v18772_v35 = vld [vmem:[%s16315_s8 + $0xac] sm:$0xf]  ;;  %v12545_v42 = vrot.slane %v12544_v51, 4 }
 0x636   : > { %12812 = vst [vmem:[%s18737_s20 + $0x18] sm:$0xff] %v12780_v10  ;;  %v12223_v45 = vadd.f32 %v18697_v56, %v12184_v58  ;;  %v12185_v1 = vmul.f32 %v15242_v39, %v18678_v38  ;;  %v11935_v22 = vpop.f32.mrb[7].mxu1  ;;  %v12583_v47 = vrot.slane %v12581_v41, 5  ;;  %v13921_v31 = vld [vmem:[%s16315_s8 + $0x9c] sm:$0xf]  ;;  %v12619_v15 = vshll.u32 %v18772_v35, 16 }
 0x637   : > { %12810 = vst [vmem:[%s18737_s20 + $0x8] sm:$0xff] %v12778_v28  ;;  %v12221_v49 = vadd.f32 %v18697_v56, %v12182_v26  ;;  %v12183_v25 = vmul.f32 %v18678_v38, %v11935_v22  ;;  %v12623_v22 = vshrl.u32 %v18772_v35, 16 }
 0x638   : > { %v12751_v44 = vadd.f32 %v18626_v18, %v12223_v45  ;;  %v12224_v54 = vadd.f32 %v18697_v56, %v12185_v1  ;;  %v12578_v18 = vor.u32 %v12577_v33, %v18728_v46 }
 0x639   : > { %v12749_v43 = vadd.f32 %v18628_v14, %v12221_v49  ;;  %v12222_v17 = vadd.f32 %v18697_v56, %v12183_v25  ;;  %v12613_v14 = vshll.u32 %v13924_v13, 16  ;;  %v13922_v13 = vld [vmem:[%s16315_s8 + $0xa0] sm:$0xf]  ;;  %v12586_v49 = vshrl.u32 %v13921_v31, 16 }
 0x63a   : > { %v12783_v24 = vmax.f32 %v12751_v44, 0.0  ;;  %v12752_v6 = vadd.f32 %v18632_v21, %v12224_v54  ;;  %v12554_v21 = vor.u32 %v12553_v60, %v18759_v36  ;;  %v12579_v62 = vrot.slane %v12578_v18, 4 }
 0x63b   : > { %v12781_v0 = vmax.f32 %v12749_v43, 0.0  ;;  %v12750_v3 = vadd.f32 %v18634_v20, %v12222_v17  ;;  %v15245_v63 = vpop.f32.mrb[8].mxu1  ;;  %v12615_v39 = vrot.slane %v12613_v14, 5  ;;  %v12589_v25 = vshll.u32 %v13921_v31, 16 }
 0x63c   : > { %12815 = vst [vmem:[%s18737_s20 + $0x30] sm:$0xff] %v12783_v24  ;;  %v12784_v37 = vmax.f32 %v12752_v6, 0.0  ;;  %v12188_v19 = vmul.f32 %v15245_v63, %v18678_v38  ;;  %v11948_v32 = vpop.f32.mrb[9].mxu1  ;;  %v12555_v1 = vrot.slane %v12554_v21, 4  ;;  %v12584_v44 = vsel %vm16396_vm2, %v12579_v62, %v12583_v47 }
 0x63d   : > { %12813 = vst [vmem:[%s18737_s20 + $0x20] sm:$0xff] %v12781_v0  ;;  %v12782_v46 = vmax.f32 %v12750_v3, 0.0  ;;  %v12186_v20 = vmul.f32 %v18678_v38, %v11948_v32  ;;  %v15246_v59 = vpop.f32.mrb[10].mxu1  ;;  %v12616_v43 = vor.u32 %v12615_v39, %v12612_v48  ;;  %v18797_v17 = vrot.slane %v12619_v15, 5 }
 0x63e   : > { %12816 = vst [vmem:[%s18737_s20 + $0x38] sm:$0xff] %v12784_v37  ;;  %v12227_v10 = vadd.f32 %v18697_v56, %v12188_v19  ;;  %v12189_v58 = vmul.f32 %v15246_v59, %v18678_v38  ;;  %v11951_v40 = vpop.f32.mrb[11].mxu1  ;;  %v12595_v24 = vshll.u32 %v13922_v13, 16  ;;  %v12588_v18 = vrot.slane %v12586_v49, 4 }
 0x63f   : > { %12814 = vst [vmem:[%s18737_s20 + $0x28] sm:$0xff] %v12782_v46  ;;  %v12225_v28 = vadd.f32 %v18697_v56, %v12186_v20  ;;  %v12187_v26 = vmul.f32 %v18678_v38, %v11951_v40  ;;  %v12591_v0 = vrot.slane %v12589_v25, 5  ;;  %v18810_v19 = vunpack.c.l.bf16 %v12584_v44  ;;  %v13926_v46 = vld [vmem:[%s16315_s8 + $0xb0] sm:$0x1]  ;;  %v13923_v20 = vld [vmem:[%s16315_s8 + $0xa4] sm:$0x1] }
 0x640   : > { %v12755_v27 = vadd.f32 %v18654_v5, %v12227_v10  ;;  %v12228_v45 = vadd.f32 %v18697_v56, %v12189_v58  ;;  %v12550_v5 = vsel %vm16396_vm2, %v12545_v42, %v18759_v36  ;;  %v12560_v36 = vsel %vm16396_vm2, %v12555_v1, %v12559_v55  ;;  %v13930_v58 = vld [vmem:[%s16315_s8 + $0xc0] sm:$0xf] }
 0x641   : > { %v12753_v2 = vadd.f32 %v18666_v29, %v12225_v28  ;;  %v12226_v33 = vadd.f32 %v18697_v56, %v12187_v26  ;;  %v18808_v37 = vunpack.c.l.bf16 %v12550_v5  ;;  %v18815_v21 = vunpack.c.l.bf16 %v12560_v36 }
 0x642   : > { %v12787_v57 = vmax.f32 %v12755_v27, 0.0  ;;  %v12756_v41 = vadd.f32 %v18680_v61, %v12228_v45  ;;  %v12617_v35 = vrot.slane %v12616_v43, 4  ;;  %v12599_v48 = vshrl.u32 %v13922_v13, 16 }
 0x643   : > { %v12785_v54 = vmax.f32 %v12753_v2, 0.0  ;;  %v12754_v60 = vadd.f32 %v18682_v50, %v12226_v33  ;;  %v15249_v29 = vpop.f32.mrb[12].mxu1  ;;  %v12625_v10 = vrot.slane %v12623_v22, 4  ;;  %v12592_v62 = vor.u32 %v12591_v0, %v12588_v18 }
 0x644   : > { %12819 = vst [vmem:[%s18737_s20 + $0x50] sm:$0xff] %v12787_v57  ;;  %v12788_v52 = vmax.f32 %v12756_v41, 0.0  ;;  %v12192_v16 = vmul.f32 %v15249_v29, %v18678_v38  ;;  %v11964_v61 = vpop.f32.mrb[13].mxu1  ;;  %v18824_v31 = vrot.slane %v12595_v24, 5  ;;  %v12629_v39 = vshll.u32 %v13926_v46, 16 }
 0x645   : > { %12817 = vst [vmem:[%s18737_s20 + $0x40] sm:$0xff] %v12785_v54  ;;  %v12786_v6 = vmax.f32 %v12754_v60, 0.0  ;;  %v12190_v50 = vmul.f32 %v18678_v38, %v11964_v61  ;;  %v15250_v51 = vpop.f32.mrb[14].mxu1  ;;  %v12605_v15 = vshll.u32 %v13923_v20, 16  ;;  %v12658_v1 = vshrl.u32 %v13930_v58, 16 }
 0x646   : > { %12820 = vst [vmem:[%s18737_s20 + $0x58] sm:$0xff] %v12788_v52  ;;  %v12231_v3 = vadd.f32 %v18697_v56, %v12192_v16  ;;  %v12193_v63 = vmul.f32 %v15250_v51, %v18678_v38  ;;  %v11967_v14 = vpop.f32.mrb[15].mxu1  ;;  %v12601_v13 = vrot.slane %v12599_v48, 4  ;;  %v12593_v57 = vrot.slane %v12592_v62, 4  ;;  %v13927_v61 = vld [vmem:[%s16315_s8 + $0xb4] sm:$0xf] }
 0x647   : > { %12818 = vst [vmem:[%s18737_s20 + $0x48] sm:$0xff] %v12786_v6  ;;  %v12229_v32 = vadd.f32 %v18697_v56, %v12190_v50  ;;  %v12191_v47 = vmul.f32 %v18678_v38, %v11967_v14  ;;  %v12661_v41 = vshll.u32 %v13930_v58, 16  ;;  %v18841_v29 = vrot.slane %v12629_v39, 5  ;;  %v13931_v51 = vld [vmem:[%s16315_s8 + $0xc4] sm:$0xf] }
 0x648   : > { %v12759_v59 = vadd.f32 %v18686_v30, %v12231_v3  ;;  %v12232_v55 = vadd.f32 %v18697_v56, %v12193_v63  ;;  %v18846_v52 = vrot.slane %v12605_v15, 5  ;;  %v18848_v16 = vrot.slane %v12658_v1, 4  ;;  %v13928_v14 = vld [vmem:[%s16315_s8 + $0xb8] sm:$0xf] }
 0x649   : > { %v12757_v40 = vadd.f32 %v18699_v9, %v12229_v32  ;;  %v12230_v42 = vadd.f32 %v18697_v56, %v12191_v47  ;;  %v12622_v9 = vsel %vm16396_vm2, %v12617_v35, %v18797_v17  ;;  %v12602_v50 = vor.u32 %v12601_v13, %v18824_v31  ;;  %v13932_v13 = vld [vmem:[%s16315_s8 + $0xc8] sm:$0x1] }
 0x64a   : > { %v12791_v28 = vmax.f32 %v12759_v59, 0.0  ;;  %v12760_v26 = vadd.f32 %v18701_v7, %v12232_v55  ;;  %v12626_v7 = vor.u32 %v12625_v10, %v18797_v17  ;;  %v18839_v60 = vunpack.c.l.bf16 %v12622_v9 }
 0x64b   : > { %v12789_v30 = vmax.f32 %v12757_v40, 0.0  ;;  %v12758_v27 = vadd.f32 %v18704_v4, %v12230_v42  ;;  %v15253_v45 = vpop.f32.mrb[16].mxu1  ;;  %v12598_v3 = vsel %vm16396_vm2, %v12593_v57, %v18824_v31  ;;  %v18862_v63 = vrot.slane %v12661_v41, 5 }
 0x64c   : > { %12823 = vst [vmem:[%s18737_s20 + $0x70] sm:$0xff] %v12791_v28  ;;  %v12792_v22 = vmax.f32 %v12760_v26, 0.0  ;;  %v12196_v2 = vmul.f32 %v15253_v45, %v18678_v38  ;;  %v11980_v33 = vpop.f32.mrb[17].mxu1  ;;  %v18853_v6 = vrot.slane %v12626_v7, 4  ;;  %v12634_v47 = vshrl.u32 %v13927_v61, 16 }
 0x64d   : > { %12821 = vst [vmem:[%s18737_s20 + $0x60] sm:$0xff] %v12789_v30  ;;  %v12790_v49 = vmax.f32 %v12758_v27, 0.0  ;;  %v12194_v4 = vmul.f32 %v18678_v38, %v11980_v33  ;;  %v15254_v25 = vpop.f32.mrb[18].mxu1  ;;  %v12637_v35 = vshll.u32 %v13927_v61, 16  ;;  %v12667_v59 = vshll.u32 %v13931_v51, 16 }
 0x64e   : > { %12824 = vst [vmem:[%s18737_s20 + $0x78] sm:$0xff] %v12792_v22  ;;  %v12235_v5 = vadd.f32 %v18697_v56, %v12196_v2  ;;  %v12197_v44 = vmul.f32 %v15254_v25, %v18678_v38  ;;  %v11983_v54 = vpop.f32.mrb[19].mxu1  ;;  %v12671_v55 = vshrl.u32 %v13931_v51, 16  ;;  %v12643_v40 = vshll.u32 %v13928_v14, 16 }
 0x64f   : > { %12822 = vst [vmem:[%s18737_s20 + $0x68] sm:$0xff] %v12790_v49  ;;  %v12233_v43 = vadd.f32 %v18697_v56, %v12194_v4  ;;  %v12195_v17 = vmul.f32 %v18678_v38, %v11983_v54  ;;  %v12647_v42 = vshrl.u32 %v13928_v14, 16  ;;  %v12737_v28 = vunpack.c.l.bf16 %v12598_v3 }
 0x650   : > { %v12763_v36 = vadd.f32 %v18707_v53, %v12235_v5  ;;  %v12236_v24 = vadd.f32 %v18697_v56, %v12197_v44  ;;  %v12636_v30 = vrot.slane %v12634_v47, 4  ;;  %v12639_v27 = vrot.slane %v12637_v35, 5 }
 0x651   : > { %v12761_v18 = vadd.f32 %v18726_v34, %v12233_v43  ;;  %v12234_v0 = vadd.f32 %v18697_v56, %v12195_v17  ;;  %v12669_v1 = vrot.slane %v12667_v59, 5  ;;  %v12673_v22 = vrot.slane %v12671_v55, 4 }
 0x652   : > { %v12795_v53 = vmax.f32 %v12763_v36, 0.0  ;;  %v12764_v32 = vadd.f32 %v18735_v23, %v12236_v24  ;;  %v18879_v7 = vrot.slane %v12643_v40, 5  ;;  %v12649_v49 = vrot.slane %v12647_v42, 4 }
 0x653   : > { %v12793_v46 = vmax.f32 %v12761_v18, 0.0  ;;  %v12762_v20 = vadd.f32 %v18744_v11, %v12234_v0  ;;  %v15257_v34 = vpop.f32.mrb[20].mxu1  ;;  %v12603_v11 = vrot.slane %v12602_v50, 4  ;;  %v12632_v57 = vsel %vm16396_vm2, %v18853_v6, %v18841_v29 }
 0x654   : > { %12827 = vst [vmem:[%s18737_s20 + $0x90] sm:$0xff] %v12795_v53  ;;  %v12796_v48 = vmax.f32 %v12764_v32, 0.0  ;;  %v12200_v10 = vmul.f32 %v15257_v34, %v18678_v38  ;;  %v11996_v58 = vpop.f32.mrb[21].mxu1  ;;  %v12664_v41 = vor.u32 %v18862_v63, %v18848_v16  ;;  %v12674_v36 = vor.u32 %v12673_v22, %v12669_v1 }
 0x655   : > { %12825 = vst [vmem:[%s18737_s20 + $0x80] sm:$0xff] %v12793_v46  ;;  %v12794_v62 = vmax.f32 %v12762_v20, 0.0  ;;  %v12198_v23 = vmul.f32 %v18678_v38, %v11996_v58  ;;  %v15258_v31 = vpop.f32.mrb[22].mxu1  ;;  %v12608_v54 = vsel %vm16396_vm2, %v12603_v11, %v18846_v52  ;;  %v12677_v29 = vshll.u32 %v13932_v13, 16 }
 0x656   : > { %12828 = vst [vmem:[%s18737_s20 + $0x98] sm:$0xff] %v12796_v48  ;;  %v12239_v26 = vadd.f32 %v18697_v56, %v12200_v10  ;;  %v12201_v39 = vmul.f32 %v15258_v31, %v18678_v38  ;;  %v11999_v15 = vpop.f32.mrb[23].mxu1  ;;  %v12740_v0 = vunpack.c.l.bf16 %v12632_v57  ;;  %v12738_v53 = vunpack.c.l.bf16 %v12608_v54 }
 0x657   : > { %12826 = vst [vmem:[%s18737_s20 + $0x88] sm:$0xff] %v12794_v62  ;;  %v12237_v45 = vadd.f32 %v18697_v56, %v12198_v23  ;;  %v12199_v9 = vmul.f32 %v18678_v38, %v11999_v15  ;;  %v12675_v46 = vrot.slane %v12674_v36, 4  ;;  %v12679_v20 = vrot.slane %v12677_v29, 5 }
 0x658   : > { %v12767_v2 = vadd.f32 %v18766_v8, %v12239_v26  ;;  %v12240_v33 = vadd.f32 %v18697_v56, %v12201_v39  ;;  %v13929_v8 = vld [vmem:[%s16315_s8 + $0xbc] sm:$0x1]  ;;  %s13970_s8 = sshll.u32 %s16239_s28, 12  ;;  %s18946_s28 = scalar_lea.sflag [#allocation6], %s284_s14 }
 0x659   : > { %v12765_v4 = vadd.f32 %v18808_v37, %v12237_v45  ;;  %v12238_v25 = vadd.f32 %v18697_v56, %v12199_v9  ;;  %v12640_v37 = vor.u32 %v12639_v27, %v12636_v30  ;;  %v12653_v50 = vshll.u32 %v13929_v8, 16  ;;  %s18937_s15 = scalar_lea.hbm %s18994_s7, %s13970_s8 }
 0x65a   : > { %v12799_v5 = vmax.f32 %v12767_v2, 0.0  ;;  %v12768_v44 = vadd.f32 %v18810_v19, %v12240_v33  ;;  %v12650_v19 = vor.u32 %v12649_v49, %v18879_v7  ;;  %v12680_v26 = vsel %vm16396_vm2, %v12675_v46, %v12679_v20 }
 0x65b   : > { %v12797_v43 = vmax.f32 %v12765_v4, 0.0  ;;  %v12766_v17 = vadd.f32 %v18815_v21, %v12238_v25  ;;  %v15261_v61 = vpop.f32.mrb[24].mxu1  ;;  %v12665_v21 = vrot.slane %v12664_v41, 4  ;;  %v12641_v32 = vrot.slane %v12640_v37, 4 }
 0x65c   : > { %12831 = vst [vmem:[%s18737_s20 + $0xb0] sm:$0xff] %v12799_v5  ;;  %v12800_v24 = vmax.f32 %v12768_v44, 0.0  ;;  %v12204_v16 = vmul.f32 %v15261_v61, %v18678_v38  ;;  %v12012_v6 = vpop.f32.mrb[25].mxu1  ;;  %v12651_v55 = vrot.slane %v12650_v19, 4  ;;  %v12655_v48 = vrot.slane %v12653_v50, 5 }
 0x65d   : > { %12829 = vst [vmem:[%s18737_s20 + $0xa0] sm:$0xff] %v12797_v43  ;;  %v12798_v51 = vmax.f32 %v12766_v17, 0.0  ;;  %v12202_v52 = vmul.f32 %v18678_v38, %v12012_v6  ;;  %v15262_v18 = vpop.f32.mrb[26].mxu1  ;;  %v12670_v40 = vsel %vm16396_vm2, %v12665_v21, %v12669_v1  ;;  %v12646_v23 = vsel %vm16396_vm2, %v12641_v32, %v18879_v7 }
 0x65e   : > { %12832 = vst [vmem:[%s18737_s20 + $0xb8] sm:$0xff] %v12800_v24  ;;  %v12243_v3 = vadd.f32 %v18697_v56, %v12204_v16  ;;  %v12205_v63 = vmul.f32 %v15262_v18, %v18678_v38  ;;  %v12015_v14 = vpop.f32.mrb[27].mxu1  ;;  %v12743_v15 = vunpack.c.l.bf16 %v12670_v40  ;;  %v12656_v27 = vsel %vm16396_vm2, %v12651_v55, %v12655_v48 }
 0x65f   : > { %12830 = vst [vmem:[%s18737_s20 + $0xa8] sm:$0xff] %v12798_v51  ;;  %v12241_v47 = vadd.f32 %v18697_v56, %v12202_v52  ;;  %v12203_v35 = vmul.f32 %v18678_v38, %v12015_v14  ;;  %v12741_v1 = vunpack.c.l.bf16 %v12646_v23  ;;  %v12744_v7 = vunpack.c.l.bf16 %v12680_v26 }
 0x660   : > { %v12771_v34 = vadd.f32 %v18839_v60, %v12243_v3  ;;  %v12244_v59 = vadd.f32 %v18697_v56, %v12205_v63  ;;  %v12742_v4 = vunpack.c.l.bf16 %v12656_v27 }
 0x661   : > { %v12769_v10 = vadd.f32 %v12737_v28, %v12241_v47  ;;  %v12242_v58 = vadd.f32 %v18697_v56, %v12203_v35 }
 0x662   : > { %v12803_v42 = vmax.f32 %v12771_v34, 0.0  ;;  %v12772_v62 = vadd.f32 %v12740_v0, %v12244_v59 }
 0x663   : > { %v12801_v31 = vmax.f32 %v12769_v10, 0.0  ;;  %v12770_v60 = vadd.f32 %v12738_v53, %v12242_v58  ;;  %v15265_v11 = vpop.f32.mrb[28].mxu1 }
 0x664   : > { %12835 = vst [vmem:[%s18737_s20 + $0xd0] sm:$0xff] %v12803_v42  ;;  %v12804_v28 = vmax.f32 %v12772_v62, 0.0  ;;  %v12208_v39 = vmul.f32 %v15265_v11, %v18678_v38  ;;  %v12028_v30 = vpop.f32.mrb[29].mxu1 }
 0x665   : > { %12833 = vst [vmem:[%s18737_s20 + $0xc0] sm:$0xff] %v12801_v31  ;;  %v12802_v45 = vmax.f32 %v12770_v60, 0.0  ;;  %v12206_v9 = vmul.f32 %v18678_v38, %v12028_v30  ;;  %v15266_v22 = vpop.f32.mrb[30].mxu1 }
 0x666   : > { %12836 = vst [vmem:[%s18737_s20 + $0xd8] sm:$0xff] %v12804_v28  ;;  %v12247_v2 = vadd.f32 %v18697_v56, %v12208_v39  ;;  %v12209_v33 = vmul.f32 %v15266_v22, %v18678_v38  ;;  %v12031_v13 = vpop.f32.mrb[31].mxu1 }
 0x667   : > { %12834 = vst [vmem:[%s18737_s20 + $0xc8] sm:$0xff] %v12802_v45  ;;  %v12245_v12 = vadd.f32 %v18697_v56, %v12206_v9  ;;  %v12207_v49 = vmul.f32 %v18678_v38, %v12031_v13 }
 0x668   : > { %v12775_v25 = vadd.f32 %v12743_v15, %v12247_v2  ;;  %v12248_v57 = vadd.f32 %v18697_v56, %v12209_v33 }
 0x669   : > { %v12773_v41 = vadd.f32 %v12741_v1, %v12245_v12  ;;  %v12246_v8 = vadd.f32 %v18697_v56, %v12207_v49 }
 0x66a   : > { %v12807_v5 = vmax.f32 %v12775_v25, 0.0  ;;  %v12776_v44 = vadd.f32 %v12744_v7, %v12248_v57 }
 0x66b   : > { %v12805_v54 = vmax.f32 %v12773_v41, 0.0  ;;  %v12774_v37 = vadd.f32 %v12742_v4, %v12246_v8 }
 0x66c   : > { %12839 = vst [vmem:[%s18737_s20 + $0xf0] sm:$0xff] %v12807_v5  ;;  %v12808_v38 = vmax.f32 %v12776_v44, 0.0 }
 0x66d   : > { %12837 = vst [vmem:[%s18737_s20 + $0xe0] sm:$0xff] %v12805_v54  ;;  %v12806_v56 = vmax.f32 %v12774_v37, 0.0 }
 0x66e   : > { %12840 = vst [vmem:[%s18737_s20 + $0xf8] sm:$0xff] %v12808_v38 }
 0x66f   : > { %12838 = vst [vmem:[%s18737_s20 + $0xe8] sm:$0xff] %v12806_v56 }
 0x670   : > { %16116 = shalt.err (!%p16113_p7)
}
 0x671   : > { %s16117_s14 = scalar_lea.hbm %s18937_s15, 4096  ;;  %s16121_s19 = scalar_lea.hbm %s18994_s7, 8192 }
 0x672   : > { %p16118_p8 = scmp.ne.s32.totalorder %s18937_s15, %s16117_s14  ;;  %p16122_p1 = scmp.lt.u32.totalorder %s18937_s15, %s18994_s7 }
 0x673   : > { %p16123_p0 = scmp.lt.u32.totalorder %s16121_s19, %s16117_s14  ;;  %p16125_p6 = scmp.lt.u32.totalorder %s16117_s14, %s18937_s15 }
 0x674   : > { %p16119_p11 = pnand %p16118_p8, %p19017_p9 }
 0x675   : > { %p16124_p5 = por %p16123_p0, %p16122_p1 }
 0x676   : > { %p16120_p13 = pneg %p16119_p11 }
 0x677   : > { %p16126_p10 = por %p16125_p6, %p16124_p5 }
 0x679   : > { %p16127_p12 = pnand %p16126_p10, %p16120_p13 }
 0x67b   : > { %16130 = shalt.err (!%p16127_p12)
}
 0x67c   : > { %s16176_s21 = smov 128   ;;  %s16177_s13 = smov 8  }
 0x67d   : > { %15784 = dma.vmem_to_hbm [thread:$0]  (%p19017_p9), %s18939_s16, 4096, %s18937_s15, %s18946_s28, %s16176_s21, %s16176_s21, %s16177_s13  }
 0x67e PF: > { %p15796_p2 = scmp.ge.s32.totalorder %s16169_s27, 2  ;;  %s12870_s22 = sand.u32 1, %s16157_s24  }
 0x67f   : > { %p19018_p3 = scmp.ne.s32.totalorder %s18999_s12, 0  ;;  %s12871_s23 = scalar_lea.sflag [#allocation6], %s12870_s22 }
 0x681   : > { %p15791_p4 = pnand %p15796_p2, %p19018_p3 }
 0x683   : > { %16152 = dma.done.wait (!%p15791_p4), %s12871_s23, 4096  }
 0x684   : > { %16154 = vsyncadd (!%p15791_p4), %s12871_s23, 4294963200  ;;  %p18_p7 = scmp.ge.s32.totalorder %s16243_s30, 4   ;;  %s19019_s24 = smov %s16161_s25 }
 0x685   : > { %s19020_s25 = smov %s16165_s26  ;;  %s19021_s26 = smov %s16254_s10 }
 0x686   : > { %s19022_s27 = smov %s16243_s30  ;;  %20 = sbr.rel (!%p18_p7) target bundleno = 4 (0x4), region = 109 }
 0x68d   :  { %12876 = vsyncpa [#allocation5], 1 }
 0x68e   :  { %12878 = vsyncpa [#allocation5 + $0x1], 1 }
 0x68f   :  { %12879 = vsyncpa [#allocation6], 1 }
 0x690   :  { %12881 = vsyncpa [#allocation6 + $0x1], 1 }

</bundles_post_ra>
